<compile_context>
chip_gen: v7x
topology: tpu7x:2x2x1
jax: 0.10.0
libtpu: 0.0.40
codegen_flags: <defaults>
</compile_context>

<pallas_src>
import functools

import jax
import jax.numpy as jnp
from jax import lax
from jax.experimental import pallas as pl
from jax.experimental.pallas import tpu as pltpu


def _ceil_to(v, m):
    return -(-v // m) * m


def _num_combines(k):
    """Shift+op steps the doubling sliding-window reduction needs for window k."""
    n, w = 0, 1
    while 2 * w <= k:
        n += 1
        w *= 2
    if w < k:
        n += 1
    return n


def _sliding_reduce(get, n, k, axis, op):
    """Stride-1 sliding min/max of window k along `axis` of length n (doubling scheme).

    `get(start, size)` supplies the level-0 data (it may read straight from a Ref so
    the full block never has to live in vregs). A window-w result combined with itself
    shifted by s (s <= w) gives a window-(w+s) result; overlap is harmless because
    min/max are idempotent, so the composition is bit-exact.
    """
    if k == 1:
        return get(0, n)

    def sl(a, start, size):
        idx = [slice(None)] * a.ndim
        idx[axis] = slice(start, start + size)
        return a[tuple(idx)]

    size = n - 1                       # window 1 -> 2, reading from `get`
    cur = op(get(0, size), get(1, size))
    win = 2
    while 2 * win <= k:                # window 2 -> 4 -> 8 -> 16 ...
        size = n - 2 * win + 1
        cur = op(sl(cur, 0, size), sl(cur, win, size))
        win *= 2
    if win < k:                        # one residual shift (k - win <= win)
        size = n - k + 1
        cur = op(sl(cur, 0, size), sl(cur, k - win, size))
    return cur


def _make_opening_kernel(h, w, pad, k_eff, left_off):
    hp, wp = h + 2 * pad, w + 2 * pad
    col0 = left_off - pad              # first column of the padded image inside scratch
    h_e, w_e = hp - k_eff + 1, wp - k_eff + 1

    def kernel(x_ref, o_ref, pad_ref):
        dt = pad_ref.dtype
        wp2 = pad_ref.shape[1]
        b = pad_ref.shape[2]

        # +inf border (identity for min), written as four thin strips only.  It is
        # rewritten every grid step: with a "parallel" grid each TensorCore owns its
        # own scratch, so a program_id==0 guard could leave a core's border
        # uninitialised.  The strips are tiny vs. the interior, so this is cheap.
        pad_ref[0:pad, :, :] = jnp.full((pad, wp2, b), jnp.inf, dt)
        pad_ref[pad + h:hp, :, :] = jnp.full((pad, wp2, b), jnp.inf, dt)
        pad_ref[pad:pad + h, 0:left_off, :] = jnp.full((h, left_off, b), jnp.inf, dt)
        pad_ref[pad:pad + h, left_off + w:left_off + w + pad, :] = (
            jnp.full((h, pad, b), jnp.inf, dt))
        # Interior: sublane-aligned store (column offset `left_off` is a multiple of 8).
        pad_ref[pad:pad + h, left_off:left_off + w, :] = x_ref[...]

        # Erosion: ONE composed min-pool of window k_eff (rows, then columns).
        # Level-0 of the row pass reads straight from the scratch ref.
        er = _sliding_reduce(
            lambda s, z: pad_ref[s:s + z, col0:col0 + wp, :],
            hp, k_eff, 0, jnp.minimum)                                     # (h_e, wp, b)
        ero = _sliding_reduce(
            lambda s, z: er[:, s:s + z, :], wp, k_eff, 1, jnp.minimum)     # (h_e, w_e, b)

        # Dilation: ONE composed max-pool of window k_eff, no padding.
        dh = _sliding_reduce(
            lambda s, z: ero[s:s + z, :, :], h_e, k_eff, 0, jnp.maximum)   # (h_o, w_e, b)
        out = _sliding_reduce(
            lambda s, z: dh[:, s:s + z, :], w_e, k_eff, 1, jnp.maximum)    # (h_o, w_o, b)

        o_ref[...] = out

    return kernel


@functools.partial(jax.jit, static_argnames=("n_iters", "k_size"))
def morphological_opening(x, n_iters=2, k_size=10):
    """x: NCHW float tensor. Returns dilation(erosion(x)) exactly as the torch module."""
    assert jnp.issubdtype(x.dtype, jnp.floating), "float dtype required (+/-inf identity)"
    n, c, h, w = x.shape
    nc = n * c

    pad = n_iters                              # erosion: padding=1 per iteration
    k_eff = n_iters * (k_size - 1) + 1         # composed stride-1 window (exact)

    hp, wp = h + 2 * pad, w + 2 * pad
    h_e, w_e = hp - k_eff + 1, wp - k_eff + 1          # after erosion
    h_o, w_o = h_e - k_eff + 1, w_e - k_eff + 1        # after dilation
    assert min(h_e, w_e, h_o, w_o) >= 1, "pooling window larger than input"

    left_off = _ceil_to(pad, 8)                # sublane-aligned interior column start
    wp2 = left_off + w + pad                   # scratch width (cols < left_off-pad dead)

    # Channels-last: flattened N*C goes on the 128-lane axis.
    y = jnp.transpose(x.reshape(nc, h, w), (1, 2, 0))          # (h, w, nc)

    # VMEM-budgeted lane-block size: 2x double-buffered input, 2x output, the padded
    # scratch and ~3 live doubling temporaries per lane.
    itemsize = jnp.dtype(x.dtype).itemsize
    per_lane_bytes = itemsize * (2 * h * w + 2 * h_o * w_o + hp * wp2 + 3 * hp * wp)
    budget = 16 * 1024 * 1024
    if nc <= 128:
        b = nc                                  # full lane dim (satisfies layout rule)
    else:
        b = max(128, (budget // per_lane_bytes) // 128 * 128)
        b = min(b, _ceil_to(nc, 128))
        if b >= nc:                             # single block: split so both v7x TCs work
            b = max(128, _ceil_to(pl.cdiv(nc, 2), 128))
    n_blocks = pl.cdiv(nc, b)

    vmem_limit = int(min(max(32 << 20, per_lane_bytes * b + (4 << 20)), 64 << 20))

    kernel = _make_opening_kernel(h, w, pad, k_eff, left_off)

    ncmb = _num_combines(k_eff)
    bytes_acc = (nc * h * w + nc * h_o * w_o) * itemsize
    flops = 4 * nc * hp * wp * ncmb            # rough min/max element-op count (no MXU)

    out = pl.pallas_call(
        kernel,
        out_shape=jax.ShapeDtypeStruct((h_o, w_o, nc), y.dtype),
        grid=(n_blocks,),
        in_specs=[pl.BlockSpec((h, w, b), lambda i: (0, 0, i))],
        out_specs=pl.BlockSpec((h_o, w_o, b), lambda i: (0, 0, i)),
        scratch_shapes=[pltpu.VMEM((hp, wp2, b), y.dtype)],
        compiler_params=pltpu.CompilerParams(
            dimension_semantics=("parallel",),
            vmem_limit_bytes=vmem_limit),
        cost_estimate=pl.CostEstimate(
            flops=flops, transcendentals=0, bytes_accessed=bytes_acc),
    )(y)

    out = jnp.transpose(out, (2, 0, 1))                        # (nc, h_o, w_o)
    return out.reshape(n, c, h_o, w_o)


def _reference(x, n_iters=2, k_size=10):
    """Pure-JAX reference mirroring torch MaxPool2d (-inf padding) semantics, iteratively."""
    win = (1, 1, k_size, k_size)
    ones = (1, 1, 1, 1)
    y = x
    for _ in range(n_iters):  # erosion
        y = -lax.reduce_window(-y, -jnp.inf, lax.max, win, ones,
                               [(0, 0), (0, 0), (1, 1), (1, 1)])
    for _ in range(n_iters):  # dilation
        y = lax.reduce_window(y, -jnp.inf, lax.max, win, ones,
                              [(0, 0), (0, 0), (0, 0), (0, 0)])
    return y


if __name__ == "__main__":
    key = jax.random.PRNGKey(0)
    # k=10, n_iters=2 needs H,W >= 33; use 40:
    # erosion (pad=1): 40 -> 33 -> 26 ; dilation (pad=0): 26 -> 17 -> 8
    x = jax.random.normal(key, (2, 4, 40, 40), dtype=jnp.float32)

    out = jax.block_until_ready(morphological_opening(x, n_iters=2, k_size=10))
    ref = jax.block_until_ready(_reference(x, n_iters=2, k_size=10))

    assert out.shape == (2, 4, 8, 8), out.shape
    assert jnp.allclose(out, ref), "mismatch vs reduce_window reference"
    print("KERNEL_OK")
</pallas_src>

<mosaic_0001>
module attributes {stable_mosaic.version = 11 : i64} {
  func.func @kernel(%arg0: i32, %arg1: memref<40x40x8xf32, #tpu.memory_space<vmem>>, %arg2: memref<8x8x8xf32, #tpu.memory_space<vmem>>, %arg3: memref<44x50x8xf32, #tpu.memory_space<vmem>>) attributes {dimension_semantics = [#tpu.dimension_semantics<parallel>], iteration_bounds = array<i64: 1>, scalar_prefetch = 0 : i64, scratch_operands = 1 : i64, tpu.core_type = #tpu.core_type<tc>, window_params = [{transform_indices = @transform_0, window_bounds = array<i64: 40, 40, 8>}, {transform_indices = @transform_1, window_bounds = array<i64: 8, 8, 8>}]} {
    %cst = arith.constant 0x7F800000 : f32
    %0 = vector.broadcast %cst : f32 to vector<2x50x8xf32>
    %c0 = arith.constant 0 : index
    %c0_0 = arith.constant 0 : index
    %c0_1 = arith.constant 0 : index
    %1 = vector.load %arg3[%c0, %c0_0, %c0_1] : memref<44x50x8xf32, #tpu.memory_space<vmem>>, vector<2x50x8xf32>
    tpu.vector_store %arg3[%c0, %c0_0, %c0_1], %0 {strides = array<i32>} : memref<44x50x8xf32, #tpu.memory_space<vmem>>, vector<2x50x8xf32>,
    %cst_2 = arith.constant 0x7F800000 : f32
    %2 = vector.broadcast %cst_2 : f32 to vector<2x50x8xf32>
    %c42 = arith.constant 42 : index
    %c0_3 = arith.constant 0 : index
    %c0_4 = arith.constant 0 : index
    %3 = vector.load %arg3[%c42, %c0_3, %c0_4] : memref<44x50x8xf32, #tpu.memory_space<vmem>>, vector<2x50x8xf32>
    tpu.vector_store %arg3[%c42, %c0_3, %c0_4], %2 {strides = array<i32>} : memref<44x50x8xf32, #tpu.memory_space<vmem>>, vector<2x50x8xf32>,
    %cst_5 = arith.constant 0x7F800000 : f32
    %4 = vector.broadcast %cst_5 : f32 to vector<40x8x8xf32>
    %c2 = arith.constant 2 : index
    %c0_6 = arith.constant 0 : index
    %c0_7 = arith.constant 0 : index
    %5 = vector.load %arg3[%c2, %c0_6, %c0_7] : memref<44x50x8xf32, #tpu.memory_space<vmem>>, vector<40x8x8xf32>
    tpu.vector_store %arg3[%c2, %c0_6, %c0_7], %4 {strides = array<i32>} : memref<44x50x8xf32, #tpu.memory_space<vmem>>, vector<40x8x8xf32>,
    %cst_8 = arith.constant 0x7F800000 : f32
    %6 = vector.broadcast %cst_8 : f32 to vector<40x2x8xf32>
    %c2_9 = arith.constant 2 : index
    %c48 = arith.constant 48 : index
    %c0_10 = arith.constant 0 : index
    %7 = vector.load %arg3[%c2_9, %c48, %c0_10] : memref<44x50x8xf32, #tpu.memory_space<vmem>>, vector<40x2x8xf32>
    tpu.vector_store %arg3[%c2_9, %c48, %c0_10], %6 {strides = array<i32>} : memref<44x50x8xf32, #tpu.memory_space<vmem>>, vector<40x2x8xf32>,
    %c0_11 = arith.constant 0 : index
    %c0_12 = arith.constant 0 : index
    %c0_13 = arith.constant 0 : index
    %8 = vector.load %arg1[%c0_11, %c0_12, %c0_13] : memref<40x40x8xf32, #tpu.memory_space<vmem>>, vector<40x40x8xf32>
    %c2_14 = arith.constant 2 : index
    %c8 = arith.constant 8 : index
    %c0_15 = arith.constant 0 : index
    %9 = vector.load %arg3[%c2_14, %c8, %c0_15] : memref<44x50x8xf32, #tpu.memory_space<vmem>>, vector<40x40x8xf32>
    tpu.vector_store %arg3[%c2_14, %c8, %c0_15], %8 {strides = array<i32>} : memref<44x50x8xf32, #tpu.memory_space<vmem>>, vector<40x40x8xf32>,
    %c0_16 = arith.constant 0 : index
    %c6 = arith.constant 6 : index
    %c0_17 = arith.constant 0 : index
    %10 = vector.load %arg3[%c0_16, %c6, %c0_17] : memref<44x50x8xf32, #tpu.memory_space<vmem>>, vector<43x44x8xf32>
    %c1 = arith.constant 1 : index
    %c6_18 = arith.constant 6 : index
    %c0_19 = arith.constant 0 : index
    %11 = vector.load %arg3[%c1, %c6_18, %c0_19] : memref<44x50x8xf32, #tpu.memory_space<vmem>>, vector<43x44x8xf32>
    %12 = arith.minimumf %10, %11 : vector<43x44x8xf32>
    %13 = vector.extract_strided_slice %12 {offsets = [0, 0, 0], sizes = [41, 44, 8], strides = [1, 1, 1]} : vector<43x44x8xf32> to vector<41x44x8xf32>
    %14 = vector.extract_strided_slice %12 {offsets = [2, 0, 0], sizes = [41, 44, 8], strides = [1, 1, 1]} : vector<43x44x8xf32> to vector<41x44x8xf32>
    %15 = arith.minimumf %13, %14 : vector<41x44x8xf32>
    %16 = vector.extract_strided_slice %15 {offsets = [0, 0, 0], sizes = [37, 44, 8], strides = [1, 1, 1]} : vector<41x44x8xf32> to vector<37x44x8xf32>
    %17 = vector.extract_strided_slice %15 {offsets = [4, 0, 0], sizes = [37, 44, 8], strides = [1, 1, 1]} : vector<41x44x8xf32> to vector<37x44x8xf32>
    %18 = arith.minimumf %16, %17 : vector<37x44x8xf32>
    %19 = vector.extract_strided_slice %18 {offsets = [0, 0, 0], sizes = [29, 44, 8], strides = [1, 1, 1]} : vector<37x44x8xf32> to vector<29x44x8xf32>
    %20 = vector.extract_strided_slice %18 {offsets = [8, 0, 0], sizes = [29, 44, 8], strides = [1, 1, 1]} : vector<37x44x8xf32> to vector<29x44x8xf32>
    %21 = arith.minimumf %19, %20 : vector<29x44x8xf32>
    %22 = vector.extract_strided_slice %21 {offsets = [0, 0, 0], sizes = [26, 44, 8], strides = [1, 1, 1]} : vector<29x44x8xf32> to vector<26x44x8xf32>
    %23 = vector.extract_strided_slice %21 {offsets = [3, 0, 0], sizes = [26, 44, 8], strides = [1, 1, 1]} : vector<29x44x8xf32> to vector<26x44x8xf32>
    %24 = arith.minimumf %22, %23 : vector<26x44x8xf32>
    %25 = vector.extract_strided_slice %24 {offsets = [0, 0, 0], sizes = [26, 43, 8], strides = [1, 1, 1]} : vector<26x44x8xf32> to vector<26x43x8xf32>
    %26 = vector.extract_strided_slice %24 {offsets = [0, 1, 0], sizes = [26, 43, 8], strides = [1, 1, 1]} : vector<26x44x8xf32> to vector<26x43x8xf32>
    %27 = arith.minimumf %25, %26 : vector<26x43x8xf32>
    %28 = vector.extract_strided_slice %27 {offsets = [0, 0, 0], sizes = [26, 41, 8], strides = [1, 1, 1]} : vector<26x43x8xf32> to vector<26x41x8xf32>
    %29 = vector.extract_strided_slice %27 {offsets = [0, 2, 0], sizes = [26, 41, 8], strides = [1, 1, 1]} : vector<26x43x8xf32> to vector<26x41x8xf32>
    %30 = arith.minimumf %28, %29 : vector<26x41x8xf32>
    %31 = vector.extract_strided_slice %30 {offsets = [0, 0, 0], sizes = [26, 37, 8], strides = [1, 1, 1]} : vector<26x41x8xf32> to vector<26x37x8xf32>
    %32 = vector.extract_strided_slice %30 {offsets = [0, 4, 0], sizes = [26, 37, 8], strides = [1, 1, 1]} : vector<26x41x8xf32> to vector<26x37x8xf32>
    %33 = arith.minimumf %31, %32 : vector<26x37x8xf32>
    %34 = vector.extract_strided_slice %33 {offsets = [0, 0, 0], sizes = [26, 29, 8], strides = [1, 1, 1]} : vector<26x37x8xf32> to vector<26x29x8xf32>
    %35 = vector.extract_strided_slice %33 {offsets = [0, 8, 0], sizes = [26, 29, 8], strides = [1, 1, 1]} : vector<26x37x8xf32> to vector<26x29x8xf32>
    %36 = arith.minimumf %34, %35 : vector<26x29x8xf32>
    %37 = vector.extract_strided_slice %36 {offsets = [0, 0, 0], sizes = [26, 26, 8], strides = [1, 1, 1]} : vector<26x29x8xf32> to vector<26x26x8xf32>
    %38 = vector.extract_strided_slice %36 {offsets = [0, 3, 0], sizes = [26, 26, 8], strides = [1, 1, 1]} : vector<26x29x8xf32> to vector<26x26x8xf32>
    %39 = arith.minimumf %37, %38 : vector<26x26x8xf32>
    %40 = vector.extract_strided_slice %39 {offsets = [0, 0, 0], sizes = [25, 26, 8], strides = [1, 1, 1]} : vector<26x26x8xf32> to vector<25x26x8xf32>
    %41 = vector.extract_strided_slice %39 {offsets = [1, 0, 0], sizes = [25, 26, 8], strides = [1, 1, 1]} : vector<26x26x8xf32> to vector<25x26x8xf32>
    %42 = arith.maximumf %40, %41 : vector<25x26x8xf32>
    %43 = vector.extract_strided_slice %42 {offsets = [0, 0, 0], sizes = [23, 26, 8], strides = [1, 1, 1]} : vector<25x26x8xf32> to vector<23x26x8xf32>
    %44 = vector.extract_strided_slice %42 {offsets = [2, 0, 0], sizes = [23, 26, 8], strides = [1, 1, 1]} : vector<25x26x8xf32> to vector<23x26x8xf32>
    %45 = arith.maximumf %43, %44 : vector<23x26x8xf32>
    %46 = vector.extract_strided_slice %45 {offsets = [0, 0, 0], sizes = [19, 26, 8], strides = [1, 1, 1]} : vector<23x26x8xf32> to vector<19x26x8xf32>
    %47 = vector.extract_strided_slice %45 {offsets = [4, 0, 0], sizes = [19, 26, 8], strides = [1, 1, 1]} : vector<23x26x8xf32> to vector<19x26x8xf32>
    %48 = arith.maximumf %46, %47 : vector<19x26x8xf32>
    %49 = vector.extract_strided_slice %48 {offsets = [0, 0, 0], sizes = [11, 26, 8], strides = [1, 1, 1]} : vector<19x26x8xf32> to vector<11x26x8xf32>
    %50 = vector.extract_strided_slice %48 {offsets = [8, 0, 0], sizes = [11, 26, 8], strides = [1, 1, 1]} : vector<19x26x8xf32> to vector<11x26x8xf32>
    %51 = arith.maximumf %49, %50 : vector<11x26x8xf32>
    %52 = vector.extract_strided_slice %51 {offsets = [0, 0, 0], sizes = [8, 26, 8], strides = [1, 1, 1]} : vector<11x26x8xf32> to vector<8x26x8xf32>
    %53 = vector.extract_strided_slice %51 {offsets = [3, 0, 0], sizes = [8, 26, 8], strides = [1, 1, 1]} : vector<11x26x8xf32> to vector<8x26x8xf32>
    %54 = arith.maximumf %52, %53 : vector<8x26x8xf32>
    %55 = vector.extract_strided_slice %54 {offsets = [0, 0, 0], sizes = [8, 25, 8], strides = [1, 1, 1]} : vector<8x26x8xf32> to vector<8x25x8xf32>
    %56 = vector.extract_strided_slice %54 {offsets = [0, 1, 0], sizes = [8, 25, 8], strides = [1, 1, 1]} : vector<8x26x8xf32> to vector<8x25x8xf32>
    %57 = arith.maximumf %55, %56 : vector<8x25x8xf32>
    %58 = vector.extract_strided_slice %57 {offsets = [0, 0, 0], sizes = [8, 23, 8], strides = [1, 1, 1]} : vector<8x25x8xf32> to vector<8x23x8xf32>
    %59 = vector.extract_strided_slice %57 {offsets = [0, 2, 0], sizes = [8, 23, 8], strides = [1, 1, 1]} : vector<8x25x8xf32> to vector<8x23x8xf32>
    %60 = arith.maximumf %58, %59 : vector<8x23x8xf32>
    %61 = vector.extract_strided_slice %60 {offsets = [0, 0, 0], sizes = [8, 19, 8], strides = [1, 1, 1]} : vector<8x23x8xf32> to vector<8x19x8xf32>
    %62 = vector.extract_strided_slice %60 {offsets = [0, 4, 0], sizes = [8, 19, 8], strides = [1, 1, 1]} : vector<8x23x8xf32> to vector<8x19x8xf32>
    %63 = arith.maximumf %61, %62 : vector<8x19x8xf32>
    %64 = vector.extract_strided_slice %63 {offsets = [0, 0, 0], sizes = [8, 11, 8], strides = [1, 1, 1]} : vector<8x19x8xf32> to vector<8x11x8xf32>
    %65 = vector.extract_strided_slice %63 {offsets = [0, 8, 0], sizes = [8, 11, 8], strides = [1, 1, 1]} : vector<8x19x8xf32> to vector<8x11x8xf32>
    %66 = arith.maximumf %64, %65 : vector<8x11x8xf32>
    %67 = vector.extract_strided_slice %66 {offsets = [0, 0, 0], sizes = [8, 8, 8], strides = [1, 1, 1]} : vector<8x11x8xf32> to vector<8x8x8xf32>
    %68 = vector.extract_strided_slice %66 {offsets = [0, 3, 0], sizes = [8, 8, 8], strides = [1, 1, 1]} : vector<8x11x8xf32> to vector<8x8x8xf32>
    %69 = arith.maximumf %67, %68 : vector<8x8x8xf32>
    %c0_20 = arith.constant 0 : index
    %c0_21 = arith.constant 0 : index
    %c0_22 = arith.constant 0 : index
    %70 = vector.load %arg2[%c0_20, %c0_21, %c0_22] : memref<8x8x8xf32, #tpu.memory_space<vmem>>, vector<8x8x8xf32>
    tpu.vector_store %arg2[%c0_20, %c0_21, %c0_22], %69 {strides = array<i32>} : memref<8x8x8xf32, #tpu.memory_space<vmem>>, vector<8x8x8xf32>,
    return
  }
  func.func @transform_0(%arg0: i32) -> (i32, i32, i32) {
    %c0_i32 = arith.constant 0 : i32
    %c0_i32_0 = arith.constant 0 : i32
    %c0_i32_1 = arith.constant 0 : i32
    return %c0_i32, %c0_i32_0, %arg0 : i32, i32, i32
  }
  func.func @transform_1(%arg0: i32) -> (i32, i32, i32) {
    %c0_i32 = arith.constant 0 : i32
    %c0_i32_0 = arith.constant 0 : i32
    %c0_i32_1 = arith.constant 0 : i32
    return %c0_i32, %c0_i32_0, %arg0 : i32, i32, i32
  }
}

</mosaic_0001>

<bundles_post_ra>
// kernel: morphological_opening.1
= control target key start
LH: loop header
LB: loop body
LE: loop exit
PB: predicated region body
PF: predicated region fallthrough
CT: control target
= control target key end

     0   :  { %vm8_vm0 = vcmask 64512   ;;  %vm15_vm1 = vcmask 58368   ;;  %v5739_v0 = vmov inf   ;;  %vm2249_vm2 = vcmask 1046528   ;;  %s15437_s0 = inlined_call_operand.vmem [shape: f32[40,40,8], index: 0, kind: input, shape index: {}]   ;;  %s15438_s1 = inlined_call_operand.vmem [shape: f32[8,8,8], index: 1, kind: output, shape index: {}]  }
   0x1   :  { %9 = vst.msk [vmem:[#allocation2] sm:$0xff] %vm8_vm0, %v5739_v0  ;;  %10 = vst.msk [vmem:[#allocation2 + $0x8] sm:$0xff] %vm8_vm0, %v5739_v0  ;;  %v120_v1 = vld [vmem:[%s15437_s0] sm:$0xff]  ;;  %v121_v2 = vld [vmem:[%s15437_s0 + $0x8] sm:$0xff]  ;;  %vm3004_vm3 = vcmask 1045504   ;;  %vm3759_vm4 = vcmask 1043456  }
   0x2   :  { %11 = vst.msk [vmem:[#allocation2 + $0x10] sm:$0xff] %vm8_vm0, %v5739_v0  ;;  %12 = vst.msk [vmem:[#allocation2 + $0x18] sm:$0xff] %vm8_vm0, %v5739_v0  ;;  %v122_v3 = vld [vmem:[%s15437_s0 + $0x10] sm:$0xff]  ;;  %v123_v4 = vld [vmem:[%s15437_s0 + $0x18] sm:$0xff]  ;;  %vm4514_vm5 = vcmask 1044480  }
   0x3   :  { %13 = vst.msk [vmem:[#allocation2 + $0x20] sm:$0xff] %vm8_vm0, %v5739_v0  ;;  %14 = vst.msk [vmem:[#allocation2 + $0x28] sm:$0xff] %vm8_vm0, %v5739_v0  ;;  %v124_v5 = vld [vmem:[%s15437_s0 + $0x20] sm:$0xff]  ;;  %v125_v6 = vld [vmem:[%s15437_s0 + $0x28] sm:$0xff] }
   0x4   :  { %17 = vst.msk [vmem:[#allocation2 + $0x38] sm:$0xff] %vm8_vm0, %v5739_v0  ;;  %18 = vst.msk [vmem:[#allocation2 + $0x40] sm:$0xff] %vm8_vm0, %v5739_v0  ;;  %v126_v7 = vld [vmem:[%s15437_s0 + $0x30] sm:$0xff]  ;;  %v127_v8 = vld [vmem:[%s15437_s0 + $0x38] sm:$0xff] }
   0x5   :  { %19 = vst.msk [vmem:[#allocation2 + $0x48] sm:$0xff] %vm8_vm0, %v5739_v0  ;;  %20 = vst.msk [vmem:[#allocation2 + $0x50] sm:$0xff] %vm8_vm0, %v5739_v0  ;;  %v128_v9 = vld [vmem:[%s15437_s0 + $0x40] sm:$0xff]  ;;  %v129_v10 = vld [vmem:[%s15437_s0 + $0x48] sm:$0xff] }
   0x6   :  { %21 = vst.msk [vmem:[#allocation2 + $0x58] sm:$0xff] %vm8_vm0, %v5739_v0  ;;  %22 = vst.msk [vmem:[#allocation2 + $0x60] sm:$0xff] %vm8_vm0, %v5739_v0  ;;  %v130_v11 = vld [vmem:[%s15437_s0 + $0x50] sm:$0xff]  ;;  %v131_v12 = vld [vmem:[%s15437_s0 + $0x58] sm:$0xff] }
   0x7   :  { %25 = vst.msk [vmem:[#allocation2 + $0x930] sm:$0xff] %vm8_vm0, %v5739_v0  ;;  %26 = vst.msk [vmem:[#allocation2 + $0x938] sm:$0xff] %vm8_vm0, %v5739_v0  ;;  %v132_v13 = vld [vmem:[%s15437_s0 + $0x60] sm:$0xff]  ;;  %v133_v14 = vld [vmem:[%s15437_s0 + $0x68] sm:$0xff] }
   0x8   :  { %27 = vst.msk [vmem:[#allocation2 + $0x940] sm:$0xff] %vm8_vm0, %v5739_v0  ;;  %28 = vst.msk [vmem:[#allocation2 + $0x948] sm:$0xff] %vm8_vm0, %v5739_v0  ;;  %v134_v15 = vld [vmem:[%s15437_s0 + $0x70] sm:$0xff]  ;;  %v135_v16 = vld [vmem:[%s15437_s0 + $0x78] sm:$0xff] }
   0x9   :  { %29 = vst.msk [vmem:[#allocation2 + $0x950] sm:$0xff] %vm8_vm0, %v5739_v0  ;;  %30 = vst.msk [vmem:[#allocation2 + $0x958] sm:$0xff] %vm8_vm0, %v5739_v0  ;;  %v136_v17 = vld [vmem:[%s15437_s0 + $0x80] sm:$0xff]  ;;  %v137_v18 = vld [vmem:[%s15437_s0 + $0x88] sm:$0xff] }
   0xa   :  { %32 = vst.msk [vmem:[#allocation2 + $0x968] sm:$0xff] %vm8_vm0, %v5739_v0  ;;  %33 = vst.msk [vmem:[#allocation2 + $0x970] sm:$0xff] %vm8_vm0, %v5739_v0  ;;  %v138_v19 = vld [vmem:[%s15437_s0 + $0x90] sm:$0xff]  ;;  %v139_v20 = vld [vmem:[%s15437_s0 + $0x98] sm:$0xff] }
   0xb   :  { %34 = vst.msk [vmem:[#allocation2 + $0x978] sm:$0xff] %vm8_vm0, %v5739_v0  ;;  %35 = vst.msk [vmem:[#allocation2 + $0x980] sm:$0xff] %vm8_vm0, %v5739_v0  ;;  %v140_v21 = vld [vmem:[%s15437_s0 + $0xa0] sm:$0xff]  ;;  %v6052_v23 = vld [vmem:[#allocation2 + $0xe] sm:$0xff] }
   0xc   :  { %36 = vst.msk [vmem:[#allocation2 + $0x988] sm:$0xff] %vm8_vm0, %v5739_v0  ;;  %37 = vst.msk [vmem:[#allocation2 + $0x990] sm:$0xff] %vm8_vm0, %v5739_v0  ;;  %v6050_v22 = vld [vmem:[#allocation2 + $0x6] sm:$0xff]  ;;  %v6054_v24 = vld [vmem:[#allocation2 + $0x16] sm:$0xff] }
   0xd   :  { %40 = vst.msk [vmem:[#allocation2 + $0x70] sm:$0xff] %vm8_vm0, %v5739_v0  ;;  %41 = vst.msk [vmem:[#allocation2 + $0xa8] sm:$0xff] %vm8_vm0, %v5739_v0  ;;  %v6056_v25 = vld [vmem:[#allocation2 + $0x1e] sm:$0xff]  ;;  %v6060_v27 = vld [vmem:[#allocation2 + $0x46] sm:$0xff] }
   0xe   :  { %42 = vst.msk [vmem:[#allocation2 + $0xe0] sm:$0xff] %vm8_vm0, %v5739_v0  ;;  %43 = vst.msk [vmem:[#allocation2 + $0x118] sm:$0xff] %vm8_vm0, %v5739_v0  ;;  %v6058_v26 = vld [vmem:[#allocation2 + $0x3e] sm:$0xff]  ;;  %v6062_v28 = vld [vmem:[#allocation2 + $0x4e] sm:$0xff]  ;;  %v1038_v54 = vmin.f32 %v6052_v23, %v6060_v27 }
   0xf   :  { %44 = vst.msk [vmem:[#allocation2 + $0x150] sm:$0xff] %vm8_vm0, %v5739_v0  ;;  %45 = vst.msk [vmem:[#allocation2 + $0x188] sm:$0xff] %vm8_vm0, %v5739_v0  ;;  %v6064_v29 = vld [vmem:[#allocation2 + $0x56] sm:$0xff]  ;;  %v6066_v30 = vld [vmem:[#allocation2 + $0x26] sm:$0xff]  ;;  %v1037_v53 = vmin.f32 %v6050_v22, %v6058_v26  ;;  %v1039_v55 = vmin.f32 %v6054_v24, %v6062_v28 }
  0x10   :  { %46 = vst.msk [vmem:[#allocation2 + $0x1c0] sm:$0xff] %vm8_vm0, %v5739_v0  ;;  %47 = vst.msk [vmem:[#allocation2 + $0x1f8] sm:$0xff] %vm8_vm0, %v5739_v0  ;;  %v6068_v31 = vld [vmem:[#allocation2 + $0x5e] sm:$0xff]  ;;  %v6070_v32 = vld [vmem:[#allocation2 + $0x936] sm:$0xff] }
  0x11   :  { %48 = vst.msk [vmem:[#allocation2 + $0x230] sm:$0xff] %vm8_vm0, %v5739_v0  ;;  %49 = vst.msk [vmem:[#allocation2 + $0x268] sm:$0xff] %vm8_vm0, %v5739_v0  ;;  %v6072_v33 = vld [vmem:[#allocation2 + $0x93e] sm:$0xff]  ;;  %v6074_v34 = vld [vmem:[#allocation2 + $0x96e] sm:$0xff] }
  0x12   :  { %50 = vst.msk [vmem:[#allocation2 + $0x2a0] sm:$0xff] %vm8_vm0, %v5739_v0  ;;  %51 = vst.msk [vmem:[#allocation2 + $0x2d8] sm:$0xff] %vm8_vm0, %v5739_v0  ;;  %v6076_v35 = vld [vmem:[#allocation2 + $0x976] sm:$0xff]  ;;  %v6078_v36 = vld [vmem:[#allocation2 + $0x946] sm:$0xff] }
  0x13   :  { %52 = vst.msk [vmem:[#allocation2 + $0x310] sm:$0xff] %vm8_vm0, %v5739_v0  ;;  %53 = vst.msk [vmem:[#allocation2 + $0x348] sm:$0xff] %vm8_vm0, %v5739_v0  ;;  %v6080_v37 = vld [vmem:[#allocation2 + $0x94e] sm:$0xff]  ;;  %v6082_v38 = vld [vmem:[#allocation2 + $0x97e] sm:$0xff] }
  0x14   :  { %54 = vst.msk [vmem:[#allocation2 + $0x380] sm:$0xff] %vm8_vm0, %v5739_v0  ;;  %55 = vst.msk [vmem:[#allocation2 + $0x3b8] sm:$0xff] %vm8_vm0, %v5739_v0  ;;  %v6084_v39 = vld [vmem:[#allocation2 + $0x986] sm:$0xff]  ;;  %v6088_v41 = vld [vmem:[#allocation2 + $0x956] sm:$0xff] }
  0x15   :  { %56 = vst.msk [vmem:[#allocation2 + $0x3f0] sm:$0xff] %vm8_vm0, %v5739_v0  ;;  %57 = vst.msk [vmem:[#allocation2 + $0x428] sm:$0xff] %vm8_vm0, %v5739_v0  ;;  %v6090_v42 = vld [vmem:[#allocation2 + $0x98e] sm:$0xff]  ;;  %v143_v62 = vld [vmem:[%s15437_s0 + $0xb8] sm:$0xff] }
  0x16   :  { %58 = vst.msk [vmem:[#allocation2 + $0x460] sm:$0xff] %vm8_vm0, %v5739_v0  ;;  %59 = vst.msk [vmem:[#allocation2 + $0x498] sm:$0xff] %vm8_vm0, %v5739_v0  ;;  %v142_v63 = vld [vmem:[%s15437_s0 + $0xb0] sm:$0xff]  ;;  %v145_v61 = vld [vmem:[%s15437_s0 + $0xc8] sm:$0xff] }
  0x17   :  { %60 = vst.msk [vmem:[#allocation2 + $0x4d0] sm:$0xff] %vm8_vm0, %v5739_v0  ;;  %61 = vst.msk [vmem:[#allocation2 + $0x508] sm:$0xff] %vm8_vm0, %v5739_v0 }
  0x18   :  { %62 = vst.msk [vmem:[#allocation2 + $0x540] sm:$0xff] %vm8_vm0, %v5739_v0  ;;  %63 = vst.msk [vmem:[#allocation2 + $0x578] sm:$0xff] %vm8_vm0, %v5739_v0 }
  0x19   :  { %64 = vst.msk [vmem:[#allocation2 + $0x5b0] sm:$0xff] %vm8_vm0, %v5739_v0  ;;  %65 = vst.msk [vmem:[#allocation2 + $0x5e8] sm:$0xff] %vm8_vm0, %v5739_v0 }
  0x1a   :  { %66 = vst.msk [vmem:[#allocation2 + $0x620] sm:$0xff] %vm8_vm0, %v5739_v0  ;;  %67 = vst.msk [vmem:[#allocation2 + $0x658] sm:$0xff] %vm8_vm0, %v5739_v0 }
  0x1b   :  { %68 = vst.msk [vmem:[#allocation2 + $0x690] sm:$0xff] %vm8_vm0, %v5739_v0  ;;  %69 = vst.msk [vmem:[#allocation2 + $0x6c8] sm:$0xff] %vm8_vm0, %v5739_v0 }
  0x1c   :  { %70 = vst.msk [vmem:[#allocation2 + $0x700] sm:$0xff] %vm8_vm0, %v5739_v0  ;;  %71 = vst.msk [vmem:[#allocation2 + $0x738] sm:$0xff] %vm8_vm0, %v5739_v0 }
  0x1d   :  { %72 = vst.msk [vmem:[#allocation2 + $0x770] sm:$0xff] %vm8_vm0, %v5739_v0  ;;  %73 = vst.msk [vmem:[#allocation2 + $0x7a8] sm:$0xff] %vm8_vm0, %v5739_v0 }
  0x1e   :  { %74 = vst.msk [vmem:[#allocation2 + $0x7e0] sm:$0xff] %vm8_vm0, %v5739_v0  ;;  %75 = vst.msk [vmem:[#allocation2 + $0x818] sm:$0xff] %vm8_vm0, %v5739_v0 }
  0x1f   :  { %76 = vst.msk [vmem:[#allocation2 + $0x850] sm:$0xff] %vm8_vm0, %v5739_v0  ;;  %77 = vst.msk [vmem:[#allocation2 + $0x888] sm:$0xff] %vm8_vm0, %v5739_v0 }
  0x20   :  { %78 = vst.msk [vmem:[#allocation2 + $0x8c0] sm:$0xff] %vm8_vm0, %v5739_v0  ;;  %79 = vst.msk [vmem:[#allocation2 + $0x8f8] sm:$0xff] %vm8_vm0, %v5739_v0 }
  0x21   :  { %16 = vst.msk [vmem:[#allocation2 + $0x30] sm:$0x3] %vm15_vm1, %v5739_v0  ;;  %23 = vst.msk [vmem:[#allocation2 + $0x68] sm:$0x3] %vm15_vm1, %v5739_v0 }
  0x22   :  { %31 = vst.msk [vmem:[#allocation2 + $0x960] sm:$0x3] %vm15_vm1, %v5739_v0  ;;  %38 = vst.msk [vmem:[#allocation2 + $0x998] sm:$0x3] %vm15_vm1, %v5739_v0 }
  0x23   :  { %80 = vst.msk [vmem:[#allocation2 + $0xa0] sm:$0x3] %vm15_vm1, %v5739_v0  ;;  %81 = vst.msk [vmem:[#allocation2 + $0xd8] sm:$0x3] %vm15_vm1, %v5739_v0 }
  0x24   :  { %82 = vst.msk [vmem:[#allocation2 + $0x110] sm:$0x3] %vm15_vm1, %v5739_v0  ;;  %83 = vst.msk [vmem:[#allocation2 + $0x148] sm:$0x3] %vm15_vm1, %v5739_v0 }
  0x25   :  { %84 = vst.msk [vmem:[#allocation2 + $0x180] sm:$0x3] %vm15_vm1, %v5739_v0  ;;  %85 = vst.msk [vmem:[#allocation2 + $0x1b8] sm:$0x3] %vm15_vm1, %v5739_v0 }
  0x26   :  { %86 = vst.msk [vmem:[#allocation2 + $0x1f0] sm:$0x3] %vm15_vm1, %v5739_v0  ;;  %87 = vst.msk [vmem:[#allocation2 + $0x228] sm:$0x3] %vm15_vm1, %v5739_v0 }
  0x27   :  { %88 = vst.msk [vmem:[#allocation2 + $0x260] sm:$0x3] %vm15_vm1, %v5739_v0  ;;  %89 = vst.msk [vmem:[#allocation2 + $0x298] sm:$0x3] %vm15_vm1, %v5739_v0 }
  0x28   :  { %90 = vst.msk [vmem:[#allocation2 + $0x2d0] sm:$0x3] %vm15_vm1, %v5739_v0  ;;  %91 = vst.msk [vmem:[#allocation2 + $0x308] sm:$0x3] %vm15_vm1, %v5739_v0  ;;  %v6092_v43 = vld [vmem:[#allocation2 + $0x2e] sm:$0xf] }
  0x29   :  { %92 = vst.msk [vmem:[#allocation2 + $0x340] sm:$0x3] %vm15_vm1, %v5739_v0  ;;  %93 = vst.msk [vmem:[#allocation2 + $0x378] sm:$0x3] %vm15_vm1, %v5739_v0  ;;  %v6094_v44 = vld [vmem:[#allocation2 + $0x95e] sm:$0xf] }
  0x2a   :  { %94 = vst.msk [vmem:[#allocation2 + $0x3b0] sm:$0x3] %vm15_vm1, %v5739_v0  ;;  %95 = vst.msk [vmem:[#allocation2 + $0x3e8] sm:$0x3] %vm15_vm1, %v5739_v0  ;;  %v6096_v45 = vld [vmem:[#allocation2 + $0x66] sm:$0xf] }
  0x2b   :  { %96 = vst.msk [vmem:[#allocation2 + $0x420] sm:$0x3] %vm15_vm1, %v5739_v0  ;;  %97 = vst.msk [vmem:[#allocation2 + $0x458] sm:$0x3] %vm15_vm1, %v5739_v0  ;;  %v6098_v46 = vld [vmem:[#allocation2 + $0x996] sm:$0xf] }
  0x2c   :  { %98 = vst.msk [vmem:[#allocation2 + $0x490] sm:$0x3] %vm15_vm1, %v5739_v0  ;;  %99 = vst.msk [vmem:[#allocation2 + $0x4c8] sm:$0x3] %vm15_vm1, %v5739_v0  ;;  %v6118_v57 = vld [vmem:[#allocation2 + $0x66] sm:$0xf] }
  0x2d   :  { %100 = vst.msk [vmem:[#allocation2 + $0x500] sm:$0x3] %vm15_vm1, %v5739_v0  ;;  %101 = vst.msk [vmem:[#allocation2 + $0x538] sm:$0x3] %vm15_vm1, %v5739_v0 }
  0x2e   :  { %102 = vst.msk [vmem:[#allocation2 + $0x570] sm:$0x3] %vm15_vm1, %v5739_v0  ;;  %103 = vst.msk [vmem:[#allocation2 + $0x5a8] sm:$0x3] %vm15_vm1, %v5739_v0 }
  0x2f   :  { %104 = vst.msk [vmem:[#allocation2 + $0x5e0] sm:$0x3] %vm15_vm1, %v5739_v0  ;;  %105 = vst.msk [vmem:[#allocation2 + $0x618] sm:$0x3] %vm15_vm1, %v5739_v0 }
  0x30   :  { %106 = vst.msk [vmem:[#allocation2 + $0x650] sm:$0x3] %vm15_vm1, %v5739_v0  ;;  %107 = vst.msk [vmem:[#allocation2 + $0x688] sm:$0x3] %vm15_vm1, %v5739_v0 }
  0x31   :  { %108 = vst.msk [vmem:[#allocation2 + $0x6c0] sm:$0x3] %vm15_vm1, %v5739_v0  ;;  %109 = vst.msk [vmem:[#allocation2 + $0x6f8] sm:$0x3] %vm15_vm1, %v5739_v0 }
  0x32   :  { %110 = vst.msk [vmem:[#allocation2 + $0x730] sm:$0x3] %vm15_vm1, %v5739_v0  ;;  %111 = vst.msk [vmem:[#allocation2 + $0x768] sm:$0x3] %vm15_vm1, %v5739_v0 }
  0x33   :  { %112 = vst.msk [vmem:[#allocation2 + $0x7a0] sm:$0x3] %vm15_vm1, %v5739_v0  ;;  %113 = vst.msk [vmem:[#allocation2 + $0x7d8] sm:$0x3] %vm15_vm1, %v5739_v0 }
  0x34   :  { %114 = vst.msk [vmem:[#allocation2 + $0x810] sm:$0x3] %vm15_vm1, %v5739_v0  ;;  %115 = vst.msk [vmem:[#allocation2 + $0x848] sm:$0x3] %vm15_vm1, %v5739_v0 }
  0x35   :  { %116 = vst.msk [vmem:[#allocation2 + $0x880] sm:$0x3] %vm15_vm1, %v5739_v0  ;;  %117 = vst.msk [vmem:[#allocation2 + $0x8b8] sm:$0x3] %vm15_vm1, %v5739_v0 }
  0x36   :  { %118 = vst.msk [vmem:[#allocation2 + $0x8f0] sm:$0x3] %vm15_vm1, %v5739_v0  ;;  %119 = vst.msk [vmem:[#allocation2 + $0x928] sm:$0x3] %vm15_vm1, %v5739_v0 }
  0x37   :  { %320 = vst.msk [vmem:[#allocation2 + $0x78] sm:$0xff] %vm8_vm0, %v120_v1  ;;  %321 = vst.msk [vmem:[#allocation2 + $0x80] sm:$0xff] %vm8_vm0, %v121_v2 }
  0x38   :  { %322 = vst.msk [vmem:[#allocation2 + $0x88] sm:$0xff] %vm8_vm0, %v122_v3  ;;  %323 = vst.msk [vmem:[#allocation2 + $0x90] sm:$0xff] %vm8_vm0, %v123_v4 }
  0x39   :  { %324 = vst.msk [vmem:[#allocation2 + $0x98] sm:$0xff] %vm8_vm0, %v124_v5  ;;  %325 = vst.msk [vmem:[#allocation2 + $0xb0] sm:$0xff] %vm8_vm0, %v125_v6  ;;  %v141_v5 = vld [vmem:[%s15437_s0 + $0xa8] sm:$0xff] }
  0x3a   :  { %326 = vst.msk [vmem:[#allocation2 + $0xb8] sm:$0xff] %vm8_vm0, %v126_v7  ;;  %327 = vst.msk [vmem:[#allocation2 + $0xc0] sm:$0xff] %vm8_vm0, %v127_v8 }
  0x3b   :  { %328 = vst.msk [vmem:[#allocation2 + $0xc8] sm:$0xff] %vm8_vm0, %v128_v9  ;;  %329 = vst.msk [vmem:[#allocation2 + $0xd0] sm:$0xff] %vm8_vm0, %v129_v10 }
  0x3c   :  { %330 = vst.msk [vmem:[#allocation2 + $0xe8] sm:$0xff] %vm8_vm0, %v130_v11  ;;  %331 = vst.msk [vmem:[#allocation2 + $0xf0] sm:$0xff] %vm8_vm0, %v131_v12 }
  0x3d   :  { %332 = vst.msk [vmem:[#allocation2 + $0xf8] sm:$0xff] %vm8_vm0, %v132_v13  ;;  %333 = vst.msk [vmem:[#allocation2 + $0x100] sm:$0xff] %vm8_vm0, %v133_v14 }
  0x3e   :  { %334 = vst.msk [vmem:[#allocation2 + $0x108] sm:$0xff] %vm8_vm0, %v134_v15  ;;  %335 = vst.msk [vmem:[#allocation2 + $0x120] sm:$0xff] %vm8_vm0, %v135_v16  ;;  %v6086_v40 = vld [vmem:[#allocation2 + $0x76] sm:$0xff]  ;;  %v6100_v47 = vld [vmem:[#allocation2 + $0x7e] sm:$0xff] }
  0x3f   :  { %336 = vst.msk [vmem:[#allocation2 + $0x128] sm:$0xff] %vm8_vm0, %v136_v17  ;;  %337 = vst.msk [vmem:[#allocation2 + $0x130] sm:$0xff] %vm8_vm0, %v137_v18  ;;  %v6102_v48 = vld [vmem:[#allocation2 + $0x86] sm:$0xff]  ;;  %v6104_v50 = vld [vmem:[#allocation2 + $0x8e] sm:$0xff] }
  0x40   :  { %338 = vst.msk [vmem:[#allocation2 + $0x138] sm:$0xff] %vm8_vm0, %v138_v19  ;;  %339 = vst.msk [vmem:[#allocation2 + $0x140] sm:$0xff] %vm8_vm0, %v139_v20  ;;  %v538_v49 = vld [vmem:[#allocation2 + $0xae] sm:$0xff]  ;;  %v6120_v58 = vld [vmem:[#allocation2 + $0x96] sm:$0xff] }
  0x41   :  { %340 = vst.msk [vmem:[#allocation2 + $0x158] sm:$0xff] %vm8_vm0, %v140_v21  ;;  %16469 = vst [vmem:[#allocation3_spill] sm:$0xff] %v6070_v32  ;;  %v6106_v51 = vld [vmem:[#allocation2 + $0xb6] sm:$0xff]  ;;  %v6108_v52 = vld [vmem:[#allocation2 + $0xbe] sm:$0xff]  ;;  %v6131_v1 = vmin.f32 %v6086_v40, %v538_v49 }
  0x42   :  { %16470 = vst [vmem:[#allocation4_spill] sm:$0xff] %v6072_v33  ;;  %16471 = vst [vmem:[#allocation5_spill] sm:$0xff] %v6074_v34  ;;  %v6122_v59 = vld [vmem:[#allocation2 + $0x9e] sm:$0xf]  ;;  %v541_v60 = vld [vmem:[#allocation2 + $0xc6] sm:$0xff]  ;;  %v6139_v7 = vmin.f32 %v6100_v47, %v6106_v51  ;;  %v6143_v8 = vmin.f32 %v6102_v48, %v6108_v52 }
  0x43   :  { %16472 = vst [vmem:[#allocation6_spill] sm:$0xff] %v6076_v35  ;;  %16473 = vst [vmem:[#allocation7_spill] sm:$0xff] %v6078_v36  ;;  %v537_v0 = vld [vmem:[#allocation2 + $0x9e] sm:$0xf]  ;;  %v542_v2 = vld [vmem:[#allocation2 + $0xce] sm:$0xff]  ;;  %v6184_v24 = vmin.f32 %v1037_v53, %v6131_v1  ;;  %v6187_v15 = vmin.f32 %v6104_v50, %v541_v60 }
  0x44   :  { %16474 = vst [vmem:[#allocation8_spill] sm:$0xff] %v6080_v37  ;;  %16475 = vst [vmem:[#allocation9_spill] sm:$0xff] %v6082_v38  ;;  %v796_v3 = vld [vmem:[#allocation2 + $0xd6] sm:$0xf]  ;;  %v544_v4 = vld [vmem:[#allocation2 + $0xe6] sm:$0xff]  ;;  %v6190_v23 = vmin.f32 %v6120_v58, %v542_v2  ;;  %v6206_v56 = vmin.f32 %v1038_v54, %v6139_v7 }
  0x45   :  { %16476 = vst [vmem:[#allocation10_spill] sm:$0xff] %v6084_v39  ;;  %16477 = vst [vmem:[#allocation11_spill] sm:$0xff] %v6088_v41  ;;  %v545_v9 = vld [vmem:[#allocation2 + $0xee] sm:$0xff]  ;;  %v546_v10 = vld [vmem:[#allocation2 + $0xf6] sm:$0xff] }
  0x46   :  { %16478 = vst [vmem:[#allocation12_spill] sm:$0xff] %v6090_v42  ;;  %16479 = vst [vmem:[#allocation13_spill] sm:$0xff] %v6094_v44  ;;  %v6145_v11 = vld [vmem:[#allocation2 + $0xfe] sm:$0xff]  ;;  %v6147_v12 = vld [vmem:[#allocation2 + $0x106] sm:$0xff] }
  0x47   :  { %16480 = vst [vmem:[#allocation14_spill] sm:$0xff] %v6098_v46  ;;  %v543_v17 = vld [vmem:[#allocation2 + $0xd6] sm:$0xf]  ;;  %v802_v18 = vld [vmem:[#allocation2 + $0x10e] sm:$0xf]  ;;  %v6157_v19 = vld [vmem:[#allocation2 + $0x11e] sm:$0xff]  ;;  %v6209_v46 = vmin.f32 %v1039_v55, %v6143_v8 }
  0x48   :  { %v6159_v20 = vld [vmem:[#allocation2 + $0x126] sm:$0xff]  ;;  %v6161_v21 = vld [vmem:[#allocation2 + $0x12e] sm:$0xff]  ;;  %v6171_v13 = vld [vmem:[#allocation2 + $0x136] sm:$0xff]  ;;  %16481 = vst [vmem:[#allocation15_spill] sm:$0xff] %v6184_v24 }
  0x49   :  { %v6173_v6 = vld [vmem:[#allocation2 + $0x13e] sm:$0xff]  ;;  %v549_v22 = vld [vmem:[#allocation2 + $0x10e] sm:$0xf]  ;;  %v808_v16 = vld [vmem:[#allocation2 + $0x146] sm:$0xf]  ;;  %341 = vst.msk [vmem:[#allocation2 + $0x160] sm:$0xff] %vm8_vm0, %v141_v5  ;;  %v6211_v5 = vmin.f32 %v537_v0, %v796_v3  ;;  %v6237_v0 = vmin.f32 %v542_v2, %v6147_v12  ;;  %v6251_v2 = vmin.f32 %v543_v17, %v802_v18  ;;  %v6257_v3 = vmin.f32 %v545_v9, %v6159_v20 }
  0x4a   :  { %v6192_v14 = vld [vmem:[#allocation2 + $0x156] sm:$0xff]  ;;  %342 = vst.msk [vmem:[#allocation2 + $0x168] sm:$0xff] %vm8_vm0, %v142_v63  ;;  %v144_v53 = vld [vmem:[%s15437_s0 + $0xc0] sm:$0xff]  ;;  %16482 = vst [vmem:[#allocation16_spill] sm:$0xff] %v6206_v56  ;;  %v6213_v63 = vmin.f32 %v538_v49, %v544_v4  ;;  %v6228_v49 = vmin.f32 %v6106_v51, %v545_v9 }
  0x4b   :  { %16483 = vst [vmem:[#allocation17_spill] sm:$0xff] %v6209_v46  ;;  %343 = vst.msk [vmem:[#allocation2 + $0x170] sm:$0xff] %vm8_vm0, %v143_v62  ;;  %v146_v44 = vld [vmem:[%s15437_s0 + $0xd0] sm:$0xff]  ;;  %v147_v54 = vld [vmem:[%s15437_s0 + $0xd8] sm:$0xff]  ;;  %v6231_v62 = vmin.f32 %v6108_v52, %v546_v10 }
  0x4c   :  { %344 = vst.msk [vmem:[#allocation2 + $0x178] sm:$0xff] %vm8_vm0, %v144_v53  ;;  %345 = vst.msk [vmem:[#allocation2 + $0x190] sm:$0xff] %vm8_vm0, %v145_v61  ;;  %v148_v55 = vld [vmem:[%s15437_s0 + $0xe0] sm:$0xff]  ;;  %v6234_v61 = vmin.f32 %v541_v60, %v6145_v11  ;;  %v149_v51 = vld [vmem:[%s15437_s0 + $0xe8] sm:$0xff]  ;;  %v6260_v53 = vmin.f32 %v546_v10, %v6161_v21  ;;  %v16486_v10 = vmin.f32 %v6056_v25, %v6064_v29 }
  0x4d   :  { %16484 = vst [vmem:[#allocation18_spill] sm:$0xff] %v6237_v0  ;;  %346 = vst.msk [vmem:[#allocation2 + $0x198] sm:$0xff] %vm8_vm0, %v146_v44  ;;  %v150_v52 = vld [vmem:[%s15437_s0 + $0xf0] sm:$0xff]  ;;  %v151_v60 = vld [vmem:[%s15437_s0 + $0xf8] sm:$0xff]  ;;  %v6254_v44 = vmin.f32 %v544_v4, %v6157_v19 }
  0x4e   :  { %347 = vst.msk [vmem:[#allocation2 + $0x1a0] sm:$0xff] %vm8_vm0, %v147_v54  ;;  %348 = vst.msk [vmem:[#allocation2 + $0x1a8] sm:$0xff] %vm8_vm0, %v148_v55  ;;  %v152_v17 = vld [vmem:[%s15437_s0 + $0x100] sm:$0xff]  ;;  %v153_v4 = vld [vmem:[%s15437_s0 + $0x108] sm:$0xff]  ;;  %v6278_v18 = vmin.f32 %v16486_v10, %v6187_v15  ;;  %v16488_v54 = vmin.f32 %v6066_v30, %v6068_v31  ;;  %v6318_v10 = vmin.f32 %v549_v22, %v808_v16 }
  0x4f   :  { %16485 = vst [vmem:[#allocation19_spill] sm:$0xff] %v6251_v2  ;;  %349 = vst.msk [vmem:[#allocation2 + $0x1b0] sm:$0xff] %vm8_vm0, %v149_v51  ;;  %v154_v9 = vld [vmem:[%s15437_s0 + $0x110] sm:$0xff]  ;;  %v6288_v51 = vmin.f32 %v6145_v11, %v6171_v13  ;;  %v155_v25 = vld [vmem:[%s15437_s0 + $0x118] sm:$0xff] }
  0x50   :  { %350 = vst.msk [vmem:[#allocation2 + $0x1c8] sm:$0xff] %vm8_vm0, %v150_v52  ;;  %351 = vst.msk [vmem:[#allocation2 + $0x1d0] sm:$0xff] %vm8_vm0, %v151_v60  ;;  %v6284_v55 = vmin.f32 %v16488_v54, %v6190_v23  ;;  %v6292_v52 = vmin.f32 %v6147_v12, %v6173_v6  ;;  %v156_v30 = vld [vmem:[%s15437_s0 + $0x120] sm:$0xff]  ;;  %v157_v11 = vld [vmem:[%s15437_s0 + $0x128] sm:$0xff]  ;;  %v16490_v12 = vmin.f32 %v6092_v43, %v6096_v45 }
  0x51   :  { %16487 = vst [vmem:[#allocation20_spill] sm:$0xff] %v6278_v18  ;;  %352 = vst.msk [vmem:[#allocation2 + $0x1d8] sm:$0xff] %vm8_vm0, %v152_v17  ;;  %v16492_v17 = vmin.f32 %v6058_v26, %v6086_v40  ;;  %v6322_v54 = vmin.f32 %v6157_v19, %v6192_v14  ;;  %v158_v43 = vld [vmem:[%s15437_s0 + $0x130] sm:$0xff]  ;;  %v159_v26 = vld [vmem:[%s15437_s0 + $0x138] sm:$0xff]  ;;  %v16494_v45 = vmin.f32 %v6060_v27, %v6100_v47 }
  0x52   :  { %16489 = vst [vmem:[#allocation21_spill] sm:$0xff] %v6284_v55  ;;  %353 = vst.msk [vmem:[#allocation2 + $0x1e0] sm:$0xff] %vm8_vm0, %v153_v4  ;;  %v6310_v60 = vmin.f32 %v16490_v12, %v6211_v5  ;;  %v160_v40 = vld [vmem:[%s15437_s0 + $0x140] sm:$0xff]  ;;  %v16496_v19 = vmin.f32 %v6062_v28, %v6102_v48  ;;  %v161_v27 = vld [vmem:[%s15437_s0 + $0x148] sm:$0xff] }
  0x53   :  { %354 = vst.msk [vmem:[#allocation2 + $0x1e8] sm:$0xff] %vm8_vm0, %v154_v9  ;;  %v6316_v4 = vmin.f32 %v16492_v17, %v6213_v63  ;;  %v555_v9 = vld [vmem:[#allocation2 + $0x146] sm:$0xf]  ;;  %355 = vst.msk [vmem:[#allocation2 + $0x200] sm:$0xff] %vm8_vm0, %v155_v25  ;;  %v6340_v16 = vmin.f32 %v16494_v45, %v6228_v49  ;;  %v16498_v25 = vmin.f32 %v6064_v29, %v6104_v50  ;;  %v162_v28 = vld [vmem:[%s15437_s0 + $0x150] sm:$0xff] }
  0x54   :  { %16491 = vst [vmem:[#allocation22_spill] sm:$0xff] %v6310_v60  ;;  %356 = vst.msk [vmem:[#allocation2 + $0x208] sm:$0xff] %vm8_vm0, %v156_v30  ;;  %v6346_v22 = vmin.f32 %v16496_v19, %v6231_v62  ;;  %v163_v29 = vld [vmem:[%s15437_s0 + $0x158] sm:$0xff]  ;;  %v559_v19 = vld [vmem:[#allocation2 + $0x16e] sm:$0xff] }
  0x55   :  { %16493 = vst [vmem:[#allocation23_spill] sm:$0xff] %v6316_v4  ;;  %357 = vst.msk [vmem:[#allocation2 + $0x210] sm:$0xff] %vm8_vm0, %v157_v11  ;;  %v6352_v30 = vmin.f32 %v16498_v25, %v6234_v61  ;;  %v16500_v11 = vmin.f32 %v6068_v31, %v6120_v58  ;;  %v16502_v31 = vmin.f32 %v6118_v57, %v6122_v59  ;;  %v557_v17 = vld [vmem:[#allocation2 + $0x15e] sm:$0xff]  ;;  %v560_v25 = vld [vmem:[#allocation2 + $0x176] sm:$0xff] }
  0x56   :  { %16495 = vst [vmem:[#allocation24_spill] sm:$0xff] %v6340_v16  ;;  %16497 = vst [vmem:[#allocation25_spill] sm:$0xff] %v6346_v22  ;;  %v164_v57 = vld [vmem:[%s15437_s0 + $0x160] sm:$0xff]  ;;  %v566_v50 = vld [vmem:[#allocation2 + $0x1ae] sm:$0xff] }
  0x57   :  { %16499 = vst [vmem:[#allocation26_spill] sm:$0xff] %v6352_v30  ;;  %v6358_v12 = vmin.f32 %v16500_v11, %v6237_v0  ;;  %358 = vst.msk [vmem:[#allocation2 + $0x218] sm:$0xff] %vm8_vm0, %v158_v43  ;;  %v6376_v47 = vmin.f32 %v16502_v31, %v6251_v2  ;;  %v558_v43 = vld [vmem:[#allocation2 + $0x166] sm:$0xff]  ;;  %v561_v11 = vld [vmem:[#allocation2 + $0x17e] sm:$0xf]  ;;  %v6436_v39 = vmin.f32 %v560_v25, %v566_v50 }
  0x58   :  { %359 = vst.msk [vmem:[#allocation2 + $0x220] sm:$0xff] %vm8_vm0, %v159_v26  ;;  %360 = vst.msk [vmem:[#allocation2 + $0x238] sm:$0xff] %vm8_vm0, %v160_v40  ;;  %v6395_v40 = vmin.f32 %v6159_v20, %v557_v17  ;;  %v6398_v45 = vmin.f32 %v6161_v21, %v558_v43  ;;  %v814_v31 = vld [vmem:[#allocation2 + $0x17e] sm:$0xf]  ;;  %v6409_v20 = vmin.f32 %v6173_v6, %v560_v25  ;;  %v562_v21 = vld [vmem:[#allocation2 + $0x18e] sm:$0xff] }
  0x59   :  { %16501 = vst [vmem:[#allocation27_spill] sm:$0xff] %v6358_v12  ;;  %16503 = vst [vmem:[#allocation28_spill] sm:$0xff] %v6376_v47  ;;  %v563_v26 = vld [vmem:[#allocation2 + $0x196] sm:$0xff]  ;;  %v6415_v58 = vmin.f32 %v555_v9, %v814_v31  ;;  %v569_v6 = vld [vmem:[#allocation2 + $0x1ce] sm:$0xff]  ;;  %v6458_v38 = vmin.f32 %v6292_v52, %v6436_v39 }
  0x5a   :  { %361 = vst.msk [vmem:[#allocation2 + $0x240] sm:$0xff] %vm8_vm0, %v161_v27  ;;  %362 = vst.msk [vmem:[#allocation2 + $0x248] sm:$0xff] %vm8_vm0, %v162_v28  ;;  %v6418_v27 = vmin.f32 %v6192_v14, %v562_v21  ;;  %v564_v28 = vld [vmem:[#allocation2 + $0x19e] sm:$0xff]  ;;  %v6424_v42 = vmin.f32 %v557_v17, %v563_v26  ;;  %v820_v41 = vld [vmem:[#allocation2 + $0x1b6] sm:$0xf]  ;;  %v6460_v36 = vmin.f32 %v563_v26, %v569_v6 }
  0x5b   :  { %363 = vst.msk [vmem:[#allocation2 + $0x250] sm:$0xff] %vm8_vm0, %v163_v29  ;;  %364 = vst.msk [vmem:[#allocation2 + $0x258] sm:$0xff] %vm8_vm0, %v164_v57  ;;  %v6406_v29 = vmin.f32 %v6171_v13, %v559_v19  ;;  %v565_v13 = vld [vmem:[#allocation2 + $0x1a6] sm:$0xff]  ;;  %v6426_v59 = vmin.f32 %v558_v43, %v564_v28  ;;  %v6446_v48 = vmin.f32 %v561_v11, %v820_v41  ;;  %v570_v37 = vld [vmem:[#allocation2 + $0x1d6] sm:$0xff] }
  0x5c   :  { %16504 = vst [vmem:[#allocation29_spill] sm:$0xff] %v6409_v20  ;;  %v568_v57 = vld [vmem:[#allocation2 + $0x1c6] sm:$0xff]  ;;  %v6432_v14 = vmin.f32 %v6254_v44, %v6418_v27  ;;  %v6434_v31 = vmin.f32 %v559_v19, %v565_v13  ;;  %v6440_v17 = vmin.f32 %v6257_v3, %v6424_v42  ;;  %16509 = vst [vmem:[#allocation34_spill] sm:$0xff] %v6458_v38  ;;  %v571_v35 = vld [vmem:[#allocation2 + $0x1de] sm:$0xff] }
  0x5d   :  { %v6444_v43 = vmin.f32 %v6260_v53, %v6426_v59  ;;  %v6448_v9 = vmin.f32 %v562_v21, %v568_v57  ;;  %v6462_v33 = vld [vmem:[#allocation2 + $0x1e6] sm:$0xff]  ;;  %v567_v21 = vld [vmem:[#allocation2 + $0x1b6] sm:$0xf]  ;;  %v6470_v19 = vmin.f32 %v6318_v10, %v6446_v48  ;;  %v826_v26 = vld [vmem:[#allocation2 + $0x1ee] sm:$0xf]  ;;  %v6484_v11 = vmin.f32 %v6395_v40, %v6460_v36 }
  0x5e   :  { %16505 = vst [vmem:[#allocation30_spill] sm:$0xff] %v6432_v14  ;;  %16506 = vst [vmem:[#allocation31_spill] sm:$0xff] %v6440_v17  ;;  %v6454_v25 = vmin.f32 %v6288_v51, %v6434_v31  ;;  %v6476_v34 = vld [vmem:[#allocation2 + $0x1fe] sm:$0xff]  ;;  %v6486_v46 = vmin.f32 %v564_v28, %v570_v37  ;;  %v6488_v56 = vld [vmem:[#allocation2 + $0x206] sm:$0xff]  ;;  %v6496_v32 = vmin.f32 %v565_v13, %v571_v35 }
  0x5f   :  { %16507 = vst [vmem:[#allocation32_spill] sm:$0xff] %v6444_v43  ;;  %16510 = vst [vmem:[#allocation35_spill] sm:$0xff] %v6470_v19  ;;  %v6474_v24 = vmin.f32 %v6322_v54, %v6448_v9  ;;  %v6490_v43 = vld [vmem:[#allocation2 + $0x20e] sm:$0xff]  ;;  %v6499_v41 = vmin.f32 %v566_v50, %v6462_v33  ;;  %v6501_v55 = vld [vmem:[#allocation2 + $0x216] sm:$0xff]  ;;  %v6511_v60 = vmin.f32 %v567_v21, %v826_v26 }
  0x60   :  { %16508 = vst [vmem:[#allocation33_spill] sm:$0xff] %v6454_v25  ;;  %16512 = vst [vmem:[#allocation37_spill] sm:$0xff] %v6484_v11  ;;  %v6503_v18 = vld [vmem:[#allocation2 + $0x21e] sm:$0xff]  ;;  %v6509_v38 = vmin.f32 %v6398_v45, %v6486_v46  ;;  %v573_v17 = vld [vmem:[#allocation2 + $0x1ee] sm:$0xf]  ;;  %v6514_v13 = vmin.f32 %v568_v57, %v6476_v34  ;;  %v6523_v28 = vmin.f32 %v6406_v29, %v6496_v32 }
  0x61   :  { %16511 = vst [vmem:[#allocation36_spill] sm:$0xff] %v6474_v24  ;;  %v832_v14 = vld [vmem:[#allocation2 + $0x226] sm:$0xf]  ;;  %v6516_v50 = vld [vmem:[#allocation2 + $0x236] sm:$0xff]  ;;  %v6527_v16 = vmin.f32 %v6409_v20, %v6499_v41  ;;  %v6530_v21 = vmin.f32 %v569_v6, %v6488_v56  ;;  %v6533_v57 = vmin.f32 %v570_v37, %v6490_v43  ;;  %v6535_v26 = vld [vmem:[#allocation2 + $0x23e] sm:$0xff]  ;;  %v6553_v25 = vmin.f32 %v6415_v58, %v6511_v60 }
  0x62   :  { %16513 = vst [vmem:[#allocation38_spill] sm:$0xff] %v6509_v38  ;;  %16514 = vst [vmem:[#allocation39_spill] sm:$0xff] %v6514_v13  ;;  %v165_v4 = vld [vmem:[%s15437_s0 + $0x168] sm:$0xff]  ;;  %v166_v24 = vld [vmem:[%s15437_s0 + $0x170] sm:$0xff]  ;;  %v6560_v2 = vmin.f32 %v571_v35, %v6501_v55  ;;  %v6616_v12 = vmin.f32 %v6462_v33, %v6503_v18  ;;  %v16521_v33 = vmin.f32 %v6139_v7, %v6257_v3 }
  0x63   :  { %v6537_v11 = vld [vmem:[#allocation2 + $0x246] sm:$0xff]  ;;  %365 = vst.msk [vmem:[#allocation2 + $0x270] sm:$0xff] %vm8_vm0, %v165_v4  ;;  %v167_v19 = vld [vmem:[%s15437_s0 + $0x178] sm:$0xff]  ;;  %v6557_v4 = vmin.f32 %v6418_v27, %v6514_v13  ;;  %v6562_v20 = vld [vmem:[#allocation2 + $0x24e] sm:$0xff]  ;;  %v6646_v22 = vmin.f32 %v6476_v34, %v6516_v50  ;;  %v16525_v34 = vmin.f32 %v6187_v15, %v6288_v51 }
  0x64   :  { %v168_v6 = vld [vmem:[%s15437_s0 + $0x180] sm:$0xff]  ;;  %v6564_v0 = vld [vmem:[#allocation2 + $0x256] sm:$0xff]  ;;  %366 = vst.msk [vmem:[#allocation2 + $0x278] sm:$0xff] %vm8_vm0, %v166_v24  ;;  %367 = vst.msk [vmem:[#allocation2 + $0x280] sm:$0xff] %vm8_vm0, %v167_v19  ;;  %v6584_v19 = vmin.f32 %v6424_v42, %v6530_v21 }
  0x65   :  { %16515 = vst [vmem:[#allocation40_spill] sm:$0xff] %v6557_v4  ;;  %368 = vst.msk [vmem:[#allocation2 + $0x288] sm:$0xff] %vm8_vm0, %v168_v6  ;;  %v169_v37 = vld [vmem:[%s15437_s0 + $0x188] sm:$0xff]  ;;  %v170_v27 = vld [vmem:[%s15437_s0 + $0x190] sm:$0xff]  ;;  %v6588_v6 = vmin.f32 %v6426_v59, %v6533_v57 }
  0x66   :  { %v171_v35 = vld [vmem:[%s15437_s0 + $0x198] sm:$0xff]  ;;  %16516 = vst [vmem:[#allocation41_spill] sm:$0xff] %v6584_v19  ;;  %v579_v38 = vld [vmem:[#allocation2 + $0x226] sm:$0xf]  ;;  %369 = vst.msk [vmem:[#allocation2 + $0x290] sm:$0xff] %vm8_vm0, %v169_v37  ;;  %v16518_v37 = vmin.f32 %v6131_v1, %v6254_v44 }
  0x67   :  { %16517 = vst [vmem:[#allocation42_spill] sm:$0xff] %v6588_v6  ;;  %v838_v13 = vld [vmem:[#allocation2 + $0x25e] sm:$0xf]  ;;  %370 = vst.msk [vmem:[#allocation2 + $0x2a8] sm:$0xff] %vm8_vm0, %v170_v27  ;;  %v173_v42 = vld [vmem:[%s15437_s0 + $0x1a8] sm:$0xff] }
  0x68   :  { %371 = vst.msk [vmem:[#allocation2 + $0x2b0] sm:$0xff] %vm8_vm0, %v171_v35  ;;  %v172_v24 = vld [vmem:[%s15437_s0 + $0x1a0] sm:$0xff]  ;;  %v174_v59 = vld [vmem:[%s15437_s0 + $0x1b0] sm:$0xff]  ;;  %v6608_v27 = vmin.f32 %v16518_v37, %v6557_v4  ;;  %v6612_v35 = vmin.f32 %v6434_v31, %v6560_v2  ;;  %373 = vst.msk [vmem:[#allocation2 + $0x2c0] sm:$0xff] %vm8_vm0, %v173_v42  ;;  %v16523_v42 = vmin.f32 %v6143_v8, %v6260_v53 }
  0x69   :  { %372 = vst.msk [vmem:[#allocation2 + $0x2b8] sm:$0xff] %vm8_vm0, %v172_v24  ;;  %374 = vst.msk [vmem:[#allocation2 + $0x2c8] sm:$0xff] %vm8_vm0, %v174_v59  ;;  %v175_v1 = vld [vmem:[%s15437_s0 + $0x1b8] sm:$0xff]  ;;  %v176_v44 = vld [vmem:[%s15437_s0 + $0x1c0] sm:$0xff]  ;;  %v6634_v24 = vmin.f32 %v16521_v33, %v6584_v19  ;;  %v6642_v37 = vmin.f32 %v573_v17, %v832_v14  ;;  %v6668_v14 = vmin.f32 %v6436_v39, %v6616_v12 }
  0x6a   :  { %16519 = vst [vmem:[#allocation43_spill] sm:$0xff] %v6608_v27  ;;  %16520 = vst [vmem:[#allocation44_spill] sm:$0xff] %v6612_v35  ;;  %v177_v31 = vld [vmem:[%s15437_s0 + $0x1c8] sm:$0xff]  ;;  %v6640_v59 = vmin.f32 %v16523_v42, %v6588_v6  ;;  %v178_v7 = vld [vmem:[%s15437_s0 + $0x1d0] sm:$0xff]  ;;  %v6664_v53 = vmin.f32 %v16525_v34, %v6612_v35  ;;  %v6672_v17 = vmin.f32 %v6488_v56, %v6535_v26 }
  0x6b   :  { %16522 = vst [vmem:[#allocation45_spill] sm:$0xff] %v6634_v24  ;;  %375 = vst.msk [vmem:[#allocation2 + $0x2e0] sm:$0xff] %vm8_vm0, %v175_v1  ;;  %v179_v8 = vld [vmem:[%s15437_s0 + $0x1d8] sm:$0xff]  ;;  %v180_v3 = vld [vmem:[%s15437_s0 + $0x1e0] sm:$0xff]  ;;  %v6676_v1 = vmin.f32 %v6490_v43, %v6537_v11  ;;  %v6692_v51 = vmin.f32 %v6446_v48, %v6642_v37  ;;  %v6696_v43 = vmin.f32 %v6448_v9, %v6646_v22 }
  0x6c   :  { %16524 = vst [vmem:[#allocation46_spill] sm:$0xff] %v6640_v59  ;;  %376 = vst.msk [vmem:[#allocation2 + $0x2e8] sm:$0xff] %vm8_vm0, %v176_v44  ;;  %v181_v15 = vld [vmem:[%s15437_s0 + $0x1e8] sm:$0xff]  ;;  %v182_v39 = vld [vmem:[%s15437_s0 + $0x1f0] sm:$0xff]  ;;  %v6700_v44 = vmin.f32 %v6501_v55, %v6562_v20  ;;  %v6726_v42 = vmin.f32 %v6460_v36, %v6672_v17 }
  0x6d   :  { %377 = vst.msk [vmem:[#allocation2 + $0x2f0] sm:$0xff] %vm8_vm0, %v177_v31  ;;  %16526 = vst [vmem:[#allocation47_spill] sm:$0xff] %v6664_v53  ;;  %v183_v56 = vld [vmem:[%s15437_s0 + $0x1f8] sm:$0xff]  ;;  %v6704_v31 = vmin.f32 %v6503_v18, %v6564_v0  ;;  %v184_v48 = vld [vmem:[%s15437_s0 + $0x200] sm:$0xff]  ;;  %v16530_v18 = vmin.f32 %v6190_v23, %v6292_v52  ;;  %v16536_v52 = vmin.f32 %v6213_v63, %v6322_v54 }
  0x6e   :  { %16527 = vst [vmem:[#allocation48_spill] sm:$0xff] %v6668_v14  ;;  %378 = vst.msk [vmem:[#allocation2 + $0x2f8] sm:$0xff] %vm8_vm0, %v178_v7  ;;  %v185_v9 = vld [vmem:[%s15437_s0 + $0x208] sm:$0xff]  ;;  %v186_v55 = vld [vmem:[%s15437_s0 + $0x210] sm:$0xff]  ;;  %v6730_v7 = vmin.f32 %v6486_v46, %v6676_v1  ;;  %v6757_v34 = vmin.f32 %v6496_v32, %v6700_v44  ;;  %v16542_v32 = vmin.f32 %v6231_v62, %v6398_v45 }
  0x6f   :  { %379 = vst.msk [vmem:[#allocation2 + $0x300] sm:$0xff] %vm8_vm0, %v179_v8  ;;  %380 = vst.msk [vmem:[#allocation2 + $0x318] sm:$0xff] %vm8_vm0, %v180_v3  ;;  %v6722_v33 = vmin.f32 %v16530_v18, %v6668_v14  ;;  %v6732_v8 = vmin.f32 %v579_v38, %v838_v13  ;;  %v586_v3 = vld [vmem:[#allocation2 + $0x26e] sm:$0xff]  ;;  %v187_v23 = vld [vmem:[%s15437_s0 + $0x218] sm:$0xff]  ;;  %v16534_v38 = vmin.f32 %v6211_v5, %v6318_v10 }
  0x70   :  { %16528 = vst [vmem:[#allocation49_spill] sm:$0xff] %v6692_v51  ;;  %16529 = vst [vmem:[#allocation50_spill] sm:$0xff] %v6696_v43  ;;  %v188_v36 = vld [vmem:[%s15437_s0 + $0x220] sm:$0xff]  ;;  %v6753_v13 = vmin.f32 %v16536_v52, %v6696_v43  ;;  %v16540_v5 = vmin.f32 %v6228_v49, %v6395_v40  ;;  %v6775_v10 = vmin.f32 %v16542_v32, %v6730_v7  ;;  %v844_v18 = vld [vmem:[#allocation2 + $0x296] sm:$0xf] }
  0x71   :  { %381 = vst.msk [vmem:[#allocation2 + $0x320] sm:$0xff] %vm8_vm0, %v181_v15  ;;  %382 = vst.msk [vmem:[#allocation2 + $0x328] sm:$0xff] %vm8_vm0, %v182_v39  ;;  %v6747_v46 = vmin.f32 %v16534_v38, %v6692_v51  ;;  %v6761_v15 = vmin.f32 %v6499_v41, %v6704_v31  ;;  %v587_v39 = vld [vmem:[#allocation2 + $0x276] sm:$0xff]  ;;  %v585_v54 = vld [vmem:[#allocation2 + $0x25e] sm:$0xf]  ;;  %v6779_v41 = vmin.f32 %v6511_v60, %v6732_v8 }
  0x72   :  { %383 = vst.msk [vmem:[#allocation2 + $0x330] sm:$0xff] %vm8_vm0, %v183_v56  ;;  %16531 = vst [vmem:[#allocation51_spill] sm:$0xff] %v6722_v33  ;;  %v588_v56 = vld [vmem:[#allocation2 + $0x27e] sm:$0xff]  ;;  %v6769_v63 = vmin.f32 %v16540_v5, %v6726_v42  ;;  %v16545_v49 = vmin.f32 %v6234_v61, %v6406_v29  ;;  %v16548_v62 = vld [vmem:[#allocation29_spill] sm:$0xff]  ;;  %v6795_v38 = vmin.f32 %v6535_v26, %v587_v39 }
  0x73   :  { %16532 = vst [vmem:[#allocation52_spill] sm:$0xff] %v6726_v42  ;;  %16533 = vst [vmem:[#allocation53_spill] sm:$0xff] %v6730_v7  ;;  %v6798_v60 = vmin.f32 %v6537_v11, %v588_v56  ;;  %v593_v52 = vld [vmem:[#allocation2 + $0x2ae] sm:$0xff]  ;;  %v16551_v5 = vld [vmem:[#allocation19_spill] sm:$0xff] }
  0x74   :  { %384 = vst.msk [vmem:[#allocation2 + $0x338] sm:$0xff] %vm8_vm0, %v184_v48  ;;  %385 = vst.msk [vmem:[#allocation2 + $0x350] sm:$0xff] %vm8_vm0, %v185_v9  ;;  %v589_v48 = vld [vmem:[#allocation2 + $0x286] sm:$0xff]  ;;  %v1097_v9 = vmin.f32 %v6516_v50, %v586_v3  ;;  %v6786_v40 = vmin.f32 %v16545_v49, %v6757_v34  ;;  %v16552_v61 = vmin.f32 %v16551_v5, %v6415_v58  ;;  %v594_v5 = vld [vmem:[#allocation2 + $0x2b6] sm:$0xff] }
  0x75   :  { %386 = vst.msk [vmem:[#allocation2 + $0x358] sm:$0xff] %vm8_vm0, %v186_v55  ;;  %16535 = vst [vmem:[#allocation54_spill] sm:$0xff] %v6747_v46  ;;  %v590_v55 = vld [vmem:[#allocation2 + $0x28e] sm:$0xff]  ;;  %v592_v50 = vld [vmem:[#allocation2 + $0x2a6] sm:$0xff]  ;;  %v6817_v11 = vmin.f32 %v6530_v21, %v6795_v38  ;;  %v6823_v58 = vmin.f32 %v585_v54, %v844_v18  ;;  %v6861_v18 = vmin.f32 %v588_v56, %v594_v5 }
  0x76   :  { %16537 = vst [vmem:[#allocation55_spill] sm:$0xff] %v6753_v13  ;;  %16538 = vst [vmem:[#allocation56_spill] sm:$0xff] %v6757_v34  ;;  %v6804_v29 = vmin.f32 %v16552_v61, %v6779_v41  ;;  %v16554_v32 = vld [vmem:[#allocation39_spill] sm:$0xff]  ;;  %v6813_v26 = vmin.f32 %v6564_v0, %v590_v55  ;;  %v591_v13 = vld [vmem:[#allocation2 + $0x296] sm:$0xf] }
  0x77   :  { %16539 = vst [vmem:[#allocation57_spill] sm:$0xff] %v6761_v15  ;;  %387 = vst.msk [vmem:[#allocation2 + $0x360] sm:$0xff] %vm8_vm0, %v187_v23  ;;  %v16547_v23 = vld [vmem:[#allocation18_spill] sm:$0xff]  ;;  %v6807_v49 = vmin.f32 %v16554_v32, %v1097_v9  ;;  %v6837_v32 = vmin.f32 %v587_v39, %v593_v52  ;;  %v16565_v59 = vld [vmem:[#allocation33_spill] sm:$0xff]  ;;  %v6881_v46 = vmin.f32 %v6676_v1, %v6861_v18 }
  0x78   :  { %388 = vst.msk [vmem:[#allocation2 + $0x368] sm:$0xff] %vm8_vm0, %v188_v36  ;;  %16541 = vst [vmem:[#allocation58_spill] sm:$0xff] %v6769_v63  ;;  %v16549_v45 = vmin.f32 %v16547_v23, %v16548_v62  ;;  %v6810_v23 = vmin.f32 %v6562_v20, %v589_v48  ;;  %v6821_v62 = vmin.f32 %v6533_v57, %v6798_v60  ;;  %v595_v57 = vld [vmem:[#allocation2 + $0x2be] sm:$0xff]  ;;  %v6865_v54 = vld [vmem:[#allocation2 + $0x2ee] sm:$0xff] }
  0x79   :  { %16543 = vst [vmem:[#allocation59_spill] sm:$0xff] %v6775_v10  ;;  %16544 = vst [vmem:[#allocation60_spill] sm:$0xff] %v6779_v41  ;;  %v6835_v21 = vmin.f32 %v6616_v12, %v6813_v26  ;;  %v596_v10 = vld [vmem:[#allocation2 + $0x2c6] sm:$0xff]  ;;  %v6845_v20 = vmin.f32 %v6642_v37, %v6823_v58  ;;  %v850_v12 = vld [vmem:[#allocation2 + $0x2ce] sm:$0xf]  ;;  %v6859_v63 = vmin.f32 %v6672_v17, %v6837_v32 }
  0x7a   :  { %16546 = vst [vmem:[#allocation61_spill] sm:$0xff] %v6786_v40  ;;  %v6792_v36 = vmin.f32 %v16549_v45, %v6761_v15  ;;  %16553 = vst [vmem:[#allocation29_spill] sm:$0xff] %v6804_v29  ;;  %v6825_v45 = vmin.f32 %v586_v3, %v592_v50  ;;  %v6831_v0 = vmin.f32 %v6560_v2, %v6810_v23  ;;  %v6851_v39 = vld [vmem:[#allocation2 + $0x2de] sm:$0xff]  ;;  %v6863_v37 = vld [vmem:[#allocation2 + $0x2e6] sm:$0xff] }
  0x7b   :  { %16555 = vst [vmem:[#allocation19_spill] sm:$0xff] %v6807_v49  ;;  %16556 = vst [vmem:[#allocation39_spill] sm:$0xff] %v6817_v11  ;;  %v6871_v24 = vmin.f32 %v589_v48, %v595_v57  ;;  %v6873_v40 = vmin.f32 %v590_v55, %v596_v10  ;;  %v6875_v27 = vld [vmem:[#allocation2 + $0x2f6] sm:$0xff]  ;;  %v597_v33 = vld [vmem:[#allocation2 + $0x2ce] sm:$0xf]  ;;  %v6883_v53 = vmin.f32 %v591_v13, %v850_v12 }
  0x7c   :  { %16550 = vst [vmem:[#allocation18_spill] sm:$0xff] %v6792_v36  ;;  %16557 = vst [vmem:[#allocation62_spill] sm:$0xff] %v6821_v62  ;;  %v6849_v2 = vmin.f32 %v6646_v22, %v6825_v45  ;;  %v6886_v61 = vmin.f32 %v592_v50, %v6851_v39  ;;  %v6888_v36 = vld [vmem:[#allocation2 + $0x2fe] sm:$0xff]  ;;  %v856_v48 = vld [vmem:[#allocation2 + $0x306] sm:$0xf]  ;;  %v6901_v1 = vmin.f32 %v593_v52, %v6863_v37 }
  0x7d   :  { %16559 = vst [vmem:[#allocation63_spill] sm:$0xff] %v6831_v0  ;;  %16560 = vst [vmem:[#allocation64_spill] sm:$0xff] %v6835_v21  ;;  %v6890_v55 = vld [vmem:[#allocation2 + $0x316] sm:$0xff]  ;;  %v6894_v29 = vmin.f32 %v6700_v44, %v6871_v24  ;;  %v6898_v56 = vmin.f32 %v6704_v31, %v6873_v40  ;;  %v6904_v13 = vmin.f32 %v594_v5, %v6865_v54  ;;  %v6906_v50 = vld [vmem:[#allocation2 + $0x31e] sm:$0xff] }
  0x7e   :  { %16563 = vst [vmem:[#allocation65_spill] sm:$0xff] %v6845_v20  ;;  %16564 = vst [vmem:[#allocation66_spill] sm:$0xff] %v6849_v2  ;;  %v6908_v12 = vld [vmem:[#allocation2 + $0x326] sm:$0xff]  ;;  %v190_v44 = vld [vmem:[%s15437_s0 + $0x230] sm:$0xff]  ;;  %v6920_v52 = vmin.f32 %v6732_v8, %v6883_v53  ;;  %v6923_v5 = vmin.f32 %v1097_v9, %v6886_v61  ;;  %v6926_v30 = vmin.f32 %v595_v57, %v6875_v27 }
  0x7f   :  { %16567 = vst [vmem:[#allocation67_spill] sm:$0xff] %v6859_v63  ;;  %16571 = vst [vmem:[#allocation68_spill] sm:$0xff] %v6881_v46  ;;  %v189_v17 = vld [vmem:[%s15437_s0 + $0x228] sm:$0xff]  ;;  %v6930_v63 = vld [vmem:[#allocation2 + $0x336] sm:$0xff]  ;;  %v6953_v31 = vmin.f32 %v6798_v60, %v6904_v13 }
  0x80   :  { %16572 = vst [vmem:[#allocation69_spill] sm:$0xff] %v6894_v29  ;;  %16573 = vst [vmem:[#allocation70_spill] sm:$0xff] %v6898_v56  ;;  %v6928_v22 = vld [vmem:[#allocation2 + $0x32e] sm:$0xff]  ;;  %v191_v47 = vld [vmem:[%s15437_s0 + $0x238] sm:$0xff] }
  0x81   :  { %16575 = vst [vmem:[#allocation71_spill] sm:$0xff] %v6923_v5  ;;  %389 = vst.msk [vmem:[#allocation2 + $0x370] sm:$0xff] %vm8_vm0, %v189_v17  ;;  %v192_v8 = vld [vmem:[%s15437_s0 + $0x240] sm:$0xff]  ;;  %v193_v9 = vld [vmem:[%s15437_s0 + $0x248] sm:$0xff] }
  0x82   :  { %390 = vst.msk [vmem:[#allocation2 + $0x388] sm:$0xff] %vm8_vm0, %v190_v44  ;;  %v6949_v44 = vmin.f32 %v6795_v38, %v6901_v1  ;;  %16577 = vst [vmem:[#allocation73_spill] sm:$0xff] %v6953_v31  ;;  %v603_v46 = vld [vmem:[#allocation2 + $0x306] sm:$0xf]  ;;  %v862_v3 = vld [vmem:[#allocation2 + $0x33e] sm:$0xf] }
  0x83   :  { %391 = vst.msk [vmem:[#allocation2 + $0x390] sm:$0xff] %vm8_vm0, %v191_v47  ;;  %392 = vst.msk [vmem:[#allocation2 + $0x398] sm:$0xff] %vm8_vm0, %v192_v8  ;;  %v194_v17 = vld [vmem:[%s15437_s0 + $0x250] sm:$0xff]  ;;  %v195_v38 = vld [vmem:[%s15437_s0 + $0x258] sm:$0xff]  ;;  %v6973_v8 = vmin.f32 %v6810_v23, %v6926_v30 }
  0x84   :  { %16576 = vst [vmem:[#allocation72_spill] sm:$0xff] %v6949_v44  ;;  %393 = vst.msk [vmem:[#allocation2 + $0x3a0] sm:$0xff] %vm8_vm0, %v193_v9  ;;  %v196_v60 = vld [vmem:[%s15437_s0 + $0x260] sm:$0xff]  ;;  %v6976_v9 = vmin.f32 %v596_v10, %v6888_v36  ;;  %v197_v57 = vld [vmem:[%s15437_s0 + $0x268] sm:$0xff] }
  0x85   :  { %394 = vst.msk [vmem:[#allocation2 + $0x3a8] sm:$0xff] %vm8_vm0, %v194_v17  ;;  %395 = vst.msk [vmem:[#allocation2 + $0x3c0] sm:$0xff] %vm8_vm0, %v195_v38  ;;  %v198_v47 = vld [vmem:[%s15437_s0 + $0x270] sm:$0xff]  ;;  %v199_v23 = vld [vmem:[%s15437_s0 + $0x278] sm:$0xff]  ;;  %v6994_v38 = vmin.f32 %v597_v33, %v856_v48 }
  0x86   :  { %396 = vst.msk [vmem:[#allocation2 + $0x3c8] sm:$0xff] %vm8_vm0, %v196_v60  ;;  %v6998_v60 = vmin.f32 %v6851_v39, %v6890_v55  ;;  %v7000_v4 = vld [vmem:[#allocation2 + $0x34e] sm:$0xff]  ;;  %397 = vst.msk [vmem:[#allocation2 + $0x3d0] sm:$0xff] %vm8_vm0, %v197_v57  ;;  %v200_v10 = vld [vmem:[%s15437_s0 + $0x280] sm:$0xff]  ;;  %v7018_v57 = vmin.f32 %v6813_v26, %v6976_v9 }
  0x87   :  { %398 = vst.msk [vmem:[#allocation2 + $0x3d8] sm:$0xff] %vm8_vm0, %v198_v47  ;;  %399 = vst.msk [vmem:[#allocation2 + $0x3e0] sm:$0xff] %vm8_vm0, %v199_v23  ;;  %v201_v33 = vld [vmem:[%s15437_s0 + $0x288] sm:$0xff]  ;;  %v202_v39 = vld [vmem:[%s15437_s0 + $0x290] sm:$0xff]  ;;  %v7022_v47 = vmin.f32 %v6863_v37, %v6906_v50  ;;  %v7026_v23 = vmin.f32 %v6865_v54, %v6908_v12  ;;  %v7044_v48 = vmin.f32 %v6823_v58, %v6994_v38 }
  0x88   :  { %16578 = vst [vmem:[#allocation74_spill] sm:$0xff] %v7018_v57  ;;  %v611_v17 = vld [vmem:[#allocation2 + $0x356] sm:$0xff]  ;;  %v7028_v6 = vld [vmem:[#allocation2 + $0x35e] sm:$0xff]  ;;  %400 = vst.msk [vmem:[#allocation2 + $0x3f8] sm:$0xff] %vm8_vm0, %v200_v10  ;;  %v7048_v10 = vmin.f32 %v6825_v45, %v6998_v60 }
  0x89   :  { %401 = vst.msk [vmem:[#allocation2 + $0x400] sm:$0xff] %vm8_vm0, %v201_v33  ;;  %402 = vst.msk [vmem:[#allocation2 + $0x408] sm:$0xff] %vm8_vm0, %v202_v39  ;;  %v203_v26 = vld [vmem:[%s15437_s0 + $0x298] sm:$0xff]  ;;  %v204_v37 = vld [vmem:[%s15437_s0 + $0x2a0] sm:$0xff]  ;;  %v7052_v33 = vmin.f32 %v6875_v27, %v6928_v22  ;;  %v7056_v39 = vmin.f32 %v6888_v36, %v6930_v63 }
  0x8a   :  { %v205_v54 = vld [vmem:[%s15437_s0 + $0x2a8] sm:$0xff]  ;;  %16579 = vst [vmem:[#allocation75_spill] sm:$0xff] %v7044_v48  ;;  %16580 = vst [vmem:[#allocation76_spill] sm:$0xff] %v7048_v10  ;;  %v206_v58 = vld [vmem:[%s15437_s0 + $0x2b0] sm:$0xff] }
  0x8b   :  { %403 = vst.msk [vmem:[#allocation2 + $0x410] sm:$0xff] %vm8_vm0, %v203_v26  ;;  %404 = vst.msk [vmem:[#allocation2 + $0x418] sm:$0xff] %vm8_vm0, %v204_v37  ;;  %v207_v45 = vld [vmem:[%s15437_s0 + $0x2b8] sm:$0xff]  ;;  %v208_v27 = vld [vmem:[%s15437_s0 + $0x2c0] sm:$0xff]  ;;  %v7074_v26 = vmin.f32 %v6837_v32, %v7022_v47  ;;  %v7078_v37 = vmin.f32 %v6861_v18, %v7026_v23 }
  0x8c   :  { %405 = vst.msk [vmem:[#allocation2 + $0x430] sm:$0xff] %vm8_vm0, %v205_v54  ;;  %v7080_v54 = vmin.f32 %v603_v46, %v862_v3  ;;  %406 = vst.msk [vmem:[#allocation2 + $0x438] sm:$0xff] %vm8_vm0, %v206_v58  ;;  %v209_v36 = vld [vmem:[%s15437_s0 + $0x2c8] sm:$0xff]  ;;  %v210_v32 = vld [vmem:[%s15437_s0 + $0x2d0] sm:$0xff]  ;;  %v7100_v58 = vmin.f32 %v6871_v24, %v7052_v33  ;;  %v7126_v46 = vmin.f32 %v6906_v50, %v611_v17 }
  0x8d   :  { %16581 = vst [vmem:[#allocation77_spill] sm:$0xff] %v7074_v26  ;;  %16582 = vst [vmem:[#allocation78_spill] sm:$0xff] %v7078_v37  ;;  %v211_v18 = vld [vmem:[%s15437_s0 + $0x2d8] sm:$0xff]  ;;  %v614_v19 = vld [vmem:[#allocation2 + $0x36e] sm:$0xff]  ;;  %v7130_v3 = vmin.f32 %v6908_v12, %v7028_v6 }
  0x8e   :  { %407 = vst.msk [vmem:[#allocation2 + $0x440] sm:$0xff] %vm8_vm0, %v207_v45  ;;  %408 = vst.msk [vmem:[#allocation2 + $0x448] sm:$0xff] %vm8_vm0, %v208_v27  ;;  %v7104_v45 = vmin.f32 %v6873_v40, %v7056_v39  ;;  %v613_v27 = vld [vmem:[#allocation2 + $0x366] sm:$0xff]  ;;  %v609_v24 = vld [vmem:[#allocation2 + $0x33e] sm:$0xf]  ;;  %v7115_v43 = vmin.f32 %v6883_v53, %v7080_v54  ;;  %v7119_v40 = vmin.f32 %v6890_v55, %v7000_v4 }
  0x8f   :  { %16583 = vst [vmem:[#allocation79_spill] sm:$0xff] %v7100_v58  ;;  %409 = vst.msk [vmem:[#allocation2 + $0x450] sm:$0xff] %vm8_vm0, %v209_v36  ;;  %v868_v36 = vld [vmem:[#allocation2 + $0x376] sm:$0xf]  ;;  %v616_v51 = vld [vmem:[#allocation2 + $0x386] sm:$0xff]  ;;  %v7146_v50 = vmin.f32 %v6901_v1, %v7126_v46  ;;  %v7150_v12 = vmin.f32 %v6904_v13, %v7130_v3 }
  0x90   :  { %16584 = vst [vmem:[#allocation80_spill] sm:$0xff] %v7104_v45  ;;  %410 = vst.msk [vmem:[#allocation2 + $0x468] sm:$0xff] %vm8_vm0, %v210_v32  ;;  %v617_v53 = vld [vmem:[#allocation2 + $0x38e] sm:$0xff]  ;;  %v7136_v7 = vmin.f32 %v6886_v61, %v7119_v40  ;;  %v7139_v32 = vmin.f32 %v6928_v22, %v613_v27  ;;  %v7152_v42 = vmin.f32 %v609_v24, %v868_v36  ;;  %v618_v61 = vld [vmem:[#allocation2 + $0x396] sm:$0xff] }
  0x91   :  { %411 = vst.msk [vmem:[#allocation2 + $0x470] sm:$0xff] %vm8_vm0, %v211_v18  ;;  %16585 = vst [vmem:[#allocation81_spill] sm:$0xff] %v7115_v43  ;;  %v7142_v18 = vmin.f32 %v6930_v63, %v614_v19  ;;  %v7155_v55 = vmin.f32 %v7000_v4, %v616_v51  ;;  %v7169_v13 = vmin.f32 %v611_v17, %v617_v53  ;;  %v619_v24 = vld [vmem:[#allocation2 + $0x39e] sm:$0xff]  ;;  %v620_v36 = vld [vmem:[#allocation2 + $0x3a6] sm:$0xff] }
  0x92   :  { %v7159_v22 = vmin.f32 %v6807_v49, %v7136_v7  ;;  %v7163_v63 = vmin.f32 %v6926_v30, %v7139_v32  ;;  %v7173_v4 = vmin.f32 %v6817_v11, %v7146_v50  ;;  %v7177_v49 = vmin.f32 %v6821_v62, %v7150_v12  ;;  %v7214_v34 = vld [vmem:[#allocation2 + $0x3be] sm:$0xff]  ;;  %v7218_v14 = vld [vmem:[#allocation2 + $0x3ce] sm:$0xff] }
  0x93   :  { %v7167_v1 = vmin.f32 %v6976_v9, %v7142_v18  ;;  %v7181_v30 = vmin.f32 %v6994_v38, %v7152_v42  ;;  %v7185_v9 = vmin.f32 %v6998_v60, %v7155_v55  ;;  %v7197_v62 = vmin.f32 %v7022_v47, %v7169_v13  ;;  %v7216_v47 = vld [vmem:[#allocation2 + $0x3c6] sm:$0xff] }
  0x94   :  { %16586 = vst [vmem:[#allocation82_spill] sm:$0xff] %v7159_v22  ;;  %16588 = vst [vmem:[#allocation84_spill] sm:$0xff] %v7173_v4  ;;  %v7189_v17 = vmin.f32 %v6831_v0, %v7163_v63  ;;  %v615_v22 = vld [vmem:[#allocation2 + $0x376] sm:$0xf]  ;;  %v7200_v38 = vmin.f32 %v7028_v6, %v618_v61  ;;  %v7210_v41 = vmin.f32 %v613_v27, %v619_v24  ;;  %v16597_v6 = vld [vmem:[#allocation20_spill] sm:$0xff] }
  0x95   :  { %16587 = vst [vmem:[#allocation83_spill] sm:$0xff] %v7167_v1  ;;  %16589 = vst [vmem:[#allocation85_spill] sm:$0xff] %v7177_v49  ;;  %v7193_v11 = vmin.f32 %v6835_v21, %v7167_v1  ;;  %v874_v49 = vld [vmem:[#allocation2 + $0x3ae] sm:$0xf]  ;;  %v7204_v60 = vmin.f32 %v6845_v20, %v7181_v30  ;;  %v7208_v4 = vmin.f32 %v6849_v2, %v7185_v9  ;;  %v16601_v2 = vld [vmem:[#allocation34_spill] sm:$0xff] }
  0x96   :  { %16590 = vst [vmem:[#allocation86_spill] sm:$0xff] %v7181_v30  ;;  %16591 = vst [vmem:[#allocation87_spill] sm:$0xff] %v7185_v9  ;;  %v7212_v15 = vmin.f32 %v614_v19, %v620_v36  ;;  %v16598_v35 = vmin.f32 %v16597_v6, %v16565_v59  ;;  %v16600_v21 = vld [vmem:[#allocation21_spill] sm:$0xff]  ;;  %v16603_v19 = vld [vmem:[#allocation67_spill] sm:$0xff]  ;;  %v7238_v30 = vmin.f32 %v7026_v23, %v7200_v38 }
  0x97   :  { %16592 = vst [vmem:[#allocation88_spill] sm:$0xff] %v7189_v17  ;;  %16593 = vst [vmem:[#allocation89_spill] sm:$0xff] %v7193_v11  ;;  %v7234_v9 = vmin.f32 %v16603_v19, %v7197_v62  ;;  %v7240_v0 = vld [vmem:[#allocation2 + $0x3d6] sm:$0xff]  ;;  %v7258_v23 = vld [vmem:[#allocation2 + $0x3de] sm:$0xff] }
  0x98   :  { %16594 = vst [vmem:[#allocation90_spill] sm:$0xff] %v7197_v62  ;;  %16595 = vst [vmem:[#allocation91_spill] sm:$0xff] %v7204_v60  ;;  %v7224_v20 = vmin.f32 %v16598_v35, %v7189_v17  ;;  %v16606_v6 = vld [vmem:[#allocation22_spill] sm:$0xff]  ;;  %v16607_v35 = vld [vmem:[#allocation35_spill] sm:$0xff]  ;;  %v7256_v19 = vmin.f32 %v7056_v39, %v7212_v15 }
  0x99   :  { %16596 = vst [vmem:[#allocation92_spill] sm:$0xff] %v7208_v4  ;;  %v16602_v4 = vmin.f32 %v16600_v21, %v16601_v2  ;;  %16604 = vst [vmem:[#allocation21_spill] sm:$0xff] %v7234_v9  ;;  %v7250_v21 = vmin.f32 %v7052_v33, %v7210_v41  ;;  %v880_v9 = vld [vmem:[#allocation2 + $0x3e6] sm:$0xf]  ;;  %v7268_v33 = vmin.f32 %v617_v53, %v7216_v47 }
  0x9a   :  { %16599 = vst [vmem:[#allocation20_spill] sm:$0xff] %v7224_v20  ;;  %16605 = vst [vmem:[#allocation93_spill] sm:$0xff] %v7238_v30  ;;  %v16608_v20 = vmin.f32 %v16606_v6, %v16607_v35  ;;  %v16612_v62 = vld [vmem:[#allocation68_spill] sm:$0xff]  ;;  %v212_v39 = vld [vmem:[%s15437_s0 + $0x2e0] sm:$0xff] }
  0x9b   :  { %v7230_v27 = vmin.f32 %v16602_v4, %v7193_v11  ;;  %16610 = vst [vmem:[#allocation94_spill] sm:$0xff] %v7250_v21  ;;  %v621_v4 = vld [vmem:[#allocation2 + $0x3ae] sm:$0xf]  ;;  %v7252_v11 = vmin.f32 %v615_v22, %v874_v49  ;;  %16611 = vst [vmem:[#allocation95_spill] sm:$0xff] %v7256_v19  ;;  %v7262_v2 = vmin.f32 %v16612_v62, %v7238_v30  ;;  %v7273_v22 = vld [vmem:[#allocation2 + $0x3f6] sm:$0xff] }
  0x9c   :  { %v7246_v17 = vmin.f32 %v16608_v20, %v7204_v60  ;;  %v7265_v20 = vmin.f32 %v616_v51, %v7214_v34  ;;  %v7271_v49 = vmin.f32 %v618_v61, %v7218_v14  ;;  %v213_v6 = vld [vmem:[%s15437_s0 + $0x2e8] sm:$0xff]  ;;  %v214_v51 = vld [vmem:[%s15437_s0 + $0x2f0] sm:$0xff]  ;;  %v7286_v53 = vmin.f32 %v6894_v29, %v7250_v21  ;;  %v7299_v60 = vld [vmem:[#allocation2 + $0x3fe] sm:$0xff]  ;;  %412 = vst.msk [vmem:[#allocation2 + $0x478] sm:$0xff] %vm8_vm0, %v212_v39 }
  0x9d   :  { %16613 = vst [vmem:[#allocation96_spill] sm:$0xff] %v7262_v2  ;;  %v7290_v61 = vmin.f32 %v7080_v54, %v7252_v11  ;;  %v7294_v62 = vmin.f32 %v6898_v56, %v7256_v19  ;;  %v7297_v2 = vmin.f32 %v619_v24, %v7240_v0  ;;  %v7301_v30 = vld [vmem:[#allocation2 + $0x406] sm:$0xff]  ;;  %v7303_v35 = vld [vmem:[#allocation2 + $0x40e] sm:$0xff]  ;;  %413 = vst.msk [vmem:[#allocation2 + $0x480] sm:$0xff] %vm8_vm0, %v213_v6 }
  0x9e   :  { %16609 = vst [vmem:[#allocation22_spill] sm:$0xff] %v7246_v17  ;;  %16614 = vst [vmem:[#allocation97_spill] sm:$0xff] %v7286_v53  ;;  %v215_v54 = vld [vmem:[%s15437_s0 + $0x2f8] sm:$0xff]  ;;  %v216_v24 = vld [vmem:[%s15437_s0 + $0x300] sm:$0xff]  ;;  %v7319_v19 = vmin.f32 %v7119_v40, %v7265_v20  ;;  %v7323_v39 = vmin.f32 %v7126_v46, %v7268_v33  ;;  %v7327_v6 = vmin.f32 %v7130_v3, %v7271_v49 }
  0x9f   :  { %16615 = vst [vmem:[#allocation98_spill] sm:$0xff] %v7294_v62  ;;  %414 = vst.msk [vmem:[#allocation2 + $0x488] sm:$0xff] %vm8_vm0, %v214_v51  ;;  %v217_v56 = vld [vmem:[%s15437_s0 + $0x308] sm:$0xff]  ;;  %v7330_v51 = vmin.f32 %v620_v36, %v7258_v23  ;;  %v7332_v29 = vld [vmem:[#allocation2 + $0x416] sm:$0xff]  ;;  %v7364_v1 = vmin.f32 %v7139_v32, %v7297_v2 }
  0xa0   :  { %415 = vst.msk [vmem:[#allocation2 + $0x4a0] sm:$0xff] %vm8_vm0, %v215_v54  ;;  %416 = vst.msk [vmem:[#allocation2 + $0x4a8] sm:$0xff] %vm8_vm0, %v216_v24  ;;  %v218_v46 = vld [vmem:[%s15437_s0 + $0x310] sm:$0xff]  ;;  %v219_v3 = vld [vmem:[%s15437_s0 + $0x318] sm:$0xff]  ;;  %v7380_v32 = vmin.f32 %v6923_v5, %v7319_v19 }
  0xa1   :  { %417 = vst.msk [vmem:[#allocation2 + $0x4b0] sm:$0xff] %vm8_vm0, %v217_v56  ;;  %v220_v40 = vld [vmem:[%s15437_s0 + $0x320] sm:$0xff]  ;;  %v16616_v36 = vld [vmem:[#allocation26_spill] sm:$0xff]  ;;  %v7354_v56 = vmin.f32 %v6920_v52, %v7290_v61  ;;  %418 = vst.msk [vmem:[#allocation2 + $0x4b8] sm:$0xff] %vm8_vm0, %v218_v46  ;;  %v7384_v46 = vmin.f32 %v6949_v44, %v7323_v39 }
  0xa2   :  { %v16617_v54 = vmin.f32 %v16616_v36, %v6523_v28  ;;  %v16620_v24 = vld [vmem:[#allocation27_spill] sm:$0xff]  ;;  %419 = vst.msk [vmem:[#allocation2 + $0x4c0] sm:$0xff] %vm8_vm0, %v219_v3  ;;  %420 = vst.msk [vmem:[#allocation2 + $0x4d8] sm:$0xff] %vm8_vm0, %v220_v40  ;;  %v221_v36 = vld [vmem:[%s15437_s0 + $0x328] sm:$0xff]  ;;  %v7388_v3 = vmin.f32 %v6953_v31, %v7327_v6 }
  0xa3   :  { %16619 = vst [vmem:[#allocation99_spill] sm:$0xff] %v7354_v56  ;;  %v16621_v59 = vmin.f32 %v16620_v24, %v6527_v16  ;;  %16622 = vst [vmem:[#allocation27_spill] sm:$0xff] %v7380_v32  ;;  %v627_v40 = vld [vmem:[#allocation2 + $0x3e6] sm:$0xf]  ;;  %v7390_v24 = vmin.f32 %v621_v4, %v880_v9  ;;  %v226_v9 = vld [vmem:[%s15437_s0 + $0x350] sm:$0xff] }
  0xa4   :  { %v7350_v21 = vmin.f32 %v16617_v54, %v7286_v53  ;;  %v222_v54 = vld [vmem:[%s15437_s0 + $0x330] sm:$0xff]  ;;  %16623 = vst [vmem:[#allocation100_spill] sm:$0xff] %v7384_v46  ;;  %16624 = vst [vmem:[#allocation101_spill] sm:$0xff] %v7388_v3  ;;  %v224_v5 = vld [vmem:[%s15437_s0 + $0x340] sm:$0xff]  ;;  %v7420_v3 = vmin.f32 %v7214_v34, %v7273_v22 }
  0xa5   :  { %v7360_v17 = vmin.f32 %v16621_v59, %v7294_v62  ;;  %v223_v59 = vld [vmem:[%s15437_s0 + $0x338] sm:$0xff]  ;;  %421 = vst.msk [vmem:[#allocation2 + $0x4e0] sm:$0xff] %vm8_vm0, %v221_v36  ;;  %422 = vst.msk [vmem:[#allocation2 + $0x4e8] sm:$0xff] %vm8_vm0, %v222_v54  ;;  %v225_v44 = vld [vmem:[%s15437_s0 + $0x348] sm:$0xff]  ;;  %v7412_v54 = vmin.f32 %v6973_v8, %v7364_v1  ;;  %v7436_v34 = vmin.f32 %v7152_v42, %v7390_v24 }
  0xa6   :  { %16618 = vst [vmem:[#allocation26_spill] sm:$0xff] %v7350_v21  ;;  %v886_v21 = vld [vmem:[#allocation2 + $0x41e] sm:$0xf]  ;;  %423 = vst.msk [vmem:[#allocation2 + $0x4f0] sm:$0xff] %vm8_vm0, %v223_v59  ;;  %v16625_v4 = vld [vmem:[#allocation28_spill] sm:$0xff]  ;;  %v7416_v59 = vmin.f32 %v7142_v18, %v7330_v51 }
  0xa7   :  { %v16626_v36 = vmin.f32 %v16625_v4, %v6553_v25  ;;  %16627 = vst [vmem:[#allocation28_spill] sm:$0xff] %v7412_v54  ;;  %424 = vst.msk [vmem:[#allocation2 + $0x4f8] sm:$0xff] %vm8_vm0, %v224_v5  ;;  %v227_v4 = vld [vmem:[%s15437_s0 + $0x358] sm:$0xff]  ;;  %v229_v18 = vld [vmem:[%s15437_s0 + $0x368] sm:$0xff]  ;;  %v7440_v5 = vmin.f32 %v7216_v47, %v7299_v60 }
  0xa8   :  { %425 = vst.msk [vmem:[#allocation2 + $0x510] sm:$0xff] %vm8_vm0, %v225_v44  ;;  %426 = vst.msk [vmem:[#allocation2 + $0x518] sm:$0xff] %vm8_vm0, %v226_v9  ;;  %v7444_v44 = vmin.f32 %v7218_v14, %v7301_v30  ;;  %v7448_v9 = vmin.f32 %v7240_v0, %v7303_v35  ;;  %v230_v42 = vld [vmem:[%s15437_s0 + $0x370] sm:$0xff]  ;;  %v231_v47 = vld [vmem:[%s15437_s0 + $0x378] sm:$0xff] }
  0xa9   :  { %v7408_v31 = vmin.f32 %v16626_v36, %v7354_v56  ;;  %v228_v36 = vld [vmem:[%s15437_s0 + $0x360] sm:$0xff]  ;;  %427 = vst.msk [vmem:[#allocation2 + $0x520] sm:$0xff] %vm8_vm0, %v227_v4  ;;  %429 = vst.msk [vmem:[#allocation2 + $0x530] sm:$0xff] %vm8_vm0, %v229_v18  ;;  %v7466_v4 = vmin.f32 %v7018_v57, %v7416_v59  ;;  %v7474_v18 = vmin.f32 %v7258_v23, %v7332_v29  ;;  %v233_v46 = vld [vmem:[%s15437_s0 + $0x388] sm:$0xff] }
  0xaa   :  { %428 = vst.msk [vmem:[#allocation2 + $0x528] sm:$0xff] %vm8_vm0, %v228_v36  ;;  %v232_v14 = vld [vmem:[%s15437_s0 + $0x380] sm:$0xff]  ;;  %v7470_v36 = vmin.f32 %v7155_v55, %v7420_v3  ;;  %430 = vst.msk [vmem:[#allocation2 + $0x548] sm:$0xff] %vm8_vm0, %v230_v42  ;;  %v234_v0 = vld [vmem:[%s15437_s0 + $0x390] sm:$0xff]  ;;  %v7490_v23 = vmin.f32 %v7044_v48, %v7436_v34  ;;  %v7494_v42 = vmin.f32 %v7169_v13, %v7440_v5 }
  0xab   :  { %431 = vst.msk [vmem:[#allocation2 + $0x550] sm:$0xff] %vm8_vm0, %v231_v47  ;;  %432 = vst.msk [vmem:[#allocation2 + $0x558] sm:$0xff] %vm8_vm0, %v232_v14  ;;  %v235_v55 = vld [vmem:[%s15437_s0 + $0x398] sm:$0xff]  ;;  %v7498_v47 = vmin.f32 %v7200_v38, %v7444_v44  ;;  %v7502_v14 = vmin.f32 %v7210_v41, %v7448_v9  ;;  %v634_v32 = vld [vmem:[#allocation2 + $0x42e] sm:$0xff]  ;;  %v7513_v38 = vmin.f32 %v627_v40, %v886_v21 }
  0xac   :  { %16629 = vst [vmem:[#allocation102_spill] sm:$0xff] %v7490_v23  ;;  %v635_v54 = vld [vmem:[#allocation2 + $0x436] sm:$0xff]  ;;  %433 = vst.msk [vmem:[#allocation2 + $0x560] sm:$0xff] %vm8_vm0, %v233_v46  ;;  %v16631_v56 = vld [vmem:[#allocation51_spill] sm:$0xff]  ;;  %v7511_v62 = vmin.f32 %v7048_v10, %v7470_v36  ;;  %v7517_v41 = vmin.f32 %v7212_v15, %v7474_v18 }
  0xad   :  { %16630 = vst [vmem:[#allocation103_spill] sm:$0xff] %v7502_v14  ;;  %434 = vst.msk [vmem:[#allocation2 + $0x568] sm:$0xff] %vm8_vm0, %v234_v0  ;;  %v636_v53 = vld [vmem:[#allocation2 + $0x43e] sm:$0xff]  ;;  %v637_v48 = vld [vmem:[#allocation2 + $0x446] sm:$0xff]  ;;  %v7527_v13 = vmin.f32 %v7078_v37, %v7498_v47  ;;  %v7531_v21 = vmin.f32 %v7100_v58, %v7502_v14  ;;  %v7535_v40 = vmin.f32 %v7252_v11, %v7513_v38 }
  0xae   :  { %435 = vst.msk [vmem:[#allocation2 + $0x580] sm:$0xff] %vm8_vm0, %v235_v55  ;;  %16632 = vst [vmem:[#allocation51_spill] sm:$0xff] %v7511_v62  ;;  %v638_v46 = vld [vmem:[#allocation2 + $0x44e] sm:$0xff]  ;;  %v16634_v0 = vld [vmem:[#allocation54_spill] sm:$0xff]  ;;  %v7523_v55 = vmin.f32 %v7074_v26, %v7494_v42  ;;  %v7539_v57 = vmin.f32 %v7104_v45, %v7517_v41  ;;  %v7542_v26 = vmin.f32 %v7273_v22, %v634_v32 }
  0xaf   :  { %16633 = vst [vmem:[#allocation104_spill] sm:$0xff] %v7517_v41  ;;  %16636 = vst [vmem:[#allocation105_spill] sm:$0xff] %v7527_v13  ;;  %v633_v15 = vld [vmem:[#allocation2 + $0x41e] sm:$0xf]  ;;  %v7545_v10 = vmin.f32 %v7299_v60, %v635_v54  ;;  %v892_v37 = vld [vmem:[#allocation2 + $0x456] sm:$0xf]  ;;  %v7552_v62 = vmin.f32 %v7301_v30, %v636_v53  ;;  %v7555_v11 = vmin.f32 %v7303_v35, %v637_v48 }
  0xb0   :  { %16635 = vst [vmem:[#allocation54_spill] sm:$0xff] %v7523_v55  ;;  %16637 = vst [vmem:[#allocation106_spill] sm:$0xff] %v7531_v21  ;;  %v16640_v13 = vld [vmem:[#allocation61_spill] sm:$0xff]  ;;  %v7558_v45 = vmin.f32 %v7332_v29, %v638_v46  ;;  %v7562_v22 = vmin.f32 %v7115_v43, %v7535_v40  ;;  %v16643_v60 = vld [vmem:[#allocation18_spill] sm:$0xff] }
  0xb1   :  { %16638 = vst [vmem:[#allocation107_spill] sm:$0xff] %v7535_v40  ;;  %16639 = vst [vmem:[#allocation108_spill] sm:$0xff] %v7539_v57  ;;  %v7549_v55 = vmin.f32 %v16640_v13, %v7531_v21  ;;  %v7566_v41 = vmin.f32 %v16643_v60, %v7539_v57  ;;  %v7570_v13 = vmin.f32 %v7265_v20, %v7542_v26  ;;  %v7590_v20 = vld [vmem:[#allocation2 + $0x466] sm:$0xff]  ;;  %v7592_v57 = vld [vmem:[#allocation2 + $0x46e] sm:$0xff] }
  0xb2   :  { %16642 = vst [vmem:[#allocation109_spill] sm:$0xff] %v7562_v22  ;;  %v7574_v30 = vmin.f32 %v7268_v33, %v7545_v10  ;;  %v7578_v29 = vmin.f32 %v7271_v49, %v7552_v62  ;;  %v7582_v35 = vmin.f32 %v7297_v2, %v7555_v11  ;;  %v7588_v60 = vmin.f32 %v7330_v51, %v7558_v45  ;;  %v7594_v33 = vld [vmem:[#allocation2 + $0x476] sm:$0xff]  ;;  %v7661_v58 = vld [vmem:[#allocation2 + $0x49e] sm:$0xff]  ;;  %v7665_v14 = vld [vmem:[#allocation2 + $0x4ae] sm:$0xff] }
  0xb3   :  { %16641 = vst [vmem:[#allocation61_spill] sm:$0xff] %v7549_v55  ;;  %16644 = vst [vmem:[#allocation18_spill] sm:$0xff] %v7570_v13  ;;  %v7584_v55 = vmin.f32 %v633_v15, %v892_v37  ;;  %v16649_v21 = vld [vmem:[#allocation29_spill] sm:$0xff]  ;;  %v7602_v2 = vmin.f32 %v7230_v27, %v7566_v41  ;;  %v7606_v37 = vmin.f32 %v7136_v7, %v7570_v13  ;;  %v643_v15 = vld [vmem:[#allocation2 + $0x47e] sm:$0xff] }
  0xb4   :  { %16645 = vst [vmem:[#allocation110_spill] sm:$0xff] %v7574_v30  ;;  %16646 = vst [vmem:[#allocation111_spill] sm:$0xff] %v7578_v29  ;;  %v7598_v49 = vmin.f32 %v16649_v21, %v7562_v22  ;;  %v7610_v51 = vmin.f32 %v7146_v50, %v7574_v30  ;;  %v7614_v43 = vmin.f32 %v7150_v12, %v7578_v29  ;;  %v16657_v7 = vld [vmem:[#allocation83_spill] sm:$0xff]  ;;  %v16659_v50 = vld [vmem:[#allocation22_spill] sm:$0xff] }
  0xb5   :  { %16647 = vst [vmem:[#allocation112_spill] sm:$0xff] %v7582_v35  ;;  %16648 = vst [vmem:[#allocation113_spill] sm:$0xff] %v7588_v60  ;;  %v7618_v21 = vmin.f32 %v7163_v63, %v7582_v35  ;;  %v7622_v27 = vmin.f32 %v7390_v24, %v7584_v55  ;;  %v7633_v12 = vmin.f32 %v634_v32, %v7590_v20  ;;  %v7641_v24 = vld [vmem:[#allocation2 + $0x486] sm:$0xff]  ;;  %v898_v22 = vld [vmem:[#allocation2 + $0x48e] sm:$0xf] }
  0xb6   :  { %16650 = vst [vmem:[#allocation29_spill] sm:$0xff] %v7598_v49  ;;  %16651 = vst [vmem:[#allocation114_spill] sm:$0xff] %v7602_v2  ;;  %v7626_v2 = vmin.f32 %v16657_v7, %v7588_v60  ;;  %v7639_v63 = vmin.f32 %v636_v53, %v7594_v33  ;;  %v16661_v7 = vld [vmem:[#allocation33_spill] sm:$0xff]  ;;  %v16662_v60 = vld [vmem:[#allocation63_spill] sm:$0xff]  ;;  %v7659_v53 = vmin.f32 %v637_v48, %v643_v15 }
  0xb7   :  { %16652 = vst [vmem:[#allocation115_spill] sm:$0xff] %v7606_v37  ;;  %16653 = vst [vmem:[#allocation116_spill] sm:$0xff] %v7610_v51  ;;  %v7630_v51 = vmin.f32 %v16659_v50, %v7598_v49  ;;  %v639_v37 = vld [vmem:[#allocation2 + $0x456] sm:$0xf]  ;;  %v16663_v35 = vmin.f32 %v16661_v7, %v16662_v60  ;;  %v7663_v49 = vld [vmem:[#allocation2 + $0x4a6] sm:$0xff]  ;;  %v7670_v60 = vmin.f32 %v7420_v3, %v7633_v12 }
  0xb8   :  { %16654 = vst [vmem:[#allocation117_spill] sm:$0xff] %v7614_v43  ;;  %16655 = vst [vmem:[#allocation118_spill] sm:$0xff] %v7618_v21  ;;  %v7636_v43 = vmin.f32 %v635_v54, %v7592_v57  ;;  %v16665_v50 = vld [vmem:[#allocation86_spill] sm:$0xff]  ;;  %v16668_v54 = vld [vmem:[#allocation64_spill] sm:$0xff]  ;;  %v7678_v48 = vmin.f32 %v7444_v44, %v7639_v63 }
  0xb9   :  { %16656 = vst [vmem:[#allocation119_spill] sm:$0xff] %v7622_v27  ;;  %16658 = vst [vmem:[#allocation83_spill] sm:$0xff] %v7626_v2  ;;  %v7647_v29 = vmin.f32 %v16663_v35, %v7618_v21  ;;  %v7651_v30 = vmin.f32 %v16665_v50, %v7622_v27  ;;  %v16667_v32 = vld [vmem:[#allocation34_spill] sm:$0xff]  ;;  %v236_v50 = vld [vmem:[%s15437_s0 + $0x3a0] sm:$0xff] }
  0xba   :  { %16660 = vst [vmem:[#allocation22_spill] sm:$0xff] %v7630_v51  ;;  %v16669_v13 = vmin.f32 %v16667_v32, %v16668_v54  ;;  %v7674_v7 = vmin.f32 %v7440_v5, %v7636_v43  ;;  %16671 = vst [vmem:[#allocation34_spill] sm:$0xff] %v7678_v48  ;;  %v237_v32 = vld [vmem:[%s15437_s0 + $0x3a8] sm:$0xff]  ;;  %v16672_v3 = vld [vmem:[#allocation35_spill] sm:$0xff] }
  0xbb   :  { %16664 = vst [vmem:[#allocation33_spill] sm:$0xff] %v7647_v29  ;;  %16666 = vst [vmem:[#allocation63_spill] sm:$0xff] %v7651_v30  ;;  %v16673_v54 = vld [vmem:[#allocation65_spill] sm:$0xff]  ;;  %v7700_v29 = vmin.f32 %v7448_v9, %v7659_v53  ;;  %v240_v9 = vld [vmem:[%s15437_s0 + $0x3c0] sm:$0xff] }
  0xbc   :  { %v7657_v40 = vmin.f32 %v16669_v13, %v7626_v2  ;;  %16670 = vst [vmem:[#allocation86_spill] sm:$0xff] %v7674_v7  ;;  %v7680_v13 = vld [vmem:[#allocation2 + $0x4b6] sm:$0xff]  ;;  %v16674_v35 = vmin.f32 %v16672_v3, %v16673_v54  ;;  %v7703_v2 = vmin.f32 %v638_v46, %v7641_v24  ;;  %436 = vst.msk [vmem:[#allocation2 + $0x588] sm:$0xff] %vm8_vm0, %v236_v50  ;;  %v16677_v3 = vrot.slane %v7630_v51, 1  ;;  %v16679_v50 = vld [vmem:[#allocation87_spill] sm:$0xff] }
  0xbd   :  { %16676 = vst [vmem:[#allocation35_spill] sm:$0xff] %v7700_v29  ;;  %437 = vst.msk [vmem:[#allocation2 + $0x590] sm:$0xff] %vm8_vm0, %v237_v32  ;;  %v7723_v32 = vmin.f32 %v16679_v50, %v7670_v60  ;;  %v16681_v54 = vld [vmem:[#allocation90_spill] sm:$0xff]  ;;  %v242_v50 = vld [vmem:[%s15437_s0 + $0x3d0] sm:$0xff] }
  0xbe   :  { %v7692_v5 = vmin.f32 %v16674_v35, %v7651_v30  ;;  %v7696_v44 = vmin.f32 %v7360_v17, %v7657_v40  ;;  %v238_v35 = vld [vmem:[%s15437_s0 + $0x3b0] sm:$0xff]  ;;  %v239_v17 = vld [vmem:[%s15437_s0 + $0x3b8] sm:$0xff]  ;;  %v7719_v46 = vmin.f32 %v7630_v51, %v16677_v3  ;;  %440 = vst.msk [vmem:[#allocation2 + $0x5b8] sm:$0xff] %vm8_vm0, %v240_v9  ;;  %v241_v3 = vld [vmem:[%s15437_s0 + $0x3c8] sm:$0xff]  ;;  %v7755_v9 = vmin.f32 %v639_v37, %v898_v22 }
  0xbf   :  { %16680 = vst [vmem:[#allocation87_spill] sm:$0xff] %v7723_v32  ;;  %v16683_v30 = vld [vmem:[#allocation93_spill] sm:$0xff]  ;;  %v7733_v27 = vld [vmem:[#allocation2 + $0x4be] sm:$0xff]  ;;  %438 = vst.msk [vmem:[#allocation2 + $0x598] sm:$0xff] %vm8_vm0, %v238_v35  ;;  %v7775_v37 = vmin.f32 %v7590_v20, %v7661_v58 }
  0xc0   :  { %16675 = vst [vmem:[#allocation64_spill] sm:$0xff] %v7696_v44  ;;  %16678 = vst [vmem:[#allocation65_spill] sm:$0xff] %v7719_v46  ;;  %v7727_v44 = vmin.f32 %v16681_v54, %v7674_v7  ;;  %v7731_v21 = vmin.f32 %v16683_v30, %v7678_v48  ;;  %v243_v30 = vld [vmem:[%s15437_s0 + $0x3d8] sm:$0xff]  ;;  %v7749_v54 = vmin.f32 %v7408_v31, %v7692_v5  ;;  %v244_v31 = vld [vmem:[%s15437_s0 + $0x3e0] sm:$0xff] }
  0xc1   :  { %439 = vst.msk [vmem:[#allocation2 + $0x5a0] sm:$0xff] %vm8_vm0, %v239_v17  ;;  %v16686_v35 = vld [vmem:[#allocation94_spill] sm:$0xff]  ;;  %v7759_v46 = vmin.f32 %v7474_v18, %v7703_v2  ;;  %441 = vst.msk [vmem:[#allocation2 + $0x5c0] sm:$0xff] %vm8_vm0, %v241_v3  ;;  %v246_v22 = vld [vmem:[%s15437_s0 + $0x3f0] sm:$0xff]  ;;  %v7779_v3 = vmin.f32 %v7592_v57, %v7663_v49 }
  0xc2   :  { %16682 = vst [vmem:[#allocation90_spill] sm:$0xff] %v7727_v44  ;;  %16684 = vst [vmem:[#allocation93_spill] sm:$0xff] %v7731_v21  ;;  %v7753_v17 = vmin.f32 %v16686_v35, %v7700_v29  ;;  %v245_v35 = vld [vmem:[%s15437_s0 + $0x3e8] sm:$0xff]  ;;  %v247_v20 = vld [vmem:[%s15437_s0 + $0x3f8] sm:$0xff] }
  0xc3   :  { %16685 = vst [vmem:[#allocation120_spill] sm:$0xff] %v7749_v54  ;;  %442 = vst.msk [vmem:[#allocation2 + $0x5c8] sm:$0xff] %vm8_vm0, %v242_v50  ;;  %v645_v18 = vld [vmem:[#allocation2 + $0x48e] sm:$0xf]  ;;  %v7783_v50 = vmin.f32 %v7594_v33, %v7665_v14  ;;  %v904_v51 = vld [vmem:[#allocation2 + $0x4c6] sm:$0xf] }
  0xc4   :  { %16687 = vst [vmem:[#allocation94_spill] sm:$0xff] %v7753_v17  ;;  %443 = vst.msk [vmem:[#allocation2 + $0x5d0] sm:$0xff] %vm8_vm0, %v243_v30  ;;  %v7786_v30 = vmin.f32 %v643_v15, %v7680_v13  ;;  %v248_v57 = vld [vmem:[%s15437_s0 + $0x400] sm:$0xff]  ;;  %v249_v33 = vld [vmem:[%s15437_s0 + $0x408] sm:$0xff]  ;;  %v15587_v15 = vrot.slane %v7749_v54, 1 }
  0xc5   :  { %444 = vst.msk [vmem:[#allocation2 + $0x5d8] sm:$0xff] %vm8_vm0, %v244_v31  ;;  %445 = vst.msk [vmem:[#allocation2 + $0x5f0] sm:$0xff] %vm8_vm0, %v245_v35  ;;  %v16688_v31 = vld [vmem:[#allocation69_spill] sm:$0xff]  ;;  %v16691_v44 = vld [vmem:[#allocation95_spill] sm:$0xff] }
  0xc6   :  { %446 = vst.msk [vmem:[#allocation2 + $0x5f8] sm:$0xff] %vm8_vm0, %v246_v22  ;;  %v16689_v35 = vmin.f32 %v6523_v28, %v16688_v31  ;;  %v7809_v22 = vmin.f32 %v7513_v38, %v7755_v9  ;;  %v7813_v32 = vmin.f32 %v16691_v44, %v7759_v46  ;;  %v7815_v29 = vld [vmem:[#allocation2 + $0x4d6] sm:$0xff]  ;;  %v7817_v48 = vld [vmem:[#allocation2 + $0x4de] sm:$0xff]  ;;  %v7819_v7 = vld [vmem:[#allocation2 + $0x4e6] sm:$0xff]  ;;  %v7835_v31 = vmin.f32 %v7542_v26, %v7775_v37 }
  0xc7   :  { %447 = vst.msk [vmem:[#allocation2 + $0x600] sm:$0xff] %vm8_vm0, %v247_v20  ;;  %448 = vst.msk [vmem:[#allocation2 + $0x608] sm:$0xff] %vm8_vm0, %v248_v57  ;;  %v250_v28 = vld [vmem:[%s15437_s0 + $0x410] sm:$0xff]  ;;  %v251_v38 = vld [vmem:[%s15437_s0 + $0x418] sm:$0xff]  ;;  %v7839_v20 = vmin.f32 %v7545_v10, %v7779_v3  ;;  %v7843_v57 = vmin.f32 %v7552_v62, %v7783_v50 }
  0xc8   :  { %v7805_v21 = vmin.f32 %v16689_v35, %v7753_v17  ;;  %16692 = vst [vmem:[#allocation95_spill] sm:$0xff] %v7813_v32  ;;  %449 = vst.msk [vmem:[#allocation2 + $0x610] sm:$0xff] %vm8_vm0, %v249_v33  ;;  %v252_v44 = vld [vmem:[%s15437_s0 + $0x420] sm:$0xff]  ;;  %v7847_v33 = vmin.f32 %v7555_v11, %v7786_v30  ;;  %v253_v26 = vld [vmem:[%s15437_s0 + $0x428] sm:$0xff]  ;;  %v7864_v11 = vmin.f32 %v7749_v54, %v15587_v15 }
  0xc9   :  { %450 = vst.msk [vmem:[#allocation2 + $0x628] sm:$0xff] %vm8_vm0, %v250_v28  ;;  %451 = vst.msk [vmem:[#allocation2 + $0x630] sm:$0xff] %vm8_vm0, %v251_v38  ;;  %v254_v10 = vld [vmem:[%s15437_s0 + $0x430] sm:$0xff]  ;;  %v255_v62 = vld [vmem:[%s15437_s0 + $0x438] sm:$0xff]  ;;  %v7868_v35 = vmin.f32 %v7290_v61, %v7809_v22 }
  0xca   :  { %16690 = vst [vmem:[#allocation69_spill] sm:$0xff] %v7805_v21  ;;  %452 = vst.msk [vmem:[#allocation2 + $0x638] sm:$0xff] %vm8_vm0, %v252_v44  ;;  %v16695_v28 = vld [vmem:[#allocation70_spill] sm:$0xff]  ;;  %v7878_v21 = vmin.f32 %v7641_v24, %v7733_v27  ;;  %v256_v61 = vld [vmem:[%s15437_s0 + $0x440] sm:$0xff]  ;;  %v7894_v24 = vmin.f32 %v7319_v19, %v7835_v31 }
  0xcb   :  { %16693 = vst [vmem:[#allocation121_spill] sm:$0xff] %v7864_v11  ;;  %16694 = vst [vmem:[#allocation122_spill] sm:$0xff] %v7868_v35  ;;  %v16696_v38 = vmin.f32 %v6527_v16, %v16695_v28  ;;  %v257_v16 = vld [vmem:[%s15437_s0 + $0x448] sm:$0xff]  ;;  %v258_v28 = vld [vmem:[%s15437_s0 + $0x450] sm:$0xff] }
  0xcc   :  { %453 = vst.msk [vmem:[#allocation2 + $0x640] sm:$0xff] %vm8_vm0, %v253_v26  ;;  %454 = vst.msk [vmem:[#allocation2 + $0x648] sm:$0xff] %vm8_vm0, %v254_v10  ;;  %v7898_v26 = vmin.f32 %v7323_v39, %v7839_v20  ;;  %v7902_v10 = vmin.f32 %v7327_v6, %v7843_v57  ;;  %v259_v19 = vld [vmem:[%s15437_s0 + $0x458] sm:$0xff]  ;;  %v16701_v39 = vmin.f32 %v6553_v25, %v6920_v52  ;;  %v16704_v11 = vld [vmem:[#allocation44_spill] sm:$0xff] }
  0xcd   :  { %v7874_v44 = vmin.f32 %v16696_v38, %v7813_v32  ;;  %455 = vst.msk [vmem:[#allocation2 + $0x660] sm:$0xff] %vm8_vm0, %v255_v62  ;;  %16697 = vst [vmem:[#allocation70_spill] sm:$0xff] %v7894_v24  ;;  %v7906_v62 = vmin.f32 %v7364_v1, %v7847_v33  ;;  %v655_v38 = vld [vmem:[#allocation2 + $0x4ee] sm:$0xff]  ;;  %v16702_v1 = vmin.f32 %v16631_v56, %v7466_v4  ;;  %v16743_v17 = vld [vmem:[#allocation18_spill] sm:$0xff] }
  0xce   :  { %16698 = vst [vmem:[#allocation123_spill] sm:$0xff] %v7898_v26  ;;  %16699 = vst [vmem:[#allocation124_spill] sm:$0xff] %v7902_v10  ;;  %v7918_v6 = vmin.f32 %v16701_v39, %v7868_v35  ;;  %v16705_v25 = vmin.f32 %v16704_v11, %v6973_v8  ;;  %v7941_v56 = vmin.f32 %v7661_v58, %v7815_v29  ;;  %v651_v8 = vld [vmem:[#allocation2 + $0x4c6] sm:$0xf]  ;;  %v16741_v35 = vld [vmem:[#allocation81_spill] sm:$0xff] }
  0xcf   :  { %16700 = vst [vmem:[#allocation125_spill] sm:$0xff] %v7906_v62  ;;  %456 = vst.msk [vmem:[#allocation2 + $0x668] sm:$0xff] %vm8_vm0, %v256_v61  ;;  %v7924_v15 = vmin.f32 %v16702_v1, %v7874_v44  ;;  %v7926_v61 = vmin.f32 %v645_v18, %v904_v51  ;;  %v7945_v51 = vmin.f32 %v7663_v49, %v7817_v48  ;;  %v16733_v10 = vld [vmem:[#allocation104_spill] sm:$0xff] }
  0xd0   :  { %457 = vst.msk [vmem:[#allocation2 + $0x670] sm:$0xff] %vm8_vm0, %v257_v16  ;;  %458 = vst.msk [vmem:[#allocation2 + $0x678] sm:$0xff] %vm8_vm0, %v258_v28  ;;  %v7930_v16 = vmin.f32 %v7558_v45, %v7878_v21  ;;  %v656_v28 = vld [vmem:[#allocation2 + $0x4f6] sm:$0xff]  ;;  %v7937_v52 = vmin.f32 %v16705_v25, %v7906_v62  ;;  %v7949_v45 = vmin.f32 %v7665_v14, %v7819_v7  ;;  %v910_v14 = vld [vmem:[#allocation2 + $0x4fe] sm:$0xf] }
  0xd1   :  { %16703 = vst [vmem:[#allocation126_spill] sm:$0xff] %v7924_v15  ;;  %459 = vst.msk [vmem:[#allocation2 + $0x680] sm:$0xff] %vm8_vm0, %v259_v19  ;;  %v16707_v18 = vmin.f32 %v16634_v0, %v7490_v23  ;;  %v7959_v11 = vmin.f32 %v7584_v55, %v7926_v61  ;;  %v7966_v49 = vmin.f32 %v7680_v13, %v655_v38  ;;  %v16712_v25 = vld [vmem:[#allocation74_spill] sm:$0xff]  ;;  %v8130_v23 = vld [vmem:[#allocation2 + $0x566] sm:$0xff] }
  0xd2   :  { %16706 = vst [vmem:[#allocation44_spill] sm:$0xff] %v7937_v52  ;;  %v7963_v58 = vmin.f32 %v7416_v59, %v7930_v16  ;;  %v7970_v39 = vmin.f32 %v7633_v12, %v7941_v56  ;;  %v7974_v0 = vmin.f32 %v7636_v43, %v7945_v51  ;;  %v7978_v55 = vmin.f32 %v7639_v63, %v7949_v45  ;;  %v16711_v12 = vld [vmem:[#allocation48_spill] sm:$0xff]  ;;  %v7998_v15 = vld [vmem:[#allocation2 + $0x516] sm:$0xff] }
  0xd3   :  { %v7955_v19 = vmin.f32 %v16707_v18, %v7918_v6  ;;  %v7981_v1 = vmin.f32 %v7733_v27, %v656_v28  ;;  %v7986_v13 = vmin.f32 %v7436_v34, %v7959_v11  ;;  %v16713_v18 = vmin.f32 %v16711_v12, %v16712_v25  ;;  %v658_v63 = vld [vmem:[#allocation2 + $0x50e] sm:$0xff] }
  0xd4   :  { %16709 = vst [vmem:[#allocation128_spill] sm:$0xff] %v7963_v58  ;;  %v7996_v43 = vmin.f32 %v7659_v53, %v7966_v49  ;;  %v8002_v27 = vmin.f32 %v7470_v36, %v7970_v39  ;;  %v8006_v34 = vmin.f32 %v7494_v42, %v7974_v0  ;;  %v8010_v12 = vmin.f32 %v7498_v47, %v7978_v55  ;;  %v8016_v53 = vld [vmem:[#allocation2 + $0x526] sm:$0xff]  ;;  %v16719_v36 = vld [vmem:[#allocation49_spill] sm:$0xff] }
  0xd5   :  { %16708 = vst [vmem:[#allocation127_spill] sm:$0xff] %v7955_v19  ;;  %v15595_v59 = vrot.slane %v7955_v19, 1  ;;  %16710 = vst [vmem:[#allocation129_spill] sm:$0xff] %v7986_v13  ;;  %v7992_v54 = vmin.f32 %v16713_v18, %v7963_v58  ;;  %v8012_v25 = vmin.f32 %v651_v8, %v910_v14  ;;  %v8014_v18 = vld [vmem:[#allocation2 + $0x51e] sm:$0xff]  ;;  %v16738_v58 = vld [vmem:[#allocation80_spill] sm:$0xff] }
  0xd6   :  { %16714 = vst [vmem:[#allocation48_spill] sm:$0xff] %v7996_v43  ;;  %16715 = vst [vmem:[#allocation74_spill] sm:$0xff] %v8002_v27  ;;  %v16720_v27 = vld [vmem:[#allocation75_spill] sm:$0xff] }
  0xd7   :  { %16716 = vst [vmem:[#allocation130_spill] sm:$0xff] %v8006_v34  ;;  %16717 = vst [vmem:[#allocation131_spill] sm:$0xff] %v8010_v12  ;;  %v8021_v52 = vmin.f32 %v7955_v19, %v15595_v59  ;;  %v16721_v42 = vmin.f32 %v16719_v36, %v16720_v27  ;;  %v8031_v47 = vmin.f32 %v7566_v41, %v7992_v54  ;;  %v16723_v8 = vld [vmem:[#allocation103_spill] sm:$0xff]  ;;  %v8052_v41 = vld [vmem:[#allocation2 + $0x52e] sm:$0xff] }
  0xd8   :  { %v8035_v14 = vmin.f32 %v16723_v8, %v7996_v43  ;;  %v8039_v12 = vmin.f32 %v7703_v2, %v7981_v1  ;;  %v8043_v59 = vmin.f32 %v7755_v9, %v8012_v25  ;;  %v8046_v27 = vmin.f32 %v7815_v29, %v658_v63  ;;  %v16729_v2 = vld [vmem:[#allocation56_spill] sm:$0xff]  ;;  %v657_v9 = vld [vmem:[#allocation2 + $0x4fe] sm:$0xf] }
  0xd9   :  { %16718 = vst [vmem:[#allocation132_spill] sm:$0xff] %v8021_v52  ;;  %v8027_v34 = vmin.f32 %v16721_v42, %v7986_v13  ;;  %16722 = vst [vmem:[#allocation49_spill] sm:$0xff] %v8031_v47  ;;  %v8050_v36 = vmin.f32 %v7817_v48, %v7998_v15  ;;  %v16727_v42 = vld [vmem:[#allocation29_spill] sm:$0xff]  ;;  %v16730_v52 = vld [vmem:[#allocation79_spill] sm:$0xff]  ;;  %v8066_v29 = vmin.f32 %v7819_v7, %v8014_v18 }
  0xda   :  { %16724 = vst [vmem:[#allocation75_spill] sm:$0xff] %v8035_v14  ;;  %16725 = vst [vmem:[#allocation103_spill] sm:$0xff] %v8039_v12  ;;  %v16731_v47 = vmin.f32 %v16729_v2, %v16730_v52  ;;  %v8069_v48 = vmin.f32 %v655_v38, %v8016_v53  ;;  %v8073_v26 = vmin.f32 %v16733_v10, %v8039_v12  ;;  %v916_v7 = vld [vmem:[#allocation2 + $0x536] sm:$0xf]  ;;  %v8087_v2 = vld [vmem:[#allocation2 + $0x546] sm:$0xff] }
  0xdb   :  { %16726 = vst [vmem:[#allocation133_spill] sm:$0xff] %v8043_v59  ;;  %v8056_v8 = vmin.f32 %v16727_v42, %v8027_v34  ;;  %v16735_v42 = vld [vmem:[#allocation107_spill] sm:$0xff]  ;;  %v8081_v52 = vmin.f32 %v7775_v37, %v8046_v27  ;;  %v8089_v38 = vld [vmem:[#allocation2 + $0x54e] sm:$0xff]  ;;  %v8101_v37 = vmin.f32 %v656_v28, %v8052_v41  ;;  %v16745_v12 = vld [vmem:[#allocation110_spill] sm:$0xff] }
  0xdc   :  { %v8062_v19 = vmin.f32 %v16731_v47, %v8035_v14  ;;  %16734 = vst [vmem:[#allocation79_spill] sm:$0xff] %v8073_v26  ;;  %v8077_v24 = vmin.f32 %v16735_v42, %v8043_v59  ;;  %v8085_v47 = vmin.f32 %v7779_v3, %v8050_v36  ;;  %v8098_v42 = vmin.f32 %v7786_v30, %v8069_v48  ;;  %v8103_v3 = vld [vmem:[#allocation2 + $0x556] sm:$0xff]  ;;  %v8105_v14 = vld [vmem:[#allocation2 + $0x55e] sm:$0xff]  ;;  %v16740_v30 = vld [vmem:[#allocation60_spill] sm:$0xff] }
  0xdd   :  { %16728 = vst [vmem:[#allocation29_spill] sm:$0xff] %v8056_v8  ;;  %v260_v13 = vld [vmem:[%s15437_s0 + $0x460] sm:$0xff]  ;;  %v16737_v10 = vld [vmem:[#allocation57_spill] sm:$0xff]  ;;  %v16742_v32 = vmin.f32 %v16740_v30, %v16741_v35  ;;  %v8124_v59 = vmin.f32 %v16743_v17, %v8081_v52  ;;  %v263_v17 = vld [vmem:[%s15437_s0 + $0x478] sm:$0xff]  ;;  %v16747_v35 = vrot.slane %v8056_v8, 1 }
  0xde   :  { %16732 = vst [vmem:[#allocation56_spill] sm:$0xff] %v8062_v19  ;;  %16736 = vst [vmem:[#allocation104_spill] sm:$0xff] %v8077_v24  ;;  %v8094_v19 = vmin.f32 %v7783_v50, %v8066_v29  ;;  %v16739_v50 = vmin.f32 %v16737_v10, %v16738_v58  ;;  %v8128_v43 = vmin.f32 %v16745_v12, %v8085_v47  ;;  %v261_v58 = vld [vmem:[%s15437_s0 + $0x468] sm:$0xff]  ;;  %v16749_v10 = vld [vmem:[#allocation111_spill] sm:$0xff] }
  0xdf   :  { %v8120_v28 = vmin.f32 %v16742_v32, %v8077_v24  ;;  %16744 = vst [vmem:[#allocation107_spill] sm:$0xff] %v8124_v59  ;;  %460 = vst.msk [vmem:[#allocation2 + $0x698] sm:$0xff] %vm8_vm0, %v260_v13  ;;  %v262_v32 = vld [vmem:[%s15437_s0 + $0x470] sm:$0xff]  ;;  %v8145_v12 = vmin.f32 %v8056_v8, %v16747_v35  ;;  %v264_v35 = vld [vmem:[%s15437_s0 + $0x480] sm:$0xff] }
  0xe0   :  { %v8114_v62 = vmin.f32 %v16739_v50, %v8073_v26  ;;  %16746 = vst [vmem:[#allocation57_spill] sm:$0xff] %v8128_v43  ;;  %v8149_v13 = vmin.f32 %v16749_v10, %v8094_v19  ;;  %v16751_v50 = vld [vmem:[#allocation112_spill] sm:$0xff]  ;;  %v8155_v43 = vmin.f32 %v657_v9, %v916_v7  ;;  %461 = vst.msk [vmem:[#allocation2 + $0x6a0] sm:$0xff] %vm8_vm0, %v261_v58  ;;  %v663_v58 = vld [vmem:[#allocation2 + $0x536] sm:$0xf] }
  0xe1   :  { %16748 = vst [vmem:[#allocation80_spill] sm:$0xff] %v8145_v12  ;;  %v8153_v30 = vmin.f32 %v16751_v50, %v8098_v42  ;;  %462 = vst.msk [vmem:[#allocation2 + $0x6a8] sm:$0xff] %vm8_vm0, %v262_v32  ;;  %v265_v10 = vld [vmem:[%s15437_s0 + $0x488] sm:$0xff]  ;;  %v266_v50 = vld [vmem:[%s15437_s0 + $0x490] sm:$0xff]  ;;  %v8175_v7 = vmin.f32 %v7692_v5, %v8120_v28  ;;  %v8179_v32 = vmin.f32 %v7878_v21, %v8101_v37 }
  0xe2   :  { %16750 = vst [vmem:[#allocation60_spill] sm:$0xff] %v8149_v13  ;;  %463 = vst.msk [vmem:[#allocation2 + $0x6b0] sm:$0xff] %vm8_vm0, %v263_v17  ;;  %v8171_v9 = vmin.f32 %v7657_v40, %v8114_v62  ;;  %v8182_v17 = vmin.f32 %v658_v63, %v8087_v2  ;;  %v922_v12 = vld [vmem:[#allocation2 + $0x56e] sm:$0xf]  ;;  %v267_v40 = vld [vmem:[%s15437_s0 + $0x498] sm:$0xff] }
  0xe3   :  { %16752 = vst [vmem:[#allocation81_spill] sm:$0xff] %v8153_v30  ;;  %16754 = vst [vmem:[#allocation110_spill] sm:$0xff] %v8175_v7  ;;  %v268_v5 = vld [vmem:[%s15437_s0 + $0x4a0] sm:$0xff]  ;;  %v269_v21 = vld [vmem:[%s15437_s0 + $0x4a8] sm:$0xff] }
  0xe4   :  { %16753 = vst [vmem:[#allocation18_spill] sm:$0xff] %v8171_v9  ;;  %464 = vst.msk [vmem:[#allocation2 + $0x6b8] sm:$0xff] %vm8_vm0, %v264_v35  ;;  %v16755_v63 = vld [vmem:[#allocation88_spill] sm:$0xff]  ;;  %v8202_v35 = vmin.f32 %v7926_v61, %v8155_v43  ;;  %v8212_v8 = vld [vmem:[#allocation2 + $0x57e] sm:$0xff] }
  0xe5   :  { %465 = vst.msk [vmem:[#allocation2 + $0x6d0] sm:$0xff] %vm8_vm0, %v265_v10  ;;  %466 = vst.msk [vmem:[#allocation2 + $0x6d8] sm:$0xff] %vm8_vm0, %v266_v50  ;;  %v8198_v9 = vmin.f32 %v16755_v63, %v8153_v30  ;;  %v8206_v10 = vmin.f32 %v7998_v15, %v8089_v38  ;;  %v8210_v50 = vmin.f32 %v8014_v18, %v8103_v3  ;;  %v270_v61 = vld [vmem:[%s15437_s0 + $0x4b0] sm:$0xff]  ;;  %v271_v15 = vld [vmem:[%s15437_s0 + $0x4b8] sm:$0xff] }
  0xe6   :  { %467 = vst.msk [vmem:[#allocation2 + $0x6e0] sm:$0xff] %vm8_vm0, %v267_v40  ;;  %468 = vst.msk [vmem:[#allocation2 + $0x6e8] sm:$0xff] %vm8_vm0, %v268_v5  ;;  %v272_v18 = vld [vmem:[%s15437_s0 + $0x4c0] sm:$0xff]  ;;  %v16757_v40 = vld [vmem:[#allocation113_spill] sm:$0xff]  ;;  %v8233_v5 = vmin.f32 %v7941_v56, %v8182_v17 }
  0xe7   :  { %16756 = vst [vmem:[#allocation111_spill] sm:$0xff] %v8198_v9  ;;  %469 = vst.msk [vmem:[#allocation2 + $0x6f0] sm:$0xff] %vm8_vm0, %v269_v21  ;;  %v8229_v9 = vmin.f32 %v16757_v40, %v8179_v32  ;;  %v8237_v21 = vmin.f32 %v8016_v53, %v8105_v14  ;;  %v8239_v13 = vld [vmem:[#allocation2 + $0x586] sm:$0xff]  ;;  %v8241_v59 = vld [vmem:[#allocation2 + $0x58e] sm:$0xff] }
  0xe8   :  { %470 = vst.msk [vmem:[#allocation2 + $0x708] sm:$0xff] %vm8_vm0, %v270_v61  ;;  %471 = vst.msk [vmem:[#allocation2 + $0x710] sm:$0xff] %vm8_vm0, %v271_v15  ;;  %v273_v40 = vld [vmem:[%s15437_s0 + $0x4c8] sm:$0xff]  ;;  %v274_v56 = vld [vmem:[%s15437_s0 + $0x4d0] sm:$0xff]  ;;  %v8261_v61 = vmin.f32 %v7945_v51, %v8206_v10  ;;  %v8265_v15 = vmin.f32 %v7949_v45, %v8210_v50  ;;  %v8294_v24 = vmin.f32 %v7670_v60, %v8233_v5 }
  0xe9   :  { %16758 = vst [vmem:[#allocation112_spill] sm:$0xff] %v8229_v9  ;;  %472 = vst.msk [vmem:[#allocation2 + $0x718] sm:$0xff] %vm8_vm0, %v272_v18  ;;  %v275_v53 = vld [vmem:[%s15437_s0 + $0x4d8] sm:$0xff]  ;;  %v16759_v63 = vld [vmem:[#allocation119_spill] sm:$0xff]  ;;  %v8269_v18 = vmin.f32 %v8052_v41, %v8130_v23  ;;  %v16761_v41 = vrot.slane %v8175_v7, 1  ;;  %v8298_v26 = vmin.f32 %v7966_v49, %v8237_v21 }
  0xea   :  { %v8257_v30 = vmin.f32 %v16759_v63, %v8202_v35  ;;  %473 = vst.msk [vmem:[#allocation2 + $0x720] sm:$0xff] %vm8_vm0, %v273_v40  ;;  %474 = vst.msk [vmem:[#allocation2 + $0x728] sm:$0xff] %vm8_vm0, %v274_v56  ;;  %v276_v63 = vld [vmem:[%s15437_s0 + $0x4e0] sm:$0xff]  ;;  %v277_v51 = vld [vmem:[%s15437_s0 + $0x4e8] sm:$0xff] }
  0xeb   :  { %475 = vst.msk [vmem:[#allocation2 + $0x740] sm:$0xff] %vm8_vm0, %v275_v53  ;;  %v278_v45 = vld [vmem:[%s15437_s0 + $0x4f0] sm:$0xff]  ;;  %v8286_v40 = vmin.f32 %v8175_v7, %v16761_v41  ;;  %16764 = vst [vmem:[#allocation119_spill] sm:$0xff] %v8294_v24  ;;  %v279_v41 = vld [vmem:[%s15437_s0 + $0x4f8] sm:$0xff]  ;;  %v8324_v24 = vmin.f32 %v663_v58, %v922_v12 }
  0xec   :  { %16760 = vst [vmem:[#allocation88_spill] sm:$0xff] %v8257_v30  ;;  %v16763_v56 = vld [vmem:[#allocation89_spill] sm:$0xff]  ;;  %476 = vst.msk [vmem:[#allocation2 + $0x748] sm:$0xff] %vm8_vm0, %v276_v63  ;;  %v281_v60 = vld [vmem:[%s15437_s0 + $0x508] sm:$0xff] }
  0xed   :  { %16762 = vst [vmem:[#allocation113_spill] sm:$0xff] %v8286_v40  ;;  %v8290_v53 = vmin.f32 %v16763_v56, %v8229_v9  ;;  %477 = vst.msk [vmem:[#allocation2 + $0x750] sm:$0xff] %vm8_vm0, %v277_v51  ;;  %v280_v56 = vld [vmem:[%s15437_s0 + $0x500] sm:$0xff]  ;;  %v16766_v63 = vld [vmem:[#allocation86_spill] sm:$0xff] }
  0xee   :  { %478 = vst.msk [vmem:[#allocation2 + $0x758] sm:$0xff] %vm8_vm0, %v278_v45  ;;  %v16765_v49 = vld [vmem:[#allocation91_spill] sm:$0xff]  ;;  %v8318_v51 = vmin.f32 %v16766_v63, %v8261_v61  ;;  %v16768_v45 = vld [vmem:[#allocation34_spill] sm:$0xff]  ;;  %479 = vst.msk [vmem:[#allocation2 + $0x760] sm:$0xff] %vm8_vm0, %v279_v41  ;;  %v8345_v41 = vmin.f32 %v7981_v1, %v8269_v18  ;;  %v8363_v1 = vmin.f32 %v8089_v38, %v8239_v13 }
  0xef   :  { %v8314_v40 = vmin.f32 %v16765_v49, %v8257_v30  ;;  %v8322_v7 = vmin.f32 %v16768_v45, %v8265_v15  ;;  %v673_v9 = vld [vmem:[#allocation2 + $0x596] sm:$0xff]  ;;  %480 = vst.msk [vmem:[#allocation2 + $0x778] sm:$0xff] %vm8_vm0, %v280_v56  ;;  %481 = vst.msk [vmem:[#allocation2 + $0x780] sm:$0xff] %vm8_vm0, %v281_v60  ;;  %v8337_v45 = vmin.f32 %v7874_v44, %v8290_v53  ;;  %v16771_v12 = vld [vmem:[#allocation35_spill] sm:$0xff] }
  0xf0   :  { %16767 = vst [vmem:[#allocation89_spill] sm:$0xff] %v8318_v51  ;;  %v282_v49 = vld [vmem:[%s15437_s0 + $0x510] sm:$0xff]  ;;  %v283_v63 = vld [vmem:[%s15437_s0 + $0x518] sm:$0xff]  ;;  %v8341_v58 = vmin.f32 %v16771_v12, %v8298_v26  ;;  %v8349_v56 = vmin.f32 %v8087_v2, %v8212_v8  ;;  %v8359_v60 = vmin.f32 %v8012_v25, %v8324_v24  ;;  %v8367_v2 = vmin.f32 %v8103_v3, %v8241_v59 }
  0xf1   :  { %16769 = vst [vmem:[#allocation91_spill] sm:$0xff] %v8322_v7  ;;  %16770 = vst [vmem:[#allocation86_spill] sm:$0xff] %v8337_v45  ;;  %v8355_v44 = vmin.f32 %v7918_v6, %v8314_v40  ;;  %v674_v12 = vld [vmem:[#allocation2 + $0x59e] sm:$0xff]  ;;  %v8375_v6 = vmin.f32 %v7759_v46, %v8345_v41  ;;  %v8382_v38 = vmin.f32 %v8105_v14, %v673_v9  ;;  %v669_v3 = vld [vmem:[#allocation2 + $0x56e] sm:$0xf] }
  0xf2   :  { %16772 = vst [vmem:[#allocation34_spill] sm:$0xff] %v8341_v58  ;;  %482 = vst.msk [vmem:[#allocation2 + $0x788] sm:$0xff] %vm8_vm0, %v282_v49  ;;  %v16775_v49 = vld [vmem:[#allocation97_spill] sm:$0xff]  ;;  %v8379_v25 = vmin.f32 %v8046_v27, %v8349_v56  ;;  %v8387_v7 = vmin.f32 %v7809_v22, %v8359_v60  ;;  %v8395_v46 = vmin.f32 %v8066_v29, %v8367_v2  ;;  %v928_v27 = vld [vmem:[#allocation2 + $0x5a6] sm:$0xf] }
  0xf3   :  { %483 = vst.msk [vmem:[#allocation2 + $0x790] sm:$0xff] %vm8_vm0, %v283_v63  ;;  %16773 = vst [vmem:[#allocation35_spill] sm:$0xff] %v8355_v44  ;;  %v8371_v63 = vmin.f32 %v16775_v49, %v8341_v58  ;;  %v8391_v49 = vmin.f32 %v8050_v36, %v8363_v1  ;;  %v8407_v22 = vmin.f32 %v8069_v48, %v8382_v38  ;;  %v676_v51 = vld [vmem:[#allocation2 + $0x5b6] sm:$0xff]  ;;  %v677_v58 = vld [vmem:[#allocation2 + $0x5be] sm:$0xff]  ;;  %v16781_v30 = vrot.slane %v8355_v44, 1 }
  0xf4   :  { %16774 = vst [vmem:[#allocation134_spill] sm:$0xff] %v8359_v60  ;;  %16777 = vst [vmem:[#allocation135_spill] sm:$0xff] %v8375_v6  ;;  %v8403_v45 = vmin.f32 %v7835_v31, %v8379_v25  ;;  %v8410_v36 = vmin.f32 %v8130_v23, %v674_v12  ;;  %v678_v29 = vld [vmem:[#allocation2 + $0x5c6] sm:$0xff]  ;;  %v8427_v23 = vmin.f32 %v7843_v57, %v8395_v46  ;;  %v8429_v48 = vld [vmem:[#allocation2 + $0x5ce] sm:$0xff] }
  0xf5   :  { %16776 = vst [vmem:[#allocation97_spill] sm:$0xff] %v8371_v63  ;;  %16778 = vst [vmem:[#allocation136_spill] sm:$0xff] %v8387_v7  ;;  %v16779_v63 = vld [vmem:[#allocation98_spill] sm:$0xff]  ;;  %v8415_v60 = vmin.f32 %v8355_v44, %v16781_v30  ;;  %v8423_v31 = vmin.f32 %v7839_v20, %v8391_v49  ;;  %v8437_v30 = vmin.f32 %v7847_v33, %v8407_v22 }
  0xf6   :  { %v8399_v14 = vmin.f32 %v16779_v63, %v8375_v6  ;;  %16780 = vst [vmem:[#allocation98_spill] sm:$0xff] %v8403_v45  ;;  %v16783_v63 = vld [vmem:[#allocation99_spill] sm:$0xff]  ;;  %16785 = vst [vmem:[#allocation138_spill] sm:$0xff] %v8427_v23  ;;  %v8443_v20 = vmin.f32 %v8101_v37, %v8410_v36  ;;  %v8458_v33 = vld [vmem:[#allocation2 + $0x5d6] sm:$0xff] }
  0xf7   :  { %16782 = vst [vmem:[#allocation137_spill] sm:$0xff] %v8415_v60  ;;  %v8419_v6 = vmin.f32 %v16783_v63, %v8387_v7  ;;  %16784 = vst [vmem:[#allocation99_spill] sm:$0xff] %v8423_v31  ;;  %v8439_v63 = vmin.f32 %v669_v3, %v928_v27  ;;  %v8450_v60 = vmin.f32 %v8212_v8, %v676_v51  ;;  %v16789_v3 = vld [vmem:[#allocation28_spill] sm:$0xff] }
  0xf8   :  { %v8433_v45 = vmin.f32 %v7992_v54, %v8399_v14  ;;  %16787 = vst [vmem:[#allocation140_spill] sm:$0xff] %v8437_v30  ;;  %v8453_v54 = vmin.f32 %v8239_v13, %v677_v58  ;;  %v8462_v27 = vmin.f32 %v16789_v3, %v8437_v30  ;;  %v675_v37 = vld [vmem:[#allocation2 + $0x5a6] sm:$0xf]  ;;  %v8470_v8 = vmin.f32 %v7930_v16, %v8443_v20  ;;  %v8488_v16 = vld [vmem:[#allocation2 + $0x5ee] sm:$0xff]  ;;  %v8490_v3 = vld [vmem:[#allocation2 + $0x5f6] sm:$0xff] }
  0xf9   :  { %v8447_v57 = vmin.f32 %v8027_v34, %v8419_v6  ;;  %v8466_v34 = vmin.f32 %v8155_v43, %v8439_v63  ;;  %v8473_v13 = vmin.f32 %v673_v9, %v8429_v48  ;;  %v8478_v23 = vmin.f32 %v8182_v17, %v8450_v60  ;;  %v8492_v9 = vld [vmem:[#allocation2 + $0x5fe] sm:$0xff]  ;;  %v8509_v31 = vld [vmem:[#allocation2 + $0x606] sm:$0xff] }
  0xfa   :  { %16786 = vst [vmem:[#allocation139_spill] sm:$0xff] %v8433_v45  ;;  %v8456_v45 = vmin.f32 %v8241_v59, %v678_v29  ;;  %16790 = vst [vmem:[#allocation142_spill] sm:$0xff] %v8462_v27  ;;  %v934_v59 = vld [vmem:[#allocation2 + $0x5de] sm:$0xf]  ;;  %v8482_v27 = vmin.f32 %v8206_v10, %v8453_v54  ;;  %v8500_v17 = vmin.f32 %v7466_v4, %v8470_v8 }
  0xfb   :  { %16788 = vst [vmem:[#allocation141_spill] sm:$0xff] %v8447_v57  ;;  %16791 = vst [vmem:[#allocation143_spill] sm:$0xff] %v8466_v34  ;;  %v8496_v44 = vmin.f32 %v7959_v11, %v8466_v34  ;;  %v8504_v10 = vmin.f32 %v8237_v21, %v8473_v13  ;;  %v284_v30 = vld [vmem:[%s15437_s0 + $0x520] sm:$0xff]  ;;  %v285_v11 = vld [vmem:[%s15437_s0 + $0x528] sm:$0xff]  ;;  %v16794_v4 = vrot.slane %v8447_v57, 1  ;;  %v8524_v21 = vmin.f32 %v7970_v39, %v8478_v23 }
  0xfc   :  { %16792 = vst [vmem:[#allocation144_spill] sm:$0xff] %v8470_v8  ;;  %v8486_v43 = vmin.f32 %v8210_v50, %v8456_v45  ;;  %v8507_v50 = vmin.f32 %v674_v12, %v8458_v33  ;;  %v8528_v12 = vmin.f32 %v7974_v0, %v8482_v27  ;;  %v8534_v34 = vld [vmem:[#allocation2 + $0x60e] sm:$0xff]  ;;  %484 = vst.msk [vmem:[#allocation2 + $0x798] sm:$0xff] %vm8_vm0, %v284_v30  ;;  %v287_v39 = vld [vmem:[%s15437_s0 + $0x538] sm:$0xff] }
  0xfd   :  { %16793 = vst [vmem:[#allocation145_spill] sm:$0xff] %v8496_v44  ;;  %v8520_v8 = vmin.f32 %v8447_v57, %v16794_v4  ;;  %16796 = vst [vmem:[#allocation147_spill] sm:$0xff] %v8524_v21  ;;  %v286_v4 = vld [vmem:[%s15437_s0 + $0x530] sm:$0xff]  ;;  %v288_v0 = vld [vmem:[%s15437_s0 + $0x540] sm:$0xff]  ;;  %v8553_v30 = vmin.f32 %v8114_v62, %v8500_v17 }
  0xfe   :  { %16797 = vst [vmem:[#allocation148_spill] sm:$0xff] %v8528_v12  ;;  %v8532_v7 = vmin.f32 %v7978_v55, %v8486_v43  ;;  %485 = vst.msk [vmem:[#allocation2 + $0x7b0] sm:$0xff] %vm8_vm0, %v285_v11  ;;  %v16799_v55 = vld [vmem:[#allocation102_spill] sm:$0xff]  ;;  %v16801_v11 = vld [vmem:[#allocation48_spill] sm:$0xff]  ;;  %v8612_v12 = vmin.f32 %v8429_v48, %v8509_v31 }
  0xff   :  { %16795 = vst [vmem:[#allocation146_spill] sm:$0xff] %v8520_v8  ;;  %v8549_v8 = vmin.f32 %v16799_v55, %v8496_v44  ;;  %16800 = vst [vmem:[#allocation102_spill] sm:$0xff] %v8553_v30  ;;  %v8557_v57 = vmin.f32 %v16801_v11, %v8504_v10  ;;  %v289_v55 = vld [vmem:[%s15437_s0 + $0x548] sm:$0xff]  ;;  %v290_v62 = vld [vmem:[%s15437_s0 + $0x550] sm:$0xff] }
 0x100   :  { %16798 = vst [vmem:[#allocation149_spill] sm:$0xff] %v8532_v7  ;;  %v8559_v7 = vmin.f32 %v675_v37, %v934_v59  ;;  %486 = vst.msk [vmem:[#allocation2 + $0x7b8] sm:$0xff] %vm8_vm0, %v286_v4  ;;  %v291_v11 = vld [vmem:[%s15437_s0 + $0x558] sm:$0xff]  ;;  %v8575_v59 = vmin.f32 %v8269_v18, %v8507_v50  ;;  %v8578_v4 = vmin.f32 %v676_v51, %v8488_v16  ;;  %v292_v18 = vld [vmem:[%s15437_s0 + $0x560] sm:$0xff] }
 0x101   :  { %16802 = vst [vmem:[#allocation48_spill] sm:$0xff] %v8557_v57  ;;  %487 = vst.msk [vmem:[#allocation2 + $0x7c0] sm:$0xff] %vm8_vm0, %v287_v39  ;;  %v681_v37 = vld [vmem:[#allocation2 + $0x5de] sm:$0xf]  ;;  %v8581_v39 = vmin.f32 %v677_v58, %v8490_v3  ;;  %v940_v30 = vld [vmem:[#allocation2 + $0x616] sm:$0xf] }
 0x102   :  { %488 = vst.msk [vmem:[#allocation2 + $0x7c8] sm:$0xff] %vm8_vm0, %v288_v0  ;;  %16803 = vst [vmem:[#allocation150_spill] sm:$0xff] %v8575_v59  ;;  %v8584_v0 = vmin.f32 %v678_v29, %v8492_v9  ;;  %v293_v51 = vld [vmem:[%s15437_s0 + $0x568] sm:$0xff]  ;;  %v294_v58 = vld [vmem:[%s15437_s0 + $0x570] sm:$0xff]  ;;  %v8600_v29 = vmin.f32 %v8120_v28, %v8549_v8 }
 0x103   :  { %489 = vst.msk [vmem:[#allocation2 + $0x7d0] sm:$0xff] %vm8_vm0, %v289_v55  ;;  %490 = vst.msk [vmem:[#allocation2 + $0x7e8] sm:$0xff] %vm8_vm0, %v290_v62  ;;  %v16805_v55 = vld [vmem:[#allocation106_spill] sm:$0xff]  ;;  %v8614_v21 = vld [vmem:[#allocation2 + $0x626] sm:$0xff] }
 0x104   :  { %491 = vst.msk [vmem:[#allocation2 + $0x7f0] sm:$0xff] %vm8_vm0, %v291_v11  ;;  %16804 = vst [vmem:[#allocation151_spill] sm:$0xff] %v8600_v29  ;;  %v8604_v62 = vmin.f32 %v16805_v55, %v8557_v57  ;;  %v8608_v11 = vmin.f32 %v8324_v24, %v8559_v7  ;;  %v8616_v44 = vld [vmem:[#allocation2 + $0x62e] sm:$0xff]  ;;  %v295_v28 = vld [vmem:[%s15437_s0 + $0x578] sm:$0xff] }
 0x105   :  { %492 = vst.msk [vmem:[#allocation2 + $0x7f8] sm:$0xff] %vm8_vm0, %v292_v18  ;;  %493 = vst.msk [vmem:[#allocation2 + $0x800] sm:$0xff] %vm8_vm0, %v293_v51  ;;  %v296_v24 = vld [vmem:[%s15437_s0 + $0x580] sm:$0xff]  ;;  %v297_v48 = vld [vmem:[%s15437_s0 + $0x588] sm:$0xff]  ;;  %v8636_v18 = vmin.f32 %v8349_v56, %v8578_v4  ;;  %v8640_v51 = vmin.f32 %v8363_v1, %v8581_v39 }
 0x106   :  { %16806 = vst [vmem:[#allocation106_spill] sm:$0xff] %v8604_v62  ;;  %16807 = vst [vmem:[#allocation152_spill] sm:$0xff] %v8608_v11  ;;  %v16808_v55 = vld [vmem:[#allocation103_spill] sm:$0xff]  ;;  %v8646_v57 = vld [vmem:[#allocation2 + $0x636] sm:$0xff] }
 0x107   :  { %494 = vst.msk [vmem:[#allocation2 + $0x808] sm:$0xff] %vm8_vm0, %v294_v58  ;;  %v8632_v62 = vmin.f32 %v16808_v55, %v8575_v59  ;;  %v8644_v58 = vmin.f32 %v8367_v2, %v8584_v0  ;;  %495 = vst.msk [vmem:[#allocation2 + $0x820] sm:$0xff] %vm8_vm0, %v295_v28  ;;  %v298_v56 = vld [vmem:[%s15437_s0 + $0x590] sm:$0xff]  ;;  %v299_v1 = vld [vmem:[%s15437_s0 + $0x598] sm:$0xff] }
 0x108   :  { %496 = vst.msk [vmem:[#allocation2 + $0x828] sm:$0xff] %vm8_vm0, %v296_v24  ;;  %497 = vst.msk [vmem:[#allocation2 + $0x830] sm:$0xff] %vm8_vm0, %v297_v48  ;;  %v300_v2 = vld [vmem:[%s15437_s0 + $0x5a0] sm:$0xff]  ;;  %v16810_v28 = vld [vmem:[#allocation133_spill] sm:$0xff]  ;;  %v8667_v24 = vmin.f32 %v8382_v38, %v8612_v12  ;;  %v8671_v48 = vmin.f32 %v8458_v33, %v8534_v34 }
 0x109   :  { %16809 = vst [vmem:[#allocation103_spill] sm:$0xff] %v8632_v62  ;;  %v8663_v59 = vmin.f32 %v16810_v28, %v8608_v11  ;;  %498 = vst.msk [vmem:[#allocation2 + $0x838] sm:$0xff] %vm8_vm0, %v298_v56  ;;  %v301_v55 = vld [vmem:[%s15437_s0 + $0x5a8] sm:$0xff]  ;;  %v302_v28 = vld [vmem:[%s15437_s0 + $0x5b0] sm:$0xff]  ;;  %v8691_v56 = vmin.f32 %v8081_v52, %v8636_v18 }
 0x10a   :  { %499 = vst.msk [vmem:[#allocation2 + $0x840] sm:$0xff] %vm8_vm0, %v299_v1  ;;  %500 = vst.msk [vmem:[#allocation2 + $0x858] sm:$0xff] %vm8_vm0, %v300_v2  ;;  %v303_v38 = vld [vmem:[%s15437_s0 + $0x5b8] sm:$0xff]  ;;  %v16812_v33 = vld [vmem:[#allocation108_spill] sm:$0xff]  ;;  %v8695_v1 = vmin.f32 %v8085_v47, %v8640_v51  ;;  %v8699_v2 = vmin.f32 %v8094_v19, %v8644_v58  ;;  %v16816_v19 = vrot.slane %v8600_v29, 1 }
 0x10b   :  { %16811 = vst [vmem:[#allocation133_spill] sm:$0xff] %v8663_v59  ;;  %v8687_v11 = vmin.f32 %v16812_v33, %v8632_v62  ;;  %16813 = vst [vmem:[#allocation108_spill] sm:$0xff] %v8691_v56  ;;  %v304_v33 = vld [vmem:[%s15437_s0 + $0x5c0] sm:$0xff]  ;;  %v305_v52 = vld [vmem:[%s15437_s0 + $0x5c8] sm:$0xff] }
 0x10c   :  { %16814 = vst [vmem:[#allocation153_spill] sm:$0xff] %v8695_v1  ;;  %16815 = vst [vmem:[#allocation154_spill] sm:$0xff] %v8699_v2  ;;  %v306_v47 = vld [vmem:[%s15437_s0 + $0x5d0] sm:$0xff]  ;;  %v8724_v2 = vmin.f32 %v8098_v42, %v8667_v24  ;;  %v8726_v1 = vmin.f32 %v681_v37, %v940_v30  ;;  %v691_v56 = vld [vmem:[#allocation2 + $0x63e] sm:$0xff]  ;;  %v8741_v42 = vmin.f32 %v8488_v16, %v8614_v21 }
 0x10d   :  { %501 = vst.msk [vmem:[#allocation2 + $0x860] sm:$0xff] %vm8_vm0, %v301_v55  ;;  %502 = vst.msk [vmem:[#allocation2 + $0x868] sm:$0xff] %vm8_vm0, %v302_v28  ;;  %v8716_v55 = vmin.f32 %v8600_v29, %v16816_v19  ;;  %v16818_v28 = vld [vmem:[#allocation109_spill] sm:$0xff]  ;;  %v8733_v19 = vmin.f32 %v8290_v53, %v8687_v11  ;;  %v8745_v30 = vmin.f32 %v8490_v3, %v8616_v44  ;;  %v692_v37 = vld [vmem:[#allocation2 + $0x646] sm:$0xff] }
 0x10e   :  { %503 = vst.msk [vmem:[#allocation2 + $0x870] sm:$0xff] %vm8_vm0, %v303_v38  ;;  %v8720_v38 = vmin.f32 %v16818_v28, %v8663_v59  ;;  %16819 = vst [vmem:[#allocation109_spill] sm:$0xff] %v8724_v2  ;;  %v8737_v28 = vmin.f32 %v8410_v36, %v8671_v48  ;;  %v16822_v53 = vld [vmem:[#allocation118_spill] sm:$0xff]  ;;  %v8757_v36 = vmin.f32 %v8439_v63, %v8726_v1 }
 0x10f   :  { %16817 = vst [vmem:[#allocation155_spill] sm:$0xff] %v8716_v55  ;;  %504 = vst.msk [vmem:[#allocation2 + $0x878] sm:$0xff] %vm8_vm0, %v304_v33  ;;  %v8761_v16 = vmin.f32 %v8492_v9, %v8646_v57  ;;  %v8776_v63 = vmin.f32 %v8509_v31, %v691_v56  ;;  %v946_v55 = vld [vmem:[#allocation2 + $0x64e] sm:$0xf]  ;;  %v8790_v29 = vld [vmem:[#allocation2 + $0x65e] sm:$0xff] }
 0x110   :  { %505 = vst.msk [vmem:[#allocation2 + $0x890] sm:$0xff] %vm8_vm0, %v305_v52  ;;  %506 = vst.msk [vmem:[#allocation2 + $0x898] sm:$0xff] %vm8_vm0, %v306_v47  ;;  %v8749_v33 = vmin.f32 %v8314_v40, %v8720_v38  ;;  %v8753_v52 = vmin.f32 %v16822_v53, %v8724_v2  ;;  %v687_v47 = vld [vmem:[#allocation2 + $0x616] sm:$0xf]  ;;  %v8765_v3 = vmin.f32 %v8179_v32, %v8737_v28 }
 0x111   :  { %16820 = vst [vmem:[#allocation156_spill] sm:$0xff] %v8733_v19  ;;  %v8769_v40 = vmin.f32 %v8450_v60, %v8741_v42  ;;  %v8773_v53 = vmin.f32 %v8453_v54, %v8745_v30  ;;  %v8781_v19 = vmin.f32 %v8202_v35, %v8757_v36  ;;  %v8785_v32 = vmin.f32 %v8456_v45, %v8761_v16  ;;  %v16826_v54 = vld [vmem:[#allocation83_spill] sm:$0xff]  ;;  %v307_v62 = vld [vmem:[%s15437_s0 + $0x5d8] sm:$0xff] }
 0x112   :  { %16821 = vst [vmem:[#allocation157_spill] sm:$0xff] %v8749_v33  ;;  %16823 = vst [vmem:[#allocation118_spill] sm:$0xff] %v8753_v52  ;;  %v8788_v60 = vmin.f32 %v8534_v34, %v692_v37  ;;  %v8794_v31 = vmin.f32 %v16826_v54, %v8765_v3  ;;  %v8806_v45 = vmin.f32 %v8473_v13, %v8776_v63  ;;  %v695_v34 = vld [vmem:[#allocation2 + $0x666] sm:$0xff]  ;;  %v696_v52 = vld [vmem:[#allocation2 + $0x66e] sm:$0xff]  ;;  %v16829_v2 = vrot.slane %v8749_v33, 1 }
 0x113   :  { %16824 = vst [vmem:[#allocation158_spill] sm:$0xff] %v8765_v3  ;;  %16825 = vst [vmem:[#allocation159_spill] sm:$0xff] %v8781_v19  ;;  %v8798_v9 = vmin.f32 %v8233_v5, %v8769_v40  ;;  %v8802_v35 = vmin.f32 %v8261_v61, %v8773_v53  ;;  %v16831_v54 = vld [vmem:[#allocation63_spill] sm:$0xff]  ;;  %v8819_v5 = vmin.f32 %v8265_v15, %v8785_v32 }
 0x114   :  { %v8811_v59 = vmin.f32 %v8749_v33, %v16829_v2  ;;  %v8815_v3 = vmin.f32 %v16831_v54, %v8781_v19  ;;  %v8821_v61 = vmin.f32 %v687_v47, %v946_v55  ;;  %v8827_v13 = vmin.f32 %v8399_v14, %v8794_v31  ;;  %v8872_v33 = vld [vmem:[#allocation2 + $0x696] sm:$0xff]  ;;  %507 = vst.msk [vmem:[#allocation2 + $0x8a0] sm:$0xff] %vm8_vm0, %v307_v62 }
 0x115   :  { %16827 = vst [vmem:[#allocation83_spill] sm:$0xff] %v8798_v9  ;;  %16828 = vst [vmem:[#allocation160_spill] sm:$0xff] %v8802_v35  ;;  %v8823_v35 = vld [vmem:[#allocation2 + $0x676] sm:$0xff]  ;;  %v8831_v2 = vmin.f32 %v8298_v26, %v8806_v45  ;;  %v8835_v54 = vmin.f32 %v8507_v50, %v8788_v60  ;;  %v8839_v15 = vmin.f32 %v8614_v21, %v8790_v29  ;;  %v8855_v50 = vld [vmem:[#allocation2 + $0x67e] sm:$0xff] }
 0x116   :  { %16830 = vst [vmem:[#allocation161_spill] sm:$0xff] %v8811_v59  ;;  %16832 = vst [vmem:[#allocation63_spill] sm:$0xff] %v8819_v5  ;;  %v8843_v55 = vmin.f32 %v8419_v6, %v8815_v3  ;;  %v8847_v14 = vmin.f32 %v8559_v7, %v8821_v61  ;;  %v8850_v47 = vmin.f32 %v8616_v44, %v695_v34  ;;  %v16838_v59 = vld [vmem:[#allocation94_spill] sm:$0xff]  ;;  %v16844_v5 = vld [vmem:[#allocation95_spill] sm:$0xff] }
 0x117   :  { %16833 = vst [vmem:[#allocation162_spill] sm:$0xff] %v8827_v13  ;;  %16834 = vst [vmem:[#allocation163_spill] sm:$0xff] %v8831_v2  ;;  %v8853_v26 = vmin.f32 %v8646_v57, %v696_v52  ;;  %v8859_v21 = vmin.f32 %v16838_v59, %v8831_v2  ;;  %v693_v13 = vld [vmem:[#allocation2 + $0x64e] sm:$0xf]  ;;  %v8863_v6 = vmin.f32 %v8345_v41, %v8835_v54  ;;  %v952_v57 = vld [vmem:[#allocation2 + $0x686] sm:$0xf] }
 0x118   :  { %16835 = vst [vmem:[#allocation164_spill] sm:$0xff] %v8835_v54  ;;  %16836 = vst [vmem:[#allocation165_spill] sm:$0xff] %v8843_v55  ;;  %v8867_v7 = vmin.f32 %v8578_v4, %v8839_v15  ;;  %v8870_v44 = vmin.f32 %v691_v56, %v8823_v35  ;;  %v16842_v59 = vld [vmem:[#allocation134_spill] sm:$0xff]  ;;  %v8881_v41 = vmin.f32 %v8581_v39, %v8850_v47  ;;  %v8889_v56 = vld [vmem:[#allocation2 + $0x6a6] sm:$0xff] }
 0x119   :  { %16837 = vst [vmem:[#allocation166_spill] sm:$0xff] %v8847_v14  ;;  %16839 = vst [vmem:[#allocation94_spill] sm:$0xff] %v8859_v21  ;;  %v8877_v21 = vmin.f32 %v16842_v59, %v8847_v14  ;;  %v8885_v4 = vmin.f32 %v8584_v0, %v8853_v26  ;;  %v8887_v9 = vld [vmem:[#allocation2 + $0x69e] sm:$0xff]  ;;  %v8891_v2 = vld [vmem:[#allocation2 + $0x6ae] sm:$0xff]  ;;  %v8895_v19 = vmin.f32 %v16844_v5, %v8863_v6 }
 0x11a   :  { %16840 = vst [vmem:[#allocation167_spill] sm:$0xff] %v8863_v6  ;;  %16841 = vst [vmem:[#allocation168_spill] sm:$0xff] %v8867_v7  ;;  %v8899_v59 = vmin.f32 %v8379_v25, %v8867_v7  ;;  %v8903_v39 = vmin.f32 %v8612_v12, %v8870_v44  ;;  %v8906_v0 = vmin.f32 %v692_v37, %v8855_v50  ;;  %v308_v5 = vld [vmem:[%s15437_s0 + $0x5e0] sm:$0xff]  ;;  %v309_v25 = vld [vmem:[%s15437_s0 + $0x5e8] sm:$0xff] }
 0x11b   :  { %16843 = vst [vmem:[#allocation134_spill] sm:$0xff] %v8877_v21  ;;  %v16848_v37 = vld [vmem:[#allocation122_spill] sm:$0xff]  ;;  %v8928_v7 = vmin.f32 %v8391_v49, %v8881_v41  ;;  %v8932_v14 = vmin.f32 %v8395_v46, %v8885_v4  ;;  %508 = vst.msk [vmem:[#allocation2 + $0x8a8] sm:$0xff] %vm8_vm0, %v308_v5  ;;  %v312_v46 = vld [vmem:[%s15437_s0 + $0x600] sm:$0xff]  ;;  %v8956_v5 = vmin.f32 %v693_v13, %v952_v57 }
 0x11c   :  { %16845 = vst [vmem:[#allocation95_spill] sm:$0xff] %v8899_v59  ;;  %v16846_v59 = vrot.slane %v8843_v55, 1  ;;  %v8924_v6 = vmin.f32 %v16848_v37, %v8877_v21  ;;  %v8934_v54 = vld [vmem:[#allocation2 + $0x6b6] sm:$0xff]  ;;  %509 = vst.msk [vmem:[#allocation2 + $0x8b0] sm:$0xff] %vm8_vm0, %v309_v25  ;;  %v8950_v37 = vmin.f32 %v8500_v17, %v8895_v19  ;;  %v8954_v62 = vmin.f32 %v8407_v22, %v8903_v39  ;;  %v313_v17 = vld [vmem:[%s15437_s0 + $0x608] sm:$0xff] }
 0x11d   :  { %16849 = vst [vmem:[#allocation122_spill] sm:$0xff] %v8928_v7  ;;  %16850 = vst [vmem:[#allocation170_spill] sm:$0xff] %v8932_v14  ;;  %v311_v49 = vld [vmem:[%s15437_s0 + $0x5f8] sm:$0xff]  ;;  %v8960_v25 = vmin.f32 %v8671_v48, %v8906_v0  ;;  %v314_v22 = vld [vmem:[%s15437_s0 + $0x610] sm:$0xff]  ;;  %v8980_v57 = vmin.f32 %v8790_v29, %v8872_v33 }
 0x11e   :  { %v8920_v12 = vmin.f32 %v8843_v55, %v16846_v59  ;;  %v310_v59 = vld [vmem:[%s15437_s0 + $0x5f0] sm:$0xff]  ;;  %16851 = vst [vmem:[#allocation171_spill] sm:$0xff] %v8950_v37  ;;  %16852 = vst [vmem:[#allocation172_spill] sm:$0xff] %v8954_v62  ;;  %v315_v13 = vld [vmem:[%s15437_s0 + $0x618] sm:$0xff]  ;;  %v8976_v48 = vmin.f32 %v8549_v8, %v8924_v6 }
 0x11f   :  { %510 = vst.msk [vmem:[#allocation2 + $0x8c8] sm:$0xff] %vm8_vm0, %v310_v59  ;;  %511 = vst.msk [vmem:[#allocation2 + $0x8d0] sm:$0xff] %vm8_vm0, %v311_v49  ;;  %v8983_v59 = vmin.f32 %v695_v34, %v8887_v9  ;;  %v8986_v49 = vmin.f32 %v696_v52, %v8889_v56  ;;  %v316_v8 = vld [vmem:[%s15437_s0 + $0x620] sm:$0xff]  ;;  %v317_v29 = vld [vmem:[%s15437_s0 + $0x628] sm:$0xff] }
 0x120   :  { %16847 = vst [vmem:[#allocation169_spill] sm:$0xff] %v8920_v12  ;;  %512 = vst.msk [vmem:[#allocation2 + $0x8d8] sm:$0xff] %vm8_vm0, %v312_v46  ;;  %v318_v34 = vld [vmem:[%s15437_s0 + $0x630] sm:$0xff]  ;;  %v699_v12 = vld [vmem:[#allocation2 + $0x686] sm:$0xf] }
 0x121   :  { %16853 = vst [vmem:[#allocation173_spill] sm:$0xff] %v8976_v48  ;;  %513 = vst.msk [vmem:[#allocation2 + $0x8e0] sm:$0xff] %vm8_vm0, %v313_v17  ;;  %v16854_v52 = vld [vmem:[#allocation125_spill] sm:$0xff]  ;;  %v9006_v17 = vmin.f32 %v8726_v1, %v8956_v5  ;;  %v16859_v1 = vld [vmem:[#allocation128_spill] sm:$0xff] }
 0x122   :  { %514 = vst.msk [vmem:[#allocation2 + $0x8e8] sm:$0xff] %vm8_vm0, %v314_v22  ;;  %515 = vst.msk [vmem:[#allocation2 + $0x900] sm:$0xff] %vm8_vm0, %v315_v13  ;;  %v9002_v46 = vmin.f32 %v16854_v52, %v8954_v62  ;;  %v9010_v22 = vmin.f32 %v8443_v20, %v8960_v25  ;;  %v9014_v13 = vmin.f32 %v8823_v35, %v8891_v2  ;;  %v319_v52 = vld [vmem:[%s15437_s0 + $0x638] sm:$0xff]  ;;  %v709_v7 = vld [vmem:[#allocation2 + $0x6e6] sm:$0xff] }
 0x123   :  { %516 = vst.msk [vmem:[#allocation2 + $0x908] sm:$0xff] %vm8_vm0, %v316_v8  ;;  %517 = vst.msk [vmem:[#allocation2 + $0x910] sm:$0xff] %vm8_vm0, %v317_v29  ;;  %v9025_v20 = vmin.f32 %v8741_v42, %v8980_v57  ;;  %v9029_v35 = vmin.f32 %v8745_v30, %v8983_v59  ;;  %v9033_v8 = vmin.f32 %v8761_v16, %v8986_v49  ;;  %v958_v29 = vld [vmem:[#allocation2 + $0x6be] sm:$0xf]  ;;  %v706_v16 = vld [vmem:[#allocation2 + $0x6ce] sm:$0xff] }
 0x124   :  { %16855 = vst [vmem:[#allocation125_spill] sm:$0xff] %v9002_v46  ;;  %16856 = vst [vmem:[#allocation174_spill] sm:$0xff] %v9010_v22  ;;  %v9042_v55 = vmin.f32 %v16859_v1, %v9010_v22  ;;  %v9046_v42 = vmin.f32 %v8776_v63, %v9014_v13  ;;  %v9050_v30 = vmin.f32 %v8855_v50, %v8934_v54  ;;  %v707_v46 = vld [vmem:[#allocation2 + $0x6d6] sm:$0xff]  ;;  %v708_v14 = vld [vmem:[#allocation2 + $0x6de] sm:$0xff] }
 0x125   :  { %518 = vst.msk [vmem:[#allocation2 + $0x918] sm:$0xff] %vm8_vm0, %v318_v34  ;;  %519 = vst.msk [vmem:[#allocation2 + $0x920] sm:$0xff] %vm8_vm0, %v319_v52  ;;  %v16857_v34 = vld [vmem:[#allocation143_spill] sm:$0xff]  ;;  %v16860_v52 = vrot.slane %v8976_v48, 1  ;;  %v9059_v1 = vmin.f32 %v8478_v23, %v9025_v20  ;;  %v9063_v63 = vmin.f32 %v8482_v27, %v9029_v35  ;;  %v9067_v50 = vmin.f32 %v8486_v43, %v9033_v8  ;;  %v16865_v22 = vld [vmem:[#allocation129_spill] sm:$0xff] }
 0x126   :  { %v9038_v37 = vmin.f32 %v16857_v34, %v9006_v17  ;;  %v9079_v23 = vmin.f32 %v8504_v10, %v9046_v42  ;;  %v9085_v27 = vmin.f32 %v8788_v60, %v9050_v30  ;;  %v9088_v43 = vmin.f32 %v8872_v33, %v706_v16 }
 0x127   :  { %v9055_v34 = vmin.f32 %v8976_v48, %v16860_v52  ;;  %16862 = vst [vmem:[#allocation175_spill] sm:$0xff] %v9059_v1  ;;  %16863 = vst [vmem:[#allocation176_spill] sm:$0xff] %v9063_v63  ;;  %v9075_v52 = vmin.f32 %v8687_v11, %v9042_v55  ;;  %v9094_v48 = vmin.f32 %v8889_v56, %v708_v14  ;;  %v710_v11 = vld [vmem:[#allocation2 + $0x6ee] sm:$0xff]  ;;  %v16871_v56 = vld [vmem:[#allocation150_spill] sm:$0xff] }
 0x128   :  { %16858 = vst [vmem:[#allocation143_spill] sm:$0xff] %v9038_v37  ;;  %16864 = vst [vmem:[#allocation177_spill] sm:$0xff] %v9067_v50  ;;  %v9071_v62 = vmin.f32 %v16865_v22, %v9038_v37  ;;  %v9091_v22 = vmin.f32 %v8887_v9, %v707_v46  ;;  %v9109_v33 = vmin.f32 %v8891_v2, %v709_v7  ;;  %v705_v9 = vld [vmem:[#allocation2 + $0x6be] sm:$0xf]  ;;  %v16873_v50 = vld [vmem:[#allocation152_spill] sm:$0xff] }
 0x129   :  { %16861 = vst [vmem:[#allocation128_spill] sm:$0xff] %v9055_v34  ;;  %16866 = vst [vmem:[#allocation129_spill] sm:$0xff] %v9075_v52  ;;  %v9081_v34 = vmin.f32 %v699_v12, %v958_v29  ;;  %v16869_v12 = vld [vmem:[#allocation75_spill] sm:$0xff]  ;;  %v9113_v52 = vmin.f32 %v16871_v56, %v9085_v27  ;;  %v713_v1 = vld [vmem:[#allocation2 + $0x70e] sm:$0xff] }
 0x12a   :  { %16867 = vst [vmem:[#allocation178_spill] sm:$0xff] %v9079_v23  ;;  %v9098_v10 = vmin.f32 %v8720_v38, %v9071_v62  ;;  %v9102_v29 = vmin.f32 %v16869_v12, %v9079_v23  ;;  %v9117_v38 = vmin.f32 %v8839_v15, %v9088_v43  ;;  %v9121_v12 = vmin.f32 %v8850_v47, %v9091_v22  ;;  %v712_v47 = vld [vmem:[#allocation2 + $0x706] sm:$0xff] }
 0x12b   :  { %v9106_v60 = vmin.f32 %v8821_v61, %v9081_v34  ;;  %16872 = vst [vmem:[#allocation150_spill] sm:$0xff] %v9113_v52  ;;  %v9125_v61 = vmin.f32 %v8853_v26, %v9094_v48  ;;  %v9134_v56 = vmin.f32 %v8870_v44, %v9109_v33  ;;  %v9137_v15 = vmin.f32 %v8934_v54, %v710_v11  ;;  %v16875_v23 = vld [vmem:[#allocation79_spill] sm:$0xff]  ;;  %v714_v54 = vld [vmem:[#allocation2 + $0x716] sm:$0xff] }
 0x12c   :  { %16868 = vst [vmem:[#allocation179_spill] sm:$0xff] %v9098_v10  ;;  %16870 = vst [vmem:[#allocation75_spill] sm:$0xff] %v9102_v29  ;;  %v964_v29 = vld [vmem:[#allocation2 + $0x6f6] sm:$0xf]  ;;  %v9141_v26 = vmin.f32 %v16875_v23, %v9113_v52  ;;  %v9145_v2 = vmin.f32 %v8636_v18, %v9117_v38  ;;  %v16879_v37 = vrot.slane %v9098_v10, 1  ;;  %v16881_v23 = vld [vmem:[#allocation104_spill] sm:$0xff] }
 0x12d   :  { %v9130_v63 = vmin.f32 %v16873_v50, %v9106_v60  ;;  %v9149_v50 = vmin.f32 %v8640_v51, %v9121_v12  ;;  %v9153_v44 = vmin.f32 %v8644_v58, %v9125_v61  ;;  %v9166_v18 = vmin.f32 %v8667_v24, %v9134_v56 }
 0x12e   :  { %16876 = vst [vmem:[#allocation79_spill] sm:$0xff] %v9145_v2  ;;  %v9158_v21 = vmin.f32 %v9098_v10, %v16879_v37  ;;  %v9168_v51 = vmin.f32 %v705_v9, %v964_v29  ;;  %v9172_v58 = vmin.f32 %v8794_v31, %v9141_v26  ;;  %v9178_v37 = vmin.f32 %v706_v16, %v712_v47  ;;  %v16885_v29 = vld [vmem:[#allocation81_spill] sm:$0xff]  ;;  %v16892_v2 = vld [vmem:[#allocation112_spill] sm:$0xff] }
 0x12f   :  { %16874 = vst [vmem:[#allocation152_spill] sm:$0xff] %v9130_v63  ;;  %16877 = vst [vmem:[#allocation180_spill] sm:$0xff] %v9149_v50  ;;  %v9162_v52 = vmin.f32 %v16881_v23, %v9130_v63  ;;  %v715_v50 = vld [vmem:[#allocation2 + $0x71e] sm:$0xff]  ;;  %v716_v23 = vld [vmem:[#allocation2 + $0x726] sm:$0xff]  ;;  %v9188_v9 = vmin.f32 %v16885_v29, %v9166_v18 }
 0x130   :  { %16878 = vst [vmem:[#allocation181_spill] sm:$0xff] %v9153_v44  ;;  %16880 = vst [vmem:[#allocation182_spill] sm:$0xff] %v9158_v21  ;;  %v9176_v44 = vmin.f32 %v8906_v0, %v9137_v15  ;;  %v9180_v21 = vmin.f32 %v707_v46, %v713_v1  ;;  %v9192_v31 = vmin.f32 %v8956_v5, %v9168_v51  ;;  %v711_v0 = vld [vmem:[#allocation2 + $0x6f6] sm:$0xf]  ;;  %v970_v10 = vld [vmem:[#allocation2 + $0x72e] sm:$0xf] }
 0x131   :  { %16882 = vst [vmem:[#allocation104_spill] sm:$0xff] %v9166_v18  ;;  %16883 = vst [vmem:[#allocation183_spill] sm:$0xff] %v9172_v58  ;;  %v9184_v24 = vmin.f32 %v8815_v3, %v9162_v52  ;;  %v9194_v58 = vmin.f32 %v708_v14, %v714_v54  ;;  %v9202_v16 = vmin.f32 %v8980_v57, %v9178_v37  ;;  %v718_v57 = vld [vmem:[#allocation2 + $0x73e] sm:$0xff] }
 0x132   :  { %16886 = vst [vmem:[#allocation81_spill] sm:$0xff] %v9188_v9  ;;  %v9198_v46 = vmin.f32 %v8737_v28, %v9176_v44  ;;  %v9206_v3 = vmin.f32 %v8983_v59, %v9180_v21  ;;  %v9208_v29 = vmin.f32 %v709_v7, %v715_v50  ;;  %v9213_v14 = vmin.f32 %v8757_v36, %v9192_v31 }
 0x133   :  { %16884 = vst [vmem:[#allocation184_spill] sm:$0xff] %v9184_v24  ;;  %16888 = vst [vmem:[#allocation186_spill] sm:$0xff] %v9202_v16  ;;  %v9217_v28 = vmin.f32 %v8986_v49, %v9194_v58  ;;  %v9219_v9 = vmin.f32 %v710_v11, %v716_v23  ;;  %v9227_v7 = vmin.f32 %v8769_v40, %v9202_v16  ;;  %v719_v49 = vld [vmem:[#allocation2 + $0x746] sm:$0xff]  ;;  %v720_v11 = vld [vmem:[#allocation2 + $0x74e] sm:$0xff]  ;;  %v16896_v18 = vrot.slane %v9184_v24, 1 }
 0x134   :  { %16887 = vst [vmem:[#allocation185_spill] sm:$0xff] %v9198_v46  ;;  %16889 = vst [vmem:[#allocation187_spill] sm:$0xff] %v9206_v3  ;;  %v9223_v59 = vmin.f32 %v16892_v2, %v9198_v46  ;;  %v9231_v5 = vmin.f32 %v8773_v53, %v9206_v3  ;;  %v9235_v36 = vmin.f32 %v9014_v13, %v9208_v29  ;;  %v16898_v2 = vld [vmem:[#allocation88_spill] sm:$0xff] }
 0x135   :  { %16890 = vst [vmem:[#allocation188_spill] sm:$0xff] %v9213_v14  ;;  %16891 = vst [vmem:[#allocation189_spill] sm:$0xff] %v9217_v28  ;;  %v9240_v63 = vmin.f32 %v9184_v24, %v16896_v18  ;;  %v9244_v46 = vmin.f32 %v16898_v2, %v9213_v14  ;;  %v9248_v40 = vmin.f32 %v8785_v32, %v9217_v28  ;;  %v741_v28 = vld [vmem:[#allocation2 + $0x80e] sm:$0xf] }
 0x136   :  { %16893 = vst [vmem:[#allocation112_spill] sm:$0xff] %v9227_v7  ;;  %16894 = vst [vmem:[#allocation190_spill] sm:$0xff] %v9231_v5  ;;  %v9250_v53 = vmin.f32 %v711_v0, %v970_v10  ;;  %v721_v5 = vld [vmem:[#allocation2 + $0x756] sm:$0xff]  ;;  %v9254_v13 = vmin.f32 %v8895_v19, %v9223_v59  ;;  %v9258_v7 = vmin.f32 %v8806_v45, %v9235_v36  ;;  %v722_v45 = vld [vmem:[#allocation2 + $0x75e] sm:$0xff] }
 0x137   :  { %16895 = vst [vmem:[#allocation191_spill] sm:$0xff] %v9235_v36  ;;  %16897 = vst [vmem:[#allocation192_spill] sm:$0xff] %v9240_v63  ;;  %v9262_v18 = vmin.f32 %v9050_v30, %v9219_v9  ;;  %v9264_v2 = vmin.f32 %v712_v47, %v718_v57  ;;  %v9268_v32 = vmin.f32 %v8924_v6, %v9244_v46  ;;  %v16905_v63 = vld [vmem:[#allocation34_spill] sm:$0xff]  ;;  %v16907_v30 = vld [vmem:[#allocation164_spill] sm:$0xff] }
 0x138   :  { %16899 = vst [vmem:[#allocation88_spill] sm:$0xff] %v9248_v40  ;;  %16900 = vst [vmem:[#allocation193_spill] sm:$0xff] %v9254_v13  ;;  %v9272_v10 = vmin.f32 %v9081_v34, %v9250_v53  ;;  %v9274_v19 = vmin.f32 %v713_v1, %v719_v49  ;;  %v9276_v0 = vmin.f32 %v714_v54, %v720_v11  ;;  %v717_v1 = vld [vmem:[#allocation2 + $0x72e] sm:$0xf]  ;;  %v16910_v54 = vld [vmem:[#allocation166_spill] sm:$0xff] }
 0x139   :  { %16901 = vst [vmem:[#allocation194_spill] sm:$0xff] %v9258_v7  ;;  %16902 = vst [vmem:[#allocation195_spill] sm:$0xff] %v9262_v18  ;;  %v9280_v13 = vmin.f32 %v16905_v63, %v9258_v7  ;;  %v9284_v47 = vmin.f32 %v16907_v30, %v9262_v18  ;;  %v9288_v6 = vmin.f32 %v9088_v43, %v9264_v2  ;;  %v16914_v43 = vld [vmem:[#allocation135_spill] sm:$0xff]  ;;  %v16915_v34 = vld [vmem:[#allocation168_spill] sm:$0xff] }
 0x13a   :  { %16903 = vst [vmem:[#allocation196_spill] sm:$0xff] %v9268_v32  ;;  %16904 = vst [vmem:[#allocation197_spill] sm:$0xff] %v9272_v10  ;;  %v9290_v24 = vmin.f32 %v715_v50, %v721_v5  ;;  %v9295_v40 = vmin.f32 %v16910_v54, %v9272_v10  ;;  %v9299_v63 = vmin.f32 %v9091_v22, %v9274_v19  ;;  %v724_v22 = vld [vmem:[#allocation2 + $0x776] sm:$0xff]  ;;  %v725_v10 = vld [vmem:[#allocation2 + $0x77e] sm:$0xff] }
 0x13b   :  { %16906 = vst [vmem:[#allocation34_spill] sm:$0xff] %v9280_v13  ;;  %16908 = vst [vmem:[#allocation164_spill] sm:$0xff] %v9284_v47  ;;  %v9303_v30 = vmin.f32 %v9094_v48, %v9276_v0  ;;  %v976_v13 = vld [vmem:[#allocation2 + $0x766] sm:$0xf]  ;;  %v9307_v50 = vmin.f32 %v16914_v43, %v9284_v47  ;;  %v9311_v7 = vmin.f32 %v16915_v34, %v9288_v6  ;;  %v16917_v48 = vrot.slane %v9268_v32, 1 }
 0x13c   :  { %16909 = vst [vmem:[#allocation198_spill] sm:$0xff] %v9288_v6  ;;  %16911 = vst [vmem:[#allocation166_spill] sm:$0xff] %v9295_v40  ;;  %v9315_v54 = vmin.f32 %v9109_v33, %v9290_v24  ;;  %v9317_v14 = vmin.f32 %v716_v23, %v722_v45  ;;  %v726_v18 = vld [vmem:[#allocation2 + $0x786] sm:$0xff]  ;;  %v9330_v34 = vmin.f32 %v8881_v41, %v9299_v63  ;;  %v727_v23 = vld [vmem:[#allocation2 + $0x78e] sm:$0xff] }
 0x13d   :  { %16912 = vst [vmem:[#allocation199_spill] sm:$0xff] %v9299_v63  ;;  %16913 = vst [vmem:[#allocation200_spill] sm:$0xff] %v9303_v30  ;;  %v9322_v36 = vmin.f32 %v9268_v32, %v16917_v48  ;;  %v16919_v43 = vld [vmem:[#allocation136_spill] sm:$0xff]  ;;  %v9334_v33 = vmin.f32 %v8885_v4, %v9303_v30  ;;  %v9354_v4 = vmin.f32 %v718_v57, %v724_v22 }
 0x13e   :  { %16916 = vst [vmem:[#allocation135_spill] sm:$0xff] %v9311_v7  ;;  %v9326_v47 = vmin.f32 %v16919_v43, %v9295_v40  ;;  %16920 = vst [vmem:[#allocation136_spill] sm:$0xff] %v9330_v34  ;;  %v9338_v7 = vmin.f32 %v9042_v55, %v9307_v50  ;;  %v9342_v48 = vmin.f32 %v8903_v39, %v9315_v54  ;;  %v16925_v39 = vld [vmem:[#allocation140_spill] sm:$0xff]  ;;  %v731_v34 = vld [vmem:[#allocation2 + $0x7b6] sm:$0xff] }
 0x13f   :  { %16918 = vst [vmem:[#allocation168_spill] sm:$0xff] %v9322_v36  ;;  %16921 = vst [vmem:[#allocation201_spill] sm:$0xff] %v9334_v33  ;;  %v9344_v36 = vmin.f32 %v717_v1, %v976_v13  ;;  %v9348_v43 = vmin.f32 %v9137_v15, %v9317_v14  ;;  %v9356_v32 = vmin.f32 %v719_v49, %v725_v10  ;;  %v723_v49 = vld [vmem:[#allocation2 + $0x766] sm:$0xf] }
 0x140   :  { %16922 = vst [vmem:[#allocation202_spill] sm:$0xff] %v9338_v7  ;;  %16923 = vst [vmem:[#allocation203_spill] sm:$0xff] %v9342_v48  ;;  %v9352_v41 = vmin.f32 %v9071_v62, %v9326_v47  ;;  %v9358_v55 = vmin.f32 %v720_v11, %v726_v18  ;;  %v728_v7 = vld [vmem:[#allocation2 + $0x796] sm:$0xff]  ;;  %v9362_v33 = vmin.f32 %v16925_v39, %v9342_v48  ;;  %v982_v39 = vld [vmem:[#allocation2 + $0x79e] sm:$0xf] }
 0x141   :  { %v9366_v13 = vmin.f32 %v9168_v51, %v9344_v36  ;;  %v9370_v15 = vmin.f32 %v8960_v25, %v9348_v43  ;;  %v9372_v62 = vmin.f32 %v721_v5, %v727_v23  ;;  %v9377_v11 = vmin.f32 %v9178_v37, %v9354_v4  ;;  %v16933_v5 = vld [vmem:[#allocation144_spill] sm:$0xff]  ;;  %v732_v48 = vld [vmem:[#allocation2 + $0x7be] sm:$0xff] }
 0x142   :  { %16924 = vst [vmem:[#allocation204_spill] sm:$0xff] %v9352_v41  ;;  %16926 = vst [vmem:[#allocation140_spill] sm:$0xff] %v9362_v33  ;;  %v9381_v1 = vmin.f32 %v9180_v21, %v9356_v32  ;;  %v9385_v51 = vmin.f32 %v9194_v58, %v9358_v55  ;;  %v9399_v33 = vmin.f32 %v722_v45, %v728_v7  ;;  %v730_v21 = vld [vmem:[#allocation2 + $0x7ae] sm:$0xff]  ;;  %v16934_v58 = vrot.slane %v9352_v41, 1  ;;  %v733_v45 = vld [vmem:[#allocation2 + $0x7c6] sm:$0xff] }
 0x143   :  { %16927 = vst [vmem:[#allocation205_spill] sm:$0xff] %v9366_v13  ;;  %16928 = vst [vmem:[#allocation206_spill] sm:$0xff] %v9370_v15  ;;  %v9389_v25 = vmin.f32 %v9006_v17, %v9366_v13  ;;  %v9393_v57 = vmin.f32 %v16933_v5, %v9370_v15  ;;  %v9397_v37 = vmin.f32 %v9208_v29, %v9372_v62  ;;  %v16939_v15 = vld [vmem:[#allocation145_spill] sm:$0xff]  ;;  %v16969_v3 = vld [vmem:[#allocation191_spill] sm:$0xff] }
 0x144   :  { %16929 = vst [vmem:[#allocation207_spill] sm:$0xff] %v9377_v11  ;;  %16930 = vst [vmem:[#allocation208_spill] sm:$0xff] %v9381_v1  ;;  %v9404_v40 = vmin.f32 %v9352_v41, %v16934_v58  ;;  %v9408_v17 = vmin.f32 %v9025_v20, %v9377_v11  ;;  %v9412_v5 = vmin.f32 %v9029_v35, %v9381_v1  ;;  %v16986_v30 = vld [vmem:[#allocation172_spill] sm:$0xff]  ;;  %v9793_v11 = vld [vmem:[#allocation2 + $0x8d6] sm:$0xff] }
 0x145   :  { %16931 = vst [vmem:[#allocation209_spill] sm:$0xff] %v9385_v51  ;;  %16932 = vst [vmem:[#allocation210_spill] sm:$0xff] %v9389_v25  ;;  %v9416_v29 = vmin.f32 %v9033_v8, %v9385_v51  ;;  %v9420_v13 = vmin.f32 %v16939_v15, %v9389_v25  ;;  %v9424_v58 = vmin.f32 %v9141_v26, %v9393_v57 }
 0x146   :  { %16935 = vst [vmem:[#allocation144_spill] sm:$0xff] %v9404_v40  ;;  %16936 = vst [vmem:[#allocation211_spill] sm:$0xff] %v9408_v17  ;;  %v9428_v20 = vmin.f32 %v9046_v42, %v9397_v37  ;;  %v9430_v40 = vmin.f32 %v723_v49, %v982_v39  ;;  %v9434_v35 = vmin.f32 %v9219_v9, %v9399_v33  ;;  %v16943_v42 = vld [vmem:[#allocation48_spill] sm:$0xff] }
 0x147   :  { %16937 = vst [vmem:[#allocation212_spill] sm:$0xff] %v9412_v5  ;;  %16938 = vst [vmem:[#allocation213_spill] sm:$0xff] %v9416_v29  ;;  %v9436_v8 = vmin.f32 %v724_v22, %v730_v21  ;;  %v9438_v41 = vmin.f32 %v725_v10, %v731_v34  ;;  %v9440_v15 = vmin.f32 %v726_v18, %v732_v48  ;;  %v734_v29 = vld [vmem:[#allocation2 + $0x7ce] sm:$0xff]  ;;  %v729_v22 = vld [vmem:[#allocation2 + $0x79e] sm:$0xf] }
 0x148   :  { %16940 = vst [vmem:[#allocation145_spill] sm:$0xff] %v9424_v58  ;;  %16941 = vst [vmem:[#allocation214_spill] sm:$0xff] %v9428_v20  ;;  %v9444_v26 = vmin.f32 %v9162_v52, %v9420_v13  ;;  %v9448_v58 = vmin.f32 %v16943_v42, %v9428_v20  ;;  %v9452_v49 = vmin.f32 %v9250_v53, %v9430_v40  ;;  %v988_v53 = vld [vmem:[#allocation2 + $0x7d6] sm:$0xf]  ;;  %v16950_v5 = vld [vmem:[#allocation103_spill] sm:$0xff] }
 0x149   :  { %v9454_v9 = vmin.f32 %v727_v23, %v733_v45  ;;  %v9458_v18 = vmin.f32 %v9085_v27, %v9434_v35  ;;  %v9462_v10 = vmin.f32 %v9264_v2, %v9436_v8  ;;  %v9466_v52 = vmin.f32 %v9274_v19, %v9438_v41  ;;  %v737_v19 = vld [vmem:[#allocation2 + $0x7ee] sm:$0xff] }
 0x14a   :  { %16942 = vst [vmem:[#allocation215_spill] sm:$0xff] %v9444_v26  ;;  %16944 = vst [vmem:[#allocation48_spill] sm:$0xff] %v9448_v58  ;;  %v9470_v39 = vmin.f32 %v9276_v0, %v9440_v15  ;;  %v15748_v23 = vrot.slane %v9444_v26, 1  ;;  %v9475_v42 = vmin.f32 %v9106_v60, %v9452_v49  ;;  %v9481_v2 = vmin.f32 %v728_v7, %v734_v29  ;;  %v736_v58 = vld [vmem:[#allocation2 + $0x7e6] sm:$0xff]  ;;  %v738_v7 = vld [vmem:[#allocation2 + $0x7f6] sm:$0xff] }
 0x14b   :  { %16945 = vst [vmem:[#allocation216_spill] sm:$0xff] %v9458_v18  ;;  %16946 = vst [vmem:[#allocation217_spill] sm:$0xff] %v9462_v10  ;;  %v9479_v27 = vmin.f32 %v9290_v24, %v9454_v9  ;;  %v9485_v17 = vmin.f32 %v16950_v5, %v9458_v18  ;;  %v9489_v0 = vmin.f32 %v9117_v38, %v9462_v10  ;;  %v16955_v5 = vld [vmem:[#allocation133_spill] sm:$0xff] }
 0x14c   :  { %16947 = vst [vmem:[#allocation218_spill] sm:$0xff] %v9466_v52  ;;  %16948 = vst [vmem:[#allocation219_spill] sm:$0xff] %v9470_v39  ;;  %v9493_v60 = vmin.f32 %v9121_v12, %v9466_v52  ;;  %v9497_v24 = vmin.f32 %v9125_v61, %v9470_v39  ;;  %v9502_v25 = vmin.f32 %v9444_v26, %v15748_v23  ;;  %v994_v26 = vld [vmem:[#allocation2 + $0x80e] sm:$0xf]  ;;  %v9817_v52 = vld [vmem:[#allocation2 + $0x8e6] sm:$0xff] }
 0x14d   :  { %16949 = vst [vmem:[#allocation220_spill] sm:$0xff] %v9475_v42  ;;  %16951 = vst [vmem:[#allocation103_spill] sm:$0xff] %v9489_v0  ;;  %v9506_v18 = vmin.f32 %v16955_v5, %v9475_v42  ;;  %v9510_v38 = vmin.f32 %v9134_v56, %v9479_v27  ;;  %v9512_v12 = vmin.f32 %v729_v22, %v988_v53  ;;  %v740_v5 = vld [vmem:[#allocation2 + $0x806] sm:$0xff]  ;;  %v16959_v22 = vld [vmem:[#allocation109_spill] sm:$0xff] }
 0x14e   :  { %16952 = vst [vmem:[#allocation221_spill] sm:$0xff] %v9493_v60  ;;  %16953 = vst [vmem:[#allocation222_spill] sm:$0xff] %v9497_v24  ;;  %v739_v60 = vld [vmem:[#allocation2 + $0x7fe] sm:$0xff]  ;;  %v9516_v61 = vmin.f32 %v9223_v59, %v9485_v17  ;;  %v9520_v24 = vmin.f32 %v9317_v14, %v9481_v2  ;;  %v9522_v23 = vmin.f32 %v730_v21, %v736_v58  ;;  %v735_v14 = vld [vmem:[#allocation2 + $0x7d6] sm:$0xf] }
 0x14f   :  { %16954 = vst [vmem:[#allocation223_spill] sm:$0xff] %v9502_v25  ;;  %16956 = vst [vmem:[#allocation133_spill] sm:$0xff] %v9510_v38  ;;  %v9524_v25 = vmin.f32 %v731_v34, %v737_v19  ;;  %v9528_v56 = vmin.f32 %v9244_v46, %v9506_v18  ;;  %v9532_v53 = vmin.f32 %v16959_v22, %v9510_v38  ;;  %v16963_v0 = vld [vmem:[#allocation158_spill] sm:$0xff]  ;;  %v743_v42 = vld [vmem:[#allocation2 + $0x826] sm:$0xff] }
 0x150   :  { %16957 = vst [vmem:[#allocation224_spill] sm:$0xff] %v9516_v61  ;;  %v9536_v59 = vmin.f32 %v9344_v36, %v9512_v12  ;;  %v9538_v61 = vmin.f32 %v732_v48, %v738_v7  ;;  %v9542_v34 = vmin.f32 %v9176_v44, %v9520_v24  ;;  %v9546_v21 = vmin.f32 %v9354_v4, %v9522_v23  ;;  %v742_v4 = vld [vmem:[#allocation2 + $0x81e] sm:$0xff]  ;;  %v745_v36 = vld [vmem:[#allocation2 + $0x836] sm:$0xff] }
 0x151   :  { %16958 = vst [vmem:[#allocation225_spill] sm:$0xff] %v9528_v56  ;;  %16960 = vst [vmem:[#allocation109_spill] sm:$0xff] %v9532_v53  ;;  %v9550_v46 = vmin.f32 %v9356_v32, %v9524_v25  ;;  %v9552_v22 = vmin.f32 %v733_v45, %v739_v60  ;;  %v9563_v53 = vmin.f32 %v734_v29, %v740_v5  ;;  %v16965_v29 = vrot.slane %v9528_v56, 1  ;;  %v746_v45 = vld [vmem:[#allocation2 + $0x83e] sm:$0xff]  ;;  %v17012_v10 = vld [vmem:[#allocation185_spill] sm:$0xff] }
 0x152   :  { %16961 = vst [vmem:[#allocation226_spill] sm:$0xff] %v9542_v34  ;;  %v9557_v48 = vmin.f32 %v9192_v31, %v9536_v59  ;;  %v9561_v44 = vmin.f32 %v9358_v55, %v9538_v61  ;;  %v9567_v32 = vmin.f32 %v16963_v0, %v9542_v34  ;;  %v744_v55 = vld [vmem:[#allocation2 + $0x82e] sm:$0xff]  ;;  %v16967_v0 = vld [vmem:[#allocation159_spill] sm:$0xff]  ;;  %v9588_v16 = vmin.f32 %v735_v14, %v994_v26 }
 0x153   :  { %v9575_v31 = vmin.f32 %v9372_v62, %v9552_v22  ;;  %v9580_v20 = vmin.f32 %v9528_v56, %v16965_v29  ;;  %v9598_v29 = vmin.f32 %v9399_v33, %v9563_v53  ;;  %v9610_v14 = vmin.f32 %v737_v19, %v743_v42  ;;  %v16975_v33 = vld [vmem:[#allocation195_spill] sm:$0xff]  ;;  %v16977_v19 = vld [vmem:[#allocation197_spill] sm:$0xff] }
 0x154   :  { %16962 = vst [vmem:[#allocation227_spill] sm:$0xff] %v9557_v48  ;;  %v9584_v34 = vmin.f32 %v16967_v0, %v9557_v48  ;;  %v9592_v62 = vmin.f32 %v9307_v50, %v9567_v32  ;;  %v9608_v26 = vmin.f32 %v9430_v40, %v9588_v16  ;;  %v9612_v50 = vmin.f32 %v738_v7, %v744_v55 }
 0x155   :  { %16964 = vst [vmem:[#allocation158_spill] sm:$0xff] %v9575_v31  ;;  %16966 = vst [vmem:[#allocation228_spill] sm:$0xff] %v9580_v20  ;;  %v1718_v38 = vmin.f32 %v16969_v3, %v9575_v31  ;;  %v9600_v20 = vmin.f32 %v736_v58, %v742_v4  ;;  %v16973_v3 = vld [vmem:[#allocation163_spill] sm:$0xff]  ;;  %v1719_v58 = vmin.f32 %v16975_v33, %v9598_v29  ;;  %v16983_v31 = vld [vmem:[#allocation134_spill] sm:$0xff] }
 0x156   :  { %16968 = vst [vmem:[#allocation159_spill] sm:$0xff] %v9592_v62  ;;  %16970 = vst [vmem:[#allocation191_spill] sm:$0xff] %v9598_v29  ;;  %v9604_v0 = vmin.f32 %v9326_v47, %v9584_v34  ;;  %v9623_v47 = vmin.f32 %v739_v60, %v745_v36  ;;  %v1720_v7 = vmin.f32 %v16977_v19, %v9608_v26  ;;  %v16980_v33 = vld [vmem:[#allocation167_spill] sm:$0xff]  ;;  %v751_v60 = vld [vmem:[#allocation2 + $0x86e] sm:$0xff] }
 0x157   :  { %16972 = vst [vmem:[#allocation230_spill] sm:$0xff] %v9608_v26  ;;  %v9615_v62 = vmin.f32 %v16973_v3, %v1718_v38  ;;  %v9621_v56 = vmin.f32 %v9436_v8, %v9600_v20  ;;  %v9630_v48 = vmin.f32 %v9438_v41, %v9610_v14  ;;  %v9634_v38 = vmin.f32 %v9440_v15, %v9612_v50  ;;  %v1000_v3 = vld [vmem:[#allocation2 + $0x846] sm:$0xf]  ;;  %v749_v41 = vld [vmem:[#allocation2 + $0x85e] sm:$0xff] }
 0x158   :  { %16971 = vst [vmem:[#allocation229_spill] sm:$0xff] %v9604_v0  ;;  %v9637_v8 = vmin.f32 %v16980_v33, %v1719_v58  ;;  %v9643_v40 = vmin.f32 %v9454_v9, %v9623_v47  ;;  %v9645_v19 = vmin.f32 %v740_v5, %v746_v45  ;;  %v750_v26 = vld [vmem:[#allocation2 + $0x866] sm:$0xff]  ;;  %v16981_v29 = vrot.slane %v9604_v0, 1 }
 0x159   :  { %16974 = vst [vmem:[#allocation163_spill] sm:$0xff] %v9615_v62  ;;  %16976 = vst [vmem:[#allocation195_spill] sm:$0xff] %v9621_v56  ;;  %v748_v62 = vld [vmem:[#allocation2 + $0x856] sm:$0xff]  ;;  %v9653_v58 = vmin.f32 %v16983_v31, %v1720_v7  ;;  %v9665_v56 = vmin.f32 %v741_v28, %v1000_v3  ;;  %v9677_v9 = vmin.f32 %v743_v42, %v749_v41 }
 0x15a   :  { %16978 = vst [vmem:[#allocation197_spill] sm:$0xff] %v9630_v48  ;;  %16979 = vst [vmem:[#allocation231_spill] sm:$0xff] %v9634_v38  ;;  %v9650_v15 = vmin.f32 %v9604_v0, %v16981_v29  ;;  %v9661_v5 = vmin.f32 %v9393_v57, %v9637_v8  ;;  %v1724_v6 = vmin.f32 %v9315_v54, %v9643_v40  ;;  %v752_v57 = vld [vmem:[#allocation2 + $0x876] sm:$0xff] }
 0x15b   :  { %v9669_v31 = vmin.f32 %v9481_v2, %v9645_v19  ;;  %v9673_v29 = vmin.f32 %v9420_v13, %v9653_v58  ;;  %v9675_v7 = vmin.f32 %v742_v4, %v748_v62  ;;  %v9679_v33 = vmin.f32 %v744_v55, %v750_v26  ;;  %v747_v4 = vld [vmem:[#allocation2 + $0x846] sm:$0xf]  ;;  %v16993_v55 = vld [vmem:[#allocation174_spill] sm:$0xff] }
 0x15c   :  { %16982 = vst [vmem:[#allocation167_spill] sm:$0xff] %v9650_v15  ;;  %16984 = vst [vmem:[#allocation134_spill] sm:$0xff] %v9661_v5  ;;  %v9682_v63 = vmin.f32 %v16986_v30, %v1724_v6  ;;  %v9686_v28 = vmin.f32 %v9512_v12, %v9665_v56  ;;  %v9690_v2 = vmin.f32 %v745_v36, %v751_v60  ;;  %v1006_v12 = vld [vmem:[#allocation2 + $0x87e] sm:$0xf] }
 0x15d   :  { %16985 = vst [vmem:[#allocation232_spill] sm:$0xff] %v9673_v29  ;;  %v1725_v54 = vmin.f32 %v9348_v43, %v9669_v31  ;;  %v9695_v42 = vmin.f32 %v9522_v23, %v9675_v7  ;;  %v9699_v6 = vmin.f32 %v9524_v25, %v9677_v9  ;;  %v9703_v30 = vmin.f32 %v9538_v61, %v9679_v33  ;;  %v16992_v43 = vld [vmem:[#allocation205_spill] sm:$0xff]  ;;  %v756_v15 = vld [vmem:[#allocation2 + $0x89e] sm:$0xff] }
 0x15e   :  { %16987 = vst [vmem:[#allocation172_spill] sm:$0xff] %v9682_v63  ;;  %16988 = vst [vmem:[#allocation233_spill] sm:$0xff] %v9686_v28  ;;  %v1726_v36 = vmin.f32 %v16992_v43, %v9686_v28  ;;  %v9712_v13 = vmin.f32 %v9552_v22, %v9690_v2  ;;  %v9714_v23 = vmin.f32 %v746_v45, %v752_v57  ;;  %v754_v63 = vld [vmem:[#allocation2 + $0x88e] sm:$0xff]  ;;  %v755_v25 = vld [vmem:[#allocation2 + $0x896] sm:$0xff]  ;;  %v16994_v5 = vrot.slane %v9673_v29, 1 }
 0x15f   :  { %16989 = vst [vmem:[#allocation234_spill] sm:$0xff] %v9695_v42  ;;  %16990 = vst [vmem:[#allocation235_spill] sm:$0xff] %v9699_v6  ;;  %v9708_v3 = vmin.f32 %v16993_v55, %v1725_v54  ;;  %v757_v55 = vld [vmem:[#allocation2 + $0x8a6] sm:$0xff]  ;;  %v9742_v54 = vmin.f32 %v748_v62, %v754_v63  ;;  %v9744_v22 = vmin.f32 %v749_v41, %v755_v25  ;;  %v753_v62 = vld [vmem:[#allocation2 + $0x87e] sm:$0xf] }
 0x160   :  { %16991 = vst [vmem:[#allocation236_spill] sm:$0xff] %v9703_v30  ;;  %v9719_v61 = vmin.f32 %v9673_v29, %v16994_v5  ;;  %v16996_v45 = vld [vmem:[#allocation143_spill] sm:$0xff]  ;;  %v1730_v5 = vmin.f32 %v9397_v37, %v9712_v13  ;;  %v9740_v43 = vmin.f32 %v9563_v53, %v9714_v23  ;;  %v9746_v51 = vmin.f32 %v750_v26, %v756_v15 }
 0x161   :  { %v9728_v0 = vmin.f32 %v16996_v45, %v1726_v36  ;;  %v9732_v28 = vmin.f32 %v9485_v17, %v9708_v3  ;;  %v758_v36 = vld [vmem:[#allocation2 + $0x8ae] sm:$0xff]  ;;  %v16999_v45 = vld [vmem:[#allocation178_spill] sm:$0xff]  ;;  %v9759_v53 = vmin.f32 %v751_v60, %v757_v55  ;;  %v9765_v26 = vmin.f32 %v9600_v20, %v9742_v54 }
 0x162   :  { %16995 = vst [vmem:[#allocation205_spill] sm:$0xff] %v9719_v61  ;;  %v9736_v61 = vmin.f32 %v747_v4, %v1006_v12  ;;  %v9753_v1 = vmin.f32 %v16999_v45, %v1730_v5  ;;  %v1731_v41 = vmin.f32 %v9434_v35, %v9740_v43  ;;  %v9773_v4 = vmin.f32 %v9612_v50, %v9746_v51  ;;  %v760_v5 = vld [vmem:[#allocation2 + $0x8c6] sm:$0xff]  ;;  %v761_v45 = vld [vmem:[#allocation2 + $0x8ce] sm:$0xff]  ;;  %v9807_v50 = vld [vmem:[#allocation2 + $0x8de] sm:$0xff] }
 0x163   :  { %16997 = vst [vmem:[#allocation174_spill] sm:$0xff] %v9732_v28  ;;  %v9750_v17 = vmin.f32 %v9506_v18, %v9728_v0  ;;  %17001 = vst [vmem:[#allocation237_spill] sm:$0xff] %v9765_v26  ;;  %v9769_v18 = vmin.f32 %v9610_v14, %v9744_v22  ;;  %v9780_v35 = vmin.f32 %v9623_v47, %v9759_v53  ;;  %v17004_v14 = vld [vmem:[#allocation150_spill] sm:$0xff]  ;;  %v17007_v28 = vld [vmem:[#allocation152_spill] sm:$0xff] }
 0x164   :  { %17000 = vst [vmem:[#allocation178_spill] sm:$0xff] %v9753_v1  ;;  %v9757_v37 = vmin.f32 %v9588_v16, %v9736_v61  ;;  %17003 = vst [vmem:[#allocation239_spill] sm:$0xff] %v9773_v4  ;;  %v1012_v16 = vld [vmem:[#allocation2 + $0x8b6] sm:$0xf]  ;;  %v9782_v20 = vmin.f32 %v752_v57, %v758_v36  ;;  %v9785_v1 = vmin.f32 %v17004_v14, %v1731_v41 }
 0x165   :  { %16998 = vst [vmem:[#allocation143_spill] sm:$0xff] %v9750_v17  ;;  %17002 = vst [vmem:[#allocation238_spill] sm:$0xff] %v9769_v18  ;;  %v17005_v47 = vrot.slane %v9750_v17, 1  ;;  %v1736_v41 = vmin.f32 %v9479_v27, %v9780_v35  ;;  %v9805_v14 = vmin.f32 %v753_v62, %v1012_v16  ;;  %v1272_v39 = vmin.f32 %v755_v25, %v761_v45  ;;  %v17010_v27 = vld [vmem:[#allocation104_spill] sm:$0xff] }
 0x166   :  { %v1732_v12 = vmin.f32 %v9452_v49, %v9757_v37  ;;  %v9811_v49 = vmin.f32 %v9567_v32, %v9785_v1  ;;  %v9815_v60 = vmin.f32 %v9645_v19, %v9782_v20  ;;  %v9831_v32 = vmin.f32 %v756_v15, %v9793_v11  ;;  %v759_v19 = vld [vmem:[#allocation2 + $0x8b6] sm:$0xf] }
 0x167   :  { %v9798_v57 = vmin.f32 %v9750_v17, %v17005_v47  ;;  %v1271_v47 = vmin.f32 %v754_v63, %v760_v5  ;;  %v9824_v62 = vmin.f32 %v17010_v27, %v1736_v41  ;;  %v9828_v16 = vmin.f32 %v9665_v56, %v9805_v14  ;;  %v1018_v41 = vld [vmem:[#allocation2 + $0x8ee] sm:$0xf] }
 0x168   :  { %v9801_v29 = vmin.f32 %v17007_v28, %v1732_v12  ;;  %17008 = vst [vmem:[#allocation152_spill] sm:$0xff] %v9811_v49  ;;  %v1737_v63 = vmin.f32 %v9520_v24, %v9815_v60  ;;  %v1518_v12 = vmin.f32 %v9677_v9, %v1272_v39  ;;  %v1519_v15 = vmin.f32 %v9679_v33, %v9831_v32  ;;  %v766_v24 = vld [vmem:[#allocation2 + $0x8fe] sm:$0xff] }
 0x169   :  { %17006 = vst [vmem:[#allocation150_spill] sm:$0xff] %v9798_v57  ;;  %17011 = vst [vmem:[#allocation104_spill] sm:$0xff] %v9824_v62  ;;  %v1517_v25 = vmin.f32 %v9675_v7, %v1271_v47  ;;  %v1738_v56 = vmin.f32 %v9536_v59, %v9828_v16  ;;  %v9846_v62 = vmin.f32 %v758_v36, %v9817_v52  ;;  %v767_v59 = vld [vmem:[#allocation2 + $0x906] sm:$0xff] }
 0x16a   :  { %v9821_v28 = vmin.f32 %v9584_v34, %v9801_v29  ;;  %v9838_v34 = vmin.f32 %v757_v55, %v9807_v50  ;;  %v9849_v7 = vmin.f32 %v17012_v10, %v1737_v63  ;;  %v9855_v55 = vmin.f32 %v9550_v46, %v1518_v12  ;;  %v17017_v36 = vld [vmem:[#allocation188_spill] sm:$0xff]  ;;  %v17020_v12 = vld [vmem:[#allocation158_spill] sm:$0xff] }
 0x16b   :  { %v9852_v9 = vmin.f32 %v9546_v21, %v1517_v25  ;;  %v9865_v57 = vmin.f32 %v17017_v36, %v1738_v56  ;;  %v9868_v10 = vmin.f32 %v9561_v44, %v1519_v15  ;;  %v9870_v63 = vmin.f32 %v759_v19, %v1018_v41  ;;  %v5734_v15 = vld [vmem:[#allocation2 + $0x936] sm:$0xff] }
 0x16c   :  { %17009 = vst [vmem:[#allocation240_spill] sm:$0xff] %v9821_v28  ;;  %17014 = vst [vmem:[#allocation241_spill] sm:$0xff] %v9855_v55  ;;  %v1520_v27 = vmin.f32 %v9690_v2, %v9838_v34  ;;  %v17015_v49 = vrot.slane %v9821_v28, 1  ;;  %v9874_v25 = vmin.f32 %v9637_v8, %v9849_v7  ;;  %v1521_v55 = vmin.f32 %v9714_v23, %v9846_v62  ;;  %v17022_v36 = vld [vmem:[#allocation194_spill] sm:$0xff]  ;;  %v17024_v8 = vld [vmem:[#allocation191_spill] sm:$0xff] }
 0x16d   :  { %17013 = vst [vmem:[#allocation185_spill] sm:$0xff] %v9852_v9  ;;  %17018 = vst [vmem:[#allocation188_spill] sm:$0xff] %v9868_v10  ;;  %v1277_v9 = vmin.f32 %v760_v5, %v766_v24  ;;  %v1522_v56 = vmin.f32 %v9736_v61, %v9870_v63  ;;  %v1283_v19 = vmin.f32 %v766_v24, %v5734_v15  ;;  %v17026_v23 = vld [vmem:[#allocation5_spill] sm:$0xff]  ;;  %v5735_v24 = vld [vmem:[#allocation2 + $0x93e] sm:$0xff] }
 0x16e   :  { %v9862_v33 = vmin.f32 %v9821_v28, %v17015_v49  ;;  %17019 = vst [vmem:[#allocation243_spill] sm:$0xff] %v9874_v25  ;;  %v1742_v2 = vmin.f32 %v17020_v12, %v1520_v27  ;;  %v9881_v49 = vmin.f32 %v9653_v58, %v9865_v57  ;;  %v1278_v41 = vmin.f32 %v761_v45, %v767_v59  ;;  %v17025_v12 = vld [vmem:[#allocation3_spill] sm:$0xff]  ;;  %v768_v15 = vld [vmem:[#allocation2 + $0x90e] sm:$0xff] }
 0x16f   :  { %v1743_v25 = vmin.f32 %v17024_v8, %v1521_v55  ;;  %v1523_v27 = vmin.f32 %v9742_v54, %v1277_v9  ;;  %v17027_v5 = vmin.f32 %v17025_v12, %v17026_v23  ;;  %v9897_v61 = vmin.f32 %v1271_v47, %v1283_v19  ;;  %v17032_v55 = vld [vmem:[#allocation195_spill] sm:$0xff]  ;;  %v769_v12 = vld [vmem:[#allocation2 + $0x916] sm:$0xff] }
 0x170   :  { %17016 = vst [vmem:[#allocation242_spill] sm:$0xff] %v9862_v33  ;;  %17021 = vst [vmem:[#allocation158_spill] sm:$0xff] %v9881_v49  ;;  %v9886_v10 = vmin.f32 %v17022_v36, %v1742_v2  ;;  %v15796_v58 = vrot.slane %v9881_v49, 1  ;;  %v17029_v33 = vld [vmem:[#allocation230_spill] sm:$0xff]  ;;  %v1284_v45 = vmin.f32 %v767_v59, %v5735_v24  ;;  %v17031_v2 = vld [vmem:[#allocation164_spill] sm:$0xff] }
 0x171   :  { %v9893_v28 = vmin.f32 %v1277_v9, %v17027_v5  ;;  %v1744_v17 = vmin.f32 %v17029_v33, %v1522_v56  ;;  %17030 = vst [vmem:[#allocation3_spill] sm:$0xff] %v9897_v61  ;;  %v9900_v36 = vmin.f32 %v17031_v2, %v1743_v25  ;;  %v9903_v8 = vmin.f32 %v17032_v55, %v1523_v27  ;;  %v17035_v33 = vld [vmem:[#allocation166_spill] sm:$0xff]  ;;  %v17038_v27 = vld [vmem:[#allocation4_spill] sm:$0xff]  ;;  %v17178_v55 = vld [vmem:[#allocation99_spill] sm:$0xff] }
 0x172   :  { %17023 = vst [vmem:[#allocation194_spill] sm:$0xff] %v9886_v10  ;;  %v1524_v9 = vmin.f32 %v9744_v22, %v1278_v41  ;;  %v9911_v47 = vmin.f32 %v9881_v49, %v15796_v58  ;;  %v9918_v56 = vmin.f32 %v1272_v39, %v1284_v45  ;;  %v17039_v22 = vld [vmem:[#allocation6_spill] sm:$0xff]  ;;  %v5736_v45 = vld [vmem:[#allocation2 + $0x946] sm:$0xff]  ;;  %v5737_v58 = vld [vmem:[#allocation2 + $0x94e] sm:$0xff] }
 0x173   :  { %17028 = vst [vmem:[#allocation191_spill] sm:$0xff] %v9893_v28  ;;  %17033 = vst [vmem:[#allocation5_spill] sm:$0xff] %v9903_v8  ;;  %v9914_v59 = vmin.f32 %v17035_v33, %v1744_v17  ;;  %v9922_v19 = vmin.f32 %v9708_v3, %v9900_v36  ;;  %v17040_v23 = vmin.f32 %v17038_v27, %v17039_v22  ;;  %v770_v54 = vld [vmem:[#allocation2 + $0x91e] sm:$0xff]  ;;  %v17125_v8 = vld [vmem:[#allocation117_spill] sm:$0xff] }
 0x174   :  { %17034 = vst [vmem:[#allocation230_spill] sm:$0xff] %v9911_v47  ;;  %17036 = vst [vmem:[#allocation164_spill] sm:$0xff] %v9918_v56  ;;  %v9930_v24 = vmin.f32 %v9630_v48, %v1524_v9  ;;  %v1279_v17 = vmin.f32 %v9793_v11, %v768_v15  ;;  %v1285_v3 = vmin.f32 %v768_v15, %v5736_v45  ;;  %v1030_v27 = vld [vmem:[#allocation2 + $0x95e] sm:$0xf]  ;;  %v17049_v45 = vld [vmem:[#allocation8_spill] sm:$0xff] }
 0x175   :  { %17037 = vst [vmem:[#allocation166_spill] sm:$0xff] %v9922_v19  ;;  %v9927_v5 = vmin.f32 %v1278_v41, %v17040_v23  ;;  %v9935_v2 = vmin.f32 %v9728_v0, %v9914_v59  ;;  %v1280_v33 = vmin.f32 %v9807_v50, %v769_v12  ;;  %v765_v41 = vld [vmem:[#allocation2 + $0x8ee] sm:$0xf]  ;;  %v17044_v11 = vld [vmem:[#allocation7_spill] sm:$0xff]  ;;  %v1286_v28 = vmin.f32 %v769_v12, %v5737_v58  ;;  %v17050_v56 = vld [vmem:[#allocation10_spill] sm:$0xff] }
 0x176   :  { %17042 = vst [vmem:[#allocation6_spill] sm:$0xff] %v9930_v24  ;;  %v1525_v22 = vmin.f32 %v9746_v51, %v1279_v17  ;;  %v17045_v23 = vld [vmem:[#allocation9_spill] sm:$0xff]  ;;  %v9950_v15 = vmin.f32 %v9831_v32, %v1285_v3  ;;  %v17051_v61 = vmin.f32 %v17049_v45, %v17050_v56  ;;  %v1024_v51 = vld [vmem:[#allocation2 + $0x926] sm:$0xf]  ;;  %v1281_v12 = vmin.f32 %v9817_v52, %v770_v54 }
 0x177   :  { %17041 = vst [vmem:[#allocation4_spill] sm:$0xff] %v9927_v5  ;;  %17043 = vst [vmem:[#allocation244_spill] sm:$0xff] %v9935_v2  ;;  %v17046_v25 = vmin.f32 %v17044_v11, %v17045_v23  ;;  %v15801_v39 = vrot.slane %v9935_v2, 1  ;;  %v1526_v50 = vmin.f32 %v9759_v53, %v1280_v33  ;;  %v771_v5 = vld [vmem:[#allocation2 + $0x926] sm:$0xf]  ;;  %v1532_v58 = vmin.f32 %v9838_v34, %v1286_v28  ;;  %v17056_v11 = vld [vmem:[#allocation133_spill] sm:$0xff] }
 0x178   :  { %17048 = vst [vmem:[#allocation9_spill] sm:$0xff] %v9950_v15  ;;  %v1538_v9 = vmin.f32 %v1280_v33, %v17051_v61  ;;  %v9957_v24 = vmin.f32 %v9634_v38, %v1525_v22  ;;  %v1282_v3 = vmin.f32 %v765_v41, %v1024_v51  ;;  %v5738_v33 = vld [vmem:[#allocation2 + $0x956] sm:$0xff]  ;;  %v1288_v34 = vmin.f32 %v771_v5, %v1030_v27  ;;  %v17059_v32 = vld [vmem:[#allocation12_spill] sm:$0xff]  ;;  %v17115_v15 = vld [vmem:[#allocation115_spill] sm:$0xff] }
 0x179   :  { %v9946_v0 = vmin.f32 %v1279_v17, %v17046_v25  ;;  %v9966_v53 = vmin.f32 %v9935_v2, %v15801_v39  ;;  %v9971_v61 = vmin.f32 %v9643_v40, %v1526_v50  ;;  %v1754_v17 = vmin.f32 %v9712_v13, %v1532_v58  ;;  %v17058_v25 = vld [vmem:[#allocation11_spill] sm:$0xff]  ;;  %v17061_v39 = vld [vmem:[#allocation214_spill] sm:$0xff]  ;;  %v17063_v27 = vld [vmem:[#allocation13_spill] sm:$0xff] }
 0x17a   :  { %17052 = vst [vmem:[#allocation8_spill] sm:$0xff] %v9957_v24  ;;  %v1760_v56 = vmin.f32 %v9780_v35, %v1538_v9  ;;  %v1287_v28 = vmin.f32 %v770_v54, %v5738_v33  ;;  %v1527_v45 = vmin.f32 %v9782_v20, %v1281_v12  ;;  %v17060_v40 = vmin.f32 %v17058_v25, %v17059_v32  ;;  %v17064_v41 = vld [vmem:[#allocation14_spill] sm:$0xff]  ;;  %v17067_v25 = vld [vmem:[#allocation15_spill] sm:$0xff]  ;;  %v17071_v33 = vld [vmem:[#allocation84_spill] sm:$0xff] }
 0x17b   :  { %17047 = vst [vmem:[#allocation7_spill] sm:$0xff] %v9946_v0  ;;  %17053 = vst [vmem:[#allocation10_spill] sm:$0xff] %v9966_v53  ;;  %v9985_v35 = vmin.f32 %v17061_v39, %v1754_v17  ;;  %v1528_v13 = vmin.f32 %v9805_v14, %v1282_v3  ;;  %v1534_v5 = vmin.f32 %v9870_v63, %v1288_v34  ;;  %v17070_v17 = vld [vmem:[#allocation233_spill] sm:$0xff]  ;;  %v17073_v34 = vld [vmem:[#allocation31_spill] sm:$0xff] }
 0x17c   :  { %17054 = vst [vmem:[#allocation245_spill] sm:$0xff] %v9971_v61  ;;  %v9978_v23 = vmin.f32 %v17056_v11, %v1760_v56  ;;  %v1539_v50 = vmin.f32 %v1281_v12, %v17060_v40  ;;  %v1533_v54 = vmin.f32 %v9846_v62, %v1287_v28  ;;  %v17065_v9 = vmin.f32 %v17063_v27, %v17064_v41  ;;  %v17066_v56 = vld [vmem:[#allocation82_spill] sm:$0xff]  ;;  %v17072_v28 = vld [vmem:[#allocation16_spill] sm:$0xff]  ;;  %v17077_v27 = vld [vmem:[#allocation85_spill] sm:$0xff] }
 0x17d   :  { %17062 = vst [vmem:[#allocation11_spill] sm:$0xff] %v9985_v35  ;;  %v1749_v58 = vmin.f32 %v9669_v31, %v1527_v45  ;;  %v17068_v12 = vld [vmem:[#allocation30_spill] sm:$0xff]  ;;  %v1750_v14 = vmin.f32 %v17070_v17, %v1528_v13  ;;  %v1756_v63 = vmin.f32 %v9757_v37, %v1534_v5  ;;  %v17078_v41 = vld [vmem:[#allocation17_spill] sm:$0xff]  ;;  %v17086_v22 = vld [vmem:[#allocation36_spill] sm:$0xff] }
 0x17e   :  { %17057 = vst [vmem:[#allocation133_spill] sm:$0xff] %v9978_v23  ;;  %v1540_v51 = vmin.f32 %v1282_v3, %v17065_v9  ;;  %v1761_v20 = vmin.f32 %v9815_v60, %v1539_v50  ;;  %v17069_v32 = vmin.f32 %v17067_v25, %v17068_v12  ;;  %v1755_v62 = vmin.f32 %v9740_v43, %v1533_v54  ;;  %v17075_v60 = vld [vmem:[#allocation206_spill] sm:$0xff]  ;;  %v17079_v9 = vld [vmem:[#allocation32_spill] sm:$0xff]  ;;  %v17109_v23 = vld [vmem:[#allocation51_spill] sm:$0xff] }
 0x17f   :  { %v17074_v3 = vmin.f32 %v17072_v28, %v17073_v34  ;;  %v1923_v45 = vmin.f32 %v17075_v60, %v1749_v58  ;;  %v17076_v40 = vld [vmem:[#allocation226_spill] sm:$0xff]  ;;  %v17080_v13 = vmin.f32 %v17078_v41, %v17079_v9  ;;  %v17082_v54 = vld [vmem:[#allocation216_spill] sm:$0xff]  ;;  %v17088_v58 = vld [vmem:[#allocation227_spill] sm:$0xff] }
 0x180   :  { %v9999_v39 = vmin.f32 %v17069_v32, %v17066_v56  ;;  %v1762_v31 = vmin.f32 %v9828_v16, %v1540_v51  ;;  %v1935_v50 = vmin.f32 %v17076_v40, %v1761_v20  ;;  %v17081_v43 = vld [vmem:[#allocation210_spill] sm:$0xff]  ;;  %v1929_v5 = vmin.f32 %v17082_v54, %v1755_v62  ;;  %v17083_v32 = vld [vmem:[#allocation220_spill] sm:$0xff]  ;;  %v17091_v41 = vld [vmem:[#allocation21_spill] sm:$0xff] }
 0x181   :  { %v10008_v11 = vmin.f32 %v17074_v3, %v17071_v33  ;;  %v10017_v25 = vmin.f32 %v17080_v13, %v17077_v27  ;;  %v1924_v37 = vmin.f32 %v17081_v43, %v1750_v14  ;;  %v1930_v17 = vmin.f32 %v17083_v32, %v1756_v63  ;;  %v17084_v28 = vld [vmem:[#allocation92_spill] sm:$0xff]  ;;  %v17085_v3 = vld [vmem:[#allocation23_spill] sm:$0xff]  ;;  %v17093_v13 = vld [vmem:[#allocation37_spill] sm:$0xff] }
 0x182   :  { %v17087_v16 = vmin.f32 %v17085_v3, %v17086_v22  ;;  %v1936_v20 = vmin.f32 %v17088_v58, %v1762_v31  ;;  %v10030_v60 = vmin.f32 %v9785_v1, %v1923_v45  ;;  %v10033_v40 = vmin.f32 %v9900_v36, %v1935_v50  ;;  %v17092_v14 = vld [vmem:[#allocation24_spill] sm:$0xff]  ;;  %v17099_v45 = vld [vmem:[#allocation25_spill] sm:$0xff]  ;;  %v17100_v32 = vld [vmem:[#allocation38_spill] sm:$0xff] }
 0x183   :  { %v17094_v62 = vmin.f32 %v17092_v14, %v17093_v13  ;;  %v10042_v63 = vmin.f32 %v9801_v29, %v1924_v37  ;;  %v10045_v54 = vmin.f32 %v9849_v7, %v1929_v5  ;;  %v10048_v31 = vmin.f32 %v9865_v57, %v1930_v17  ;;  %v17098_v1 = vld [vmem:[#allocation96_spill] sm:$0xff]  ;;  %v17104_v58 = vld [vmem:[#allocation43_spill] sm:$0xff]  ;;  %v17106_v37 = vld [vmem:[#allocation45_spill] sm:$0xff] }
 0x184   :  { %v10026_v51 = vmin.f32 %v17087_v16, %v17084_v28  ;;  %17089 = vst [vmem:[#allocation12_spill] sm:$0xff] %v10030_v60  ;;  %17090 = vst [vmem:[#allocation214_spill] sm:$0xff] %v10033_v40  ;;  %v17101_v36 = vmin.f32 %v17099_v45, %v17100_v32  ;;  %v10057_v3 = vmin.f32 %v9914_v59, %v1936_v20  ;;  %v17103_v16 = vld [vmem:[#allocation27_spill] sm:$0xff]  ;;  %v17105_v29 = vld [vmem:[#allocation100_spill] sm:$0xff] }
 0x185   :  { %v10039_v43 = vmin.f32 %v17094_v62, %v17091_v41  ;;  %17095 = vst [vmem:[#allocation13_spill] sm:$0xff] %v10042_v63  ;;  %17096 = vst [vmem:[#allocation14_spill] sm:$0xff] %v10045_v54  ;;  %v17107_v7 = vld [vmem:[#allocation101_spill] sm:$0xff]  ;;  %v17108_v5 = vld [vmem:[#allocation46_spill] sm:$0xff] }
 0x186   :  { %17097 = vst [vmem:[#allocation82_spill] sm:$0xff] %v10048_v31  ;;  %v10054_v50 = vmin.f32 %v17101_v36, %v17098_v1  ;;  %17102 = vst [vmem:[#allocation15_spill] sm:$0xff] %v10057_v3  ;;  %v17110_v45 = vld [vmem:[#allocation55_spill] sm:$0xff]  ;;  %v17111_v0 = vld [vmem:[#allocation54_spill] sm:$0xff] }
 0x187   :  { %v10069_v36 = vmin.f32 %v17110_v45, %v17109_v23  ;;  %v17112_v59 = vld [vmem:[#allocation58_spill] sm:$0xff]  ;;  %v17113_v54 = vld [vmem:[#allocation105_spill] sm:$0xff]  ;;  %v17114_v35 = vld [vmem:[#allocation59_spill] sm:$0xff] }
 0x188   :  { %v10073_v20 = vmin.f32 %v17112_v59, %v17111_v0  ;;  %v10078_v62 = vmin.f32 %v17114_v35, %v17113_v54  ;;  %v17116_v40 = vld [vmem:[#allocation19_spill] sm:$0xff]  ;;  %v17118_v17 = vld [vmem:[#allocation116_spill] sm:$0xff]  ;;  %v17121_v59 = vrot.slane %v10042_v63, 1  ;;  %v17123_v35 = vrot.slane %v10048_v31, 1 }
 0x189   :  { %v17117_v57 = vmin.f32 %v17068_v12, %v17116_v40  ;;  %v17119_v45 = vld [vmem:[#allocation39_spill] sm:$0xff]  ;;  %v17126_v12 = vld [vmem:[#allocation62_spill] sm:$0xff] }
 0x18a   :  { %v17120_v61 = vmin.f32 %v17073_v34, %v17119_v45  ;;  %v10095_v14 = vmin.f32 %v10042_v63, %v17121_v59  ;;  %v10100_v24 = vmin.f32 %v10048_v31, %v17123_v35  ;;  %v17127_v40 = vmin.f32 %v17079_v9, %v17126_v12  ;;  %v17128_v53 = vld [vmem:[#allocation87_spill] sm:$0xff]  ;;  %v17133_v63 = vld [vmem:[#allocation90_spill] sm:$0xff]  ;;  %v17136_v9 = vld [vmem:[#allocation93_spill] sm:$0xff] }
 0x18b   :  { %v10084_v60 = vmin.f32 %v17117_v57, %v17115_v15  ;;  %v17131_v59 = vrot.slane %v10057_v3, 1  ;;  %v17134_v35 = vld [vmem:[#allocation67_spill] sm:$0xff]  ;;  %v17137_v12 = vld [vmem:[#allocation68_spill] sm:$0xff] }
 0x18c   :  { %v10090_v52 = vmin.f32 %v17120_v61, %v17118_v17  ;;  %17122 = vst [vmem:[#allocation30_spill] sm:$0xff] %v10095_v14  ;;  %17124 = vst [vmem:[#allocation233_spill] sm:$0xff] %v10100_v24  ;;  %v10106_v57 = vmin.f32 %v17127_v40, %v17125_v8  ;;  %v17129_v61 = vld [vmem:[#allocation66_spill] sm:$0xff]  ;;  %v17135_v24 = vmin.f32 %v17093_v13, %v17134_v35  ;;  %v17149_v35 = vld [vmem:[#allocation73_spill] sm:$0xff] }
 0x18d   :  { %v17130_v34 = vmin.f32 %v17086_v22, %v17129_v61  ;;  %v10117_v14 = vmin.f32 %v10057_v3, %v17131_v59  ;;  %v17138_v40 = vmin.f32 %v17100_v32, %v17137_v12  ;;  %v17139_v22 = vld [vmem:[#allocation70_spill] sm:$0xff]  ;;  %v17140_v61 = vld [vmem:[#allocation40_spill] sm:$0xff]  ;;  %v17143_v59 = vld [vmem:[#allocation123_spill] sm:$0xff] }
 0x18e   :  { %v10123_v31 = vmin.f32 %v17135_v24, %v17133_v63  ;;  %v17145_v3 = vld [vmem:[#allocation72_spill] sm:$0xff]  ;;  %v17148_v13 = vld [vmem:[#allocation42_spill] sm:$0xff] }
 0x18f   :  { %v10112_v45 = vmin.f32 %v17130_v34, %v17128_v53  ;;  %17132 = vst [vmem:[#allocation84_spill] sm:$0xff] %v10117_v14  ;;  %v10129_v2 = vmin.f32 %v17138_v40, %v17136_v9  ;;  %v17141_v34 = vld [vmem:[#allocation71_spill] sm:$0xff]  ;;  %v17144_v14 = vld [vmem:[#allocation41_spill] sm:$0xff]  ;;  %v17147_v24 = vld [vmem:[#allocation124_spill] sm:$0xff]  ;;  %v17150_v4 = vmin.f32 %v17148_v13, %v17149_v35 }
 0x190   :  { %v17142_v19 = vmin.f32 %v17140_v61, %v17141_v34  ;;  %v17146_v49 = vmin.f32 %v17144_v14, %v17145_v3  ;;  %v17151_v32 = vld [vmem:[#allocation74_spill] sm:$0xff]  ;;  %v17153_v40 = vld [vmem:[#allocation76_spill] sm:$0xff]  ;;  %v17157_v34 = vld [vmem:[#allocation77_spill] sm:$0xff] }
 0x191   :  { %v10147_v18 = vmin.f32 %v17150_v4, %v17147_v24  ;;  %v17152_v12 = vld [vmem:[#allocation50_spill] sm:$0xff]  ;;  %v17156_v61 = vld [vmem:[#allocation52_spill] sm:$0xff]  ;;  %v17160_v3 = vld [vmem:[#allocation53_spill] sm:$0xff] }
 0x192   :  { %v10135_v10 = vmin.f32 %v17142_v19, %v17139_v22  ;;  %v10141_v47 = vmin.f32 %v17146_v49, %v17143_v59  ;;  %v17154_v26 = vmin.f32 %v17152_v12, %v17153_v40  ;;  %v17155_v19 = vld [vmem:[#allocation130_spill] sm:$0xff]  ;;  %v17158_v6 = vmin.f32 %v17156_v61, %v17157_v34  ;;  %v17159_v49 = vld [vmem:[#allocation131_spill] sm:$0xff]  ;;  %v17166_v35 = vld [vmem:[#allocation57_spill] sm:$0xff] }
 0x193   :  { %v17161_v14 = vld [vmem:[#allocation78_spill] sm:$0xff]  ;;  %v17164_v4 = vld [vmem:[#allocation107_spill] sm:$0xff]  ;;  %v17168_v12 = vld [vmem:[#allocation60_spill] sm:$0xff] }
 0x194   :  { %v10153_v30 = vmin.f32 %v17154_v26, %v17151_v32  ;;  %v10159_v42 = vmin.f32 %v17158_v6, %v17155_v19  ;;  %v17162_v38 = vmin.f32 %v17160_v3, %v17161_v14  ;;  %v10169_v13 = vmin.f32 %v17066_v56, %v17164_v4  ;;  %v17170_v6 = vld [vmem:[#allocation119_spill] sm:$0xff]  ;;  %v17172_v34 = vld [vmem:[#allocation89_spill] sm:$0xff]  ;;  %v17176_v14 = vld [vmem:[#allocation98_spill] sm:$0xff] }
 0x195   :  { %v10173_v26 = vmin.f32 %v17071_v33, %v17166_v35  ;;  %v10177_v40 = vmin.f32 %v17077_v27, %v17168_v12  ;;  %v10181_v61 = vmin.f32 %v17084_v28, %v17170_v6  ;;  %v17174_v3 = vld [vmem:[#allocation91_spill] sm:$0xff]  ;;  %v10193_v33 = vmin.f32 %v17103_v16, %v17176_v14 }
 0x196   :  { %v10165_v48 = vmin.f32 %v17162_v38, %v17159_v49  ;;  %17165 = vst [vmem:[#allocation31_spill] sm:$0xff] %v10169_v13  ;;  %v10185_v38 = vmin.f32 %v17091_v41, %v17172_v34  ;;  %v10189_v56 = vmin.f32 %v17098_v1, %v17174_v3  ;;  %v10197_v27 = vmin.f32 %v17105_v29, %v17178_v55 }
 0x197   :  { %17167 = vst [vmem:[#allocation206_spill] sm:$0xff] %v10173_v26  ;;  %17169 = vst [vmem:[#allocation226_spill] sm:$0xff] %v10177_v40  ;;  %v17180_v40 = vld [vmem:[#allocation138_spill] sm:$0xff] }
 0x198   :  { %17163 = vst [vmem:[#allocation16_spill] sm:$0xff] %v10165_v48  ;;  %17171 = vst [vmem:[#allocation85_spill] sm:$0xff] %v10181_v61  ;;  %v10201_v28 = vmin.f32 %v17107_v7, %v17180_v40  ;;  %v17182_v61 = vld [vmem:[#allocation147_spill] sm:$0xff] }
 0x199   :  { %17173 = vst [vmem:[#allocation17_spill] sm:$0xff] %v10185_v38  ;;  %17175 = vst [vmem:[#allocation32_spill] sm:$0xff] %v10189_v56  ;;  %v10205_v41 = vmin.f32 %v17109_v23, %v17182_v61  ;;  %v17184_v38 = vld [vmem:[#allocation148_spill] sm:$0xff]  ;;  %v17186_v56 = vld [vmem:[#allocation149_spill] sm:$0xff] }
 0x19a   :  { %17177 = vst [vmem:[#allocation210_spill] sm:$0xff] %v10193_v33  ;;  %17179 = vst [vmem:[#allocation216_spill] sm:$0xff] %v10197_v27  ;;  %v10209_v1 = vmin.f32 %v17111_v0, %v17184_v38  ;;  %v10213_v26 = vmin.f32 %v17113_v54, %v17186_v56  ;;  %v17188_v33 = vld [vmem:[#allocation108_spill] sm:$0xff]  ;;  %v17190_v27 = vld [vmem:[#allocation153_spill] sm:$0xff] }
 0x19b   :  { %17181 = vst [vmem:[#allocation220_spill] sm:$0xff] %v10201_v28  ;;  %17183 = vst [vmem:[#allocation92_spill] sm:$0xff] %v10205_v41  ;;  %v10217_v13 = vmin.f32 %v17115_v15, %v17188_v33  ;;  %v10221_v48 = vmin.f32 %v17118_v17, %v17190_v27  ;;  %v17192_v28 = vld [vmem:[#allocation154_spill] sm:$0xff]  ;;  %v17194_v41 = vld [vmem:[#allocation83_spill] sm:$0xff] }
 0x19c   :  { %17185 = vst [vmem:[#allocation23_spill] sm:$0xff] %v10209_v1  ;;  %17187 = vst [vmem:[#allocation36_spill] sm:$0xff] %v10213_v26  ;;  %v10225_v23 = vmin.f32 %v17125_v8, %v17192_v28  ;;  %v10229_v0 = vmin.f32 %v17128_v53, %v17194_v41  ;;  %v17196_v1 = vld [vmem:[#allocation160_spill] sm:$0xff]  ;;  %v17198_v26 = vld [vmem:[#allocation63_spill] sm:$0xff] }
 0x19d   :  { %17189 = vst [vmem:[#allocation227_spill] sm:$0xff] %v10217_v13  ;;  %17191 = vst [vmem:[#allocation21_spill] sm:$0xff] %v10221_v48  ;;  %v10233_v54 = vmin.f32 %v17133_v63, %v17196_v1  ;;  %v10237_v15 = vmin.f32 %v17136_v9, %v17198_v26  ;;  %v17200_v13 = vld [vmem:[#allocation95_spill] sm:$0xff]  ;;  %v17201_v48 = vld [vmem:[#allocation122_spill] sm:$0xff] }
 0x19e   :  { %17193 = vst [vmem:[#allocation24_spill] sm:$0xff] %v10225_v23  ;;  %17195 = vst [vmem:[#allocation37_spill] sm:$0xff] %v10229_v0  ;;  %v10241_v17 = vmin.f32 %v17139_v22, %v17200_v13  ;;  %v10245_v8 = vmin.f32 %v17143_v59, %v17201_v48  ;;  %v17202_v23 = vld [vmem:[#allocation170_spill] sm:$0xff]  ;;  %v17203_v0 = vld [vmem:[#allocation175_spill] sm:$0xff] }
 0x19f   :  { %17197 = vst [vmem:[#allocation96_spill] sm:$0xff] %v10233_v54  ;;  %17199 = vst [vmem:[#allocation25_spill] sm:$0xff] %v10237_v15  ;;  %v10249_v53 = vmin.f32 %v17147_v24, %v17202_v23  ;;  %v10253_v63 = vmin.f32 %v17151_v32, %v17203_v0  ;;  %v17204_v54 = vld [vmem:[#allocation176_spill] sm:$0xff]  ;;  %v17205_v15 = vld [vmem:[#allocation177_spill] sm:$0xff] }
 0x1a0   :  { %v10257_v9 = vmin.f32 %v17155_v19, %v17204_v54  ;;  %v10261_v22 = vmin.f32 %v17159_v49, %v17205_v15  ;;  %v17206_v13 = vld [vmem:[#allocation79_spill] sm:$0xff]  ;;  %v17207_v48 = vld [vmem:[#allocation180_spill] sm:$0xff]  ;;  %v17208_v23 = vld [vmem:[#allocation181_spill] sm:$0xff] }
 0x1a1   :  { %v10265_v59 = vmin.f32 %v17164_v4, %v17206_v13  ;;  %v10269_v24 = vmin.f32 %v17166_v35, %v17207_v48  ;;  %v10273_v32 = vmin.f32 %v17168_v12, %v17208_v23  ;;  %v17209_v0 = vld [vmem:[#allocation112_spill] sm:$0xff]  ;;  %v17210_v54 = vld [vmem:[#allocation190_spill] sm:$0xff]  ;;  %v17212_v13 = vld [vmem:[#allocation135_spill] sm:$0xff] }
 0x1a2   :  { %v10277_v19 = vmin.f32 %v17170_v6, %v17209_v0  ;;  %v10281_v49 = vmin.f32 %v17172_v34, %v17210_v54  ;;  %v17211_v15 = vld [vmem:[#allocation88_spill] sm:$0xff]  ;;  %v10289_v35 = vmin.f32 %v17176_v14, %v17212_v13  ;;  %v17214_v23 = vld [vmem:[#allocation201_spill] sm:$0xff]  ;;  %v17215_v0 = vld [vmem:[#allocation211_spill] sm:$0xff] }
 0x1a3   :  { %v10285_v4 = vmin.f32 %v17174_v3, %v17211_v15  ;;  %v17213_v48 = vld [vmem:[#allocation136_spill] sm:$0xff]  ;;  %v10297_v6 = vmin.f32 %v17180_v40, %v17214_v23  ;;  %v10301_v34 = vmin.f32 %v17182_v61, %v17215_v0  ;;  %v17219_v15 = vld [vmem:[#allocation213_spill] sm:$0xff]  ;;  %v17221_v13 = vld [vmem:[#allocation103_spill] sm:$0xff] }
 0x1a4   :  { %v10293_v12 = vmin.f32 %v17178_v55, %v17213_v48  ;;  %v17217_v54 = vld [vmem:[#allocation212_spill] sm:$0xff]  ;;  %v10309_v14 = vmin.f32 %v17186_v56, %v17219_v15  ;;  %v10313_v55 = vmin.f32 %v17188_v33, %v17221_v13  ;;  %v17223_v48 = vld [vmem:[#allocation221_spill] sm:$0xff]  ;;  %v17225_v23 = vld [vmem:[#allocation222_spill] sm:$0xff] }
 0x1a5   :  { %17216 = vst [vmem:[#allocation38_spill] sm:$0xff] %v10301_v34  ;;  %v10305_v3 = vmin.f32 %v17184_v38, %v17217_v54  ;;  %v10317_v40 = vmin.f32 %v17190_v27, %v17223_v48  ;;  %v10321_v61 = vmin.f32 %v17192_v28, %v17225_v23  ;;  %v17227_v0 = vld [vmem:[#allocation186_spill] sm:$0xff]  ;;  %v17230_v56 = vld [vmem:[#allocation187_spill] sm:$0xff]  ;;  %v17233_v13 = vld [vmem:[#allocation189_spill] sm:$0xff]  ;;  %v10343_v28 = vmin.f32 %v9999_v39, %v10069_v36 }
 0x1a6   :  { %17220 = vst [vmem:[#allocation43_spill] sm:$0xff] %v10309_v14  ;;  %17222 = vst [vmem:[#allocation100_spill] sm:$0xff] %v10313_v55  ;;  %v17228_v38 = vmin.f32 %v17227_v0, %v9546_v21  ;;  %v17231_v15 = vmin.f32 %v17230_v56, %v9550_v46  ;;  %v17234_v27 = vmin.f32 %v17233_v13, %v9561_v44  ;;  %v17242_v13 = vld [vmem:[#allocation33_spill] sm:$0xff] }
 0x1a7   :  { %17218 = vst [vmem:[#allocation27_spill] sm:$0xff] %v10305_v3  ;;  %17224 = vst [vmem:[#allocation45_spill] sm:$0xff] %v10317_v40  ;;  %v10347_v21 = vmin.f32 %v10008_v11, %v10073_v20  ;;  %v10351_v46 = vmin.f32 %v10017_v25, %v10078_v62  ;;  %v10359_v44 = vmin.f32 %v10026_v51, %v10084_v60 }
 0x1a8   :  { %17226 = vst [vmem:[#allocation101_spill] sm:$0xff] %v10321_v61  ;;  %v10327_v54 = vmin.f32 %v17194_v41, %v17228_v38  ;;  %v10333_v33 = vmin.f32 %v17196_v1, %v17231_v15  ;;  %v10339_v48 = vmin.f32 %v17198_v26, %v17234_v27  ;;  %v17236_v41 = vld [vmem:[#allocation61_spill] sm:$0xff]  ;;  %v17237_v1 = vld [vmem:[#allocation20_spill] sm:$0xff]  ;;  %v10363_v39 = vmin.f32 %v10039_v43, %v10090_v52  ;;  %v17243_v26 = vld [vmem:[#allocation26_spill] sm:$0xff] }
 0x1a9   :  { %v10355_v0 = vmin.f32 %v17237_v1, %v17236_v41  ;;  %17239 = vst [vmem:[#allocation58_spill] sm:$0xff] %v10359_v44  ;;  %v10367_v11 = vmin.f32 %v10054_v50, %v10106_v57  ;;  %v10371_v25 = vmin.f32 %v17243_v26, %v17242_v13  ;;  %v17245_v15 = vmin.f32 %v17104_v58, %v17103_v16  ;;  %v17251_v27 = vld [vmem:[#allocation69_spill] sm:$0xff]  ;;  %v17252_v1 = vld [vmem:[#allocation47_spill] sm:$0xff]  ;;  %v17253_v26 = vld [vmem:[#allocation28_spill] sm:$0xff] }
 0x1aa   :  { %17229 = vst [vmem:[#allocation46_spill] sm:$0xff] %v10327_v54  ;;  %17232 = vst [vmem:[#allocation51_spill] sm:$0xff] %v10333_v33  ;;  %v17247_v51 = vmin.f32 %v17106_v37, %v17105_v29  ;;  %v17249_v50 = vmin.f32 %v17108_v5, %v17107_v7  ;;  %v17254_v23 = vmin.f32 %v17252_v1, %v17253_v26  ;;  %v17259_v37 = vld [vmem:[#allocation44_spill] sm:$0xff]  ;;  %v17271_v1 = vld [vmem:[#allocation226_spill] sm:$0xff] }
 0x1ab   :  { %17235 = vst [vmem:[#allocation55_spill] sm:$0xff] %v10339_v48  ;;  %17238 = vst [vmem:[#allocation54_spill] sm:$0xff] %v10355_v0  ;;  %v10377_v38 = vmin.f32 %v17245_v15, %v10112_v45  ;;  %v10399_v16 = vmin.f32 %v10069_v36, %v10135_v10  ;;  %v10403_v58 = vmin.f32 %v10073_v20, %v10141_v47  ;;  %v17265_v15 = vld [vmem:[#allocation56_spill] sm:$0xff]  ;;  %v17273_v26 = vld [vmem:[#allocation111_spill] sm:$0xff] }
 0x1ac   :  { %17240 = vst [vmem:[#allocation105_spill] sm:$0xff] %v10363_v39  ;;  %17241 = vst [vmem:[#allocation59_spill] sm:$0xff] %v10367_v11  ;;  %v10383_v43 = vmin.f32 %v17247_v51, %v10123_v31  ;;  %v10389_v56 = vmin.f32 %v17249_v50, %v10129_v2  ;;  %v10407_v29 = vmin.f32 %v10078_v62, %v10147_v18  ;;  %v17267_v51 = vld [vmem:[#allocation31_spill] sm:$0xff]  ;;  %v17269_v50 = vld [vmem:[#allocation206_spill] sm:$0xff] }
 0x1ad   :  { %17244 = vst [vmem:[#allocation115_spill] sm:$0xff] %v10371_v25  ;;  %17246 = vst [vmem:[#allocation19_spill] sm:$0xff] %v10377_v38  ;;  %v10395_v25 = vmin.f32 %v17254_v23, %v17251_v27  ;;  %v10411_v7 = vmin.f32 %v17236_v41, %v17259_v37  ;;  %v10415_v5 = vmin.f32 %v10084_v60, %v10153_v30  ;;  %v17263_v23 = vld [vmem:[#allocation16_spill] sm:$0xff] }
 0x1ae   :  { %17248 = vst [vmem:[#allocation116_spill] sm:$0xff] %v10383_v43  ;;  %17250 = vst [vmem:[#allocation39_spill] sm:$0xff] %v10389_v56  ;;  %v10419_v36 = vmin.f32 %v10090_v52, %v10159_v42  ;;  %v10423_v20 = vmin.f32 %v10106_v57, %v17263_v23  ;;  %v10427_v62 = vmin.f32 %v17242_v13, %v17265_v15 }
 0x1af   :  { %17255 = vst [vmem:[#allocation117_spill] sm:$0xff] %v10395_v25  ;;  %17256 = vst [vmem:[#allocation62_spill] sm:$0xff] %v10399_v16  ;;  %v10431_v41 = vmin.f32 %v10112_v45, %v17267_v51  ;;  %v10435_v60 = vmin.f32 %v10123_v31, %v17269_v50  ;;  %v10439_v52 = vmin.f32 %v10129_v2, %v17271_v1 }
 0x1b0   :  { %17257 = vst [vmem:[#allocation87_spill] sm:$0xff] %v10403_v58  ;;  %17258 = vst [vmem:[#allocation66_spill] sm:$0xff] %v10407_v29  ;;  %v10443_v57 = vmin.f32 %v17251_v27, %v17273_v26 }
 0x1b1   :  { %17260 = vst [vmem:[#allocation90_spill] sm:$0xff] %v10411_v7  ;;  %17261 = vst [vmem:[#allocation67_spill] sm:$0xff] %v10415_v5 }
 0x1b2   :  { %17262 = vst [vmem:[#allocation93_spill] sm:$0xff] %v10419_v36  ;;  %17264 = vst [vmem:[#allocation68_spill] sm:$0xff] %v10423_v20  ;;  %v17275_v20 = vld [vmem:[#allocation85_spill] sm:$0xff] }
 0x1b3   :  { %17266 = vst [vmem:[#allocation70_spill] sm:$0xff] %v10427_v62  ;;  %17268 = vst [vmem:[#allocation40_spill] sm:$0xff] %v10431_v41  ;;  %v10447_v13 = vmin.f32 %v10135_v10, %v17275_v20  ;;  %v17277_v62 = vld [vmem:[#allocation17_spill] sm:$0xff]  ;;  %v17279_v41 = vld [vmem:[#allocation32_spill] sm:$0xff] }
 0x1b4   :  { %17270 = vst [vmem:[#allocation71_spill] sm:$0xff] %v10435_v60  ;;  %17272 = vst [vmem:[#allocation123_spill] sm:$0xff] %v10439_v52  ;;  %v10451_v45 = vmin.f32 %v10141_v47, %v17277_v62  ;;  %v10455_v31 = vmin.f32 %v10147_v18, %v17279_v41  ;;  %v17281_v60 = vld [vmem:[#allocation97_spill] sm:$0xff]  ;;  %v17283_v52 = vld [vmem:[#allocation210_spill] sm:$0xff] }
 0x1b5   :  { %17274 = vst [vmem:[#allocation41_spill] sm:$0xff] %v10443_v57  ;;  %17276 = vst [vmem:[#allocation72_spill] sm:$0xff] %v10447_v13  ;;  %v10459_v2 = vmin.f32 %v17259_v37, %v17281_v60  ;;  %v10463_v27 = vmin.f32 %v10153_v30, %v17283_v52  ;;  %v17285_v57 = vld [vmem:[#allocation216_spill] sm:$0xff] }
 0x1b6   :  { %17278 = vst [vmem:[#allocation124_spill] sm:$0xff] %v10451_v45  ;;  %17280 = vst [vmem:[#allocation42_spill] sm:$0xff] %v10455_v31  ;;  %v10467_v10 = vmin.f32 %v10159_v42, %v17285_v57  ;;  %v17287_v13 = vld [vmem:[#allocation220_spill] sm:$0xff]  ;;  %v17289_v45 = vld [vmem:[#allocation142_spill] sm:$0xff] }
 0x1b7   :  { %17282 = vst [vmem:[#allocation73_spill] sm:$0xff] %v10459_v2  ;;  %17284 = vst [vmem:[#allocation74_spill] sm:$0xff] %v10463_v27  ;;  %v10471_v47 = vmin.f32 %v17263_v23, %v17287_v13  ;;  %v10475_v18 = vmin.f32 %v17265_v15, %v17289_v45  ;;  %v17291_v31 = vld [vmem:[#allocation92_spill] sm:$0xff]  ;;  %v17293_v2 = vld [vmem:[#allocation23_spill] sm:$0xff] }
 0x1b8   :  { %17286 = vst [vmem:[#allocation50_spill] sm:$0xff] %v10467_v10  ;;  %v10479_v37 = vmin.f32 %v17267_v51, %v17291_v31  ;;  %v10483_v30 = vmin.f32 %v17269_v50, %v17293_v2  ;;  %v17295_v27 = vld [vmem:[#allocation36_spill] sm:$0xff]  ;;  %v17297_v10 = vld [vmem:[#allocation106_spill] sm:$0xff] }
 0x1b9   :  { %17288 = vst [vmem:[#allocation76_spill] sm:$0xff] %v10471_v47  ;;  %17290 = vst [vmem:[#allocation130_spill] sm:$0xff] %v10475_v18  ;;  %v10487_v42 = vmin.f32 %v17271_v1, %v17295_v27  ;;  %v10491_v23 = vmin.f32 %v17273_v26, %v17297_v10  ;;  %v17299_v47 = vld [vmem:[#allocation227_spill] sm:$0xff]  ;;  %v17301_v18 = vld [vmem:[#allocation21_spill] sm:$0xff] }
 0x1ba   :  { %17292 = vst [vmem:[#allocation52_spill] sm:$0xff] %v10479_v37  ;;  %17294 = vst [vmem:[#allocation77_spill] sm:$0xff] %v10483_v30  ;;  %v10495_v15 = vmin.f32 %v17275_v20, %v17299_v47  ;;  %v10499_v51 = vmin.f32 %v17277_v62, %v17301_v18  ;;  %v17303_v37 = vld [vmem:[#allocation24_spill] sm:$0xff]  ;;  %v17305_v30 = vld [vmem:[#allocation118_spill] sm:$0xff] }
 0x1bb   :  { %17296 = vst [vmem:[#allocation131_spill] sm:$0xff] %v10487_v42  ;;  %17298 = vst [vmem:[#allocation53_spill] sm:$0xff] %v10491_v23  ;;  %v10503_v50 = vmin.f32 %v17279_v41, %v17303_v37  ;;  %v10507_v1 = vmin.f32 %v17281_v60, %v17305_v30  ;;  %v17307_v42 = vld [vmem:[#allocation37_spill] sm:$0xff]  ;;  %v17309_v23 = vld [vmem:[#allocation96_spill] sm:$0xff]  ;;  %v10527_v60 = vmin.f32 %v17291_v31, %v10241_v17 }
 0x1bc   :  { %17300 = vst [vmem:[#allocation78_spill] sm:$0xff] %v10495_v15  ;;  %17302 = vst [vmem:[#allocation107_spill] sm:$0xff] %v10499_v51  ;;  %v10511_v26 = vmin.f32 %v17283_v52, %v17307_v42  ;;  %v10515_v20 = vmin.f32 %v17285_v57, %v17309_v23  ;;  %v17311_v15 = vld [vmem:[#allocation25_spill] sm:$0xff]  ;;  %v17313_v51 = vld [vmem:[#allocation94_spill] sm:$0xff]  ;;  %v10531_v52 = vmin.f32 %v17293_v2, %v10245_v8 }
 0x1bd   :  { %17304 = vst [vmem:[#allocation57_spill] sm:$0xff] %v10503_v50  ;;  %17306 = vst [vmem:[#allocation60_spill] sm:$0xff] %v10507_v1  ;;  %v10519_v62 = vmin.f32 %v17287_v13, %v17311_v15  ;;  %v10523_v41 = vmin.f32 %v17289_v45, %v17313_v51  ;;  %v10535_v57 = vmin.f32 %v17295_v27, %v10249_v53 }
 0x1be   :  { %17308 = vst [vmem:[#allocation119_spill] sm:$0xff] %v10511_v26  ;;  %17310 = vst [vmem:[#allocation89_spill] sm:$0xff] %v10515_v20  ;;  %v17318_v20 = vld [vmem:[#allocation125_spill] sm:$0xff]  ;;  %v10543_v45 = vmin.f32 %v17299_v47, %v10253_v63  ;;  %v10547_v31 = vmin.f32 %v17301_v18, %v10257_v9  ;;  %v10551_v2 = vmin.f32 %v17303_v37, %v10261_v22 }
 0x1bf   :  { %17312 = vst [vmem:[#allocation91_spill] sm:$0xff] %v10519_v62  ;;  %17314 = vst [vmem:[#allocation98_spill] sm:$0xff] %v10523_v41  ;;  %v10539_v13 = vmin.f32 %v17297_v10, %v17318_v20  ;;  %v10559_v10 = vmin.f32 %v17307_v42, %v10265_v59  ;;  %v10563_v47 = vmin.f32 %v17309_v23, %v10269_v24 }
 0x1c0   :  { %17315 = vst [vmem:[#allocation99_spill] sm:$0xff] %v10527_v60  ;;  %17316 = vst [vmem:[#allocation138_spill] sm:$0xff] %v10531_v52  ;;  %v17323_v52 = vld [vmem:[#allocation75_spill] sm:$0xff]  ;;  %v10567_v18 = vmin.f32 %v17311_v15, %v10273_v32  ;;  %v10579_v42 = vmin.f32 %v10245_v8, %v10281_v49  ;;  %v10583_v23 = vmin.f32 %v10249_v53, %v10285_v4 }
 0x1c1   :  { %17317 = vst [vmem:[#allocation147_spill] sm:$0xff] %v10535_v57  ;;  %17319 = vst [vmem:[#allocation148_spill] sm:$0xff] %v10539_v13  ;;  %v10555_v27 = vmin.f32 %v17305_v30, %v17323_v52  ;;  %v10575_v30 = vmin.f32 %v10241_v17, %v10277_v19  ;;  %v10595_v17 = vmin.f32 %v10257_v9, %v10293_v12 }
 0x1c2   :  { %17320 = vst [vmem:[#allocation149_spill] sm:$0xff] %v10543_v45  ;;  %17321 = vst [vmem:[#allocation108_spill] sm:$0xff] %v10547_v31  ;;  %v17328_v31 = vld [vmem:[#allocation81_spill] sm:$0xff]  ;;  %v10599_v8 = vmin.f32 %v10261_v22, %v10297_v6  ;;  %v10615_v9 = vmin.f32 %v10273_v32, %v10309_v14  ;;  %v17353_v14 = vld [vmem:[#allocation115_spill] sm:$0xff] }
 0x1c3   :  { %17322 = vst [vmem:[#allocation153_spill] sm:$0xff] %v10551_v2  ;;  %17324 = vst [vmem:[#allocation154_spill] sm:$0xff] %v10555_v27  ;;  %v10571_v37 = vmin.f32 %v17313_v51, %v17328_v31  ;;  %v10591_v51 = vmin.f32 %v10253_v63, %v10289_v35  ;;  %v10611_v63 = vmin.f32 %v10269_v24, %v10305_v3  ;;  %v17348_v3 = vld [vmem:[#allocation109_spill] sm:$0xff] }
 0x1c4   :  { %17325 = vst [vmem:[#allocation83_spill] sm:$0xff] %v10559_v10  ;;  %17326 = vst [vmem:[#allocation160_spill] sm:$0xff] %v10563_v47  ;;  %v17333_v47 = vld [vmem:[#allocation34_spill] sm:$0xff]  ;;  %v10631_v24 = vmin.f32 %v10285_v4, %v10321_v61  ;;  %v2251_v61 = vrot.slane %v10347_v21, 1 }
 0x1c5   :  { %17327 = vst [vmem:[#allocation63_spill] sm:$0xff] %v10567_v18  ;;  %17329 = vst [vmem:[#allocation186_spill] sm:$0xff] %v10571_v37  ;;  %v10587_v15 = vmin.f32 %v17318_v20, %v17333_v47  ;;  %v10607_v20 = vmin.f32 %v10265_v59, %v10301_v34  ;;  %v10627_v59 = vmin.f32 %v10281_v49, %v10317_v40  ;;  %v17351_v40 = vld [vmem:[#allocation163_spill] sm:$0xff]  ;;  %v2266_v34 = vrot.slane %v17353_v14, 1 }
 0x1c6   :  { %17330 = vst [vmem:[#allocation187_spill] sm:$0xff] %v10575_v30  ;;  %17331 = vst [vmem:[#allocation189_spill] sm:$0xff] %v10579_v42  ;;  %v17338_v42 = vld [vmem:[#allocation140_spill] sm:$0xff]  ;;  %v10635_v32 = vmin.f32 %v17333_v47, %v17348_v3  ;;  %v10647_v49 = vmin.f32 %v10297_v6, %v10339_v48  ;;  %v2250_v47 = vrot.slane %v10343_v28, 1  ;;  %v2262_v6 = vrot.slane %v10363_v39, 1 }
 0x1c7   :  { %17332 = vst [vmem:[#allocation61_spill] sm:$0xff] %v10583_v23  ;;  %17334 = vst [vmem:[#allocation20_spill] sm:$0xff] %v10587_v15  ;;  %v10603_v53 = vmin.f32 %v17323_v52, %v17338_v42  ;;  %v10623_v52 = vmin.f32 %v10277_v19, %v10313_v55  ;;  %v10643_v19 = vmin.f32 %v10293_v12, %v10333_v33  ;;  %v17352_v55 = vld [vmem:[#allocation114_spill] sm:$0xff]  ;;  %v2261_v33 = vrot.slane %v10359_v44, 1 }
 0x1c8   :  { %17335 = vst [vmem:[#allocation33_spill] sm:$0xff] %v10591_v51  ;;  %17336 = vst [vmem:[#allocation26_spill] sm:$0xff] %v10595_v17  ;;  %v17343_v17 = vld [vmem:[#allocation48_spill] sm:$0xff]  ;;  %v10651_v4 = vmin.f32 %v17338_v42, %v17351_v40  ;;  %v2257_v12 = vrot.slane %v17352_v55, 1  ;;  %v2264_v48 = vrot.slane %v10367_v11, 1  ;;  %v10662_v42 = vsel %vm2249_vm2, %v2250_v47, %v2251_v61  ;;  %v17354_v55 = vld [vmem:[#allocation22_spill] sm:$0xff] }
 0x1c9   :  { %17337 = vst [vmem:[#allocation69_spill] sm:$0xff] %v10599_v8  ;;  %17339 = vst [vmem:[#allocation47_spill] sm:$0xff] %v10603_v53  ;;  %v10619_v22 = vmin.f32 %v17328_v31, %v17343_v17  ;;  %v10639_v31 = vmin.f32 %v10289_v35, %v10327_v54  ;;  %v2253_v35 = vrot.slane %v10351_v46, 1  ;;  %v2255_v54 = vrot.slane %v10355_v0, 1 }
 0x1ca   :  { %17340 = vst [vmem:[#allocation28_spill] sm:$0xff] %v10607_v20  ;;  %17341 = vst [vmem:[#allocation44_spill] sm:$0xff] %v10611_v63  ;;  %v17355_v44 = vrot.slane %v17354_v55, 1  ;;  %v10680_v11 = vsel %vm2249_vm2, %v2261_v33, %v2262_v6  ;;  %v10683_v47 = vsel %vm2249_vm2, %v2262_v6, %v2264_v48  ;;  %v2272_v14 = vrot.slane %v10377_v38, 1 }
 0x1cb   :  { %17342 = vst [vmem:[#allocation16_spill] sm:$0xff] %v10615_v9  ;;  %17344 = vst [vmem:[#allocation56_spill] sm:$0xff] %v10619_v22  ;;  %v10665_v40 = vsel %vm2249_vm2, %v2251_v61, %v2253_v35  ;;  %v10668_v3 = vsel %vm2249_vm2, %v2253_v35, %v2255_v54  ;;  %v10672_v17 = vsel %vm2249_vm2, %v2255_v54, %v2257_v12  ;;  %v17359_v35 = vld [vmem:[#allocation64_spill] sm:$0xff]  ;;  %v2273_v54 = vrot.slane %v10383_v43, 1 }
 0x1cc   :  { %17345 = vst [vmem:[#allocation31_spill] sm:$0xff] %v10623_v52  ;;  %17346 = vst [vmem:[#allocation206_spill] sm:$0xff] %v10627_v59  ;;  %v10677_v39 = vsel %vm2249_vm2, %v2257_v12, %v17355_v44  ;;  %v10686_v61 = vsel %vm2249_vm2, %v2264_v48, %v2266_v34  ;;  %v2268_v0 = vrot.slane %v17359_v35, 1  ;;  %v2275_v55 = vrot.slane %v10389_v56, 1  ;;  %v17360_v12 = vld [vmem:[#allocation126_spill] sm:$0xff] }
 0x1cd   :  { %17347 = vst [vmem:[#allocation226_spill] sm:$0xff] %v10631_v24  ;;  %17349 = vst [vmem:[#allocation111_spill] sm:$0xff] %v10635_v32  ;;  %v2277_v44 = vrot.slane %v10395_v25, 1  ;;  %v2283_v33 = vrot.slane %v10399_v16, 1  ;;  %v10704_v38 = vsel %vm2249_vm2, %v2272_v14, %v2273_v54  ;;  %v2284_v43 = vrot.slane %v10403_v58, 1 }
 0x1ce   :  { %17350 = vst [vmem:[#allocation85_spill] sm:$0xff] %v10643_v19  ;;  %17356 = vst [vmem:[#allocation17_spill] sm:$0xff] %v10677_v39  ;;  %v2279_v39 = vrot.slane %v17360_v12, 1  ;;  %v10696_v6 = vsel %vm2249_vm2, %v2266_v34, %v2268_v0  ;;  %v10708_v56 = vsel %vm2249_vm2, %v2273_v54, %v2275_v55  ;;  %v17366_v34 = vld [vmem:[#allocation127_spill] sm:$0xff]  ;;  %v2286_v14 = vrot.slane %v10407_v29, 1  ;;  %v17369_v54 = vld [vmem:[#allocation49_spill] sm:$0xff] }
 0x1cf   :  { %17357 = vst [vmem:[#allocation32_spill] sm:$0xff] %v10683_v47  ;;  %17358 = vst [vmem:[#allocation97_spill] sm:$0xff] %v10686_v61  ;;  %v17361_v47 = vld [vmem:[#allocation120_spill] sm:$0xff]  ;;  %v10711_v12 = vsel %vm2249_vm2, %v2275_v55, %v2277_v44  ;;  %v17367_v25 = vrot.slane %v17366_v34, 1  ;;  %v2290_v58 = vrot.slane %v17369_v54, 1  ;;  %v2294_v55 = vrot.slane %v10415_v5, 1 }
 0x1d0   :  { %v17362_v48 = vrot.slane %v17361_v47, 1  ;;  %17363 = vst [vmem:[#allocation210_spill] sm:$0xff] %v10708_v56  ;;  %17364 = vst [vmem:[#allocation216_spill] sm:$0xff] %v10711_v12  ;;  %v10714_v16 = vsel %vm2249_vm2, %v2277_v44, %v2279_v39  ;;  %v2295_v12 = vrot.slane %v10419_v36, 1  ;;  %v17370_v44 = vld [vmem:[#allocation68_spill] sm:$0xff]  ;;  %v17371_v56 = vld [vmem:[#allocation70_spill] sm:$0xff] }
 0x1d1   :  { %17365 = vst [vmem:[#allocation220_spill] sm:$0xff] %v10714_v16  ;;  %v10719_v47 = vsel %vm2249_vm2, %v2279_v39, %v17367_v25  ;;  %v2297_v16 = vrot.slane %v17370_v44, 1  ;;  %v2299_v34 = vrot.slane %v17371_v56, 1  ;;  %v10732_v39 = vsel %vm2249_vm2, %v2284_v43, %v2286_v14  ;;  %v17381_v56 = vld [vmem:[#allocation18_spill] sm:$0xff]  ;;  %v17382_v5 = vld [vmem:[#allocation40_spill] sm:$0xff] }
 0x1d2   :  { %v10701_v61 = vsel %vm2249_vm2, %v2268_v0, %v17362_v48  ;;  %v10722_v0 = vsel %vm2249_vm2, %v2283_v33, %v2284_v43  ;;  %v2288_v48 = vrot.slane %v10411_v7, 1  ;;  %17372 = vst [vmem:[#allocation92_spill] sm:$0xff] %v10732_v39  ;;  %v17375_v7 = vld [vmem:[#allocation29_spill] sm:$0xff]  ;;  %v10746_v36 = vsel %vm2249_vm2, %v2294_v55, %v2295_v12  ;;  %v17384_v39 = vld [vmem:[#allocation123_spill] sm:$0xff]  ;;  %v17387_v55 = vld [vmem:[#allocation110_spill] sm:$0xff] }
 0x1d3   :  { %17368 = vst [vmem:[#allocation142_spill] sm:$0xff] %v10722_v0  ;;  %v17376_v29 = vrot.slane %v17375_v7, 1  ;;  %17378 = vst [vmem:[#allocation227_spill] sm:$0xff] %v10746_v36  ;;  %v10749_v44 = vsel %vm2249_vm2, %v2295_v12, %v2297_v16  ;;  %v10752_v43 = vsel %vm2249_vm2, %v2297_v16, %v2299_v34  ;;  %v2308_v7 = vrot.slane %v17384_v39, 1  ;;  %v17385_v0 = vld [vmem:[#allocation41_spill] sm:$0xff]  ;;  %v17390_v16 = vld [vmem:[#allocation86_spill] sm:$0xff] }
 0x1d4   :  { %v10735_v25 = vsel %vm2249_vm2, %v2286_v14, %v2288_v48  ;;  %v10738_v33 = vsel %vm2249_vm2, %v2288_v48, %v2290_v58  ;;  %17379 = vst [vmem:[#allocation21_spill] sm:$0xff] %v10749_v44  ;;  %17380 = vst [vmem:[#allocation24_spill] sm:$0xff] %v10752_v43  ;;  %v2301_v14 = vrot.slane %v17381_v56, 1  ;;  %v17383_v48 = vld [vmem:[#allocation71_spill] sm:$0xff]  ;;  %v17388_v36 = vrot.slane %v17387_v55, 1  ;;  %v17391_v44 = vld [vmem:[#allocation72_spill] sm:$0xff] }
 0x1d5   :  { %17373 = vst [vmem:[#allocation23_spill] sm:$0xff] %v10735_v25  ;;  %17374 = vst [vmem:[#allocation36_spill] sm:$0xff] %v10738_v33  ;;  %v10743_v54 = vsel %vm2249_vm2, %v2290_v58, %v17376_v29  ;;  %v2305_v25 = vrot.slane %v17382_v5, 1  ;;  %v2306_v33 = vrot.slane %v17383_v48, 1  ;;  %v2310_v58 = vrot.slane %v17385_v0, 1 }
 0x1d6   :  { %17377 = vst [vmem:[#allocation106_spill] sm:$0xff] %v10743_v54  ;;  %v10760_v29 = vsel %vm2249_vm2, %v2299_v34, %v2301_v14  ;;  %v10765_v12 = vsel %vm2249_vm2, %v2301_v14, %v17388_v36  ;;  %v2312_v43 = vrot.slane %v17390_v16, 1  ;;  %v2316_v56 = vrot.slane %v17391_v44, 1  ;;  %v17395_v34 = vld [vmem:[#allocation124_spill] sm:$0xff]  ;;  %v17397_v36 = vld [vmem:[#allocation35_spill] sm:$0xff]  ;;  %v17400_v44 = vld [vmem:[#allocation42_spill] sm:$0xff] }
 0x1d7   :  { %17386 = vst [vmem:[#allocation118_spill] sm:$0xff] %v10760_v29  ;;  %17389 = vst [vmem:[#allocation37_spill] sm:$0xff] %v10765_v12  ;;  %v10770_v5 = vsel %vm2249_vm2, %v2305_v25, %v2306_v33  ;;  %v10773_v48 = vsel %vm2249_vm2, %v2306_v33, %v2308_v7  ;;  %v10776_v0 = vsel %vm2249_vm2, %v2308_v7, %v2310_v58  ;;  %v2317_v39 = vrot.slane %v17395_v34, 1  ;;  %v17401_v25 = vld [vmem:[#allocation73_spill] sm:$0xff]  ;;  %v17405_v34 = vld [vmem:[#allocation50_spill] sm:$0xff] }
 0x1d8   :  { %17392 = vst [vmem:[#allocation96_spill] sm:$0xff] %v10770_v5  ;;  %17393 = vst [vmem:[#allocation25_spill] sm:$0xff] %v10773_v48  ;;  %v10780_v55 = vsel %vm2249_vm2, %v2310_v58, %v2312_v43  ;;  %v17398_v14 = vrot.slane %v17397_v36, 1  ;;  %v2319_v12 = vrot.slane %v17400_v44, 1  ;;  %v2321_v5 = vrot.slane %v17401_v25, 1  ;;  %v17403_v48 = vld [vmem:[#allocation139_spill] sm:$0xff] }
 0x1d9   :  { %17394 = vst [vmem:[#allocation94_spill] sm:$0xff] %v10776_v0  ;;  %17396 = vst [vmem:[#allocation125_spill] sm:$0xff] %v10780_v55  ;;  %v10790_v33 = vsel %vm2249_vm2, %v2316_v56, %v2317_v39  ;;  %v2323_v7 = vrot.slane %v17403_v48, 1  ;;  %v17404_v0 = vld [vmem:[#allocation74_spill] sm:$0xff]  ;;  %v2328_v54 = vrot.slane %v17405_v34, 1  ;;  %v17411_v56 = vld [vmem:[#allocation141_spill] sm:$0xff] }
 0x1da   :  { %v10785_v16 = vsel %vm2249_vm2, %v2312_v43, %v17398_v14  ;;  %17402 = vst [vmem:[#allocation81_spill] sm:$0xff] %v10790_v33  ;;  %v2327_v29 = vrot.slane %v17404_v0, 1  ;;  %v10796_v58 = vsel %vm2249_vm2, %v2317_v39, %v2319_v12  ;;  %v10799_v36 = vsel %vm2249_vm2, %v2319_v12, %v2321_v5  ;;  %v17408_v43 = vld [vmem:[#allocation76_spill] sm:$0xff]  ;;  %v17409_v44 = vld [vmem:[#allocation130_spill] sm:$0xff] }
 0x1db   :  { %17399 = vst [vmem:[#allocation75_spill] sm:$0xff] %v10785_v16  ;;  %17406 = vst [vmem:[#allocation34_spill] sm:$0xff] %v10796_v58  ;;  %v2330_v14 = vrot.slane %v17408_v43, 1  ;;  %v2332_v16 = vrot.slane %v17409_v44, 1  ;;  %v10804_v25 = vsel %vm2249_vm2, %v2321_v5, %v2323_v7  ;;  %v17412_v33 = vrot.slane %v17411_v56, 1  ;;  %v17415_v39 = vld [vmem:[#allocation102_spill] sm:$0xff] }
 0x1dc   :  { %17407 = vst [vmem:[#allocation140_spill] sm:$0xff] %v10799_v36  ;;  %17410 = vst [vmem:[#allocation22_spill] sm:$0xff] %v10804_v25  ;;  %v10812_v34 = vsel %vm2249_vm2, %v2327_v29, %v2328_v54  ;;  %v2334_v0 = vrot.slane %v17415_v39, 1  ;;  %v17418_v44 = vld [vmem:[#allocation52_spill] sm:$0xff]  ;;  %v17419_v5 = vld [vmem:[#allocation77_spill] sm:$0xff] }
 0x1dd   :  { %v10809_v48 = vsel %vm2249_vm2, %v2323_v7, %v17412_v33  ;;  %17414 = vst [vmem:[#allocation120_spill] sm:$0xff] %v10812_v34  ;;  %v10816_v12 = vsel %vm2249_vm2, %v2328_v54, %v2330_v14  ;;  %v10819_v43 = vsel %vm2249_vm2, %v2330_v14, %v2332_v16  ;;  %v2338_v36 = vrot.slane %v17418_v44, 1  ;;  %v17420_v33 = vld [vmem:[#allocation151_spill] sm:$0xff]  ;;  %v17424_v14 = vld [vmem:[#allocation156_spill] sm:$0xff]  ;;  %v17425_v44 = vld [vmem:[#allocation78_spill] sm:$0xff] }
 0x1de   :  { %17413 = vst [vmem:[#allocation64_spill] sm:$0xff] %v10809_v48  ;;  %17416 = vst [vmem:[#allocation127_spill] sm:$0xff] %v10816_v12  ;;  %v2339_v25 = vrot.slane %v17419_v5, 1  ;;  %v10824_v56 = vsel %vm2249_vm2, %v2332_v16, %v2334_v0  ;;  %v17421_v7 = vrot.slane %v17420_v33, 1  ;;  %v17422_v34 = vld [vmem:[#allocation131_spill] sm:$0xff]  ;;  %v17423_v48 = vld [vmem:[#allocation53_spill] sm:$0xff] }
 0x1df   :  { %17417 = vst [vmem:[#allocation29_spill] sm:$0xff] %v10819_v43  ;;  %v2341_v39 = vrot.slane %v17422_v34, 1  ;;  %v2343_v54 = vrot.slane %v17423_v48, 1  ;;  %v2345_v43 = vrot.slane %v17424_v14, 1  ;;  %v2349_v58 = vrot.slane %v17425_v44, 1  ;;  %v17426_v5 = vld [vmem:[#allocation107_spill] sm:$0xff] }
 0x1e0   :  { %v10829_v29 = vsel %vm2249_vm2, %v2334_v0, %v17421_v7  ;;  %v10834_v12 = vsel %vm2249_vm2, %v2338_v36, %v2339_v25  ;;  %v2350_v55 = vrot.slane %v17426_v5, 1  ;;  %v2352_v0 = vrot.slane %v10503_v50, 1  ;;  %v17428_v36 = vld [vmem:[#allocation157_spill] sm:$0xff] }
 0x1e1   :  { %v10840_v16 = vsel %vm2249_vm2, %v2339_v25, %v2341_v39  ;;  %v10843_v33 = vsel %vm2249_vm2, %v2341_v39, %v2343_v54  ;;  %v2354_v7 = vrot.slane %v10507_v1, 1  ;;  %v10848_v48 = vsel %vm2249_vm2, %v2343_v54, %v2345_v43  ;;  %v17431_v25 = vld [vmem:[#allocation162_spill] sm:$0xff]  ;;  %v17434_v54 = vld [vmem:[#allocation89_spill] sm:$0xff] }
 0x1e2   :  { %17427 = vst [vmem:[#allocation110_spill] sm:$0xff] %v10848_v48  ;;  %v17429_v34 = vrot.slane %v17428_v36, 1  ;;  %v10856_v5 = vsel %vm2249_vm2, %v2349_v58, %v2350_v55  ;;  %v2356_v44 = vrot.slane %v17431_v25, 1  ;;  %v10860_v39 = vsel %vm2249_vm2, %v2350_v55, %v2352_v0 }
 0x1e3   :  { %17430 = vst [vmem:[#allocation35_spill] sm:$0xff] %v10856_v5  ;;  %17432 = vst [vmem:[#allocation141_spill] sm:$0xff] %v10860_v39  ;;  %v10863_v50 = vsel %vm2249_vm2, %v2352_v0, %v2354_v7  ;;  %v2360_v1 = vrot.slane %v10511_v26, 1  ;;  %v2361_v48 = vrot.slane %v17434_v54, 1  ;;  %v2363_v25 = vrot.slane %v10519_v62, 1  ;;  %v17437_v0 = vld [vmem:[#allocation171_spill] sm:$0xff] }
 0x1e4   :  { %v10853_v14 = vsel %vm2249_vm2, %v2345_v43, %v17429_v34  ;;  %17433 = vst [vmem:[#allocation151_spill] sm:$0xff] %v10863_v50  ;;  %v10868_v36 = vsel %vm2249_vm2, %v2354_v7, %v2356_v44  ;;  %v17435_v34 = vld [vmem:[#allocation165_spill] sm:$0xff]  ;;  %v2365_v55 = vrot.slane %v10523_v41, 1  ;;  %v2367_v50 = vrot.slane %v17437_v0, 1  ;;  %v17438_v54 = vld [vmem:[#allocation138_spill] sm:$0xff] }
 0x1e5   :  { %v17436_v43 = vrot.slane %v17435_v34, 1  ;;  %v10878_v39 = vsel %vm2249_vm2, %v2360_v1, %v2361_v48  ;;  %v2371_v26 = vrot.slane %v10527_v60, 1  ;;  %v2372_v5 = vrot.slane %v17438_v54, 1  ;;  %v17440_v1 = vld [vmem:[#allocation173_spill] sm:$0xff] }
 0x1e6   :  { %v10884_v7 = vsel %vm2249_vm2, %v2361_v48, %v2363_v25  ;;  %v10887_v34 = vsel %vm2249_vm2, %v2363_v25, %v2365_v55  ;;  %v10892_v41 = vsel %vm2249_vm2, %v2365_v55, %v2367_v50  ;;  %v17441_v62 = vrot.slane %v17440_v1, 1  ;;  %v17443_v48 = vld [vmem:[#allocation129_spill] sm:$0xff]  ;;  %v17446_v55 = vld [vmem:[#allocation108_spill] sm:$0xff] }
 0x1e7   :  { %v10873_v58 = vsel %vm2249_vm2, %v2356_v44, %v17436_v43  ;;  %v2374_v44 = vrot.slane %v10535_v57, 1  ;;  %v2376_v43 = vrot.slane %v10539_v13, 1  ;;  %17439 = vst [vmem:[#allocation157_spill] sm:$0xff] %v10892_v41  ;;  %v10900_v54 = vsel %vm2249_vm2, %v2371_v26, %v2372_v5 }
 0x1e8   :  { %v10897_v0 = vsel %vm2249_vm2, %v2367_v50, %v17441_v62  ;;  %17442 = vst [vmem:[#allocation165_spill] sm:$0xff] %v10900_v54  ;;  %v2378_v60 = vrot.slane %v17443_v48, 1  ;;  %v2382_v13 = vrot.slane %v10543_v45, 1  ;;  %v2383_v41 = vrot.slane %v17446_v55, 1  ;;  %v17447_v50 = vld [vmem:[#allocation179_spill] sm:$0xff]  ;;  %v17450_v55 = vld [vmem:[#allocation160_spill] sm:$0xff] }
 0x1e9   :  { %v10904_v25 = vsel %vm2249_vm2, %v2372_v5, %v2374_v44  ;;  %v10907_v57 = vsel %vm2249_vm2, %v2374_v44, %v2376_v43  ;;  %v17448_v62 = vrot.slane %v17447_v50, 1  ;;  %v2385_v48 = vrot.slane %v10551_v2, 1  ;;  %v17449_v44 = vld [vmem:[#allocation183_spill] sm:$0xff] }
 0x1ea   :  { %17444 = vst [vmem:[#allocation173_spill] sm:$0xff] %v10904_v25  ;;  %17445 = vst [vmem:[#allocation246_spill] sm:$0xff] %v10907_v57  ;;  %v10912_v1 = vsel %vm2249_vm2, %v2376_v43, %v2378_v60  ;;  %v2387_v5 = vrot.slane %v10555_v27, 1  ;;  %v10922_v25 = vsel %vm2249_vm2, %v2382_v13, %v2383_v41  ;;  %v2389_v57 = vrot.slane %v17449_v44, 1  ;;  %v17452_v13 = vld [vmem:[#allocation184_spill] sm:$0xff] }
 0x1eb   :  { %v10917_v26 = vsel %vm2249_vm2, %v2378_v60, %v17448_v62  ;;  %v2393_v45 = vrot.slane %v10559_v10, 1  ;;  %v2394_v54 = vrot.slane %v17450_v55, 1  ;;  %v10928_v43 = vsel %vm2249_vm2, %v2383_v41, %v2385_v48  ;;  %v17455_v41 = vld [vmem:[#allocation193_spill] sm:$0xff] }
 0x1ec   :  { %v10931_v50 = vsel %vm2249_vm2, %v2385_v48, %v2387_v5  ;;  %v2396_v60 = vrot.slane %v10567_v18, 1  ;;  %v2398_v62 = vrot.slane %v10571_v37, 1  ;;  %v10936_v27 = vsel %vm2249_vm2, %v2387_v5, %v2389_v57  ;;  %v17458_v5 = vld [vmem:[#allocation189_spill] sm:$0xff] }
 0x1ed   :  { %17451 = vst [vmem:[#allocation179_spill] sm:$0xff] %v10936_v27  ;;  %v17453_v2 = vrot.slane %v17452_v13, 1  ;;  %v10944_v55 = vsel %vm2249_vm2, %v2393_v45, %v2394_v54  ;;  %v2400_v10 = vrot.slane %v17455_v41, 1  ;;  %v2404_v37 = vrot.slane %v10575_v30, 1 }
 0x1ee   :  { %17454 = vst [vmem:[#allocation184_spill] sm:$0xff] %v10944_v55  ;;  %v10948_v48 = vsel %vm2249_vm2, %v2394_v54, %v2396_v60  ;;  %v10951_v18 = vsel %vm2249_vm2, %v2396_v60, %v2398_v62  ;;  %v2405_v27 = vrot.slane %v17458_v5, 1  ;;  %v2407_v41 = vrot.slane %v10583_v23, 1  ;;  %v17461_v60 = vld [vmem:[#allocation202_spill] sm:$0xff] }
 0x1ef   :  { %v10941_v44 = vsel %vm2249_vm2, %v2389_v57, %v17453_v2  ;;  %17456 = vst [vmem:[#allocation247_spill] sm:$0xff] %v10948_v48  ;;  %17457 = vst [vmem:[#allocation248_spill] sm:$0xff] %v10951_v18  ;;  %v10956_v13 = vsel %vm2249_vm2, %v2398_v62, %v2400_v10  ;;  %v17459_v57 = vld [vmem:[#allocation196_spill] sm:$0xff]  ;;  %v2409_v54 = vrot.slane %v10587_v15, 1  ;;  %v2411_v18 = vrot.slane %v17461_v60, 1  ;;  %v17462_v5 = vld [vmem:[#allocation26_spill] sm:$0xff] }
 0x1f0   :  { %v17460_v2 = vrot.slane %v17459_v57, 1  ;;  %v10966_v48 = vsel %vm2249_vm2, %v2404_v37, %v2405_v27  ;;  %v2415_v30 = vrot.slane %v10591_v51, 1  ;;  %v2416_v55 = vrot.slane %v17462_v5, 1  ;;  %v17463_v37 = vld [vmem:[#allocation204_spill] sm:$0xff] }
 0x1f1   :  { %v10972_v62 = vsel %vm2249_vm2, %v2405_v27, %v2407_v41  ;;  %v10975_v57 = vsel %vm2249_vm2, %v2407_v41, %v2409_v54  ;;  %v10980_v15 = vsel %vm2249_vm2, %v2409_v54, %v2411_v18  ;;  %v17464_v23 = vrot.slane %v17463_v37, 1  ;;  %v17465_v27 = vld [vmem:[#allocation145_spill] sm:$0xff] }
 0x1f2   :  { %v10961_v45 = vsel %vm2249_vm2, %v2400_v10, %v17460_v2  ;;  %v2418_v10 = vrot.slane %v10599_v8, 1  ;;  %v2420_v2 = vrot.slane %v10603_v53, 1  ;;  %v10988_v5 = vsel %vm2249_vm2, %v2415_v30, %v2416_v55 }
 0x1f3   :  { %v10985_v60 = vsel %vm2249_vm2, %v2411_v18, %v17464_v23  ;;  %v2422_v51 = vrot.slane %v17465_v27, 1  ;;  %v2426_v53 = vrot.slane %v10607_v20, 1  ;;  %v2427_v54 = vrot.slane %v10611_v63, 1  ;;  %v17468_v18 = vld [vmem:[#allocation215_spill] sm:$0xff] }
 0x1f4   :  { %v10992_v41 = vsel %vm2249_vm2, %v2416_v55, %v2418_v10  ;;  %v10995_v8 = vsel %vm2249_vm2, %v2418_v10, %v2420_v2  ;;  %v17469_v23 = vrot.slane %v17468_v18, 1  ;;  %v2429_v27 = vrot.slane %v10615_v9, 1  ;;  %v17470_v10 = vld [vmem:[#allocation224_spill] sm:$0xff] }
 0x1f5   :  { %17466 = vst [vmem:[#allocation196_spill] sm:$0xff] %v10992_v41  ;;  %17467 = vst [vmem:[#allocation204_spill] sm:$0xff] %v10995_v8  ;;  %v11000_v37 = vsel %vm2249_vm2, %v2420_v2, %v2422_v51  ;;  %v2431_v55 = vrot.slane %v10619_v22, 1  ;;  %v11010_v41 = vsel %vm2249_vm2, %v2426_v53, %v2427_v54  ;;  %v2433_v8 = vrot.slane %v17470_v10, 1  ;;  %v17471_v53 = vld [vmem:[#allocation225_spill] sm:$0xff] }
 0x1f6   :  { %v11005_v30 = vsel %vm2249_vm2, %v2422_v51, %v17469_v23  ;;  %v2437_v20 = vrot.slane %v10623_v52, 1  ;;  %v2438_v63 = vrot.slane %v10627_v59, 1  ;;  %v11016_v2 = vsel %vm2249_vm2, %v2427_v54, %v2429_v27  ;;  %v17473_v54 = vld [vmem:[#allocation159_spill] sm:$0xff] }
 0x1f7   :  { %v11019_v18 = vsel %vm2249_vm2, %v2429_v27, %v2431_v55  ;;  %v2440_v51 = vrot.slane %v10631_v24, 1  ;;  %v2442_v23 = vrot.slane %v10635_v32, 1  ;;  %v11024_v22 = vsel %vm2249_vm2, %v2431_v55, %v2433_v8 }
 0x1f8   :  { %v17472_v9 = vrot.slane %v17471_v53, 1  ;;  %v11032_v59 = vsel %vm2249_vm2, %v2437_v20, %v2438_v63  ;;  %v2444_v52 = vrot.slane %v17473_v54, 1  ;;  %v2448_v32 = vrot.slane %v10639_v31, 1 }
 0x1f9   :  { %v11036_v27 = vsel %vm2249_vm2, %v2438_v63, %v2440_v51  ;;  %v11039_v24 = vsel %vm2249_vm2, %v2440_v51, %v2442_v23  ;;  %v2449_v55 = vrot.slane %v10643_v19, 1  ;;  %v2451_v54 = vrot.slane %v10647_v49, 1  ;;  %v17478_v51 = vld [vmem:[#allocation134_spill] sm:$0xff] }
 0x1fa   :  { %v11029_v10 = vsel %vm2249_vm2, %v2433_v8, %v17472_v9  ;;  %17474 = vst [vmem:[#allocation215_spill] sm:$0xff] %v11036_v27  ;;  %17475 = vst [vmem:[#allocation225_spill] sm:$0xff] %v11039_v24  ;;  %v11044_v53 = vsel %vm2249_vm2, %v2442_v23, %v2444_v52  ;;  %v17476_v8 = vld [vmem:[#allocation229_spill] sm:$0xff]  ;;  %v2453_v63 = vrot.slane %v10651_v4, 1  ;;  %v2455_v24 = vrot.slane %v17478_v51, 1 }
 0x1fb   :  { %v17477_v9 = vrot.slane %v17476_v8, 1  ;;  %v11054_v27 = vsel %vm2249_vm2, %v2448_v32, %v2449_v55  ;;  %v11059_v19 = vmin.f32 %v10343_v28, %v10662_v42  ;;  %v11063_v23 = vmin.f32 %v10347_v21, %v10665_v40  ;;  %v17484_v42 = vld [vmem:[#allocation232_spill] sm:$0xff] }
 0x1fc   :  { %v11069_v8 = vsel %vm2249_vm2, %v2451_v54, %v2453_v63  ;;  %v11073_v32 = vmin.f32 %v10351_v46, %v10668_v3  ;;  %v11080_v28 = vsel %vm2249_vm2, %v2453_v63, %v2455_v24  ;;  %v17485_v40 = vrot.slane %v17484_v42, 1  ;;  %v17491_v46 = vld [vmem:[#allocation32_spill] sm:$0xff]  ;;  %v17495_v63 = vld [vmem:[#allocation59_spill] sm:$0xff] }
 0x1fd   :  { %v11049_v20 = vsel %vm2249_vm2, %v2444_v52, %v17477_v9  ;;  %17479 = vst [vmem:[#allocation229_spill] sm:$0xff] %v11059_v19  ;;  %17480 = vst [vmem:[#allocation249_spill] sm:$0xff] %v11063_v23  ;;  %v11066_v52 = vsel %vm2249_vm2, %v2449_v55, %v2451_v54  ;;  %v17482_v9 = vld [vmem:[#allocation54_spill] sm:$0xff]  ;;  %v17486_v55 = vld [vmem:[#allocation17_spill] sm:$0xff] }
 0x1fe   :  { %17481 = vst [vmem:[#allocation250_spill] sm:$0xff] %v11073_v32  ;;  %v11077_v51 = vmin.f32 %v17482_v9, %v10672_v17  ;;  %v11085_v21 = vsel %vm2249_vm2, %v2455_v24, %v17485_v40  ;;  %v17487_v23 = vld [vmem:[#allocation114_spill] sm:$0xff]  ;;  %v17492_v32 = vld [vmem:[#allocation105_spill] sm:$0xff]  ;;  %v17497_v42 = vld [vmem:[#allocation115_spill] sm:$0xff] }
 0x1ff   :  { %v11089_v54 = vmin.f32 %v17487_v23, %v17486_v55  ;;  %v17489_v19 = vld [vmem:[#allocation58_spill] sm:$0xff]  ;;  %v11097_v17 = vmin.f32 %v17492_v32, %v17491_v46  ;;  %v17494_v9 = vld [vmem:[#allocation97_spill] sm:$0xff]  ;;  %v11105_v24 = vmin.f32 %v17497_v42, %v10696_v6  ;;  %v11109_v23 = vmin.f32 %v17359_v35, %v10701_v61  ;;  %v17500_v40 = vld [vmem:[#allocation19_spill] sm:$0xff] }
 0x200   :  { %17483 = vst [vmem:[#allocation54_spill] sm:$0xff] %v11077_v51  ;;  %v11093_v3 = vmin.f32 %v17489_v19, %v10680_v11  ;;  %v11101_v51 = vmin.f32 %v17495_v63, %v17494_v9  ;;  %v11113_v11 = vmin.f32 %v17500_v40, %v10704_v38  ;;  %v17502_v19 = vld [vmem:[#allocation210_spill] sm:$0xff]  ;;  %v17503_v55 = vld [vmem:[#allocation116_spill] sm:$0xff] }
 0x201   :  { %17488 = vst [vmem:[#allocation232_spill] sm:$0xff] %v11089_v54  ;;  %17493 = vst [vmem:[#allocation114_spill] sm:$0xff] %v11097_v17  ;;  %v11117_v32 = vmin.f32 %v17503_v55, %v17502_v19  ;;  %v17505_v46 = vld [vmem:[#allocation216_spill] sm:$0xff]  ;;  %v17506_v17 = vld [vmem:[#allocation39_spill] sm:$0xff] }
 0x202   :  { %17490 = vst [vmem:[#allocation17_spill] sm:$0xff] %v11093_v3  ;;  %17496 = vst [vmem:[#allocation58_spill] sm:$0xff] %v11101_v51  ;;  %v11121_v9 = vmin.f32 %v17506_v17, %v17505_v46  ;;  %v17508_v63 = vld [vmem:[#allocation220_spill] sm:$0xff]  ;;  %v17509_v51 = vld [vmem:[#allocation117_spill] sm:$0xff] }
 0x203   :  { %17498 = vst [vmem:[#allocation32_spill] sm:$0xff] %v11105_v24  ;;  %17499 = vst [vmem:[#allocation105_spill] sm:$0xff] %v11109_v23  ;;  %v11125_v6 = vmin.f32 %v17509_v51, %v17508_v63  ;;  %v17511_v42 = vld [vmem:[#allocation126_spill] sm:$0xff]  ;;  %v17516_v40 = vld [vmem:[#allocation92_spill] sm:$0xff] }
 0x204   :  { %17501 = vst [vmem:[#allocation97_spill] sm:$0xff] %v11113_v11  ;;  %17504 = vst [vmem:[#allocation59_spill] sm:$0xff] %v11117_v32  ;;  %v11129_v61 = vmin.f32 %v17511_v42, %v10719_v47  ;;  %v17513_v35 = vld [vmem:[#allocation142_spill] sm:$0xff]  ;;  %v17517_v11 = vld [vmem:[#allocation87_spill] sm:$0xff] }
 0x205   :  { %17507 = vst [vmem:[#allocation115_spill] sm:$0xff] %v11121_v9  ;;  %17510 = vst [vmem:[#allocation19_spill] sm:$0xff] %v11125_v6  ;;  %v17514_v23 = vld [vmem:[#allocation62_spill] sm:$0xff]  ;;  %v11137_v19 = vmin.f32 %v17517_v11, %v17516_v40  ;;  %v17519_v55 = vld [vmem:[#allocation23_spill] sm:$0xff] }
 0x206   :  { %17512 = vst [vmem:[#allocation210_spill] sm:$0xff] %v11129_v61  ;;  %v11133_v38 = vmin.f32 %v17514_v23, %v17513_v35  ;;  %v17520_v32 = vld [vmem:[#allocation66_spill] sm:$0xff]  ;;  %v17522_v46 = vld [vmem:[#allocation36_spill] sm:$0xff]  ;;  %v17526_v6 = vld [vmem:[#allocation49_spill] sm:$0xff] }
 0x207   :  { %17518 = vst [vmem:[#allocation216_spill] sm:$0xff] %v11137_v19  ;;  %v11141_v17 = vmin.f32 %v17520_v32, %v17519_v55  ;;  %v17523_v9 = vld [vmem:[#allocation90_spill] sm:$0xff]  ;;  %v17528_v42 = vld [vmem:[#allocation227_spill] sm:$0xff]  ;;  %v17531_v35 = vld [vmem:[#allocation21_spill] sm:$0xff] }
 0x208   :  { %17515 = vst [vmem:[#allocation116_spill] sm:$0xff] %v11133_v38  ;;  %v11145_v51 = vmin.f32 %v17523_v9, %v17522_v46  ;;  %v17525_v63 = vld [vmem:[#allocation106_spill] sm:$0xff]  ;;  %v17529_v61 = vld [vmem:[#allocation67_spill] sm:$0xff]  ;;  %v17532_v38 = vld [vmem:[#allocation93_spill] sm:$0xff] }
 0x209   :  { %17521 = vst [vmem:[#allocation39_spill] sm:$0xff] %v11141_v17  ;;  %v11149_v47 = vmin.f32 %v17526_v6, %v17525_v63  ;;  %v11153_v23 = vmin.f32 %v17529_v61, %v17528_v42  ;;  %v11157_v11 = vmin.f32 %v17532_v38, %v17531_v35  ;;  %v17534_v40 = vld [vmem:[#allocation24_spill] sm:$0xff]  ;;  %v17537_v55 = vld [vmem:[#allocation118_spill] sm:$0xff]  ;;  %v17540_v46 = vld [vmem:[#allocation37_spill] sm:$0xff] }
 0x20a   :  { %17524 = vst [vmem:[#allocation220_spill] sm:$0xff] %v11145_v51  ;;  %v17535_v19 = vld [vmem:[#allocation68_spill] sm:$0xff]  ;;  %v17538_v17 = vld [vmem:[#allocation70_spill] sm:$0xff]  ;;  %v17546_v42 = vld [vmem:[#allocation25_spill] sm:$0xff] }
 0x20b   :  { %17527 = vst [vmem:[#allocation117_spill] sm:$0xff] %v11149_v47  ;;  %17530 = vst [vmem:[#allocation126_spill] sm:$0xff] %v11153_v23  ;;  %v11161_v32 = vmin.f32 %v17535_v19, %v17534_v40  ;;  %v11165_v9 = vmin.f32 %v17538_v17, %v17537_v55  ;;  %v17541_v51 = vld [vmem:[#allocation18_spill] sm:$0xff]  ;;  %v17543_v63 = vld [vmem:[#allocation96_spill] sm:$0xff] }
 0x20c   :  { %17533 = vst [vmem:[#allocation142_spill] sm:$0xff] %v11157_v11  ;;  %v11169_v6 = vmin.f32 %v17541_v51, %v17540_v46  ;;  %v17544_v47 = vld [vmem:[#allocation40_spill] sm:$0xff]  ;;  %v17547_v23 = vld [vmem:[#allocation71_spill] sm:$0xff]  ;;  %v17549_v35 = vld [vmem:[#allocation94_spill] sm:$0xff] }
 0x20d   :  { %17536 = vst [vmem:[#allocation62_spill] sm:$0xff] %v11161_v32  ;;  %17539 = vst [vmem:[#allocation92_spill] sm:$0xff] %v11165_v9  ;;  %v11173_v61 = vmin.f32 %v17544_v47, %v17543_v63  ;;  %v11177_v38 = vmin.f32 %v17547_v23, %v17546_v42  ;;  %v17550_v11 = vld [vmem:[#allocation123_spill] sm:$0xff]  ;;  %v17552_v40 = vld [vmem:[#allocation125_spill] sm:$0xff] }
 0x20e   :  { %17542 = vst [vmem:[#allocation87_spill] sm:$0xff] %v11169_v6  ;;  %v11181_v19 = vmin.f32 %v17550_v11, %v17549_v35  ;;  %v17553_v32 = vld [vmem:[#allocation41_spill] sm:$0xff]  ;;  %v17555_v55 = vld [vmem:[#allocation75_spill] sm:$0xff]  ;;  %v17556_v9 = vld [vmem:[#allocation86_spill] sm:$0xff] }
 0x20f   :  { %17545 = vst [vmem:[#allocation23_spill] sm:$0xff] %v11173_v61  ;;  %17548 = vst [vmem:[#allocation66_spill] sm:$0xff] %v11177_v38  ;;  %v11185_v17 = vmin.f32 %v17553_v32, %v17552_v40  ;;  %v11189_v51 = vmin.f32 %v17556_v9, %v17555_v55  ;;  %v17558_v46 = vld [vmem:[#allocation81_spill] sm:$0xff]  ;;  %v17559_v6 = vld [vmem:[#allocation72_spill] sm:$0xff] }
 0x210   :  { %17551 = vst [vmem:[#allocation36_spill] sm:$0xff] %v11181_v19  ;;  %v11193_v47 = vmin.f32 %v17559_v6, %v17558_v46  ;;  %v17561_v63 = vld [vmem:[#allocation34_spill] sm:$0xff]  ;;  %v17562_v61 = vld [vmem:[#allocation124_spill] sm:$0xff]  ;;  %v17568_v19 = vld [vmem:[#allocation73_spill] sm:$0xff] }
 0x211   :  { %17554 = vst [vmem:[#allocation90_spill] sm:$0xff] %v11185_v17  ;;  %17557 = vst [vmem:[#allocation106_spill] sm:$0xff] %v11189_v51  ;;  %v11197_v23 = vmin.f32 %v17562_v61, %v17561_v63  ;;  %v17564_v42 = vld [vmem:[#allocation140_spill] sm:$0xff]  ;;  %v17565_v38 = vld [vmem:[#allocation42_spill] sm:$0xff] }
 0x212   :  { %17560 = vst [vmem:[#allocation49_spill] sm:$0xff] %v11193_v47  ;;  %v11201_v11 = vmin.f32 %v17565_v38, %v17564_v42  ;;  %v17567_v35 = vld [vmem:[#allocation22_spill] sm:$0xff]  ;;  %v17570_v40 = vld [vmem:[#allocation64_spill] sm:$0xff]  ;;  %v17571_v17 = vld [vmem:[#allocation139_spill] sm:$0xff] }
 0x213   :  { %17563 = vst [vmem:[#allocation227_spill] sm:$0xff] %v11197_v23  ;;  %v11205_v32 = vmin.f32 %v17568_v19, %v17567_v35  ;;  %v11209_v9 = vmin.f32 %v17571_v17, %v17570_v40  ;;  %v17573_v55 = vld [vmem:[#allocation120_spill] sm:$0xff]  ;;  %v17574_v51 = vld [vmem:[#allocation74_spill] sm:$0xff]  ;;  %v17576_v46 = vld [vmem:[#allocation127_spill] sm:$0xff] }
 0x214   :  { %17566 = vst [vmem:[#allocation67_spill] sm:$0xff] %v11201_v11  ;;  %v11213_v6 = vmin.f32 %v17574_v51, %v17573_v55  ;;  %v17577_v47 = vld [vmem:[#allocation50_spill] sm:$0xff]  ;;  %v17579_v63 = vld [vmem:[#allocation29_spill] sm:$0xff]  ;;  %v17580_v23 = vld [vmem:[#allocation76_spill] sm:$0xff] }
 0x215   :  { %17569 = vst [vmem:[#allocation21_spill] sm:$0xff] %v11205_v32  ;;  %17572 = vst [vmem:[#allocation93_spill] sm:$0xff] %v11209_v9  ;;  %v11217_v61 = vmin.f32 %v17577_v47, %v17576_v46  ;;  %v11221_v38 = vmin.f32 %v17580_v23, %v17579_v63  ;;  %v17582_v42 = vld [vmem:[#allocation130_spill] sm:$0xff]  ;;  %v17586_v40 = vld [vmem:[#allocation52_spill] sm:$0xff] }
 0x216   :  { %17575 = vst [vmem:[#allocation24_spill] sm:$0xff] %v11213_v6  ;;  %v11225_v19 = vmin.f32 %v17582_v42, %v10824_v56  ;;  %v17584_v35 = vld [vmem:[#allocation102_spill] sm:$0xff]  ;;  %v11233_v51 = vmin.f32 %v17586_v40, %v10834_v12  ;;  %v17588_v55 = vld [vmem:[#allocation77_spill] sm:$0xff]  ;;  %v17590_v46 = vld [vmem:[#allocation131_spill] sm:$0xff] }
 0x217   :  { %17578 = vst [vmem:[#allocation68_spill] sm:$0xff] %v11217_v61  ;;  %17581 = vst [vmem:[#allocation118_spill] sm:$0xff] %v11221_v38  ;;  %v11229_v17 = vmin.f32 %v17584_v35, %v10829_v29  ;;  %v11237_v47 = vmin.f32 %v17588_v55, %v10840_v16  ;;  %v11241_v23 = vmin.f32 %v17590_v46, %v10843_v33  ;;  %v17592_v63 = vld [vmem:[#allocation110_spill] sm:$0xff]  ;;  %v17593_v38 = vld [vmem:[#allocation53_spill] sm:$0xff] }
 0x218   :  { %17583 = vst [vmem:[#allocation70_spill] sm:$0xff] %v11225_v19  ;;  %17587 = vst [vmem:[#allocation18_spill] sm:$0xff] %v11233_v51  ;;  %v11245_v56 = vmin.f32 %v17593_v38, %v17592_v63  ;;  %v17595_v42 = vld [vmem:[#allocation156_spill] sm:$0xff]  ;;  %v17597_v35 = vld [vmem:[#allocation35_spill] sm:$0xff] }
 0x219   :  { %17585 = vst [vmem:[#allocation37_spill] sm:$0xff] %v11229_v17  ;;  %17589 = vst [vmem:[#allocation96_spill] sm:$0xff] %v11237_v47  ;;  %v11249_v29 = vmin.f32 %v17595_v42, %v10853_v14  ;;  %v17598_v17 = vld [vmem:[#allocation78_spill] sm:$0xff]  ;;  %v17600_v40 = vld [vmem:[#allocation141_spill] sm:$0xff] }
 0x21a   :  { %17591 = vst [vmem:[#allocation40_spill] sm:$0xff] %v11241_v23  ;;  %17594 = vst [vmem:[#allocation25_spill] sm:$0xff] %v11245_v56  ;;  %v11253_v12 = vmin.f32 %v17598_v17, %v17597_v35  ;;  %v17601_v51 = vld [vmem:[#allocation107_spill] sm:$0xff]  ;;  %v17604_v47 = vld [vmem:[#allocation57_spill] sm:$0xff] }
 0x21b   :  { %17596 = vst [vmem:[#allocation71_spill] sm:$0xff] %v11249_v29  ;;  %v11257_v16 = vmin.f32 %v17601_v51, %v17600_v40  ;;  %v17603_v55 = vld [vmem:[#allocation151_spill] sm:$0xff]  ;;  %v17606_v46 = vld [vmem:[#allocation60_spill] sm:$0xff]  ;;  %v17608_v63 = vld [vmem:[#allocation162_spill] sm:$0xff] }
 0x21c   :  { %17599 = vst [vmem:[#allocation94_spill] sm:$0xff] %v11253_v12  ;;  %v11261_v33 = vmin.f32 %v17604_v47, %v17603_v55  ;;  %v11265_v38 = vmin.f32 %v17606_v46, %v10868_v36  ;;  %v11269_v14 = vmin.f32 %v17608_v63, %v10873_v58  ;;  %v17610_v42 = vld [vmem:[#allocation119_spill] sm:$0xff]  ;;  %v17612_v35 = vld [vmem:[#allocation89_spill] sm:$0xff] }
 0x21d   :  { %17602 = vst [vmem:[#allocation123_spill] sm:$0xff] %v11257_v16  ;;  %v11273_v17 = vmin.f32 %v17610_v42, %v10878_v39  ;;  %v11277_v51 = vmin.f32 %v17612_v35, %v10884_v7  ;;  %v17614_v40 = vld [vmem:[#allocation91_spill] sm:$0xff]  ;;  %v17616_v55 = vld [vmem:[#allocation157_spill] sm:$0xff]  ;;  %v17627_v35 = vld [vmem:[#allocation246_spill] sm:$0xff] }
 0x21e   :  { %17605 = vst [vmem:[#allocation125_spill] sm:$0xff] %v11261_v33  ;;  %17607 = vst [vmem:[#allocation41_spill] sm:$0xff] %v11265_v38  ;;  %v11281_v47 = vmin.f32 %v17614_v40, %v10887_v34  ;;  %v17617_v33 = vld [vmem:[#allocation98_spill] sm:$0xff]  ;;  %v17619_v46 = vld [vmem:[#allocation171_spill] sm:$0xff] }
 0x21f   :  { %17609 = vst [vmem:[#allocation75_spill] sm:$0xff] %v11269_v14  ;;  %17611 = vst [vmem:[#allocation86_spill] sm:$0xff] %v11273_v17  ;;  %v11285_v36 = vmin.f32 %v17617_v33, %v17616_v55  ;;  %v11289_v58 = vmin.f32 %v17619_v46, %v10897_v0  ;;  %v17621_v63 = vld [vmem:[#allocation165_spill] sm:$0xff]  ;;  %v17622_v14 = vld [vmem:[#allocation99_spill] sm:$0xff] }
 0x220   :  { %17613 = vst [vmem:[#allocation81_spill] sm:$0xff] %v11277_v51  ;;  %17615 = vst [vmem:[#allocation72_spill] sm:$0xff] %v11281_v47  ;;  %v11293_v39 = vmin.f32 %v17622_v14, %v17621_v63  ;;  %v17624_v42 = vld [vmem:[#allocation173_spill] sm:$0xff]  ;;  %v17625_v17 = vld [vmem:[#allocation138_spill] sm:$0xff] }
 0x221   :  { %17618 = vst [vmem:[#allocation34_spill] sm:$0xff] %v11285_v36  ;;  %17620 = vst [vmem:[#allocation124_spill] sm:$0xff] %v11289_v58  ;;  %v11297_v7 = vmin.f32 %v17625_v17, %v17624_v42  ;;  %v17628_v51 = vld [vmem:[#allocation147_spill] sm:$0xff]  ;;  %v17630_v40 = vld [vmem:[#allocation148_spill] sm:$0xff] }
 0x222   :  { %17623 = vst [vmem:[#allocation140_spill] sm:$0xff] %v11293_v39  ;;  %v11301_v34 = vmin.f32 %v17628_v51, %v17627_v35  ;;  %v11305_v33 = vmin.f32 %v17630_v40, %v10912_v1  ;;  %v17632_v55 = vld [vmem:[#allocation129_spill] sm:$0xff]  ;;  %v17636_v63 = vld [vmem:[#allocation108_spill] sm:$0xff]  ;;  %v17640_v35 = vld [vmem:[#allocation179_spill] sm:$0xff] }
 0x223   :  { %17626 = vst [vmem:[#allocation42_spill] sm:$0xff] %v11297_v7  ;;  %v11309_v0 = vmin.f32 %v17632_v55, %v10917_v26  ;;  %v17634_v46 = vld [vmem:[#allocation149_spill] sm:$0xff]  ;;  %v11317_v17 = vmin.f32 %v17636_v63, %v10928_v43  ;;  %v17643_v40 = vld [vmem:[#allocation183_spill] sm:$0xff]  ;;  %v17645_v55 = vld [vmem:[#allocation184_spill] sm:$0xff] }
 0x224   :  { %17629 = vst [vmem:[#allocation22_spill] sm:$0xff] %v11301_v34  ;;  %17631 = vst [vmem:[#allocation73_spill] sm:$0xff] %v11305_v33  ;;  %v11313_v14 = vmin.f32 %v17634_v46, %v10922_v25  ;;  %v17638_v42 = vld [vmem:[#allocation153_spill] sm:$0xff]  ;;  %v17641_v34 = vld [vmem:[#allocation154_spill] sm:$0xff]  ;;  %v11329_v26 = vmin.f32 %v17643_v40, %v10941_v44 }
 0x225   :  { %17633 = vst [vmem:[#allocation64_spill] sm:$0xff] %v11309_v0  ;;  %17637 = vst [vmem:[#allocation120_spill] sm:$0xff] %v11317_v17  ;;  %v11321_v51 = vmin.f32 %v17638_v42, %v10931_v50  ;;  %v11325_v1 = vmin.f32 %v17641_v34, %v17640_v35  ;;  %v17646_v0 = vld [vmem:[#allocation83_spill] sm:$0xff]  ;;  %v17651_v63 = vld [vmem:[#allocation248_spill] sm:$0xff] }
 0x226   :  { %17635 = vst [vmem:[#allocation139_spill] sm:$0xff] %v11313_v14  ;;  %17644 = vst [vmem:[#allocation50_spill] sm:$0xff] %v11329_v26  ;;  %v11333_v25 = vmin.f32 %v17646_v0, %v17645_v55  ;;  %v17648_v46 = vld [vmem:[#allocation247_spill] sm:$0xff]  ;;  %v17649_v14 = vld [vmem:[#allocation160_spill] sm:$0xff] }
 0x227   :  { %17639 = vst [vmem:[#allocation74_spill] sm:$0xff] %v11321_v51  ;;  %17642 = vst [vmem:[#allocation127_spill] sm:$0xff] %v11325_v1  ;;  %v11337_v43 = vmin.f32 %v17649_v14, %v17648_v46  ;;  %v17652_v17 = vld [vmem:[#allocation63_spill] sm:$0xff]  ;;  %v17653_v42 = vld [vmem:[#allocation186_spill] sm:$0xff] }
 0x228   :  { %17647 = vst [vmem:[#allocation29_spill] sm:$0xff] %v11333_v25  ;;  %v11341_v50 = vmin.f32 %v17652_v17, %v17651_v63  ;;  %v11345_v34 = vmin.f32 %v17653_v42, %v10956_v13  ;;  %v17655_v35 = vld [vmem:[#allocation193_spill] sm:$0xff]  ;;  %v17657_v40 = vld [vmem:[#allocation187_spill] sm:$0xff]  ;;  %v17663_v63 = vld [vmem:[#allocation20_spill] sm:$0xff] }
 0x229   :  { %17650 = vst [vmem:[#allocation76_spill] sm:$0xff] %v11337_v43  ;;  %v11349_v44 = vmin.f32 %v17655_v35, %v10961_v45  ;;  %v11353_v0 = vmin.f32 %v17657_v40, %v10966_v48  ;;  %v17659_v55 = vld [vmem:[#allocation189_spill] sm:$0xff]  ;;  %v11365_v13 = vmin.f32 %v17663_v63, %v10980_v15  ;;  %v17665_v42 = vld [vmem:[#allocation202_spill] sm:$0xff]  ;;  %v17669_v40 = vld [vmem:[#allocation196_spill] sm:$0xff] }
 0x22a   :  { %17654 = vst [vmem:[#allocation130_spill] sm:$0xff] %v11345_v34  ;;  %v11357_v14 = vmin.f32 %v17659_v55, %v10972_v62  ;;  %v17661_v46 = vld [vmem:[#allocation61_spill] sm:$0xff]  ;;  %v11369_v45 = vmin.f32 %v17665_v42, %v10985_v60  ;;  %v17672_v55 = vld [vmem:[#allocation204_spill] sm:$0xff] }
 0x22b   :  { %17656 = vst [vmem:[#allocation102_spill] sm:$0xff] %v11349_v44  ;;  %17658 = vst [vmem:[#allocation52_spill] sm:$0xff] %v11353_v0  ;;  %v11361_v17 = vmin.f32 %v17661_v46, %v10975_v57  ;;  %v17667_v35 = vld [vmem:[#allocation33_spill] sm:$0xff]  ;;  %v17670_v0 = vld [vmem:[#allocation26_spill] sm:$0xff] }
 0x22c   :  { %17660 = vst [vmem:[#allocation77_spill] sm:$0xff] %v11357_v14  ;;  %17664 = vst [vmem:[#allocation110_spill] sm:$0xff] %v11365_v13  ;;  %v11373_v48 = vmin.f32 %v17667_v35, %v10988_v5  ;;  %v11377_v62 = vmin.f32 %v17670_v0, %v17669_v40  ;;  %v17673_v14 = vld [vmem:[#allocation69_spill] sm:$0xff]  ;;  %v17675_v46 = vld [vmem:[#allocation47_spill] sm:$0xff] }
 0x22d   :  { %17662 = vst [vmem:[#allocation131_spill] sm:$0xff] %v11361_v17  ;;  %17666 = vst [vmem:[#allocation53_spill] sm:$0xff] %v11369_v45  ;;  %v11381_v57 = vmin.f32 %v17673_v14, %v17672_v55  ;;  %v11385_v15 = vmin.f32 %v17675_v46, %v11000_v37  ;;  %v17677_v63 = vld [vmem:[#allocation145_spill] sm:$0xff]  ;;  %v17679_v42 = vld [vmem:[#allocation28_spill] sm:$0xff] }
 0x22e   :  { %17668 = vst [vmem:[#allocation156_spill] sm:$0xff] %v11373_v48  ;;  %17671 = vst [vmem:[#allocation35_spill] sm:$0xff] %v11377_v62  ;;  %v11389_v60 = vmin.f32 %v17677_v63, %v11005_v30  ;;  %v11393_v5 = vmin.f32 %v17679_v42, %v11010_v41  ;;  %v17681_v35 = vld [vmem:[#allocation44_spill] sm:$0xff]  ;;  %v17689_v63 = vld [vmem:[#allocation31_spill] sm:$0xff] }
 0x22f   :  { %17674 = vst [vmem:[#allocation78_spill] sm:$0xff] %v11381_v57  ;;  %17676 = vst [vmem:[#allocation141_spill] sm:$0xff] %v11385_v15  ;;  %v11397_v0 = vmin.f32 %v17681_v35, %v11016_v2  ;;  %v17683_v40 = vld [vmem:[#allocation16_spill] sm:$0xff]  ;;  %v11413_v41 = vmin.f32 %v17689_v63, %v11032_v59  ;;  %v17691_v42 = vld [vmem:[#allocation215_spill] sm:$0xff]  ;;  %v11433_v59 = vmin.f32 %v10639_v31, %v11054_v27 }
 0x230   :  { %17678 = vst [vmem:[#allocation107_spill] sm:$0xff] %v11389_v60  ;;  %17680 = vst [vmem:[#allocation151_spill] sm:$0xff] %v11393_v5  ;;  %v11401_v14 = vmin.f32 %v17683_v40, %v11019_v18  ;;  %v17685_v55 = vld [vmem:[#allocation56_spill] sm:$0xff]  ;;  %v17692_v5 = vld [vmem:[#allocation206_spill] sm:$0xff] }
 0x231   :  { %17682 = vst [vmem:[#allocation57_spill] sm:$0xff] %v11397_v0  ;;  %v11405_v37 = vmin.f32 %v17685_v55, %v11024_v22  ;;  %v17687_v46 = vld [vmem:[#allocation224_spill] sm:$0xff]  ;;  %17690 = vst [vmem:[#allocation89_spill] sm:$0xff] %v11413_v41  ;;  %v11417_v2 = vmin.f32 %v17692_v5, %v17691_v42  ;;  %v17694_v35 = vld [vmem:[#allocation225_spill] sm:$0xff] }
 0x232   :  { %17684 = vst [vmem:[#allocation60_spill] sm:$0xff] %v11401_v14  ;;  %v11409_v30 = vmin.f32 %v17687_v46, %v11029_v10  ;;  %v17695_v0 = vld [vmem:[#allocation226_spill] sm:$0xff]  ;;  %v17697_v40 = vld [vmem:[#allocation111_spill] sm:$0xff]  ;;  %17701 = vst [vmem:[#allocation165_spill] sm:$0xff] %v11433_v59 }
 0x233   :  { %17686 = vst [vmem:[#allocation162_spill] sm:$0xff] %v11405_v37  ;;  %17693 = vst [vmem:[#allocation91_spill] sm:$0xff] %v11417_v2  ;;  %v11421_v18 = vmin.f32 %v17695_v0, %v17694_v35  ;;  %v11425_v22 = vmin.f32 %v17697_v40, %v11044_v53  ;;  %v17699_v55 = vld [vmem:[#allocation159_spill] sm:$0xff]  ;;  %v17702_v46 = vld [vmem:[#allocation85_spill] sm:$0xff]  ;;  %v11441_v0 = vmin.f32 %v10647_v49, %v11069_v8  ;;  %v3012_v49 = vrot.slane %v11089_v54, 2 }
 0x234   :  { %17688 = vst [vmem:[#allocation119_spill] sm:$0xff] %v11409_v30  ;;  %v11429_v10 = vmin.f32 %v17699_v55, %v11049_v20  ;;  %v11437_v5 = vmin.f32 %v17702_v46, %v11066_v52  ;;  %v11445_v53 = vmin.f32 %v10651_v4, %v11080_v28  ;;  %v17706_v63 = vld [vmem:[#allocation134_spill] sm:$0xff]  ;;  %v17708_v42 = vld [vmem:[#allocation229_spill] sm:$0xff]  ;;  %v3016_v28 = vrot.slane %v11093_v3, 2 }
 0x235   :  { %17696 = vst [vmem:[#allocation157_spill] sm:$0xff] %v11421_v18  ;;  %17698 = vst [vmem:[#allocation98_spill] sm:$0xff] %v11425_v22  ;;  %v11449_v20 = vmin.f32 %v17706_v63, %v11085_v21  ;;  %v3005_v31 = vrot.slane %v17708_v42, 2  ;;  %v17709_v27 = vld [vmem:[#allocation249_spill] sm:$0xff]  ;;  %v17710_v40 = vld [vmem:[#allocation250_spill] sm:$0xff] }
 0x236   :  { %17700 = vst [vmem:[#allocation171_spill] sm:$0xff] %v11429_v10  ;;  %17703 = vst [vmem:[#allocation99_spill] sm:$0xff] %v11437_v5  ;;  %v3006_v35 = vrot.slane %v17709_v27, 2  ;;  %v3008_v52 = vrot.slane %v17710_v40, 2  ;;  %v17711_v55 = vld [vmem:[#allocation54_spill] sm:$0xff]  ;;  %v17712_v8 = vld [vmem:[#allocation65_spill] sm:$0xff] }
 0x237   :  { %17704 = vst [vmem:[#allocation173_spill] sm:$0xff] %v11441_v0  ;;  %17705 = vst [vmem:[#allocation138_spill] sm:$0xff] %v11445_v53  ;;  %v3010_v46 = vrot.slane %v17711_v55, 2  ;;  %v15983_v0 = vrot.slane %v17712_v8, 2  ;;  %v17714_v21 = vld [vmem:[#allocation114_spill] sm:$0xff]  ;;  %v17723_v27 = vld [vmem:[#allocation97_spill] sm:$0xff] }
 0x238   :  { %17707 = vst [vmem:[#allocation246_spill] sm:$0xff] %v11449_v20  ;;  %v11458_v4 = vsel %vm3004_vm3, %v3005_v31, %v3006_v35  ;;  %v3017_v63 = vrot.slane %v17714_v21, 2  ;;  %v17715_v20 = vld [vmem:[#allocation58_spill] sm:$0xff]  ;;  %v11464_v42 = vsel %vm3004_vm3, %v3006_v35, %v3008_v52  ;;  %v3021_v35 = vrot.slane %v11105_v24, 2  ;;  %v17725_v8 = vld [vmem:[#allocation115_spill] sm:$0xff] }
 0x239   :  { %17713 = vst [vmem:[#allocation147_spill] sm:$0xff] %v11458_v4  ;;  %v3019_v53 = vrot.slane %v17715_v20, 2  ;;  %17716 = vst [vmem:[#allocation148_spill] sm:$0xff] %v11464_v42  ;;  %v11467_v40 = vsel %vm3004_vm3, %v3008_v52, %v3010_v46  ;;  %v11470_v55 = vsel %vm3004_vm3, %v3010_v46, %v3012_v49  ;;  %v11475_v31 = vsel %vm3004_vm3, %v3012_v49, %v15983_v0  ;;  %v17721_v20 = vld [vmem:[#allocation105_spill] sm:$0xff] }
 0x23a   :  { %17717 = vst [vmem:[#allocation129_spill] sm:$0xff] %v11467_v40  ;;  %17718 = vst [vmem:[#allocation149_spill] sm:$0xff] %v11470_v55  ;;  %v11478_v3 = vsel %vm3004_vm3, %v3016_v28, %v3017_v63  ;;  %v3023_v54 = vrot.slane %v17721_v20, 2  ;;  %v17722_v52 = vld [vmem:[#allocation121_spill] sm:$0xff]  ;;  %v3027_v46 = vrot.slane %v17723_v27, 2  ;;  %v17724_v55 = vld [vmem:[#allocation59_spill] sm:$0xff] }
 0x23b   :  { %17719 = vst [vmem:[#allocation108_spill] sm:$0xff] %v11478_v3  ;;  %v11481_v21 = vsel %vm3004_vm3, %v3017_v63, %v3019_v53  ;;  %v15986_v40 = vrot.slane %v17722_v52, 2  ;;  %v3028_v42 = vrot.slane %v17724_v55, 2  ;;  %v3030_v4 = vrot.slane %v17725_v8, 2  ;;  %v17728_v63 = vld [vmem:[#allocation19_spill] sm:$0xff]  ;;  %v17737_v52 = vld [vmem:[#allocation216_spill] sm:$0xff] }
 0x23c   :  { %17720 = vst [vmem:[#allocation153_spill] sm:$0xff] %v11481_v21  ;;  %v11490_v49 = vsel %vm3004_vm3, %v3019_v53, %v3021_v35  ;;  %v11493_v28 = vsel %vm3004_vm3, %v3021_v35, %v3023_v54  ;;  %v3032_v0 = vrot.slane %v17728_v63, 2  ;;  %v17729_v21 = vld [vmem:[#allocation210_spill] sm:$0xff]  ;;  %v17733_v53 = vld [vmem:[#allocation132_spill] sm:$0xff] }
 0x23d   :  { %17726 = vst [vmem:[#allocation179_spill] sm:$0xff] %v11490_v49  ;;  %17727 = vst [vmem:[#allocation154_spill] sm:$0xff] %v11493_v28  ;;  %v3034_v24 = vrot.slane %v17729_v21, 2  ;;  %v11500_v20 = vsel %vm3004_vm3, %v3023_v54, %v15986_v40  ;;  %v11503_v27 = vsel %vm3004_vm3, %v3027_v46, %v3028_v42  ;;  %v11506_v8 = vsel %vm3004_vm3, %v3028_v42, %v3030_v4  ;;  %v17736_v21 = vld [vmem:[#allocation116_spill] sm:$0xff]  ;;  %v17739_v46 = vld [vmem:[#allocation39_spill] sm:$0xff] }
 0x23e   :  { %17730 = vst [vmem:[#allocation183_spill] sm:$0xff] %v11500_v20  ;;  %17731 = vst [vmem:[#allocation184_spill] sm:$0xff] %v11503_v27  ;;  %v15988_v55 = vrot.slane %v17733_v53, 2  ;;  %v11510_v35 = vsel %vm3004_vm3, %v3030_v4, %v3032_v0  ;;  %v3038_v28 = vrot.slane %v17736_v21, 2  ;;  %v3039_v49 = vrot.slane %v17737_v52, 2  ;;  %v17740_v40 = vld [vmem:[#allocation220_spill] sm:$0xff] }
 0x23f   :  { %17732 = vst [vmem:[#allocation83_spill] sm:$0xff] %v11506_v8  ;;  %17734 = vst [vmem:[#allocation247_spill] sm:$0xff] %v11510_v35  ;;  %v11513_v63 = vsel %vm3004_vm3, %v3032_v0, %v3034_v24  ;;  %v3041_v42 = vrot.slane %v17739_v46, 2  ;;  %v3043_v8 = vrot.slane %v17740_v40, 2  ;;  %v17741_v27 = vld [vmem:[#allocation117_spill] sm:$0xff]  ;;  %v17743_v0 = vld [vmem:[#allocation80_spill] sm:$0xff] }
 0x240   :  { %17735 = vst [vmem:[#allocation160_spill] sm:$0xff] %v11513_v63  ;;  %v11520_v54 = vsel %vm3004_vm3, %v3034_v24, %v15988_v55  ;;  %v3045_v20 = vrot.slane %v17741_v27, 2  ;;  %v11526_v4 = vsel %vm3004_vm3, %v3038_v28, %v3039_v49  ;;  %v15990_v63 = vrot.slane %v17743_v0, 2  ;;  %v17744_v35 = vld [vmem:[#allocation126_spill] sm:$0xff] }
 0x241   :  { %17738 = vst [vmem:[#allocation248_spill] sm:$0xff] %v11520_v54  ;;  %17742 = vst [vmem:[#allocation63_spill] sm:$0xff] %v11526_v4  ;;  %v3049_v21 = vrot.slane %v17744_v35, 2  ;;  %v17745_v3 = vld [vmem:[#allocation142_spill] sm:$0xff]  ;;  %v11532_v53 = vsel %vm3004_vm3, %v3039_v49, %v3041_v42  ;;  %v11535_v24 = vsel %vm3004_vm3, %v3041_v42, %v3043_v8  ;;  %v17752_v49 = vld [vmem:[#allocation87_spill] sm:$0xff] }
 0x242   :  { %v3050_v52 = vrot.slane %v17745_v3, 2  ;;  %17746 = vst [vmem:[#allocation186_spill] sm:$0xff] %v11532_v53  ;;  %17747 = vst [vmem:[#allocation193_spill] sm:$0xff] %v11535_v24  ;;  %v11538_v55 = vsel %vm3004_vm3, %v3043_v8, %v3045_v20  ;;  %v17749_v40 = vld [vmem:[#allocation62_spill] sm:$0xff]  ;;  %v11544_v28 = vsel %vm3004_vm3, %v3045_v20, %v15990_v63  ;;  %v17751_v3 = vld [vmem:[#allocation92_spill] sm:$0xff]  ;;  %v3056_v53 = vrot.slane %v17752_v49, 2 }
 0x243   :  { %17748 = vst [vmem:[#allocation187_spill] sm:$0xff] %v11538_v55  ;;  %v3052_v27 = vrot.slane %v17749_v40, 2  ;;  %v3054_v46 = vrot.slane %v17751_v3, 2  ;;  %v17754_v24 = vld [vmem:[#allocation113_spill] sm:$0xff]  ;;  %v17755_v55 = vld [vmem:[#allocation23_spill] sm:$0xff]  ;;  %v17756_v40 = vld [vmem:[#allocation66_spill] sm:$0xff] }
 0x244   :  { %v11547_v35 = vsel %vm3004_vm3, %v3049_v21, %v3050_v52  ;;  %v15992_v8 = vrot.slane %v17754_v24, 2  ;;  %v3060_v4 = vrot.slane %v17755_v55, 2  ;;  %v3061_v54 = vrot.slane %v17756_v40, 2  ;;  %v17759_v21 = vld [vmem:[#allocation36_spill] sm:$0xff]  ;;  %v17760_v3 = vld [vmem:[#allocation90_spill] sm:$0xff] }
 0x245   :  { %17750 = vst [vmem:[#allocation189_spill] sm:$0xff] %v11547_v35  ;;  %v11552_v42 = vsel %vm3004_vm3, %v3050_v52, %v3052_v27  ;;  %v11558_v0 = vsel %vm3004_vm3, %v3052_v27, %v3054_v46  ;;  %v11561_v20 = vsel %vm3004_vm3, %v3054_v46, %v3056_v53  ;;  %v3063_v63 = vrot.slane %v17759_v21, 2  ;;  %v17761_v55 = vld [vmem:[#allocation106_spill] sm:$0xff]  ;;  %v17764_v21 = vld [vmem:[#allocation49_spill] sm:$0xff] }
 0x246   :  { %17753 = vst [vmem:[#allocation61_spill] sm:$0xff] %v11552_v42  ;;  %17757 = vst [vmem:[#allocation20_spill] sm:$0xff] %v11558_v0  ;;  %v3065_v35 = vrot.slane %v17760_v3, 2  ;;  %v11568_v52 = vsel %vm3004_vm3, %v3056_v53, %v15992_v8  ;;  %v11571_v49 = vsel %vm3004_vm3, %v3060_v4, %v3061_v54  ;;  %v3067_v40 = vrot.slane %v17761_v55, 2  ;;  %v17762_v42 = vld [vmem:[#allocation137_spill] sm:$0xff] }
 0x247   :  { %17758 = vst [vmem:[#allocation202_spill] sm:$0xff] %v11561_v20  ;;  %v15994_v27 = vrot.slane %v17762_v42, 2  ;;  %v11576_v0 = vsel %vm3004_vm3, %v3061_v54, %v3063_v63  ;;  %v3071_v3 = vrot.slane %v17764_v21, 2  ;;  %v17765_v20 = vld [vmem:[#allocation227_spill] sm:$0xff]  ;;  %v3074_v8 = vrot.slane %v11201_v11, 2  ;;  %v17766_v21 = vld [vmem:[#allocation146_spill] sm:$0xff] }
 0x248   :  { %v11579_v46 = vsel %vm3004_vm3, %v3063_v63, %v3065_v35  ;;  %v3072_v24 = vrot.slane %v17765_v20, 2  ;;  %v11584_v53 = vsel %vm3004_vm3, %v3065_v35, %v3067_v40  ;;  %v3076_v54 = vrot.slane %v11205_v32, 2 }
 0x249   :  { %17763 = vst [vmem:[#allocation33_spill] sm:$0xff] %v11579_v46  ;;  %v11589_v4 = vsel %vm3004_vm3, %v3067_v40, %v15994_v27  ;;  %v3078_v63 = vrot.slane %v11209_v9, 2  ;;  %v16000_v46 = vrot.slane %v17766_v21, 2  ;;  %v3082_v20 = vrot.slane %v11213_v6, 2  ;;  %v17769_v27 = vld [vmem:[#allocation118_spill] sm:$0xff]  ;;  %v17771_v9 = vld [vmem:[#allocation37_spill] sm:$0xff] }
 0x24a   :  { %v11594_v55 = vsel %vm3004_vm3, %v3071_v3, %v3072_v24  ;;  %v11600_v35 = vsel %vm3004_vm3, %v3072_v24, %v3074_v8  ;;  %v11603_v42 = vsel %vm3004_vm3, %v3074_v8, %v3076_v54  ;;  %v3083_v40 = vrot.slane %v11217_v61, 2  ;;  %v17774_v61 = vld [vmem:[#allocation155_spill] sm:$0xff] }
 0x24b   :  { %17767 = vst [vmem:[#allocation196_spill] sm:$0xff] %v11600_v35  ;;  %17768 = vst [vmem:[#allocation26_spill] sm:$0xff] %v11603_v42  ;;  %v3085_v11 = vrot.slane %v17769_v27, 2  ;;  %v11608_v32 = vsel %vm3004_vm3, %v3076_v54, %v3078_v63  ;;  %v11613_v3 = vsel %vm3004_vm3, %v3078_v63, %v16000_v46  ;;  %v3087_v6 = vrot.slane %v11225_v19, 2  ;;  %v17775_v42 = vld [vmem:[#allocation18_spill] sm:$0xff]  ;;  %v17776_v46 = vld [vmem:[#allocation96_spill] sm:$0xff] }
 0x24c   :  { %17770 = vst [vmem:[#allocation204_spill] sm:$0xff] %v11608_v32  ;;  %v3089_v24 = vrot.slane %v17771_v9, 2  ;;  %v11618_v35 = vsel %vm3004_vm3, %v3082_v20, %v3083_v40  ;;  %v16004_v27 = vrot.slane %v17774_v61, 2  ;;  %v3093_v54 = vrot.slane %v17775_v42, 2  ;;  %v17777_v42 = vld [vmem:[#allocation161_spill] sm:$0xff] }
 0x24d   :  { %17772 = vst [vmem:[#allocation69_spill] sm:$0xff] %v11618_v35  ;;  %v11621_v8 = vsel %vm3004_vm3, %v3083_v40, %v3085_v11  ;;  %v11626_v32 = vsel %vm3004_vm3, %v3085_v11, %v3087_v6  ;;  %v3094_v19 = vrot.slane %v17776_v46, 2  ;;  %v3096_v9 = vrot.slane %v11241_v23, 2 }
 0x24e   :  { %17773 = vst [vmem:[#allocation47_spill] sm:$0xff] %v11621_v8  ;;  %v11629_v63 = vsel %vm3004_vm3, %v3087_v6, %v3089_v24  ;;  %v11636_v20 = vsel %vm3004_vm3, %v3089_v24, %v16004_v27  ;;  %v3098_v40 = vrot.slane %v11245_v56, 2  ;;  %v3100_v8 = vrot.slane %v11249_v29, 2  ;;  %v17783_v56 = vld [vmem:[#allocation75_spill] sm:$0xff] }
 0x24f   :  { %v16010_v35 = vrot.slane %v17777_v42, 2  ;;  %v11642_v11 = vsel %vm3004_vm3, %v3093_v54, %v3094_v19  ;;  %v11645_v6 = vsel %vm3004_vm3, %v3094_v19, %v3096_v9  ;;  %v3104_v46 = vrot.slane %v11253_v12, 2  ;;  %v17782_v54 = vld [vmem:[#allocation125_spill] sm:$0xff] }
 0x250   :  { %17778 = vst [vmem:[#allocation145_spill] sm:$0xff] %v11642_v11  ;;  %17779 = vst [vmem:[#allocation28_spill] sm:$0xff] %v11645_v6  ;;  %v3105_v23 = vrot.slane %v11257_v16, 2  ;;  %v11650_v61 = vsel %vm3004_vm3, %v3096_v9, %v3098_v40  ;;  %v11653_v24 = vsel %vm3004_vm3, %v3098_v40, %v3100_v8  ;;  %v3107_v29 = vrot.slane %v17782_v54, 2  ;;  %v17784_v6 = vld [vmem:[#allocation169_spill] sm:$0xff]  ;;  %v17785_v40 = vld [vmem:[#allocation86_spill] sm:$0xff] }
 0x251   :  { %17780 = vst [vmem:[#allocation44_spill] sm:$0xff] %v11650_v61  ;;  %17781 = vst [vmem:[#allocation16_spill] sm:$0xff] %v11653_v24  ;;  %v11658_v27 = vsel %vm3004_vm3, %v3100_v8, %v16010_v35  ;;  %v3109_v12 = vrot.slane %v11265_v38, 2  ;;  %v3111_v16 = vrot.slane %v17783_v56, 2  ;;  %v16014_v9 = vrot.slane %v17784_v6, 2  ;;  %v17786_v42 = vld [vmem:[#allocation81_spill] sm:$0xff] }
 0x252   :  { %v11662_v19 = vsel %vm3004_vm3, %v3104_v46, %v3105_v23  ;;  %v11668_v61 = vsel %vm3004_vm3, %v3105_v23, %v3107_v29  ;;  %v3115_v24 = vrot.slane %v17785_v40, 2  ;;  %v3116_v11 = vrot.slane %v17786_v42, 2 }
 0x253   :  { %v3118_v8 = vrot.slane %v11281_v47, 2  ;;  %v11674_v35 = vsel %vm3004_vm3, %v3107_v29, %v3109_v12  ;;  %v11677_v46 = vsel %vm3004_vm3, %v3109_v12, %v3111_v16  ;;  %v11682_v56 = vsel %vm3004_vm3, %v3111_v16, %v16014_v9  ;;  %v17789_v29 = vld [vmem:[#allocation128_spill] sm:$0xff]  ;;  %v17791_v9 = vld [vmem:[#allocation22_spill] sm:$0xff] }
 0x254   :  { %17787 = vst [vmem:[#allocation56_spill] sm:$0xff] %v11682_v56  ;;  %v3120_v23 = vrot.slane %v11285_v36, 2  ;;  %v11686_v38 = vsel %vm3004_vm3, %v3115_v24, %v3116_v11  ;;  %v3122_v47 = vrot.slane %v11289_v58, 2  ;;  %v16019_v40 = vrot.slane %v17789_v29, 2  ;;  %v17793_v58 = vld [vmem:[#allocation64_spill] sm:$0xff] }
 0x255   :  { %v11689_v42 = vsel %vm3004_vm3, %v3116_v11, %v3118_v8  ;;  %v3126_v6 = vrot.slane %v11293_v39, 2  ;;  %v3127_v16 = vrot.slane %v11297_v7, 2  ;;  %v3129_v56 = vrot.slane %v17791_v9, 2  ;;  %v17796_v7 = vld [vmem:[#allocation182_spill] sm:$0xff] }
 0x256   :  { %17788 = vst [vmem:[#allocation224_spill] sm:$0xff] %v11689_v42  ;;  %v11694_v12 = vsel %vm3004_vm3, %v3118_v8, %v3120_v23  ;;  %v11700_v36 = vsel %vm3004_vm3, %v3120_v23, %v3122_v47  ;;  %v11705_v11 = vsel %vm3004_vm3, %v3122_v47, %v16019_v40  ;;  %v3131_v24 = vrot.slane %v11305_v33, 2  ;;  %v17798_v40 = vld [vmem:[#allocation120_spill] sm:$0xff] }
 0x257   :  { %17790 = vst [vmem:[#allocation31_spill] sm:$0xff] %v11694_v12  ;;  %17792 = vst [vmem:[#allocation215_spill] sm:$0xff] %v11700_v36  ;;  %v3133_v42 = vrot.slane %v17793_v58, 2  ;;  %v11710_v8 = vsel %vm3004_vm3, %v3126_v6, %v3127_v16  ;;  %v11713_v39 = vsel %vm3004_vm3, %v3127_v16, %v3129_v56  ;;  %v16023_v9 = vrot.slane %v17796_v7, 2  ;;  %v17797_v12 = vld [vmem:[#allocation139_spill] sm:$0xff] }
 0x258   :  { %17794 = vst [vmem:[#allocation206_spill] sm:$0xff] %v11710_v8  ;;  %17795 = vst [vmem:[#allocation225_spill] sm:$0xff] %v11713_v39  ;;  %v3137_v23 = vrot.slane %v17797_v12, 2  ;;  %v11718_v36 = vsel %vm3004_vm3, %v3129_v56, %v3131_v24  ;;  %v3138_v33 = vrot.slane %v17798_v40, 2  ;;  %v3140_v58 = vrot.slane %v11321_v51, 2  ;;  %v17799_v12 = vld [vmem:[#allocation192_spill] sm:$0xff] }
 0x259   :  { %v11721_v47 = vsel %vm3004_vm3, %v3131_v24, %v3133_v42  ;;  %v11728_v6 = vsel %vm3004_vm3, %v3133_v42, %v16023_v9  ;;  %v3142_v16 = vrot.slane %v11325_v1, 2  ;;  %v3144_v39 = vrot.slane %v11329_v26, 2  ;;  %v17802_v26 = vld [vmem:[#allocation168_spill] sm:$0xff] }
 0x25a   :  { %v16029_v8 = vrot.slane %v17799_v12, 2  ;;  %v11734_v56 = vsel %vm3004_vm3, %v3137_v23, %v3138_v33  ;;  %v11737_v24 = vsel %vm3004_vm3, %v3138_v33, %v3140_v58  ;;  %v3148_v40 = vrot.slane %v11333_v25, 2  ;;  %v17804_v12 = vld [vmem:[#allocation77_spill] sm:$0xff] }
 0x25b   :  { %v3149_v51 = vrot.slane %v11337_v43, 2  ;;  %v11742_v7 = vsel %vm3004_vm3, %v3140_v58, %v3142_v16  ;;  %v11745_v42 = vsel %vm3004_vm3, %v3142_v16, %v3144_v39  ;;  %v3151_v23 = vrot.slane %v11341_v50, 2  ;;  %v17803_v16 = vld [vmem:[#allocation52_spill] sm:$0xff] }
 0x25c   :  { %17800 = vst [vmem:[#allocation226_spill] sm:$0xff] %v11742_v7  ;;  %17801 = vst [vmem:[#allocation111_spill] sm:$0xff] %v11745_v42  ;;  %v11750_v9 = vsel %vm3004_vm3, %v3144_v39, %v16029_v8  ;;  %v3153_v25 = vrot.slane %v11345_v34, 2  ;;  %v3155_v43 = vrot.slane %v11349_v44, 2  ;;  %v16034_v58 = vrot.slane %v17802_v26, 2 }
 0x25d   :  { %v11754_v33 = vsel %vm3004_vm3, %v3148_v40, %v3149_v51  ;;  %v11760_v1 = vsel %vm3004_vm3, %v3149_v51, %v3151_v23  ;;  %v3159_v42 = vrot.slane %v17803_v16, 2  ;;  %v3160_v7 = vrot.slane %v17804_v12, 2 }
 0x25e   :  { %v3162_v39 = vrot.slane %v11361_v17, 2  ;;  %v11766_v8 = vsel %vm3004_vm3, %v3151_v23, %v3153_v25  ;;  %v11769_v40 = vsel %vm3004_vm3, %v3153_v25, %v3155_v43  ;;  %v11774_v44 = vsel %vm3004_vm3, %v3155_v43, %v16034_v58  ;;  %v17805_v23 = vld [vmem:[#allocation144_spill] sm:$0xff] }
 0x25f   :  { %v3164_v51 = vrot.slane %v11365_v13, 2  ;;  %v11778_v34 = vsel %vm3004_vm3, %v3159_v42, %v3160_v7  ;;  %v3166_v17 = vrot.slane %v11369_v45, 2  ;;  %v16040_v16 = vrot.slane %v17805_v23, 2 }
 0x260   :  { %v11781_v12 = vsel %vm3004_vm3, %v3160_v7, %v3162_v39  ;;  %v3170_v26 = vrot.slane %v11373_v48, 2  ;;  %v3171_v43 = vrot.slane %v11377_v62, 2  ;;  %v3173_v58 = vrot.slane %v11381_v57, 2  ;;  %v17810_v62 = vld [vmem:[#allocation223_spill] sm:$0xff] }
 0x261   :  { %v11786_v25 = vsel %vm3004_vm3, %v3162_v39, %v3164_v51  ;;  %v11792_v13 = vsel %vm3004_vm3, %v3164_v51, %v3166_v17  ;;  %v11797_v7 = vsel %vm3004_vm3, %v3166_v17, %v16040_v16  ;;  %v3175_v42 = vrot.slane %v11385_v15, 2  ;;  %v17812_v16 = vld [vmem:[#allocation57_spill] sm:$0xff] }
 0x262   :  { %17806 = vst [vmem:[#allocation159_spill] sm:$0xff] %v11786_v25  ;;  %17807 = vst [vmem:[#allocation85_spill] sm:$0xff] %v11792_v13  ;;  %v3177_v45 = vrot.slane %v11389_v60, 2  ;;  %v11802_v39 = vsel %vm3004_vm3, %v3170_v26, %v3171_v43  ;;  %v11805_v48 = vsel %vm3004_vm3, %v3171_v43, %v3173_v58  ;;  %v16045_v57 = vrot.slane %v17810_v62, 2  ;;  %v17811_v25 = vld [vmem:[#allocation151_spill] sm:$0xff] }
 0x263   :  { %17808 = vst [vmem:[#allocation134_spill] sm:$0xff] %v11802_v39  ;;  %17809 = vst [vmem:[#allocation146_spill] sm:$0xff] %v11805_v48  ;;  %v3181_v51 = vrot.slane %v17811_v25, 2  ;;  %v11810_v13 = vsel %vm3004_vm3, %v3173_v58, %v3175_v42  ;;  %v3182_v15 = vrot.slane %v17812_v16, 2  ;;  %v3184_v60 = vrot.slane %v11401_v14, 2  ;;  %v17813_v25 = vld [vmem:[#allocation228_spill] sm:$0xff] }
 0x264   :  { %v11813_v17 = vsel %vm3004_vm3, %v3175_v42, %v3177_v45  ;;  %v11820_v26 = vsel %vm3004_vm3, %v3177_v45, %v16045_v57  ;;  %v3186_v43 = vrot.slane %v11405_v37, 2  ;;  %v3188_v48 = vrot.slane %v11409_v30, 2  ;;  %v17815_v30 = vld [vmem:[#allocation167_spill] sm:$0xff] }
 0x265   :  { %v16051_v39 = vrot.slane %v17813_v25, 2  ;;  %v11826_v58 = vsel %vm3004_vm3, %v3181_v51, %v3182_v15  ;;  %v11829_v42 = vsel %vm3004_vm3, %v3182_v15, %v3184_v60  ;;  %v3192_v16 = vrot.slane %v11413_v41, 2 }
 0x266   :  { %v3193_v14 = vrot.slane %v11417_v2, 2  ;;  %v11834_v62 = vsel %vm3004_vm3, %v3184_v60, %v3186_v43  ;;  %v11837_v45 = vsel %vm3004_vm3, %v3186_v43, %v3188_v48  ;;  %v3195_v51 = vrot.slane %v11421_v18, 2 }
 0x267   :  { %v11842_v57 = vsel %vm3004_vm3, %v3188_v48, %v16051_v39  ;;  %v3197_v41 = vrot.slane %v11425_v22, 2  ;;  %v3199_v2 = vrot.slane %v11429_v10, 2  ;;  %v16058_v60 = vrot.slane %v17815_v30, 2  ;;  %v17817_v48 = vld [vmem:[#allocation173_spill] sm:$0xff]  ;;  %v17821_v22 = vld [vmem:[#allocation138_spill] sm:$0xff] }
 0x268   :  { %v11846_v15 = vsel %vm3004_vm3, %v3192_v16, %v3193_v14  ;;  %v11852_v37 = vsel %vm3004_vm3, %v3193_v14, %v3195_v51  ;;  %v3203_v43 = vrot.slane %v11433_v59, 2  ;;  %v3204_v25 = vrot.slane %v11437_v5, 2  ;;  %v17827_v30 = vld [vmem:[#allocation229_spill] sm:$0xff] }
 0x269   :  { %17814 = vst [vmem:[#allocation125_spill] sm:$0xff] %v11846_v15  ;;  %17816 = vst [vmem:[#allocation128_spill] sm:$0xff] %v11852_v37  ;;  %v3206_v39 = vrot.slane %v17817_v48, 2  ;;  %v11858_v18 = vsel %vm3004_vm3, %v3195_v51, %v3197_v41  ;;  %v11861_v16 = vsel %vm3004_vm3, %v3197_v41, %v3199_v2  ;;  %v11866_v10 = vsel %vm3004_vm3, %v3199_v2, %v16058_v60  ;;  %v17823_v48 = vld [vmem:[#allocation246_spill] sm:$0xff]  ;;  %v17824_v51 = vld [vmem:[#allocation205_spill] sm:$0xff] }
 0x26a   :  { %17818 = vst [vmem:[#allocation144_spill] sm:$0xff] %v11858_v18  ;;  %17819 = vst [vmem:[#allocation251_spill] sm:$0xff] %v11861_v16  ;;  %v3208_v14 = vrot.slane %v17821_v22, 2  ;;  %v11870_v37 = vsel %vm3004_vm3, %v3203_v43, %v3204_v25  ;;  %v3210_v59 = vrot.slane %v17823_v48, 2  ;;  %v16062_v18 = vrot.slane %v17824_v51, 2  ;;  %v17826_v16 = vld [vmem:[#allocation147_spill] sm:$0xff] }
 0x26b   :  { %17820 = vst [vmem:[#allocation252_spill] sm:$0xff] %v11866_v10  ;;  %17822 = vst [vmem:[#allocation253_spill] sm:$0xff] %v11870_v37  ;;  %v11873_v5 = vsel %vm3004_vm3, %v3204_v25, %v3206_v39  ;;  %v11882_v15 = vmin.f32 %v17827_v30, %v17826_v16  ;;  %v17829_v2 = vld [vmem:[#allocation148_spill] sm:$0xff]  ;;  %v17830_v60 = vld [vmem:[#allocation249_spill] sm:$0xff] }
 0x26c   :  { %v11878_v41 = vsel %vm3004_vm3, %v3206_v39, %v3208_v14  ;;  %v11886_v22 = vmin.f32 %v17830_v60, %v17829_v2  ;;  %v17832_v43 = vld [vmem:[#allocation129_spill] sm:$0xff]  ;;  %v17833_v37 = vld [vmem:[#allocation250_spill] sm:$0xff]  ;;  %v11893_v25 = vsel %vm3004_vm3, %v3208_v14, %v3210_v59  ;;  %v11898_v39 = vsel %vm3004_vm3, %v3210_v59, %v16062_v18  ;;  %v17839_v16 = vld [vmem:[#allocation232_spill] sm:$0xff] }
 0x26d   :  { %17825 = vst [vmem:[#allocation254_spill] sm:$0xff] %v11878_v41  ;;  %17828 = vst [vmem:[#allocation147_spill] sm:$0xff] %v11882_v15  ;;  %v11890_v10 = vmin.f32 %v17833_v37, %v17832_v43  ;;  %v17836_v48 = vld [vmem:[#allocation149_spill] sm:$0xff]  ;;  %v17837_v41 = vld [vmem:[#allocation54_spill] sm:$0xff]  ;;  %v11906_v60 = vmin.f32 %v17839_v16, %v11475_v31 }
 0x26e   :  { %17831 = vst [vmem:[#allocation229_spill] sm:$0xff] %v11886_v22  ;;  %17835 = vst [vmem:[#allocation249_spill] sm:$0xff] %v11898_v39  ;;  %v11902_v30 = vmin.f32 %v17837_v41, %v17836_v48  ;;  %v17841_v2 = vld [vmem:[#allocation65_spill] sm:$0xff]  ;;  %v17844_v14 = vld [vmem:[#allocation108_spill] sm:$0xff] }
 0x26f   :  { %17834 = vst [vmem:[#allocation148_spill] sm:$0xff] %v11890_v10  ;;  %17840 = vst [vmem:[#allocation250_spill] sm:$0xff] %v11906_v60  ;;  %v17842_v22 = vrot.slane %v17841_v2, 2  ;;  %v17845_v43 = vld [vmem:[#allocation17_spill] sm:$0xff]  ;;  %v17848_v59 = vld [vmem:[#allocation114_spill] sm:$0xff] }
 0x270   :  { %17838 = vst [vmem:[#allocation129_spill] sm:$0xff] %v11902_v30  ;;  %v11915_v10 = vmin.f32 %v17845_v43, %v17844_v14  ;;  %v17847_v15 = vld [vmem:[#allocation153_spill] sm:$0xff]  ;;  %v17850_v51 = vld [vmem:[#allocation179_spill] sm:$0xff]  ;;  %v17851_v48 = vld [vmem:[#allocation58_spill] sm:$0xff] }
 0x271   :  { %v11911_v37 = vmin.f32 %v17841_v2, %v17842_v22  ;;  %v11919_v18 = vmin.f32 %v17848_v59, %v17847_v15  ;;  %v11923_v41 = vmin.f32 %v17851_v48, %v17850_v51  ;;  %v17853_v30 = vld [vmem:[#allocation154_spill] sm:$0xff]  ;;  %v17854_v31 = vld [vmem:[#allocation32_spill] sm:$0xff]  ;;  %v17856_v60 = vld [vmem:[#allocation183_spill] sm:$0xff] }
 0x272   :  { %17846 = vst [vmem:[#allocation54_spill] sm:$0xff] %v11915_v10  ;;  %v11927_v16 = vmin.f32 %v17854_v31, %v17853_v30  ;;  %v17857_v39 = vld [vmem:[#allocation105_spill] sm:$0xff]  ;;  %v17862_v43 = vld [vmem:[#allocation184_spill] sm:$0xff]  ;;  %v17866_v51 = vld [vmem:[#allocation59_spill] sm:$0xff] }
 0x273   :  { %17843 = vst [vmem:[#allocation149_spill] sm:$0xff] %v11911_v37  ;;  %17849 = vst [vmem:[#allocation232_spill] sm:$0xff] %v11919_v18  ;;  %v11931_v22 = vmin.f32 %v17857_v39, %v17856_v60  ;;  %v17859_v2 = vld [vmem:[#allocation121_spill] sm:$0xff]  ;;  %v17865_v18 = vld [vmem:[#allocation83_spill] sm:$0xff] }
 0x274   :  { %17852 = vst [vmem:[#allocation65_spill] sm:$0xff] %v11923_v41  ;;  %17855 = vst [vmem:[#allocation108_spill] sm:$0xff] %v11927_v16  ;;  %v17860_v37 = vrot.slane %v17859_v2, 2  ;;  %v17863_v15 = vld [vmem:[#allocation97_spill] sm:$0xff]  ;;  %v11944_v48 = vmin.f32 %v17866_v51, %v17865_v18  ;;  %v17868_v41 = vld [vmem:[#allocation247_spill] sm:$0xff] }
 0x275   :  { %17858 = vst [vmem:[#allocation17_spill] sm:$0xff] %v11931_v22  ;;  %v11940_v59 = vmin.f32 %v17863_v15, %v17862_v43  ;;  %v17869_v30 = vld [vmem:[#allocation115_spill] sm:$0xff]  ;;  %v17871_v16 = vld [vmem:[#allocation160_spill] sm:$0xff]  ;;  %v17875_v10 = vld [vmem:[#allocation210_spill] sm:$0xff] }
 0x276   :  { %v11936_v14 = vmin.f32 %v17859_v2, %v17860_v37  ;;  %17867 = vst [vmem:[#allocation179_spill] sm:$0xff] %v11944_v48  ;;  %v11948_v31 = vmin.f32 %v17869_v30, %v17868_v41  ;;  %v17872_v39 = vld [vmem:[#allocation19_spill] sm:$0xff]  ;;  %v17874_v22 = vld [vmem:[#allocation248_spill] sm:$0xff]  ;;  %v17883_v48 = vld [vmem:[#allocation186_spill] sm:$0xff] }
 0x277   :  { %17864 = vst [vmem:[#allocation114_spill] sm:$0xff] %v11940_v59  ;;  %v11952_v60 = vmin.f32 %v17872_v39, %v17871_v16  ;;  %v11956_v37 = vmin.f32 %v17875_v10, %v17874_v22  ;;  %v17877_v2 = vld [vmem:[#allocation132_spill] sm:$0xff]  ;;  %v17880_v15 = vld [vmem:[#allocation63_spill] sm:$0xff] }
 0x278   :  { %17861 = vst [vmem:[#allocation153_spill] sm:$0xff] %v11936_v14  ;;  %17870 = vst [vmem:[#allocation58_spill] sm:$0xff] %v11948_v31  ;;  %v17878_v14 = vrot.slane %v17877_v2, 2  ;;  %v17881_v18 = vld [vmem:[#allocation116_spill] sm:$0xff]  ;;  %v17886_v31 = vld [vmem:[#allocation193_spill] sm:$0xff] }
 0x279   :  { %17873 = vst [vmem:[#allocation154_spill] sm:$0xff] %v11952_v60  ;;  %17876 = vst [vmem:[#allocation32_spill] sm:$0xff] %v11956_v37  ;;  %v11965_v51 = vmin.f32 %v17881_v18, %v17880_v15  ;;  %v17884_v41 = vld [vmem:[#allocation216_spill] sm:$0xff]  ;;  %v17887_v16 = vld [vmem:[#allocation39_spill] sm:$0xff] }
 0x27a   :  { %v11961_v43 = vmin.f32 %v17877_v2, %v17878_v14  ;;  %v11969_v30 = vmin.f32 %v17884_v41, %v17883_v48  ;;  %v11973_v39 = vmin.f32 %v17887_v16, %v17886_v31  ;;  %v17889_v60 = vld [vmem:[#allocation187_spill] sm:$0xff]  ;;  %v17890_v10 = vld [vmem:[#allocation220_spill] sm:$0xff]  ;;  %v17892_v37 = vld [vmem:[#allocation117_spill] sm:$0xff] }
 0x27b   :  { %17882 = vst [vmem:[#allocation105_spill] sm:$0xff] %v11965_v51  ;;  %v11977_v22 = vmin.f32 %v17890_v10, %v17889_v60  ;;  %v11981_v14 = vmin.f32 %v17892_v37, %v11544_v28  ;;  %v17894_v2 = vld [vmem:[#allocation80_spill] sm:$0xff]  ;;  %v17897_v18 = vld [vmem:[#allocation189_spill] sm:$0xff]  ;;  %v17898_v48 = vld [vmem:[#allocation126_spill] sm:$0xff] }
 0x27c   :  { %17879 = vst [vmem:[#allocation183_spill] sm:$0xff] %v11961_v43  ;;  %17885 = vst [vmem:[#allocation121_spill] sm:$0xff] %v11969_v30  ;;  %v17895_v43 = vrot.slane %v17894_v2, 2  ;;  %v11990_v41 = vmin.f32 %v17898_v48, %v17897_v18  ;;  %v17900_v30 = vld [vmem:[#allocation61_spill] sm:$0xff]  ;;  %v17901_v31 = vld [vmem:[#allocation142_spill] sm:$0xff] }
 0x27d   :  { %17888 = vst [vmem:[#allocation184_spill] sm:$0xff] %v11973_v39  ;;  %17891 = vst [vmem:[#allocation97_spill] sm:$0xff] %v11977_v22  ;;  %v11994_v16 = vmin.f32 %v17901_v31, %v17900_v30  ;;  %v17903_v39 = vld [vmem:[#allocation20_spill] sm:$0xff]  ;;  %v17904_v60 = vld [vmem:[#allocation62_spill] sm:$0xff] }
 0x27e   :  { %17893 = vst [vmem:[#allocation83_spill] sm:$0xff] %v11981_v14  ;;  %v11986_v15 = vmin.f32 %v17894_v2, %v17895_v43  ;;  %17899 = vst [vmem:[#allocation247_spill] sm:$0xff] %v11990_v41  ;;  %v11998_v10 = vmin.f32 %v17904_v60, %v17903_v39  ;;  %v17906_v22 = vld [vmem:[#allocation202_spill] sm:$0xff]  ;;  %v17907_v28 = vld [vmem:[#allocation92_spill] sm:$0xff] }
 0x27f   :  { %17902 = vst [vmem:[#allocation115_spill] sm:$0xff] %v11994_v16  ;;  %v12002_v37 = vmin.f32 %v17907_v28, %v17906_v22  ;;  %v17909_v14 = vld [vmem:[#allocation87_spill] sm:$0xff]  ;;  %v17911_v2 = vld [vmem:[#allocation113_spill] sm:$0xff]  ;;  %v17916_v39 = vld [vmem:[#allocation66_spill] sm:$0xff] }
 0x280   :  { %17896 = vst [vmem:[#allocation59_spill] sm:$0xff] %v11986_v15  ;;  %17905 = vst [vmem:[#allocation160_spill] sm:$0xff] %v11998_v10  ;;  %v12006_v43 = vmin.f32 %v17909_v14, %v11568_v52  ;;  %v17912_v15 = vrot.slane %v17911_v2, 2  ;;  %v17914_v30 = vld [vmem:[#allocation23_spill] sm:$0xff]  ;;  %v12019_v31 = vmin.f32 %v17916_v39, %v11576_v0  ;;  %v17918_v60 = vld [vmem:[#allocation33_spill] sm:$0xff] }
 0x281   :  { %17908 = vst [vmem:[#allocation19_spill] sm:$0xff] %v12002_v37  ;;  %v12015_v48 = vmin.f32 %v17914_v30, %v11571_v49  ;;  %v17919_v22 = vld [vmem:[#allocation36_spill] sm:$0xff]  ;;  %v17921_v52 = vld [vmem:[#allocation90_spill] sm:$0xff]  ;;  %v17927_v0 = vld [vmem:[#allocation49_spill] sm:$0xff] }
 0x282   :  { %17910 = vst [vmem:[#allocation248_spill] sm:$0xff] %v12006_v43  ;;  %v12011_v18 = vmin.f32 %v17911_v2, %v17912_v15  ;;  %17917 = vst [vmem:[#allocation63_spill] sm:$0xff] %v12019_v31  ;;  %v12023_v28 = vmin.f32 %v17919_v22, %v17918_v60  ;;  %v12027_v14 = vmin.f32 %v17921_v52, %v11584_v53  ;;  %v17923_v43 = vld [vmem:[#allocation106_spill] sm:$0xff]  ;;  %v17925_v2 = vld [vmem:[#allocation137_spill] sm:$0xff] }
 0x283   :  { %17915 = vst [vmem:[#allocation132_spill] sm:$0xff] %v12015_v48  ;;  %v12031_v15 = vmin.f32 %v17923_v43, %v11589_v4  ;;  %v12040_v30 = vmin.f32 %v17927_v0, %v11594_v55  ;;  %v17929_v39 = vld [vmem:[#allocation196_spill] sm:$0xff]  ;;  %v17930_v60 = vld [vmem:[#allocation227_spill] sm:$0xff]  ;;  %v17936_v4 = vld [vmem:[#allocation21_spill] sm:$0xff] }
 0x284   :  { %17913 = vst [vmem:[#allocation210_spill] sm:$0xff] %v12011_v18  ;;  %17920 = vst [vmem:[#allocation116_spill] sm:$0xff] %v12023_v28  ;;  %v17926_v18 = vrot.slane %v17925_v2, 2  ;;  %v12044_v22 = vmin.f32 %v17930_v60, %v17929_v39  ;;  %v17932_v28 = vld [vmem:[#allocation26_spill] sm:$0xff]  ;;  %v17933_v53 = vld [vmem:[#allocation67_spill] sm:$0xff] }
 0x285   :  { %17922 = vst [vmem:[#allocation186_spill] sm:$0xff] %v12027_v14  ;;  %17924 = vst [vmem:[#allocation216_spill] sm:$0xff] %v12031_v15  ;;  %v12048_v52 = vmin.f32 %v17933_v53, %v17932_v28  ;;  %v17935_v14 = vld [vmem:[#allocation204_spill] sm:$0xff]  ;;  %v17938_v15 = vld [vmem:[#allocation93_spill] sm:$0xff] }
 0x286   :  { %v12036_v49 = vmin.f32 %v17925_v2, %v17926_v18  ;;  %17928 = vst [vmem:[#allocation193_spill] sm:$0xff] %v12040_v30  ;;  %17931 = vst [vmem:[#allocation39_spill] sm:$0xff] %v12044_v22  ;;  %v12052_v43 = vmin.f32 %v17936_v4, %v17935_v14  ;;  %v12056_v18 = vmin.f32 %v17938_v15, %v11613_v3  ;;  %v17940_v2 = vrot.slane %v17766_v21, 2  ;;  %v17942_v0 = vld [vmem:[#allocation69_spill] sm:$0xff]  ;;  %v17943_v39 = vld [vmem:[#allocation24_spill] sm:$0xff] }
 0x287   :  { %17934 = vst [vmem:[#allocation187_spill] sm:$0xff] %v12048_v52  ;;  %v12065_v60 = vmin.f32 %v17943_v39, %v17942_v0  ;;  %v17945_v22 = vld [vmem:[#allocation47_spill] sm:$0xff]  ;;  %v17946_v28 = vld [vmem:[#allocation68_spill] sm:$0xff]  ;;  %v17948_v14 = vld [vmem:[#allocation118_spill] sm:$0xff] }
 0x288   :  { %17937 = vst [vmem:[#allocation220_spill] sm:$0xff] %v12052_v43  ;;  %17939 = vst [vmem:[#allocation117_spill] sm:$0xff] %v12056_v18  ;;  %v12061_v55 = vmin.f32 %v17766_v21, %v17940_v2  ;;  %v12069_v53 = vmin.f32 %v17946_v28, %v17945_v22  ;;  %v12073_v4 = vmin.f32 %v17948_v14, %v11626_v32  ;;  %v17950_v3 = vld [vmem:[#allocation70_spill] sm:$0xff]  ;;  %v17952_v18 = vld [vmem:[#allocation37_spill] sm:$0xff] }
 0x289   :  { %17944 = vst [vmem:[#allocation189_spill] sm:$0xff] %v12065_v60  ;;  %v12077_v15 = vmin.f32 %v17950_v3, %v11629_v63  ;;  %v12081_v21 = vmin.f32 %v17952_v18, %v11636_v20  ;;  %v17954_v2 = vld [vmem:[#allocation155_spill] sm:$0xff]  ;;  %v17957_v39 = vld [vmem:[#allocation145_spill] sm:$0xff]  ;;  %v17958_v22 = vld [vmem:[#allocation18_spill] sm:$0xff] }
 0x28a   :  { %17941 = vst [vmem:[#allocation80_spill] sm:$0xff] %v12061_v55  ;;  %17947 = vst [vmem:[#allocation126_spill] sm:$0xff] %v12069_v53  ;;  %v17955_v55 = vrot.slane %v17954_v2, 2  ;;  %v12090_v28 = vmin.f32 %v17958_v22, %v17957_v39  ;;  %v17960_v53 = vld [vmem:[#allocation28_spill] sm:$0xff]  ;;  %v17967_v20 = vld [vmem:[#allocation25_spill] sm:$0xff] }
 0x28b   :  { %17949 = vst [vmem:[#allocation61_spill] sm:$0xff] %v12073_v4  ;;  %17951 = vst [vmem:[#allocation142_spill] sm:$0xff] %v12077_v15  ;;  %v17961_v32 = vld [vmem:[#allocation96_spill] sm:$0xff] }
 0x28c   :  { %17953 = vst [vmem:[#allocation20_spill] sm:$0xff] %v12081_v21  ;;  %v12086_v0 = vmin.f32 %v17954_v2, %v17955_v55  ;;  %17959 = vst [vmem:[#allocation202_spill] sm:$0xff] %v12090_v28  ;;  %v12094_v14 = vmin.f32 %v17961_v32, %v17960_v53  ;;  %v17963_v4 = vld [vmem:[#allocation44_spill] sm:$0xff]  ;;  %v17969_v21 = vld [vmem:[#allocation71_spill] sm:$0xff] }
 0x28d   :  { %v17964_v63 = vld [vmem:[#allocation40_spill] sm:$0xff]  ;;  %v12106_v55 = vmin.f32 %v17969_v21, %v11658_v27  ;;  %v17971_v2 = vld [vmem:[#allocation161_spill] sm:$0xff]  ;;  %v17974_v53 = vld [vmem:[#allocation94_spill] sm:$0xff] }
 0x28e   :  { %17956 = vst [vmem:[#allocation62_spill] sm:$0xff] %v12086_v0  ;;  %17962 = vst [vmem:[#allocation92_spill] sm:$0xff] %v12094_v14  ;;  %v12098_v3 = vmin.f32 %v17964_v63, %v17963_v4  ;;  %v17966_v15 = vld [vmem:[#allocation16_spill] sm:$0xff]  ;;  %v17972_v0 = vrot.slane %v17971_v2, 2  ;;  %v12115_v22 = vmin.f32 %v17974_v53, %v11662_v19  ;;  %v17976_v4 = vld [vmem:[#allocation123_spill] sm:$0xff] }
 0x28f   :  { %v12102_v18 = vmin.f32 %v17967_v20, %v17966_v15  ;;  %17970 = vst [vmem:[#allocation23_spill] sm:$0xff] %v12106_v55  ;;  %v12119_v32 = vmin.f32 %v17976_v4, %v11668_v61  ;;  %v12123_v15 = vmin.f32 %v17782_v54, %v11674_v35  ;;  %v17979_v27 = vld [vmem:[#allocation41_spill] sm:$0xff]  ;;  %v17981_v63 = vld [vmem:[#allocation56_spill] sm:$0xff]  ;;  %v17982_v20 = vld [vmem:[#allocation75_spill] sm:$0xff] }
 0x290   :  { %17965 = vst [vmem:[#allocation87_spill] sm:$0xff] %v12098_v3  ;;  %v12111_v39 = vmin.f32 %v17971_v2, %v17972_v0  ;;  %17975 = vst [vmem:[#allocation33_spill] sm:$0xff] %v12115_v22  ;;  %v12127_v21 = vmin.f32 %v17979_v27, %v11677_v46  ;;  %v12131_v0 = vmin.f32 %v17982_v20, %v17981_v63  ;;  %v17984_v2 = vld [vmem:[#allocation169_spill] sm:$0xff]  ;;  %v17986_v61 = vld [vmem:[#allocation86_spill] sm:$0xff] }
 0x291   :  { %17968 = vst [vmem:[#allocation113_spill] sm:$0xff] %v12102_v18  ;;  %17977 = vst [vmem:[#allocation36_spill] sm:$0xff] %v12119_v32  ;;  %v12140_v53 = vmin.f32 %v17986_v61, %v11686_v38  ;;  %v17988_v4 = vld [vmem:[#allocation224_spill] sm:$0xff]  ;;  %v17989_v35 = vld [vmem:[#allocation81_spill] sm:$0xff] }
 0x292   :  { %17973 = vst [vmem:[#allocation66_spill] sm:$0xff] %v12111_v39  ;;  %17978 = vst [vmem:[#allocation90_spill] sm:$0xff] %v12123_v15  ;;  %v17985_v39 = vrot.slane %v17984_v2, 2  ;;  %v12144_v54 = vmin.f32 %v17989_v35, %v17988_v4  ;;  %v17991_v15 = vld [vmem:[#allocation31_spill] sm:$0xff]  ;;  %v17992_v46 = vld [vmem:[#allocation72_spill] sm:$0xff] }
 0x293   :  { %17980 = vst [vmem:[#allocation106_spill] sm:$0xff] %v12127_v21  ;;  %17983 = vst [vmem:[#allocation137_spill] sm:$0xff] %v12131_v0  ;;  %v12148_v27 = vmin.f32 %v17992_v46, %v17991_v15  ;;  %v17994_v21 = vld [vmem:[#allocation215_spill] sm:$0xff]  ;;  %v17995_v63 = vld [vmem:[#allocation34_spill] sm:$0xff] }
 0x294   :  { %v12136_v19 = vmin.f32 %v17984_v2, %v17985_v39  ;;  %17987 = vst [vmem:[#allocation49_spill] sm:$0xff] %v12140_v53  ;;  %17990 = vst [vmem:[#allocation196_spill] sm:$0xff] %v12144_v54  ;;  %v12152_v20 = vmin.f32 %v17995_v63, %v17994_v21  ;;  %v17997_v0 = vld [vmem:[#allocation124_spill] sm:$0xff]  ;;  %v17999_v2 = vrot.slane %v17789_v29, 2  ;;  %v18001_v61 = vld [vmem:[#allocation206_spill] sm:$0xff] }
 0x295   :  { %17993 = vst [vmem:[#allocation227_spill] sm:$0xff] %v12148_v27  ;;  %v12156_v39 = vmin.f32 %v17997_v0, %v11705_v11  ;;  %v18002_v4 = vld [vmem:[#allocation140_spill] sm:$0xff]  ;;  %v18004_v54 = vld [vmem:[#allocation225_spill] sm:$0xff]  ;;  %v18005_v15 = vld [vmem:[#allocation42_spill] sm:$0xff] }
 0x296   :  { %17996 = vst [vmem:[#allocation26_spill] sm:$0xff] %v12152_v20  ;;  %v12161_v38 = vmin.f32 %v17789_v29, %v17999_v2  ;;  %v12165_v35 = vmin.f32 %v18002_v4, %v18001_v61  ;;  %v12169_v46 = vmin.f32 %v18005_v15, %v18004_v54  ;;  %v18007_v21 = vld [vmem:[#allocation22_spill] sm:$0xff]  ;;  %v18009_v11 = vld [vmem:[#allocation73_spill] sm:$0xff]  ;;  %v18016_v54 = vld [vmem:[#allocation139_spill] sm:$0xff] }
 0x297   :  { %17998 = vst [vmem:[#allocation67_spill] sm:$0xff] %v12156_v39  ;;  %v12173_v63 = vmin.f32 %v18007_v21, %v11718_v36  ;;  %v12177_v0 = vmin.f32 %v18009_v11, %v11721_v47  ;;  %v18011_v39 = vld [vmem:[#allocation64_spill] sm:$0xff]  ;;  %v18013_v2 = vld [vmem:[#allocation182_spill] sm:$0xff]  ;;  %v12190_v4 = vmin.f32 %v18016_v54, %v11734_v56 }
 0x298   :  { %18000 = vst [vmem:[#allocation204_spill] sm:$0xff] %v12161_v38  ;;  %18003 = vst [vmem:[#allocation21_spill] sm:$0xff] %v12165_v35  ;;  %v12181_v29 = vmin.f32 %v18011_v39, %v11728_v6  ;;  %v18014_v38 = vrot.slane %v18013_v2, 2  ;;  %v18018_v36 = vld [vmem:[#allocation120_spill] sm:$0xff]  ;;  %v18020_v21 = vld [vmem:[#allocation226_spill] sm:$0xff] }
 0x299   :  { %18006 = vst [vmem:[#allocation93_spill] sm:$0xff] %v12169_v46  ;;  %18008 = vst [vmem:[#allocation69_spill] sm:$0xff] %v12173_v63  ;;  %v12194_v15 = vmin.f32 %v18018_v36, %v11737_v24  ;;  %v18021_v47 = vld [vmem:[#allocation74_spill] sm:$0xff]  ;;  %v18024_v6 = vld [vmem:[#allocation127_spill] sm:$0xff] }
 0x29a   :  { %18010 = vst [vmem:[#allocation24_spill] sm:$0xff] %v12177_v0  ;;  %18012 = vst [vmem:[#allocation47_spill] sm:$0xff] %v12181_v29  ;;  %v12186_v61 = vmin.f32 %v18013_v2, %v18014_v38  ;;  %v12198_v11 = vmin.f32 %v18021_v47, %v18020_v21  ;;  %v18023_v0 = vld [vmem:[#allocation111_spill] sm:$0xff]  ;;  %v18026_v29 = vld [vmem:[#allocation50_spill] sm:$0xff] }
 0x29b   :  { %18017 = vst [vmem:[#allocation118_spill] sm:$0xff] %v12190_v4  ;;  %18019 = vst [vmem:[#allocation70_spill] sm:$0xff] %v12194_v15  ;;  %v12202_v39 = vmin.f32 %v18024_v6, %v18023_v0  ;;  %v12206_v38 = vmin.f32 %v18026_v29, %v11750_v9  ;;  %v18028_v2 = vld [vmem:[#allocation192_spill] sm:$0xff]  ;;  %v18030_v24 = vld [vmem:[#allocation29_spill] sm:$0xff]  ;;  %v12223_v0 = vmin.f32 %v11341_v50, %v11766_v8 }
 0x29c   :  { %18015 = vst [vmem:[#allocation68_spill] sm:$0xff] %v12186_v61  ;;  %18022 = vst [vmem:[#allocation37_spill] sm:$0xff] %v12198_v11  ;;  %v18029_v61 = vrot.slane %v18028_v2, 2  ;;  %v12215_v54 = vmin.f32 %v18030_v24, %v11754_v33  ;;  %v18032_v36 = vld [vmem:[#allocation76_spill] sm:$0xff]  ;;  %v18035_v9 = vld [vmem:[#allocation130_spill] sm:$0xff] }
 0x29d   :  { %18025 = vst [vmem:[#allocation155_spill] sm:$0xff] %v12202_v39  ;;  %18027 = vst [vmem:[#allocation145_spill] sm:$0xff] %v12206_v38  ;;  %v12219_v21 = vmin.f32 %v18032_v36, %v11760_v1  ;;  %v12227_v29 = vmin.f32 %v18035_v9, %v11769_v40  ;;  %v18037_v47 = vld [vmem:[#allocation102_spill] sm:$0xff]  ;;  %v18039_v6 = vld [vmem:[#allocation168_spill] sm:$0xff] }
 0x29e   :  { %v12211_v56 = vmin.f32 %v18028_v2, %v18029_v61  ;;  %18031 = vst [vmem:[#allocation18_spill] sm:$0xff] %v12215_v54  ;;  %18034 = vst [vmem:[#allocation96_spill] sm:$0xff] %v12223_v0  ;;  %v12231_v61 = vmin.f32 %v18037_v47, %v11774_v44  ;;  %v18040_v2 = vrot.slane %v18039_v6, 2  ;;  %v18041_v1 = vld [vmem:[#allocation52_spill] sm:$0xff]  ;;  %v18043_v50 = vld [vmem:[#allocation77_spill] sm:$0xff] }
 0x29f   :  { %18033 = vst [vmem:[#allocation28_spill] sm:$0xff] %v12219_v21  ;;  %18036 = vst [vmem:[#allocation44_spill] sm:$0xff] %v12227_v29  ;;  %v12240_v24 = vmin.f32 %v18041_v1, %v11778_v34  ;;  %v12244_v8 = vmin.f32 %v18043_v50, %v11781_v12  ;;  %v18045_v36 = vld [vmem:[#allocation159_spill] sm:$0xff]  ;;  %v18048_v29 = vld [vmem:[#allocation85_spill] sm:$0xff] }
 0x2a0   :  { %18038 = vst [vmem:[#allocation40_spill] sm:$0xff] %v12231_v61  ;;  %v12236_v33 = vmin.f32 %v18039_v6, %v18040_v2  ;;  %v18046_v40 = vld [vmem:[#allocation131_spill] sm:$0xff]  ;;  %v18049_v44 = vld [vmem:[#allocation110_spill] sm:$0xff]  ;;  %v18051_v61 = vld [vmem:[#allocation53_spill] sm:$0xff]  ;;  %v18053_v2 = vrot.slane %v17805_v23, 2 }
 0x2a1   :  { %18042 = vst [vmem:[#allocation16_spill] sm:$0xff] %v12240_v24  ;;  %18044 = vst [vmem:[#allocation25_spill] sm:$0xff] %v12244_v8  ;;  %v12248_v9 = vmin.f32 %v18046_v40, %v18045_v36  ;;  %v12252_v47 = vmin.f32 %v18049_v44, %v18048_v29  ;;  %v12256_v6 = vmin.f32 %v18051_v61, %v11797_v7  ;;  %v18055_v1 = vld [vmem:[#allocation134_spill] sm:$0xff]  ;;  %v18056_v12 = vld [vmem:[#allocation156_spill] sm:$0xff] }
 0x2a2   :  { %v12261_v34 = vmin.f32 %v17805_v23, %v18053_v2  ;;  %v12265_v50 = vmin.f32 %v18056_v12, %v18055_v1  ;;  %v18058_v8 = vld [vmem:[#allocation146_spill] sm:$0xff]  ;;  %v18059_v36 = vld [vmem:[#allocation35_spill] sm:$0xff]  ;;  %v18063_v7 = vld [vmem:[#allocation141_spill] sm:$0xff] }
 0x2a3   :  { %18047 = vst [vmem:[#allocation71_spill] sm:$0xff] %v12248_v9  ;;  %18050 = vst [vmem:[#allocation161_spill] sm:$0xff] %v12252_v47  ;;  %v12269_v40 = vmin.f32 %v18059_v36, %v18058_v8  ;;  %v18061_v29 = vld [vmem:[#allocation78_spill] sm:$0xff]  ;;  %v12277_v61 = vmin.f32 %v18063_v7, %v11813_v17  ;;  %v18067_v2 = vld [vmem:[#allocation223_spill] sm:$0xff] }
 0x2a4   :  { %18052 = vst [vmem:[#allocation94_spill] sm:$0xff] %v12256_v6  ;;  %18054 = vst [vmem:[#allocation123_spill] sm:$0xff] %v12261_v34  ;;  %v12273_v44 = vmin.f32 %v18061_v29, %v11810_v13  ;;  %v18065_v6 = vld [vmem:[#allocation107_spill] sm:$0xff]  ;;  %v18068_v34 = vrot.slane %v18067_v2, 2  ;;  %v18072_v13 = vld [vmem:[#allocation57_spill] sm:$0xff] }
 0x2a5   :  { %18057 = vst [vmem:[#allocation41_spill] sm:$0xff] %v12265_v50  ;;  %18060 = vst [vmem:[#allocation56_spill] sm:$0xff] %v12269_v40  ;;  %v12281_v23 = vmin.f32 %v18065_v6, %v11820_v26  ;;  %v18070_v8 = vld [vmem:[#allocation151_spill] sm:$0xff]  ;;  %v12294_v36 = vmin.f32 %v18072_v13, %v11829_v42  ;;  %v18074_v17 = vld [vmem:[#allocation60_spill] sm:$0xff] }
 0x2a6   :  { %18062 = vst [vmem:[#allocation75_spill] sm:$0xff] %v12273_v44  ;;  %18064 = vst [vmem:[#allocation169_spill] sm:$0xff] %v12277_v61  ;;  %v12286_v1 = vmin.f32 %v18067_v2, %v18068_v34  ;;  %v12290_v12 = vmin.f32 %v18070_v8, %v11826_v58  ;;  %v12298_v29 = vmin.f32 %v18074_v17, %v11834_v62  ;;  %v18076_v26 = vld [vmem:[#allocation162_spill] sm:$0xff]  ;;  %v18078_v7 = vld [vmem:[#allocation119_spill] sm:$0xff] }
 0x2a7   :  { %18066 = vst [vmem:[#allocation86_spill] sm:$0xff] %v12281_v23  ;;  %18073 = vst [vmem:[#allocation31_spill] sm:$0xff] %v12294_v36  ;;  %v12302_v6 = vmin.f32 %v18076_v26, %v11837_v45  ;;  %v12306_v34 = vmin.f32 %v18078_v7, %v11842_v57  ;;  %v18080_v2 = vld [vmem:[#allocation228_spill] sm:$0xff]  ;;  %v18083_v8 = vld [vmem:[#allocation125_spill] sm:$0xff] }
 0x2a8   :  { %18069 = vst [vmem:[#allocation224_spill] sm:$0xff] %v12286_v1  ;;  %18071 = vst [vmem:[#allocation81_spill] sm:$0xff] %v12290_v12  ;;  %v18081_v1 = vrot.slane %v18080_v2, 2  ;;  %v18084_v42 = vld [vmem:[#allocation89_spill] sm:$0xff]  ;;  %v18086_v36 = vld [vmem:[#allocation128_spill] sm:$0xff] }
 0x2a9   :  { %18075 = vst [vmem:[#allocation72_spill] sm:$0xff] %v12298_v29  ;;  %18077 = vst [vmem:[#allocation215_spill] sm:$0xff] %v12302_v6  ;;  %v12315_v13 = vmin.f32 %v18084_v42, %v18083_v8  ;;  %v18087_v62 = vld [vmem:[#allocation91_spill] sm:$0xff]  ;;  %v18089_v29 = vld [vmem:[#allocation144_spill] sm:$0xff] }
 0x2aa   :  { %18079 = vst [vmem:[#allocation34_spill] sm:$0xff] %v12306_v34  ;;  %v12311_v58 = vmin.f32 %v18080_v2, %v18081_v1  ;;  %v12319_v17 = vmin.f32 %v18087_v62, %v18086_v36  ;;  %v18090_v45 = vld [vmem:[#allocation157_spill] sm:$0xff]  ;;  %v18092_v6 = vld [vmem:[#allocation251_spill] sm:$0xff]  ;;  %v18093_v57 = vld [vmem:[#allocation98_spill] sm:$0xff] }
 0x2ab   :  { %18085 = vst [vmem:[#allocation206_spill] sm:$0xff] %v12315_v13  ;;  %v12323_v26 = vmin.f32 %v18090_v45, %v18089_v29  ;;  %v12327_v7 = vmin.f32 %v18093_v57, %v18092_v6  ;;  %v18095_v34 = vld [vmem:[#allocation252_spill] sm:$0xff]  ;;  %v18096_v12 = vld [vmem:[#allocation171_spill] sm:$0xff]  ;;  %v18101_v42 = vld [vmem:[#allocation253_spill] sm:$0xff] }
 0x2ac   :  { %18082 = vst [vmem:[#allocation124_spill] sm:$0xff] %v12311_v58  ;;  %18088 = vst [vmem:[#allocation140_spill] sm:$0xff] %v12319_v17  ;;  %v12331_v1 = vmin.f32 %v18096_v12, %v18095_v34  ;;  %v18098_v2 = vld [vmem:[#allocation167_spill] sm:$0xff]  ;;  %v18102_v36 = vld [vmem:[#allocation165_spill] sm:$0xff] }
 0x2ad   :  { %18091 = vst [vmem:[#allocation225_spill] sm:$0xff] %v12323_v26  ;;  %18094 = vst [vmem:[#allocation42_spill] sm:$0xff] %v12327_v7  ;;  %v18099_v58 = vrot.slane %v18098_v2, 2  ;;  %v12340_v62 = vmin.f32 %v18102_v36, %v18101_v42  ;;  %v18104_v29 = vld [vmem:[#allocation99_spill] sm:$0xff]  ;;  %v18106_v26 = vld [vmem:[#allocation254_spill] sm:$0xff] }
 0x2ae   :  { %18097 = vst [vmem:[#allocation22_spill] sm:$0xff] %v12331_v1  ;;  %v12344_v45 = vmin.f32 %v18104_v29, %v11873_v5  ;;  %v18107_v6 = vld [vmem:[#allocation173_spill] sm:$0xff]  ;;  %v18109_v12 = vld [vmem:[#allocation138_spill] sm:$0xff]  ;;  %v18117_v5 = vld [vmem:[#allocation147_spill] sm:$0xff] }
 0x2af   :  { %v12336_v8 = vmin.f32 %v18098_v2, %v18099_v58  ;;  %18103 = vst [vmem:[#allocation64_spill] sm:$0xff] %v12340_v62  ;;  %v12348_v57 = vmin.f32 %v18107_v6, %v18106_v26  ;;  %v12352_v34 = vmin.f32 %v18109_v12, %v11893_v25  ;;  %v18111_v1 = vld [vmem:[#allocation249_spill] sm:$0xff]  ;;  %v18112_v7 = vld [vmem:[#allocation246_spill] sm:$0xff]  ;;  %v3760_v36 = vrot.slane %v18117_v5, 4  ;;  %v18119_v26 = vld [vmem:[#allocation148_spill] sm:$0xff] }
 0x2b0   :  { %18105 = vst [vmem:[#allocation182_spill] sm:$0xff] %v12344_v45  ;;  %v12356_v58 = vmin.f32 %v18112_v7, %v18111_v1  ;;  %v18114_v2 = vld [vmem:[#allocation205_spill] sm:$0xff]  ;;  %v3763_v6 = vrot.slane %v18119_v26, 4  ;;  %v18121_v25 = vld [vmem:[#allocation250_spill] sm:$0xff] }
 0x2b1   :  { %18100 = vst [vmem:[#allocation73_spill] sm:$0xff] %v12336_v8  ;;  %18108 = vst [vmem:[#allocation139_spill] sm:$0xff] %v12348_v57  ;;  %v18115_v8 = vrot.slane %v18114_v2, 2  ;;  %v18118_v29 = vld [vmem:[#allocation229_spill] sm:$0xff]  ;;  %v3767_v12 = vrot.slane %v18121_v25, 4  ;;  %v18124_v1 = vld [vmem:[#allocation54_spill] sm:$0xff] }
 0x2b2   :  { %18110 = vst [vmem:[#allocation120_spill] sm:$0xff] %v12352_v34  ;;  %18113 = vst [vmem:[#allocation226_spill] sm:$0xff] %v12356_v58  ;;  %v3761_v45 = vrot.slane %v18118_v29, 4  ;;  %v18120_v57 = vld [vmem:[#allocation129_spill] sm:$0xff]  ;;  %v3771_v58 = vrot.slane %v18124_v1, 4 }
 0x2b3   :  { %v12361_v42 = vmin.f32 %v18114_v2, %v18115_v8  ;;  %v3765_v62 = vrot.slane %v18120_v57, 4  ;;  %v18122_v34 = vld [vmem:[#allocation149_spill] sm:$0xff]  ;;  %v18125_v8 = vld [vmem:[#allocation232_spill] sm:$0xff] }
 0x2b4   :  { %v3769_v17 = vrot.slane %v18122_v34, 4  ;;  %v12370_v7 = vsel %vm3759_vm4, %v3760_v36, %v3761_v45  ;;  %v3772_v2 = vrot.slane %v18125_v8, 4  ;;  %v12376_v5 = vsel %vm3759_vm4, %v3761_v45, %v3763_v6  ;;  %v18133_v8 = vld [vmem:[#allocation108_spill] sm:$0xff]  ;;  %v18134_v25 = vld [vmem:[#allocation17_spill] sm:$0xff] }
 0x2b5   :  { %18116 = vst [vmem:[#allocation74_spill] sm:$0xff] %v12361_v42  ;;  %18123 = vst [vmem:[#allocation111_spill] sm:$0xff] %v12370_v7  ;;  %v18126_v42 = vld [vmem:[#allocation65_spill] sm:$0xff]  ;;  %v12379_v26 = vsel %vm3759_vm4, %v3763_v6, %v3765_v62  ;;  %v12382_v57 = vsel %vm3759_vm4, %v3765_v62, %v3767_v12  ;;  %v3778_v45 = vrot.slane %v18134_v25, 4  ;;  %v3782_v6 = vrot.slane %v11940_v59, 4 }
 0x2b6   :  { %v3774_v13 = vrot.slane %v18126_v42, 4  ;;  %18127 = vst [vmem:[#allocation127_spill] sm:$0xff] %v12376_v5  ;;  %18128 = vst [vmem:[#allocation50_spill] sm:$0xff] %v12379_v26  ;;  %v12385_v34 = vsel %vm3759_vm4, %v3767_v12, %v3769_v17  ;;  %v12388_v36 = vsel %vm3759_vm4, %v3771_v58, %v3772_v2  ;;  %v3776_v42 = vrot.slane %v18133_v8, 4  ;;  %v18135_v29 = vld [vmem:[#allocation153_spill] sm:$0xff]  ;;  %v18136_v26 = vld [vmem:[#allocation179_spill] sm:$0xff] }
 0x2b7   :  { %18129 = vst [vmem:[#allocation192_spill] sm:$0xff] %v12382_v57  ;;  %18130 = vst [vmem:[#allocation29_spill] sm:$0xff] %v12385_v34  ;;  %v3780_v5 = vrot.slane %v18135_v29, 4  ;;  %v3783_v62 = vrot.slane %v18136_v26, 4  ;;  %v18137_v57 = vld [vmem:[#allocation58_spill] sm:$0xff]  ;;  %v18287_v34 = vld [vmem:[#allocation121_spill] sm:$0xff] }
 0x2b8   :  { %18131 = vst [vmem:[#allocation76_spill] sm:$0xff] %v12388_v36  ;;  %v12391_v1 = vsel %vm3759_vm4, %v3772_v2, %v3774_v13  ;;  %v3785_v7 = vrot.slane %v18137_v57, 4  ;;  %v12400_v17 = vsel %vm3759_vm4, %v3774_v13, %v3776_v42  ;;  %v12403_v58 = vsel %vm3759_vm4, %v3776_v42, %v3778_v45  ;;  %v18139_v12 = vld [vmem:[#allocation154_spill] sm:$0xff]  ;;  %v18144_v57 = vld [vmem:[#allocation183_spill] sm:$0xff] }
 0x2b9   :  { %18132 = vst [vmem:[#allocation130_spill] sm:$0xff] %v12391_v1  ;;  %18138 = vst [vmem:[#allocation102_spill] sm:$0xff] %v12403_v58  ;;  %v3787_v2 = vrot.slane %v18139_v12, 4  ;;  %v18140_v1 = vld [vmem:[#allocation32_spill] sm:$0xff]  ;;  %v12408_v25 = vsel %vm3759_vm4, %v3778_v45, %v3780_v5  ;;  %v12411_v29 = vsel %vm3759_vm4, %v3782_v6, %v3783_v62  ;;  %v3791_v59 = vrot.slane %v18144_v57, 4 }
 0x2ba   :  { %v3789_v8 = vrot.slane %v18140_v1, 4  ;;  %18141 = vst [vmem:[#allocation168_spill] sm:$0xff] %v12408_v25  ;;  %18142 = vst [vmem:[#allocation52_spill] sm:$0xff] %v12411_v29  ;;  %v12414_v26 = vsel %vm3759_vm4, %v3783_v62, %v3785_v7  ;;  %v3793_v12 = vrot.slane %v11965_v51, 4  ;;  %v18146_v1 = vld [vmem:[#allocation121_spill] sm:$0xff]  ;;  %v18148_v45 = vld [vmem:[#allocation184_spill] sm:$0xff] }
 0x2bb   :  { %18143 = vst [vmem:[#allocation77_spill] sm:$0xff] %v12414_v26  ;;  %v12418_v13 = vsel %vm3759_vm4, %v3785_v7, %v3787_v2  ;;  %v3794_v58 = vrot.slane %v18146_v1, 4  ;;  %v3796_v6 = vrot.slane %v18148_v45, 4  ;;  %v18149_v29 = vld [vmem:[#allocation97_spill] sm:$0xff]  ;;  %v18150_v26 = vld [vmem:[#allocation83_spill] sm:$0xff]  ;;  %v3805_v51 = vrot.slane %v11994_v16, 4 }
 0x2bc   :  { %18145 = vst [vmem:[#allocation159_spill] sm:$0xff] %v12418_v13  ;;  %v12421_v42 = vsel %vm3759_vm4, %v3787_v2, %v3789_v8  ;;  %v12426_v5 = vsel %vm3759_vm4, %v3789_v8, %v3791_v59  ;;  %v3798_v62 = vrot.slane %v18149_v29, 4  ;;  %v3800_v25 = vrot.slane %v18150_v26, 4  ;;  %v18152_v7 = vld [vmem:[#allocation59_spill] sm:$0xff]  ;;  %v18156_v16 = vld [vmem:[#allocation248_spill] sm:$0xff] }
 0x2bd   :  { %18147 = vst [vmem:[#allocation131_spill] sm:$0xff] %v12426_v5  ;;  %v12432_v57 = vsel %vm3759_vm4, %v3793_v12, %v3794_v58  ;;  %v3802_v13 = vrot.slane %v18152_v7, 4  ;;  %v3804_v2 = vrot.slane %v11990_v41, 4  ;;  %v12438_v1 = vsel %vm3759_vm4, %v3794_v58, %v3796_v6  ;;  %v18304_v5 = vld [vmem:[#allocation63_spill] sm:$0xff] }
 0x2be   :  { %18151 = vst [vmem:[#allocation85_spill] sm:$0xff] %v12432_v57  ;;  %v12441_v59 = vsel %vm3759_vm4, %v3796_v6, %v3798_v62  ;;  %v12444_v8 = vsel %vm3759_vm4, %v3798_v62, %v3800_v25  ;;  %v3807_v26 = vrot.slane %v11998_v10, 4  ;;  %v3809_v41 = vrot.slane %v12002_v37, 4  ;;  %v18157_v6 = vld [vmem:[#allocation210_spill] sm:$0xff] }
 0x2bf   :  { %18153 = vst [vmem:[#allocation110_spill] sm:$0xff] %v12444_v8  ;;  %v12448_v12 = vsel %vm3759_vm4, %v3800_v25, %v3802_v13  ;;  %v12451_v7 = vsel %vm3759_vm4, %v3804_v2, %v3805_v51  ;;  %v3811_v29 = vrot.slane %v18156_v16, 4  ;;  %v3813_v45 = vrot.slane %v18157_v6, 4  ;;  %v18159_v13 = vld [vmem:[#allocation116_spill] sm:$0xff]  ;;  %v18160_v37 = vld [vmem:[#allocation186_spill] sm:$0xff] }
 0x2c0   :  { %18154 = vst [vmem:[#allocation53_spill] sm:$0xff] %v12448_v12  ;;  %18155 = vst [vmem:[#allocation134_spill] sm:$0xff] %v12451_v7  ;;  %v12456_v58 = vsel %vm3759_vm4, %v3805_v51, %v3807_v26  ;;  %v3815_v62 = vrot.slane %v12015_v48, 4  ;;  %v3816_v8 = vrot.slane %v12019_v31, 4  ;;  %v12462_v10 = vsel %vm3759_vm4, %v3807_v26, %v3809_v41  ;;  %v18163_v6 = vld [vmem:[#allocation216_spill] sm:$0xff]  ;;  %v18312_v12 = vld [vmem:[#allocation39_spill] sm:$0xff] }
 0x2c1   :  { %v12465_v25 = vsel %vm3759_vm4, %v3809_v41, %v3811_v29  ;;  %v3818_v2 = vrot.slane %v18159_v13, 4  ;;  %v3820_v7 = vrot.slane %v18160_v37, 4  ;;  %v12470_v16 = vsel %vm3759_vm4, %v3811_v29, %v3813_v45 }
 0x2c2   :  { %18158 = vst [vmem:[#allocation156_spill] sm:$0xff] %v12465_v25  ;;  %18161 = vst [vmem:[#allocation146_spill] sm:$0xff] %v12470_v16  ;;  %v12473_v51 = vsel %vm3759_vm4, %v3815_v62, %v3816_v8  ;;  %v3822_v48 = vrot.slane %v18163_v6, 4  ;;  %v3824_v31 = vrot.slane %v12036_v49, 4  ;;  %v3826_v13 = vrot.slane %v12040_v30, 4  ;;  %v18166_v25 = vld [vmem:[#allocation39_spill] sm:$0xff] }
 0x2c3   :  { %18162 = vst [vmem:[#allocation35_spill] sm:$0xff] %v12473_v51  ;;  %v12478_v26 = vsel %vm3759_vm4, %v3816_v8, %v3818_v2  ;;  %v12481_v41 = vsel %vm3759_vm4, %v3818_v2, %v3820_v7  ;;  %v3827_v37 = vrot.slane %v18166_v25, 4  ;;  %v3829_v62 = vrot.slane %v12048_v52, 4  ;;  %v18169_v6 = vld [vmem:[#allocation117_spill] sm:$0xff]  ;;  %v18319_v16 = vld [vmem:[#allocation126_spill] sm:$0xff] }
 0x2c4   :  { %18164 = vst [vmem:[#allocation78_spill] sm:$0xff] %v12478_v26  ;;  %18165 = vst [vmem:[#allocation141_spill] sm:$0xff] %v12481_v41  ;;  %v12486_v29 = vsel %vm3759_vm4, %v3820_v7, %v3822_v48  ;;  %v12489_v45 = vsel %vm3759_vm4, %v3822_v48, %v3824_v31  ;;  %v3831_v49 = vrot.slane %v12052_v43, 4  ;;  %v3833_v2 = vrot.slane %v18169_v6, 4  ;;  %v18170_v41 = vld [vmem:[#allocation80_spill] sm:$0xff]  ;;  %v18172_v48 = vld [vmem:[#allocation126_spill] sm:$0xff] }
 0x2c5   :  { %18167 = vst [vmem:[#allocation107_spill] sm:$0xff] %v12489_v45  ;;  %v12494_v8 = vsel %vm3759_vm4, %v3826_v13, %v3827_v37  ;;  %v3835_v26 = vrot.slane %v18170_v41, 4  ;;  %v3837_v30 = vrot.slane %v12065_v60, 4  ;;  %v12500_v25 = vsel %vm3759_vm4, %v3827_v37, %v3829_v62  ;;  %v18173_v52 = vld [vmem:[#allocation61_spill] sm:$0xff]  ;;  %v18175_v6 = vld [vmem:[#allocation142_spill] sm:$0xff] }
 0x2c6   :  { %18168 = vst [vmem:[#allocation223_spill] sm:$0xff] %v12494_v8  ;;  %v12503_v7 = vsel %vm3759_vm4, %v3829_v62, %v3831_v49  ;;  %v3838_v31 = vrot.slane %v18172_v48, 4  ;;  %v3840_v45 = vrot.slane %v18173_v52, 4  ;;  %v12508_v43 = vsel %vm3759_vm4, %v3831_v49, %v3833_v2  ;;  %v18176_v8 = vld [vmem:[#allocation20_spill] sm:$0xff] }
 0x2c7   :  { %18171 = vst [vmem:[#allocation151_spill] sm:$0xff] %v12503_v7  ;;  %v12511_v13 = vsel %vm3759_vm4, %v3833_v2, %v3835_v26  ;;  %v3842_v41 = vrot.slane %v18175_v6, 4  ;;  %v3844_v60 = vrot.slane %v18176_v8, 4  ;;  %v18179_v7 = vld [vmem:[#allocation62_spill] sm:$0xff]  ;;  %v3848_v52 = vrot.slane %v12090_v28, 4 }
 0x2c8   :  { %18174 = vst [vmem:[#allocation57_spill] sm:$0xff] %v12511_v13  ;;  %v12516_v37 = vsel %vm3759_vm4, %v3837_v30, %v3838_v31  ;;  %v12519_v62 = vsel %vm3759_vm4, %v3838_v31, %v3840_v45  ;;  %v3846_v48 = vrot.slane %v18179_v7, 4  ;;  %v3849_v2 = vrot.slane %v12094_v14, 4  ;;  %v18181_v7 = vld [vmem:[#allocation66_spill] sm:$0xff]  ;;  %v18334_v13 = vld [vmem:[#allocation36_spill] sm:$0xff] }
 0x2c9   :  { %18177 = vst [vmem:[#allocation60_spill] sm:$0xff] %v12516_v37  ;;  %18178 = vst [vmem:[#allocation162_spill] sm:$0xff] %v12519_v62  ;;  %v12524_v49 = vsel %vm3759_vm4, %v3840_v45, %v3842_v41  ;;  %v12527_v26 = vsel %vm3759_vm4, %v3842_v41, %v3844_v60  ;;  %v3851_v8 = vrot.slane %v12098_v3, 4  ;;  %v3853_v31 = vrot.slane %v12102_v18, 4 }
 0x2ca   :  { %v12532_v30 = vsel %vm3759_vm4, %v3844_v60, %v3846_v48  ;;  %v3855_v6 = vrot.slane %v12106_v55, 4  ;;  %v3857_v62 = vrot.slane %v18181_v7, 4  ;;  %v12538_v28 = vsel %vm3759_vm4, %v3848_v52, %v3849_v2  ;;  %v18187_v7 = vld [vmem:[#allocation90_spill] sm:$0xff] }
 0x2cb   :  { %18180 = vst [vmem:[#allocation119_spill] sm:$0xff] %v12532_v30  ;;  %18182 = vst [vmem:[#allocation228_spill] sm:$0xff] %v12538_v28  ;;  %v12541_v45 = vsel %vm3759_vm4, %v3849_v2, %v3851_v8  ;;  %v3859_v41 = vrot.slane %v12115_v22, 4  ;;  %v3860_v14 = vrot.slane %v12119_v32, 4  ;;  %v12546_v3 = vsel %vm3759_vm4, %v3851_v8, %v3853_v31  ;;  %v18189_v2 = vld [vmem:[#allocation106_spill] sm:$0xff]  ;;  %v18341_v30 = vld [vmem:[#allocation196_spill] sm:$0xff] }
 0x2cc   :  { %18183 = vst [vmem:[#allocation125_spill] sm:$0xff] %v12541_v45  ;;  %18184 = vst [vmem:[#allocation89_spill] sm:$0xff] %v12546_v3  ;;  %v12549_v60 = vsel %vm3759_vm4, %v3853_v31, %v3855_v6  ;;  %v12552_v48 = vsel %vm3759_vm4, %v3855_v6, %v3857_v62  ;;  %v3862_v55 = vrot.slane %v18187_v7, 4  ;;  %v3864_v18 = vrot.slane %v18189_v2, 4  ;;  %v18190_v45 = vld [vmem:[#allocation137_spill] sm:$0xff] }
 0x2cd   :  { %18185 = vst [vmem:[#allocation128_spill] sm:$0xff] %v12549_v60  ;;  %18186 = vst [vmem:[#allocation91_spill] sm:$0xff] %v12552_v48  ;;  %v12556_v52 = vsel %vm3759_vm4, %v3859_v41, %v3860_v14  ;;  %v3866_v22 = vrot.slane %v18190_v45, 4  ;;  %v3868_v32 = vrot.slane %v12136_v19, 4  ;;  %v3870_v31 = vrot.slane %v12140_v53, 4  ;;  %v18191_v60 = vld [vmem:[#allocation196_spill] sm:$0xff] }
 0x2ce   :  { %18188 = vst [vmem:[#allocation144_spill] sm:$0xff] %v12556_v52  ;;  %v12562_v8 = vsel %vm3759_vm4, %v3860_v14, %v3862_v55  ;;  %v3871_v3 = vrot.slane %v18191_v60, 4  ;;  %v3873_v6 = vrot.slane %v12148_v27, 4  ;;  %v12568_v62 = vsel %vm3759_vm4, %v3862_v55, %v3864_v18  ;;  %v18195_v60 = vld [vmem:[#allocation67_spill] sm:$0xff]  ;;  %v18196_v27 = vld [vmem:[#allocation204_spill] sm:$0xff]  ;;  %v18346_v48 = vld [vmem:[#allocation93_spill] sm:$0xff] }
 0x2cf   :  { %v12571_v41 = vsel %vm3759_vm4, %v3864_v18, %v3866_v22  ;;  %v12574_v2 = vsel %vm3759_vm4, %v3866_v22, %v3868_v32  ;;  %v3875_v19 = vrot.slane %v12152_v20, 4  ;;  %v3877_v45 = vrot.slane %v18195_v60, 4  ;;  %v18199_v60 = vld [vmem:[#allocation47_spill] sm:$0xff] }
 0x2d0   :  { %18192 = vst [vmem:[#allocation157_spill] sm:$0xff] %v12574_v2  ;;  %v12578_v14 = vsel %vm3759_vm4, %v3870_v31, %v3871_v3  ;;  %v12581_v53 = vsel %vm3759_vm4, %v3871_v3, %v3873_v6  ;;  %v3879_v7 = vrot.slane %v18196_v27, 4  ;;  %v3881_v18 = vrot.slane %v12165_v35, 4  ;;  %v18198_v3 = vld [vmem:[#allocation24_spill] sm:$0xff]  ;;  %v18352_v2 = vld [vmem:[#allocation70_spill] sm:$0xff] }
 0x2d1   :  { %18193 = vst [vmem:[#allocation251_spill] sm:$0xff] %v12578_v14  ;;  %18194 = vst [vmem:[#allocation98_spill] sm:$0xff] %v12581_v53  ;;  %v12586_v55 = vsel %vm3759_vm4, %v3873_v6, %v3875_v19  ;;  %v3882_v22 = vrot.slane %v12169_v46, 4  ;;  %v3884_v32 = vrot.slane %v12173_v63, 4  ;;  %v12592_v20 = vsel %vm3759_vm4, %v3875_v19, %v3877_v45  ;;  %v18201_v35 = vld [vmem:[#allocation68_spill] sm:$0xff] }
 0x2d2   :  { %v12595_v31 = vsel %vm3759_vm4, %v3877_v45, %v3879_v7  ;;  %v3886_v53 = vrot.slane %v18198_v3, 4  ;;  %v3888_v14 = vrot.slane %v18199_v60, 4  ;;  %v3890_v46 = vrot.slane %v18201_v35, 4 }
 0x2d3   :  { %18197 = vst [vmem:[#allocation252_spill] sm:$0xff] %v12595_v31  ;;  %v12600_v27 = vsel %vm3759_vm4, %v3881_v18, %v3882_v22  ;;  %v12603_v6 = vsel %vm3759_vm4, %v3882_v22, %v3884_v32  ;;  %v3892_v63 = vrot.slane %v12190_v4, 4  ;;  %v3893_v7 = vrot.slane %v12194_v15, 4  ;;  %v18359_v31 = vld [vmem:[#allocation28_spill] sm:$0xff] }
 0x2d4   :  { %18200 = vst [vmem:[#allocation171_spill] sm:$0xff] %v12600_v27  ;;  %v12608_v19 = vsel %vm3759_vm4, %v3884_v32, %v3886_v53  ;;  %v12611_v45 = vsel %vm3759_vm4, %v3886_v53, %v3888_v14  ;;  %v3895_v60 = vrot.slane %v12198_v11, 4  ;;  %v12616_v18 = vsel %vm3759_vm4, %v3888_v14, %v3890_v46 }
 0x2d5   :  { %18202 = vst [vmem:[#allocation167_spill] sm:$0xff] %v12616_v18  ;;  %v3897_v22 = vrot.slane %v12202_v39, 4  ;;  %v3899_v3 = vrot.slane %v12206_v38, 4  ;;  %v3901_v35 = vrot.slane %v12211_v56, 4  ;;  %v12622_v4 = vsel %vm3759_vm4, %v3892_v63, %v3893_v7  ;;  %v18209_v39 = vld [vmem:[#allocation40_spill] sm:$0xff]  ;;  %v18368_v18 = vld [vmem:[#allocation25_spill] sm:$0xff] }
 0x2d6   :  { %18203 = vst [vmem:[#allocation253_spill] sm:$0xff] %v12622_v4  ;;  %v12625_v32 = vsel %vm3759_vm4, %v3893_v7, %v3895_v60  ;;  %v3903_v53 = vrot.slane %v12215_v54, 4  ;;  %v3904_v15 = vrot.slane %v12219_v21, 4  ;;  %v3906_v56 = vrot.slane %v12223_v0, 4  ;;  %v18208_v7 = vld [vmem:[#allocation44_spill] sm:$0xff] }
 0x2d7   :  { %v12630_v11 = vsel %vm3759_vm4, %v3895_v60, %v3897_v22  ;;  %v12633_v46 = vsel %vm3759_vm4, %v3897_v22, %v3899_v3  ;;  %v12636_v14 = vsel %vm3759_vm4, %v3899_v3, %v3901_v35  ;;  %v3908_v38 = vrot.slane %v18208_v7, 4 }
 0x2d8   :  { %18204 = vst [vmem:[#allocation165_spill] sm:$0xff] %v12630_v11  ;;  %18205 = vst [vmem:[#allocation99_spill] sm:$0xff] %v12633_v46  ;;  %v12640_v63 = vsel %vm3759_vm4, %v3903_v53, %v3904_v15  ;;  %v3910_v54 = vrot.slane %v18209_v39, 4  ;;  %v3912_v21 = vrot.slane %v12236_v33, 4  ;;  %v12646_v60 = vsel %vm3759_vm4, %v3904_v15, %v3906_v56  ;;  %v18210_v46 = vld [vmem:[#allocation25_spill] sm:$0xff] }
 0x2d9   :  { %18206 = vst [vmem:[#allocation254_spill] sm:$0xff] %v12636_v14  ;;  %18207 = vst [vmem:[#allocation173_spill] sm:$0xff] %v12640_v63  ;;  %v3914_v22 = vrot.slane %v12240_v24, 4  ;;  %v3915_v11 = vrot.slane %v18210_v46, 4  ;;  %v3917_v3 = vrot.slane %v12248_v9, 4  ;;  %v12652_v35 = vsel %vm3759_vm4, %v3906_v56, %v3908_v38  ;;  %v18214_v46 = vld [vmem:[#allocation94_spill] sm:$0xff] }
 0x2da   :  { %v12655_v53 = vsel %vm3759_vm4, %v3908_v38, %v3910_v54  ;;  %v12658_v7 = vsel %vm3759_vm4, %v3910_v54, %v3912_v21  ;;  %v3919_v33 = vrot.slane %v12252_v47, 4  ;;  %v3921_v39 = vrot.slane %v18214_v46, 4  ;;  %v18215_v9 = vld [vmem:[#allocation123_spill] sm:$0xff]  ;;  %v18381_v14 = vld [vmem:[#allocation56_spill] sm:$0xff] }
 0x2db   :  { %18211 = vst [vmem:[#allocation138_spill] sm:$0xff] %v12658_v7  ;;  %v12662_v15 = vsel %vm3759_vm4, %v3914_v22, %v3915_v11  ;;  %v12665_v24 = vsel %vm3759_vm4, %v3915_v11, %v3917_v3  ;;  %v3923_v0 = vrot.slane %v18215_v9, 4  ;;  %v3925_v38 = vrot.slane %v12265_v50, 4  ;;  %v18221_v50 = vld [vmem:[#allocation224_spill] sm:$0xff]  ;;  %v18393_v7 = vld [vmem:[#allocation31_spill] sm:$0xff] }
 0x2dc   :  { %18212 = vst [vmem:[#allocation249_spill] sm:$0xff] %v12662_v15  ;;  %18213 = vst [vmem:[#allocation246_spill] sm:$0xff] %v12665_v24  ;;  %v12670_v56 = vsel %vm3759_vm4, %v3917_v3, %v3919_v33  ;;  %v3926_v54 = vrot.slane %v12269_v40, 4  ;;  %v3928_v21 = vrot.slane %v12273_v44, 4  ;;  %v12676_v47 = vsel %vm3759_vm4, %v3919_v33, %v3921_v39 }
 0x2dd   :  { %18216 = vst [vmem:[#allocation205_spill] sm:$0xff] %v12670_v56  ;;  %18217 = vst [vmem:[#allocation149_spill] sm:$0xff] %v12676_v47  ;;  %v12679_v22 = vsel %vm3759_vm4, %v3921_v39, %v3923_v0  ;;  %v3930_v11 = vrot.slane %v12277_v61, 4  ;;  %v3932_v46 = vrot.slane %v12281_v23, 4  ;;  %v3934_v40 = vrot.slane %v18221_v50, 4  ;;  %v18222_v56 = vld [vmem:[#allocation81_spill] sm:$0xff] }
 0x2de   :  { %18218 = vst [vmem:[#allocation153_spill] sm:$0xff] %v12679_v22  ;;  %v12684_v9 = vsel %vm3759_vm4, %v3925_v38, %v3926_v54  ;;  %v12687_v3 = vsel %vm3759_vm4, %v3926_v54, %v3928_v21  ;;  %v3936_v44 = vrot.slane %v18222_v56, 4  ;;  %v18225_v0 = vld [vmem:[#allocation31_spill] sm:$0xff]  ;;  %v18226_v22 = vld [vmem:[#allocation72_spill] sm:$0xff]  ;;  %v12862_v51 = vmin.f32 %v18312_v12, %v12500_v25  ;;  %v18320_v12 = vld [vmem:[#allocation61_spill] sm:$0xff] }
 0x2df   :  { %18219 = vst [vmem:[#allocation183_spill] sm:$0xff] %v12684_v9  ;;  %18220 = vst [vmem:[#allocation59_spill] sm:$0xff] %v12687_v3  ;;  %v12692_v33 = vsel %vm3759_vm4, %v3928_v21, %v3930_v11  ;;  %v12695_v39 = vsel %vm3759_vm4, %v3930_v11, %v3932_v46  ;;  %v3937_v61 = vrot.slane %v18225_v0, 4  ;;  %v3939_v23 = vrot.slane %v18226_v22, 4  ;;  %v18228_v9 = vld [vmem:[#allocation215_spill] sm:$0xff]  ;;  %v18229_v3 = vld [vmem:[#allocation34_spill] sm:$0xff] }
 0x2e0   :  { %18223 = vst [vmem:[#allocation210_spill] sm:$0xff] %v12692_v33  ;;  %18224 = vst [vmem:[#allocation80_spill] sm:$0xff] %v12695_v39  ;;  %v12700_v38 = vsel %vm3759_vm4, %v3932_v46, %v3934_v40  ;;  %v3941_v54 = vrot.slane %v18228_v9, 4  ;;  %v3943_v47 = vrot.slane %v18229_v3, 4  ;;  %v18230_v50 = vld [vmem:[#allocation124_spill] sm:$0xff]  ;;  %v18233_v11 = vld [vmem:[#allocation206_spill] sm:$0xff]  ;;  %v12882_v25 = vmin.f32 %v18320_v12, %v12524_v49 }
 0x2e1   :  { %18227 = vst [vmem:[#allocation62_spill] sm:$0xff] %v12700_v38  ;;  %v3945_v24 = vrot.slane %v18230_v50, 4  ;;  %v12706_v56 = vsel %vm3759_vm4, %v3936_v44, %v3937_v61  ;;  %v12709_v21 = vsel %vm3759_vm4, %v3937_v61, %v3939_v23  ;;  %v3947_v39 = vrot.slane %v18233_v11, 4  ;;  %v18234_v0 = vld [vmem:[#allocation140_spill] sm:$0xff]  ;;  %v18238_v50 = vld [vmem:[#allocation225_spill] sm:$0xff]  ;;  %v18240_v61 = vld [vmem:[#allocation42_spill] sm:$0xff] }
 0x2e2   :  { %18231 = vst [vmem:[#allocation66_spill] sm:$0xff] %v12706_v56  ;;  %18232 = vst [vmem:[#allocation204_spill] sm:$0xff] %v12709_v21  ;;  %v3948_v33 = vrot.slane %v18234_v0, 4  ;;  %v12714_v22 = vsel %vm3759_vm4, %v3939_v23, %v3941_v54  ;;  %v12717_v40 = vsel %vm3759_vm4, %v3941_v54, %v3943_v47  ;;  %v3950_v3 = vrot.slane %v18238_v50, 4  ;;  %v18241_v21 = vld [vmem:[#allocation22_spill] sm:$0xff]  ;;  %v18242_v56 = vld [vmem:[#allocation73_spill] sm:$0xff] }
 0x2e3   :  { %18235 = vst [vmem:[#allocation68_spill] sm:$0xff] %v12714_v22  ;;  %18236 = vst [vmem:[#allocation123_spill] sm:$0xff] %v12717_v40  ;;  %v12720_v46 = vsel %vm3759_vm4, %v3943_v47, %v3945_v24  ;;  %v3952_v9 = vrot.slane %v18240_v61, 4  ;;  %v3954_v11 = vrot.slane %v18241_v21, 4  ;;  %v3956_v0 = vrot.slane %v18242_v56, 4  ;;  %v18244_v22 = vld [vmem:[#allocation64_spill] sm:$0xff] }
 0x2e4   :  { %18237 = vst [vmem:[#allocation224_spill] sm:$0xff] %v12720_v46  ;;  %v12724_v44 = vsel %vm3759_vm4, %v3947_v39, %v3948_v33  ;;  %v12730_v23 = vsel %vm3759_vm4, %v3948_v33, %v3950_v3  ;;  %v3958_v54 = vrot.slane %v18244_v22, 4  ;;  %v18245_v40 = vld [vmem:[#allocation182_spill] sm:$0xff]  ;;  %v18246_v24 = vld [vmem:[#allocation139_spill] sm:$0xff]  ;;  %v18250_v21 = vld [vmem:[#allocation120_spill] sm:$0xff]  ;;  %v12910_v28 = vmin.f32 %v18334_v13, %v12562_v8 }
 0x2e5   :  { %18239 = vst [vmem:[#allocation124_spill] sm:$0xff] %v12724_v44  ;;  %18243 = vst [vmem:[#allocation73_spill] sm:$0xff] %v12730_v23  ;;  %v3959_v38 = vrot.slane %v18245_v40, 4  ;;  %v3961_v47 = vrot.slane %v18246_v24, 4  ;;  %v12736_v50 = vsel %vm3759_vm4, %v3950_v3, %v3952_v9  ;;  %v12739_v39 = vsel %vm3759_vm4, %v3952_v9, %v3954_v11  ;;  %v18252_v40 = vld [vmem:[#allocation226_spill] sm:$0xff]  ;;  %v18329_v49 = vld [vmem:[#allocation128_spill] sm:$0xff] }
 0x2e6   :  { %18247 = vst [vmem:[#allocation255_spill] sm:$0xff] %v12736_v50  ;;  %18248 = vst [vmem:[#allocation256_spill] sm:$0xff] %v12739_v39  ;;  %v12742_v61 = vsel %vm3759_vm4, %v3954_v11, %v3956_v0  ;;  %v3963_v56 = vrot.slane %v18250_v21, 4  ;;  %v3965_v23 = vrot.slane %v18252_v40, 4  ;;  %v18253_v24 = vld [vmem:[#allocation74_spill] sm:$0xff]  ;;  %v18257_v0 = vld [vmem:[#allocation127_spill] sm:$0xff]  ;;  %v12958_v27 = vmin.f32 %v18352_v2, %v12625_v32 }
 0x2e7   :  { %18249 = vst [vmem:[#allocation257_spill] sm:$0xff] %v12742_v61  ;;  %v12746_v33 = vsel %vm3759_vm4, %v3958_v54, %v3959_v38  ;;  %v12749_v22 = vsel %vm3759_vm4, %v3959_v38, %v3961_v47  ;;  %v3967_v44 = vrot.slane %v18253_v24, 4  ;;  %v18258_v11 = vld [vmem:[#allocation229_spill] sm:$0xff]  ;;  %v18260_v21 = vld [vmem:[#allocation50_spill] sm:$0xff]  ;;  %v18261_v54 = vld [vmem:[#allocation148_spill] sm:$0xff]  ;;  %v12974_v4 = vmin.f32 %v18359_v31, %v12646_v60 }
 0x2e8   :  { %18251 = vst [vmem:[#allocation258_spill] sm:$0xff] %v12746_v33  ;;  %v12754_v3 = vsel %vm3759_vm4, %v3961_v47, %v3963_v56  ;;  %v12760_v61 = vmin.f32 %v18258_v11, %v18257_v0  ;;  %v12764_v33 = vmin.f32 %v18261_v54, %v18260_v21  ;;  %v12767_v38 = vsel %vm3759_vm4, %v3963_v56, %v3965_v23  ;;  %v18264_v24 = vld [vmem:[#allocation192_spill] sm:$0xff]  ;;  %v18265_v47 = vld [vmem:[#allocation129_spill] sm:$0xff]  ;;  %v18269_v39 = vld [vmem:[#allocation130_spill] sm:$0xff] }
 0x2e9   :  { %18254 = vst [vmem:[#allocation74_spill] sm:$0xff] %v12754_v3  ;;  %v12770_v40 = vsel %vm3759_vm4, %v3965_v23, %v3967_v44  ;;  %v12774_v3 = vmin.f32 %v18265_v47, %v18264_v24  ;;  %v18271_v56 = vld [vmem:[#allocation65_spill] sm:$0xff]  ;;  %v18272_v44 = vld [vmem:[#allocation102_spill] sm:$0xff]  ;;  %v18273_v23 = vld [vmem:[#allocation108_spill] sm:$0xff] }
 0x2ea   :  { %18259 = vst [vmem:[#allocation127_spill] sm:$0xff] %v12760_v61  ;;  %18262 = vst [vmem:[#allocation229_spill] sm:$0xff] %v12764_v33  ;;  %v18270_v61 = vld [vmem:[#allocation232_spill] sm:$0xff]  ;;  %v12786_v54 = vmin.f32 %v18271_v56, %v12400_v17  ;;  %v12790_v33 = vmin.f32 %v18273_v23, %v18272_v44  ;;  %v18275_v47 = vld [vmem:[#allocation17_spill] sm:$0xff] }
 0x2eb   :  { %18263 = vst [vmem:[#allocation50_spill] sm:$0xff] %v12770_v40  ;;  %18266 = vst [vmem:[#allocation148_spill] sm:$0xff] %v12774_v3  ;;  %v12782_v21 = vmin.f32 %v18270_v61, %v18269_v39  ;;  %v18277_v9 = vld [vmem:[#allocation114_spill] sm:$0xff]  ;;  %v18278_v50 = vld [vmem:[#allocation77_spill] sm:$0xff]  ;;  %v12814_v40 = vmin.f32 %v18287_v34, %v12438_v1 }
 0x2ec   :  { %v18279_v11 = vld [vmem:[#allocation179_spill] sm:$0xff]  ;;  %v18281_v39 = vld [vmem:[#allocation58_spill] sm:$0xff]  ;;  %v18285_v44 = vld [vmem:[#allocation32_spill] sm:$0xff]  ;;  %18321 = vst [vmem:[#allocation102_spill] sm:$0xff] %v12882_v25 }
 0x2ed   :  { %v12798_v36 = vmin.f32 %v18279_v11, %v18278_v50  ;;  %v18280_v61 = vld [vmem:[#allocation159_spill] sm:$0xff]  ;;  %v18283_v17 = vld [vmem:[#allocation154_spill] sm:$0xff]  ;;  %v18286_v3 = vld [vmem:[#allocation105_spill] sm:$0xff]  ;;  %18360 = vst [vmem:[#allocation114_spill] sm:$0xff] %v12974_v4 }
 0x2ee   :  { %v12802_v0 = vmin.f32 %v18281_v39, %v18280_v61  ;;  %v12806_v56 = vmin.f32 %v18283_v17, %v12421_v42  ;;  %v18288_v50 = vld [vmem:[#allocation184_spill] sm:$0xff]  ;;  %v18290_v61 = vld [vmem:[#allocation110_spill] sm:$0xff]  ;;  %v18291_v39 = vld [vmem:[#allocation97_spill] sm:$0xff] }
 0x2ef   :  { %v12818_v11 = vmin.f32 %v18288_v50, %v12441_v59  ;;  %v18295_v24 = vld [vmem:[#allocation115_spill] sm:$0xff]  ;;  %v18296_v1 = vld [vmem:[#allocation160_spill] sm:$0xff]  ;;  %v18303_v42 = vld [vmem:[#allocation78_spill] sm:$0xff] }
 0x2f0   :  { %18282 = vst [vmem:[#allocation192_spill] sm:$0xff] %v12802_v0  ;;  %18284 = vst [vmem:[#allocation129_spill] sm:$0xff] %v12806_v56  ;;  %v12822_v0 = vmin.f32 %v18291_v39, %v18290_v61  ;;  %v12830_v57 = vmin.f32 %v18295_v24, %v12456_v58  ;;  %v12834_v34 = vmin.f32 %v18296_v1, %v12462_v10  ;;  %v18298_v59 = vld [vmem:[#allocation156_spill] sm:$0xff]  ;;  %v18299_v50 = vld [vmem:[#allocation19_spill] sm:$0xff] }
 0x2f1   :  { %18289 = vst [vmem:[#allocation130_spill] sm:$0xff] %v12818_v11  ;;  %v12838_v11 = vmin.f32 %v18299_v50, %v18298_v59  ;;  %v18301_v61 = vld [vmem:[#allocation248_spill] sm:$0xff]  ;;  %v12846_v56 = vmin.f32 %v18304_v5, %v18303_v42  ;;  %v18305_v58 = vld [vmem:[#allocation141_spill] sm:$0xff]  ;;  %v18307_v10 = vld [vmem:[#allocation186_spill] sm:$0xff] }
 0x2f2   :  { %18297 = vst [vmem:[#allocation232_spill] sm:$0xff] %v12834_v34  ;;  %v18306_v24 = vld [vmem:[#allocation116_spill] sm:$0xff]  ;;  %v12854_v1 = vmin.f32 %v18307_v10, %v12486_v29  ;;  %v18311_v39 = vld [vmem:[#allocation193_spill] sm:$0xff]  ;;  %v18313_v5 = vld [vmem:[#allocation151_spill] sm:$0xff] }
 0x2f3   :  { %18300 = vst [vmem:[#allocation65_spill] sm:$0xff] %v12838_v11  ;;  %v12850_v23 = vmin.f32 %v18306_v24, %v18305_v58  ;;  %v18314_v42 = vld [vmem:[#allocation187_spill] sm:$0xff]  ;;  %v18315_v58 = vld [vmem:[#allocation220_spill] sm:$0xff]  ;;  %v18318_v50 = vld [vmem:[#allocation162_spill] sm:$0xff] }
 0x2f4   :  { %v12866_v17 = vmin.f32 %v18314_v42, %v18313_v5  ;;  %v12870_v24 = vmin.f32 %v18315_v58, %v12508_v43  ;;  %v12878_v34 = vmin.f32 %v18319_v16, %v18318_v50  ;;  %v18322_v5 = vld [vmem:[#allocation142_spill] sm:$0xff]  ;;  %v18323_v43 = vld [vmem:[#allocation20_spill] sm:$0xff]  ;;  %v18325_v29 = vld [vmem:[#allocation125_spill] sm:$0xff] }
 0x2f5   :  { %v12886_v42 = vmin.f32 %v18322_v5, %v12527_v26  ;;  %v18324_v10 = vld [vmem:[#allocation202_spill] sm:$0xff]  ;;  %v18326_v59 = vld [vmem:[#allocation92_spill] sm:$0xff]  ;;  %v18327_v16 = vld [vmem:[#allocation89_spill] sm:$0xff] }
 0x2f6   :  { %v12894_v37 = vmin.f32 %v18326_v59, %v18325_v29  ;;  %v18328_v50 = vld [vmem:[#allocation87_spill] sm:$0xff]  ;;  %v18330_v12 = vld [vmem:[#allocation113_spill] sm:$0xff]  ;;  %v18335_v59 = vld [vmem:[#allocation90_spill] sm:$0xff] }
 0x2f7   :  { %v12898_v11 = vmin.f32 %v18328_v50, %v18327_v16  ;;  %v12902_v25 = vmin.f32 %v18330_v12, %v18329_v49  ;;  %v18333_v58 = vld [vmem:[#allocation33_spill] sm:$0xff]  ;;  %v12914_v29 = vmin.f32 %v18335_v59, %v12568_v62  ;;  %v18336_v16 = vld [vmem:[#allocation106_spill] sm:$0xff]  ;;  %v18342_v13 = vld [vmem:[#allocation227_spill] sm:$0xff] }
 0x2f8   :  { %v12918_v50 = vmin.f32 %v18336_v16, %v12571_v41  ;;  %v18337_v49 = vld [vmem:[#allocation137_spill] sm:$0xff]  ;;  %v18340_v26 = vld [vmem:[#allocation98_spill] sm:$0xff]  ;;  %v12930_v8 = vmin.f32 %v18342_v13, %v12586_v55  ;;  %v18344_v41 = vld [vmem:[#allocation67_spill] sm:$0xff] }
 0x2f9   :  { %18331 = vst [vmem:[#allocation108_spill] sm:$0xff] %v12902_v25  ;;  %v18339_v5 = vld [vmem:[#allocation49_spill] sm:$0xff]  ;;  %v12926_v52 = vmin.f32 %v18341_v30, %v18340_v26  ;;  %v18343_v62 = vld [vmem:[#allocation26_spill] sm:$0xff]  ;;  %v12942_v25 = vmin.f32 %v18346_v48, %v12603_v6  ;;  %v18349_v55 = vld [vmem:[#allocation24_spill] sm:$0xff] }
 0x2fa   :  { %v12934_v59 = vmin.f32 %v18343_v62, %v12592_v20  ;;  %v18347_v30 = vld [vmem:[#allocation69_spill] sm:$0xff]  ;;  %v12950_v13 = vmin.f32 %v18349_v55, %v12611_v45  ;;  %v18350_v20 = vld [vmem:[#allocation47_spill] sm:$0xff]  ;;  %v18351_v16 = vld [vmem:[#allocation118_spill] sm:$0xff] }
 0x2fb   :  { %v12946_v26 = vmin.f32 %v18347_v30, %v12608_v19  ;;  %v18353_v48 = vld [vmem:[#allocation165_spill] sm:$0xff]  ;;  %v18355_v19 = vld [vmem:[#allocation99_spill] sm:$0xff]  ;;  %v18361_v2 = vld [vmem:[#allocation96_spill] sm:$0xff] }
 0x2fc   :  { %v18354_v6 = vld [vmem:[#allocation37_spill] sm:$0xff]  ;;  %v18356_v30 = vld [vmem:[#allocation155_spill] sm:$0xff]  ;;  %v12978_v32 = vmin.f32 %v18361_v2, %v12652_v35  ;;  %v18367_v45 = vld [vmem:[#allocation246_spill] sm:$0xff] }
 0x2fd   :  { %18348 = vst [vmem:[#allocation17_spill] sm:$0xff] %v12946_v26  ;;  %v12962_v12 = vmin.f32 %v18354_v6, %v18353_v48  ;;  %v12966_v26 = vmin.f32 %v18356_v30, %v18355_v19  ;;  %v18363_v48 = vld [vmem:[#allocation44_spill] sm:$0xff]  ;;  %v12990_v63 = vmin.f32 %v18368_v18, %v18367_v45  ;;  %v18370_v31 = vld [vmem:[#allocation205_spill] sm:$0xff]  ;;  %v18371_v60 = vld [vmem:[#allocation71_spill] sm:$0xff] }
 0x2fe   :  { %18362 = vst [vmem:[#allocation77_spill] sm:$0xff] %v12978_v32  ;;  %v12982_v6 = vmin.f32 %v18363_v48, %v12655_v53  ;;  %v12994_v62 = vmin.f32 %v18371_v60, %v18370_v31  ;;  %v18373_v35 = vld [vmem:[#allocation149_spill] sm:$0xff]  ;;  %v18380_v19 = vld [vmem:[#allocation59_spill] sm:$0xff]  ;;  %v18382_v18 = vld [vmem:[#allocation210_spill] sm:$0xff] }
 0x2ff   :  { %18369 = vst [vmem:[#allocation159_spill] sm:$0xff] %v12990_v63  ;;  %v18374_v2 = vld [vmem:[#allocation161_spill] sm:$0xff]  ;;  %v13006_v15 = vmin.f32 %v18381_v14, %v18380_v19  ;;  %v18383_v45 = vld [vmem:[#allocation75_spill] sm:$0xff]  ;;  %v18385_v31 = vld [vmem:[#allocation80_spill] sm:$0xff] }
 0x300   :  { %18364 = vst [vmem:[#allocation179_spill] sm:$0xff] %v12982_v6  ;;  %18372 = vst [vmem:[#allocation58_spill] sm:$0xff] %v12994_v62  ;;  %v12998_v32 = vmin.f32 %v18374_v2, %v18373_v35  ;;  %v13010_v55 = vmin.f32 %v18383_v45, %v18382_v18  ;;  %v18386_v60 = vld [vmem:[#allocation169_spill] sm:$0xff]  ;;  %v18392_v48 = vld [vmem:[#allocation204_spill] sm:$0xff] }
 0x301   :  { %v13014_v62 = vmin.f32 %v18386_v60, %v18385_v31  ;;  %v13022_v4 = vmin.f32 %v18393_v7, %v18392_v48  ;;  %v18395_v14 = vld [vmem:[#allocation68_spill] sm:$0xff]  ;;  %v18398_v18 = vld [vmem:[#allocation123_spill] sm:$0xff]  ;;  %v18401_v31 = vld [vmem:[#allocation34_spill] sm:$0xff] }
 0x302   :  { %18375 = vst [vmem:[#allocation154_spill] sm:$0xff] %v12998_v32  ;;  %18384 = vst [vmem:[#allocation32_spill] sm:$0xff] %v13010_v55  ;;  %v18396_v19 = vld [vmem:[#allocation72_spill] sm:$0xff]  ;;  %v18399_v45 = vld [vmem:[#allocation215_spill] sm:$0xff] }
 0x303   :  { %18387 = vst [vmem:[#allocation105_spill] sm:$0xff] %v13014_v62  ;;  %18394 = vst [vmem:[#allocation121_spill] sm:$0xff] %v13022_v4  ;;  %v13026_v30 = vmin.f32 %v18396_v19, %v18395_v14  ;;  %v13030_v55 = vmin.f32 %v18399_v45, %v18398_v18  ;;  %v18404_v2 = vld [vmem:[#allocation73_spill] sm:$0xff]  ;;  %v18405_v53 = vld [vmem:[#allocation140_spill] sm:$0xff] }
 0x304   :  { %v13038_v63 = vmin.f32 %v18405_v53, %v18404_v2  ;;  %v18406_v7 = vld [vmem:[#allocation255_spill] sm:$0xff]  ;;  %v18407_v48 = vld [vmem:[#allocation225_spill] sm:$0xff]  ;;  %v18409_v14 = vld [vmem:[#allocation256_spill] sm:$0xff] }
 0x305   :  { %18397 = vst [vmem:[#allocation184_spill] sm:$0xff] %v13026_v30  ;;  %18400 = vst [vmem:[#allocation110_spill] sm:$0xff] %v13030_v55  ;;  %v13042_v6 = vmin.f32 %v18407_v48, %v18406_v7  ;;  %v18410_v19 = vld [vmem:[#allocation42_spill] sm:$0xff]  ;;  %v18415_v60 = vld [vmem:[#allocation64_spill] sm:$0xff] }
 0x306   :  { %v13046_v30 = vmin.f32 %v18410_v19, %v18409_v14  ;;  %v18416_v35 = vld [vmem:[#allocation182_spill] sm:$0xff]  ;;  %v18418_v2 = vld [vmem:[#allocation139_spill] sm:$0xff]  ;;  %v18419_v7 = vld [vmem:[#allocation120_spill] sm:$0xff] }
 0x307   :  { %18408 = vst [vmem:[#allocation97_spill] sm:$0xff] %v13042_v6  ;;  %v13054_v62 = vmin.f32 %v18416_v35, %v12749_v22  ;;  %v18417_v53 = vld [vmem:[#allocation74_spill] sm:$0xff]  ;;  %v13062_v48 = vmin.f32 %v18419_v7, %v12767_v38  ;;  %v18423_v6 = vld [vmem:[#allocation127_spill] sm:$0xff]  ;;  %v18428_v4 = vld [vmem:[#allocation229_spill] sm:$0xff] }
 0x308   :  { %18411 = vst [vmem:[#allocation115_spill] sm:$0xff] %v13046_v30  ;;  %v13058_v32 = vmin.f32 %v18418_v2, %v18417_v53  ;;  %v18422_v19 = vld [vmem:[#allocation226_spill] sm:$0xff]  ;;  %v18424_v55 = vld [vmem:[#allocation147_spill] sm:$0xff]  ;;  %v13074_v22 = vmin.f32 %v18423_v6, %v18428_v4  ;;  %v18430_v35 = vld [vmem:[#allocation148_spill] sm:$0xff] }
 0x309   :  { %18420 = vst [vmem:[#allocation160_spill] sm:$0xff] %v13062_v48  ;;  %v18425_v18 = vld [vmem:[#allocation111_spill] sm:$0xff]  ;;  %v13078_v53 = vmin.f32 %v18428_v4, %v18430_v35  ;;  %v18432_v2 = vld [vmem:[#allocation250_spill] sm:$0xff]  ;;  %v18433_v38 = vld [vmem:[#allocation29_spill] sm:$0xff]  ;;  %v13098_v4 = vmin.f32 %v12786_v54, %v12790_v33 }
 0x30a   :  { %v18426_v45 = vmin.f32 %v18424_v55, %v18425_v18  ;;  %18429 = vst [vmem:[#allocation19_spill] sm:$0xff] %v13074_v22  ;;  %v18434_v7 = vmin.f32 %v18432_v2, %v18433_v38  ;;  %v18436_v30 = vld [vmem:[#allocation54_spill] sm:$0xff]  ;;  %v18437_v14 = vld [vmem:[#allocation76_spill] sm:$0xff] }
 0x30b   :  { %18431 = vst [vmem:[#allocation248_spill] sm:$0xff] %v13078_v53  ;;  %v18438_v55 = vmin.f32 %v18436_v30, %v18437_v14  ;;  %18441 = vst [vmem:[#allocation116_spill] sm:$0xff] %v13098_v4  ;;  %v18445_v38 = vld [vmem:[#allocation52_spill] sm:$0xff]  ;;  %v18452_v4 = vld [vmem:[#allocation131_spill] sm:$0xff] }
 0x30c   :  { %v13070_v46 = vmin.f32 %v18426_v45, %v18423_v6  ;;  %v13084_v48 = vmin.f32 %v18430_v35, %v18434_v7  ;;  %v13094_v6 = vmin.f32 %v12782_v21, %v12786_v54  ;;  %v18442_v45 = vld [vmem:[#allocation168_spill] sm:$0xff]  ;;  %v18446_v30 = vmin.f32 %v18277_v9, %v18445_v38  ;;  %v18457_v38 = vld [vmem:[#allocation130_spill] sm:$0xff] }
 0x30d   :  { %v13090_v18 = vmin.f32 %v18438_v55, %v12782_v21  ;;  %v18443_v2 = vmin.f32 %v18275_v47, %v18442_v45  ;;  %v18448_v7 = vld [vmem:[#allocation192_spill] sm:$0xff]  ;;  %v18450_v55 = vld [vmem:[#allocation129_spill] sm:$0xff]  ;;  %v18453_v47 = vmin.f32 %v18285_v44, %v18452_v4 }
 0x30e   :  { %18427 = vst [vmem:[#allocation156_spill] sm:$0xff] %v13070_v46  ;;  %18435 = vst [vmem:[#allocation78_spill] sm:$0xff] %v13084_v48  ;;  %v13110_v14 = vmin.f32 %v18446_v30, %v12798_v36  ;;  %v13114_v21 = vmin.f32 %v12798_v36, %v18448_v7  ;;  %v13118_v54 = vmin.f32 %v18448_v7, %v18450_v55  ;;  %v18454_v45 = vld [vmem:[#allocation85_spill] sm:$0xff]  ;;  %v18460_v7 = vld [vmem:[#allocation83_spill] sm:$0xff] }
 0x30f   :  { %18439 = vst [vmem:[#allocation63_spill] sm:$0xff] %v13090_v18  ;;  %18440 = vst [vmem:[#allocation141_spill] sm:$0xff] %v13094_v6  ;;  %v13104_v35 = vmin.f32 %v12790_v33, %v18443_v2  ;;  %v13124_v33 = vmin.f32 %v18450_v55, %v18453_v47  ;;  %v18455_v9 = vmin.f32 %v18286_v3, %v18454_v45  ;;  %v18463_v55 = vld [vmem:[#allocation247_spill] sm:$0xff]  ;;  %v18464_v47 = vld [vmem:[#allocation134_spill] sm:$0xff] }
 0x310   :  { %18447 = vst [vmem:[#allocation193_spill] sm:$0xff] %v13110_v14  ;;  %18449 = vst [vmem:[#allocation39_spill] sm:$0xff] %v13114_v21  ;;  %v13134_v36 = vmin.f32 %v12814_v40, %v18457_v38  ;;  %v13138_v30 = vmin.f32 %v18457_v38, %v12822_v0  ;;  %v18465_v3 = vmin.f32 %v18463_v55, %v18464_v47 }
 0x311   :  { %18444 = vst [vmem:[#allocation186_spill] sm:$0xff] %v13104_v35  ;;  %18451 = vst [vmem:[#allocation151_spill] sm:$0xff] %v13118_v54  ;;  %v13130_v2 = vmin.f32 %v18455_v9, %v12814_v40  ;;  %v18461_v54 = vld [vmem:[#allocation53_spill] sm:$0xff]  ;;  %v18467_v9 = vld [vmem:[#allocation232_spill] sm:$0xff] }
 0x312   :  { %18458 = vst [vmem:[#allocation220_spill] sm:$0xff] %v13134_v36  ;;  %18459 = vst [vmem:[#allocation162_spill] sm:$0xff] %v13138_v30  ;;  %v18462_v44 = vmin.f32 %v18460_v7, %v18461_v54  ;;  %v13150_v45 = vmin.f32 %v18465_v3, %v12830_v57  ;;  %v13154_v40 = vmin.f32 %v12830_v57, %v18467_v9  ;;  %v18469_v36 = vld [vmem:[#allocation65_spill] sm:$0xff]  ;;  %v18471_v30 = vld [vmem:[#allocation146_spill] sm:$0xff] }
 0x313   :  { %18456 = vst [vmem:[#allocation187_spill] sm:$0xff] %v13130_v2  ;;  %v13158_v38 = vmin.f32 %v18467_v9, %v18469_v36  ;;  %v18472_v54 = vmin.f32 %v18301_v61, %v18471_v30  ;;  %v18473_v7 = vld [vmem:[#allocation132_spill] sm:$0xff]  ;;  %v13174_v57 = vmin.f32 %v12846_v56, %v12850_v23  ;;  %v13178_v3 = vmin.f32 %v12850_v23, %v12854_v1  ;;  %v18483_v30 = vld [vmem:[#allocation223_spill] sm:$0xff] }
 0x314   :  { %v13144_v4 = vmin.f32 %v12822_v0, %v18462_v44  ;;  %18466 = vst [vmem:[#allocation126_spill] sm:$0xff] %v13150_v45  ;;  %18468 = vst [vmem:[#allocation61_spill] sm:$0xff] %v13154_v40  ;;  %v18474_v44 = vld [vmem:[#allocation35_spill] sm:$0xff]  ;;  %v18479_v9 = vld [vmem:[#allocation216_spill] sm:$0xff]  ;;  %v13198_v23 = vmin.f32 %v12866_v17, %v12870_v24 }
 0x315   :  { %18470 = vst [vmem:[#allocation142_spill] sm:$0xff] %v13158_v38  ;;  %v13164_v0 = vmin.f32 %v18469_v36, %v18472_v54  ;;  %v18475_v55 = vmin.f32 %v18473_v7, %v18474_v44  ;;  %18477 = vst [vmem:[#allocation202_spill] sm:$0xff] %v13174_v57  ;;  %v18480_v38 = vld [vmem:[#allocation107_spill] sm:$0xff]  ;;  %v18484_v54 = vmin.f32 %v18311_v39, %v18483_v30  ;;  %v18488_v44 = vld [vmem:[#allocation117_spill] sm:$0xff] }
 0x316   :  { %18478 = vst [vmem:[#allocation125_spill] sm:$0xff] %v13178_v3  ;;  %v18481_v61 = vmin.f32 %v18479_v9, %v18480_v38  ;;  %18487 = vst [vmem:[#allocation128_spill] sm:$0xff] %v13198_v23  ;;  %v18491_v9 = vld [vmem:[#allocation189_spill] sm:$0xff]  ;;  %v18498_v23 = vld [vmem:[#allocation119_spill] sm:$0xff] }
 0x317   :  { %v13170_v47 = vmin.f32 %v18475_v55, %v12846_v56  ;;  %v13190_v7 = vmin.f32 %v18484_v54, %v12862_v51  ;;  %v13194_v56 = vmin.f32 %v12862_v51, %v12866_v17  ;;  %v18489_v55 = vld [vmem:[#allocation57_spill] sm:$0xff]  ;;  %v18495_v54 = vld [vmem:[#allocation102_spill] sm:$0xff] }
 0x318   :  { %v13184_v36 = vmin.f32 %v12854_v1, %v18481_v61  ;;  %v18490_v38 = vmin.f32 %v18488_v44, %v18489_v55  ;;  %v18492_v61 = vld [vmem:[#allocation60_spill] sm:$0xff]  ;;  %v13214_v51 = vmin.f32 %v12878_v34, %v18495_v54  ;;  %v13218_v17 = vmin.f32 %v18495_v54, %v12886_v42  ;;  %v18506_v54 = vld [vmem:[#allocation23_spill] sm:$0xff] }
 0x319   :  { %18476 = vst [vmem:[#allocation20_spill] sm:$0xff] %v13170_v47  ;;  %18485 = vst [vmem:[#allocation89_spill] sm:$0xff] %v13190_v7  ;;  %v18493_v39 = vmin.f32 %v18491_v9, %v18492_v61  ;;  %v18499_v44 = vmin.f32 %v18323_v43, %v18498_v23  ;;  %v18500_v55 = vld [vmem:[#allocation228_spill] sm:$0xff] }
 0x31a   :  { %18482 = vst [vmem:[#allocation92_spill] sm:$0xff] %v13184_v36  ;;  %18486 = vst [vmem:[#allocation87_spill] sm:$0xff] %v13194_v56  ;;  %v13204_v1 = vmin.f32 %v12870_v24, %v18490_v38  ;;  %v18501_v38 = vmin.f32 %v18324_v10, %v18500_v55  ;;  %v18504_v61 = vld [vmem:[#allocation108_spill] sm:$0xff]  ;;  %v18514_v55 = vld [vmem:[#allocation157_spill] sm:$0xff] }
 0x31b   :  { %v13210_v30 = vmin.f32 %v18493_v39, %v12878_v34  ;;  %18496 = vst [vmem:[#allocation33_spill] sm:$0xff] %v13214_v51  ;;  %18497 = vst [vmem:[#allocation36_spill] sm:$0xff] %v13218_v17  ;;  %v13224_v24 = vmin.f32 %v12886_v42, %v18499_v44  ;;  %v13234_v34 = vmin.f32 %v12894_v37, %v12898_v11  ;;  %v18507_v17 = vld [vmem:[#allocation91_spill] sm:$0xff]  ;;  %v18509_v23 = vld [vmem:[#allocation144_spill] sm:$0xff] }
 0x31c   :  { %v13230_v9 = vmin.f32 %v18501_v38, %v12894_v37  ;;  %v13238_v39 = vmin.f32 %v12898_v11, %v18504_v61  ;;  %v18508_v43 = vmin.f32 %v18506_v54, %v18507_v17  ;;  %v18510_v10 = vmin.f32 %v18333_v58, %v18509_v23  ;;  %v18525_v23 = vld [vmem:[#allocation21_spill] sm:$0xff] }
 0x31d   :  { %18494 = vst [vmem:[#allocation113_spill] sm:$0xff] %v13210_v30  ;;  %18503 = vst [vmem:[#allocation106_spill] sm:$0xff] %v13234_v34  ;;  %v13254_v37 = vmin.f32 %v12910_v28, %v12914_v29  ;;  %v13258_v11 = vmin.f32 %v12914_v29, %v12918_v50  ;;  %v18515_v17 = vmin.f32 %v18337_v49, %v18514_v55 }
 0x31e   :  { %18502 = vst [vmem:[#allocation90_spill] sm:$0xff] %v13230_v9  ;;  %18505 = vst [vmem:[#allocation137_spill] sm:$0xff] %v13238_v39  ;;  %v13244_v42 = vmin.f32 %v18504_v61, %v18508_v43  ;;  %v13250_v44 = vmin.f32 %v18510_v10, %v12910_v28  ;;  %v18517_v61 = vld [vmem:[#allocation251_spill] sm:$0xff]  ;;  %v13274_v28 = vmin.f32 %v12926_v52, %v12930_v8  ;;  %v18522_v43 = vld [vmem:[#allocation252_spill] sm:$0xff] }
 0x31f   :  { %18512 = vst [vmem:[#allocation98_spill] sm:$0xff] %v13254_v37  ;;  %18513 = vst [vmem:[#allocation196_spill] sm:$0xff] %v13258_v11  ;;  %v13264_v38 = vmin.f32 %v12918_v50, %v18515_v17  ;;  %v18518_v58 = vmin.f32 %v18339_v5, %v18517_v61  ;;  %v13278_v29 = vmin.f32 %v12930_v8, %v12934_v59  ;;  %v18526_v10 = vld [vmem:[#allocation171_spill] sm:$0xff]  ;;  %v18529_v17 = vld [vmem:[#allocation17_spill] sm:$0xff] }
 0x320   :  { %18511 = vst [vmem:[#allocation49_spill] sm:$0xff] %v13250_v44  ;;  %18520 = vst [vmem:[#allocation67_spill] sm:$0xff] %v13274_v28  ;;  %v18523_v49 = vmin.f32 %v18344_v41, %v18522_v43  ;;  %v18527_v5 = vmin.f32 %v18525_v23, %v18526_v10  ;;  %v13298_v8 = vmin.f32 %v18529_v17, %v12950_v13  ;;  %v18532_v61 = vld [vmem:[#allocation167_spill] sm:$0xff]  ;;  %v18540_v10 = vld [vmem:[#allocation145_spill] sm:$0xff] }
 0x321   :  { %18516 = vst [vmem:[#allocation227_spill] sm:$0xff] %v13264_v38  ;;  %v13270_v54 = vmin.f32 %v18518_v58, %v12926_v52  ;;  %18521 = vst [vmem:[#allocation93_spill] sm:$0xff] %v13278_v29  ;;  %v13294_v52 = vmin.f32 %v12942_v25, %v18529_v17  ;;  %v18533_v41 = vmin.f32 %v18350_v20, %v18532_v61  ;;  %v18535_v58 = vld [vmem:[#allocation253_spill] sm:$0xff]  ;;  %v18544_v17 = vld [vmem:[#allocation114_spill] sm:$0xff] }
 0x322   :  { %v13284_v50 = vmin.f32 %v12934_v59, %v18523_v49  ;;  %v13290_v55 = vmin.f32 %v18527_v5, %v12942_v25  ;;  %18531 = vst [vmem:[#allocation118_spill] sm:$0xff] %v13298_v8  ;;  %v18536_v43 = vmin.f32 %v18351_v16, %v18535_v58  ;;  %v13314_v25 = vmin.f32 %v12958_v27, %v12962_v12  ;;  %v18541_v5 = vld [vmem:[#allocation254_spill] sm:$0xff] }
 0x323   :  { %18519 = vst [vmem:[#allocation26_spill] sm:$0xff] %v13270_v54  ;;  %18530 = vst [vmem:[#allocation47_spill] sm:$0xff] %v13294_v52  ;;  %v13304_v59 = vmin.f32 %v12950_v13, %v18533_v41  ;;  %v13318_v23 = vmin.f32 %v12962_v12, %v12966_v26  ;;  %v18542_v20 = vmin.f32 %v18540_v10, %v18541_v5  ;;  %v18545_v61 = vld [vmem:[#allocation18_spill] sm:$0xff]  ;;  %v18546_v41 = vld [vmem:[#allocation173_spill] sm:$0xff] }
 0x324   :  { %18524 = vst [vmem:[#allocation69_spill] sm:$0xff] %v13284_v50  ;;  %18528 = vst [vmem:[#allocation24_spill] sm:$0xff] %v13290_v55  ;;  %v13310_v49 = vmin.f32 %v18536_v43, %v12958_v27  ;;  %v18547_v16 = vmin.f32 %v18545_v61, %v18546_v41  ;;  %v18549_v43 = vld [vmem:[#allocation77_spill] sm:$0xff]  ;;  %v18557_v5 = vld [vmem:[#allocation159_spill] sm:$0xff] }
 0x325   :  { %18534 = vst [vmem:[#allocation70_spill] sm:$0xff] %v13304_v59  ;;  %18538 = vst [vmem:[#allocation37_spill] sm:$0xff] %v13314_v25  ;;  %v13324_v13 = vmin.f32 %v12966_v26, %v18542_v20  ;;  %v13334_v27 = vmin.f32 %v18544_v17, %v18549_v43  ;;  %v18551_v25 = vld [vmem:[#allocation179_spill] sm:$0xff]  ;;  %v18558_v20 = vld [vmem:[#allocation16_spill] sm:$0xff] }
 0x326   :  { %18537 = vst [vmem:[#allocation165_spill] sm:$0xff] %v13310_v49  ;;  %18539 = vst [vmem:[#allocation99_spill] sm:$0xff] %v13318_v23  ;;  %v13330_v58 = vmin.f32 %v18547_v16, %v18544_v17  ;;  %v13338_v12 = vmin.f32 %v18549_v43, %v18551_v25  ;;  %v18553_v23 = vld [vmem:[#allocation40_spill] sm:$0xff]  ;;  %v18554_v49 = vld [vmem:[#allocation138_spill] sm:$0xff] }
 0x327   :  { %18543 = vst [vmem:[#allocation155_spill] sm:$0xff] %v13324_v13  ;;  %18550 = vst [vmem:[#allocation96_spill] sm:$0xff] %v13334_v27  ;;  %v18555_v10 = vmin.f32 %v18553_v23, %v18554_v49  ;;  %v18559_v13 = vld [vmem:[#allocation249_spill] sm:$0xff]  ;;  %v18562_v16 = vld [vmem:[#allocation58_spill] sm:$0xff] }
 0x328   :  { %18548 = vst [vmem:[#allocation28_spill] sm:$0xff] %v13330_v58  ;;  %18552 = vst [vmem:[#allocation44_spill] sm:$0xff] %v13338_v12  ;;  %v18560_v61 = vmin.f32 %v18558_v20, %v18559_v13  ;;  %v13354_v17 = vmin.f32 %v18557_v5, %v18562_v16  ;;  %v18564_v27 = vld [vmem:[#allocation154_spill] sm:$0xff]  ;;  %v18567_v58 = vld [vmem:[#allocation153_spill] sm:$0xff] }
 0x329   :  { %v13344_v26 = vmin.f32 %v18551_v25, %v18555_v10  ;;  %v13358_v43 = vmin.f32 %v18562_v16, %v18564_v27  ;;  %v18566_v12 = vld [vmem:[#allocation94_spill] sm:$0xff]  ;;  %v18570_v23 = vld [vmem:[#allocation41_spill] sm:$0xff]  ;;  %v18571_v10 = vld [vmem:[#allocation183_spill] sm:$0xff] }
 0x32a   :  { %v13350_v41 = vmin.f32 %v18560_v61, %v18557_v5  ;;  %18563 = vst [vmem:[#allocation205_spill] sm:$0xff] %v13354_v17  ;;  %v18568_v49 = vmin.f32 %v18566_v12, %v18567_v58  ;;  %v18572_v13 = vmin.f32 %v18570_v23, %v18571_v10  ;;  %v18574_v61 = vld [vmem:[#allocation32_spill] sm:$0xff]  ;;  %v18576_v17 = vld [vmem:[#allocation105_spill] sm:$0xff] }
 0x32b   :  { %18556 = vst [vmem:[#allocation246_spill] sm:$0xff] %v13344_v26  ;;  %18565 = vst [vmem:[#allocation71_spill] sm:$0xff] %v13358_v43  ;;  %v13374_v5 = vmin.f32 %v13006_v15, %v18574_v61  ;;  %v13378_v16 = vmin.f32 %v18574_v61, %v18576_v17  ;;  %v18578_v43 = vld [vmem:[#allocation86_spill] sm:$0xff]  ;;  %v18581_v12 = vld [vmem:[#allocation121_spill] sm:$0xff] }
 0x32c   :  { %18561 = vst [vmem:[#allocation25_spill] sm:$0xff] %v13350_v41  ;;  %v13364_v25 = vmin.f32 %v18564_v27, %v18568_v49  ;;  %v13370_v20 = vmin.f32 %v18572_v13, %v13006_v15  ;;  %v18579_v41 = vld [vmem:[#allocation62_spill] sm:$0xff]  ;;  %v18582_v49 = vld [vmem:[#allocation81_spill] sm:$0xff]  ;;  %v18586_v13 = vld [vmem:[#allocation184_spill] sm:$0xff] }
 0x32d   :  { %18575 = vst [vmem:[#allocation59_spill] sm:$0xff] %v13374_v5  ;;  %18577 = vst [vmem:[#allocation56_spill] sm:$0xff] %v13378_v16  ;;  %v18580_v58 = vmin.f32 %v18578_v43, %v18579_v41  ;;  %v13394_v15 = vmin.f32 %v18581_v12, %v18586_v13  ;;  %v18588_v5 = vld [vmem:[#allocation110_spill] sm:$0xff]  ;;  %v18590_v16 = vld [vmem:[#allocation224_spill] sm:$0xff] }
 0x32e   :  { %18569 = vst [vmem:[#allocation149_spill] sm:$0xff] %v13364_v25  ;;  %18573 = vst [vmem:[#allocation161_spill] sm:$0xff] %v13370_v20  ;;  %v18583_v25 = vld [vmem:[#allocation66_spill] sm:$0xff]  ;;  %v13398_v61 = vmin.f32 %v18586_v13, %v18588_v5  ;;  %v18591_v41 = vmin.f32 %v18401_v31, %v18590_v16 }
 0x32f   :  { %v13384_v27 = vmin.f32 %v18576_v17, %v18580_v58  ;;  %v18584_v23 = vmin.f32 %v18582_v49, %v18583_v25  ;;  %18587 = vst [vmem:[#allocation75_spill] sm:$0xff] %v13394_v15  ;;  %v18592_v43 = vld [vmem:[#allocation206_spill] sm:$0xff]  ;;  %v18593_v58 = vld [vmem:[#allocation124_spill] sm:$0xff]  ;;  %v18598_v15 = vld [vmem:[#allocation115_spill] sm:$0xff] }
 0x330   :  { %18589 = vst [vmem:[#allocation80_spill] sm:$0xff] %v13398_v61  ;;  %v13404_v17 = vmin.f32 %v18588_v5, %v18591_v41  ;;  %v18594_v25 = vmin.f32 %v18592_v43, %v18593_v58  ;;  %v18600_v61 = vld [vmem:[#allocation22_spill] sm:$0xff]  ;;  %v18607_v58 = vld [vmem:[#allocation160_spill] sm:$0xff] }
 0x331   :  { %v13390_v10 = vmin.f32 %v18584_v23, %v18581_v12  ;;  %v18596_v23 = vld [vmem:[#allocation97_spill] sm:$0xff]  ;;  %v18603_v16 = vld [vmem:[#allocation258_spill] sm:$0xff] }
 0x332   :  { %v13410_v49 = vmin.f32 %v18594_v25, %v13038_v63  ;;  %v13414_v12 = vmin.f32 %v13038_v63, %v18596_v23  ;;  %v13418_v13 = vmin.f32 %v18596_v23, %v18598_v15  ;;  %v18604_v41 = vmin.f32 %v18415_v60, %v18603_v16  ;;  %v18609_v23 = vld [vmem:[#allocation50_spill] sm:$0xff] }
 0x333   :  { %18585 = vst [vmem:[#allocation210_spill] sm:$0xff] %v13390_v10  ;;  %v18601_v10 = vld [vmem:[#allocation257_spill] sm:$0xff]  ;;  %v13434_v63 = vmin.f32 %v13054_v62, %v13058_v32  ;;  %v13438_v25 = vmin.f32 %v13058_v32, %v18607_v58  ;;  %v4516_v60 = vrot.slane %v13074_v22, 3  ;;  %v4522_v16 = vrot.slane %v13090_v18, 3  ;;  %v18665_v22 = vld [vmem:[#allocation116_spill] sm:$0xff] }
 0x334   :  { %18595 = vst [vmem:[#allocation169_spill] sm:$0xff] %v13410_v49  ;;  %18597 = vst [vmem:[#allocation204_spill] sm:$0xff] %v13414_v12  ;;  %v18602_v31 = vmin.f32 %v18600_v61, %v18601_v10  ;;  %v13430_v43 = vmin.f32 %v18604_v41, %v13054_v62  ;;  %v18610_v10 = vmin.f32 %v18422_v19, %v18609_v23  ;;  %v4515_v61 = vrot.slane %v13070_v46, 3  ;;  %v18612_v41 = vld [vmem:[#allocation116_spill] sm:$0xff] }
 0x335   :  { %18599 = vst [vmem:[#allocation31_spill] sm:$0xff] %v13418_v13  ;;  %18606 = vst [vmem:[#allocation72_spill] sm:$0xff] %v13434_v63  ;;  %v16267_v62 = vrot.slane %v13084_v48, 3  ;;  %v4523_v32 = vrot.slane %v13094_v6, 3  ;;  %v4530_v18 = vrot.slane %v13114_v21, 3  ;;  %v18619_v21 = vld [vmem:[#allocation220_spill] sm:$0xff] }
 0x336   :  { %v13424_v5 = vmin.f32 %v18598_v15, %v18602_v31  ;;  %18605 = vst [vmem:[#allocation68_spill] sm:$0xff] %v13430_v43  ;;  %18608 = vst [vmem:[#allocation123_spill] sm:$0xff] %v13438_v25  ;;  %v13444_v15 = vmin.f32 %v18607_v58, %v18610_v10  ;;  %v4518_v31 = vrot.slane %v13078_v53, 3  ;;  %v4525_v25 = vrot.slane %v18612_v41, 3 }
 0x337   :  { %v4529_v58 = vrot.slane %v13110_v14, 3  ;;  %v13456_v23 = vsel %vm4514_vm5, %v4515_v61, %v4516_v60  ;;  %v13468_v6 = vsel %vm4514_vm5, %v4522_v16, %v4523_v32  ;;  %v18617_v14 = vrot.slane %v13104_v35, 3 }
 0x338   :  { %18611 = vst [vmem:[#allocation215_spill] sm:$0xff] %v13444_v15  ;;  %18613 = vst [vmem:[#allocation34_spill] sm:$0xff] %v13456_v23  ;;  %v13459_v10 = vsel %vm4514_vm5, %v4516_v60, %v4518_v31  ;;  %v13464_v53 = vsel %vm4514_vm5, %v4518_v31, %v16267_v62  ;;  %v13471_v19 = vsel %vm4514_vm5, %v4523_v32, %v4525_v25  ;;  %v18618_v60 = vld [vmem:[#allocation151_spill] sm:$0xff]  ;;  %v16273_v31 = vrot.slane %v13124_v33, 3  ;;  %v18620_v32 = vld [vmem:[#allocation162_spill] sm:$0xff] }
 0x339   :  { %18614 = vst [vmem:[#allocation73_spill] sm:$0xff] %v13459_v10  ;;  %18615 = vst [vmem:[#allocation140_spill] sm:$0xff] %v13468_v6  ;;  %v13476_v61 = vsel %vm4514_vm5, %v4525_v25, %v18617_v14  ;;  %v4532_v41 = vrot.slane %v18618_v60, 3  ;;  %v13480_v48 = vsel %vm4514_vm5, %v4529_v58, %v4530_v18  ;;  %v4536_v62 = vrot.slane %v13130_v2, 3  ;;  %v18660_v23 = vld [vmem:[#allocation63_spill] sm:$0xff] }
 0x33a   :  { %18616 = vst [vmem:[#allocation255_spill] sm:$0xff] %v13471_v19  ;;  %v4537_v16 = vrot.slane %v18619_v21, 3  ;;  %v4539_v19 = vrot.slane %v18620_v32, 3  ;;  %v16275_v35 = vrot.slane %v13144_v4, 3  ;;  %v4543_v14 = vrot.slane %v13150_v45, 3  ;;  %v18621_v21 = vld [vmem:[#allocation142_spill] sm:$0xff] }
 0x33b   :  { %v13486_v6 = vsel %vm4514_vm5, %v4530_v18, %v4532_v41  ;;  %v13494_v25 = vsel %vm4514_vm5, %v4532_v41, %v16273_v31  ;;  %v4544_v2 = vrot.slane %v13154_v40, 3  ;;  %v4546_v60 = vrot.slane %v18621_v21, 3 }
 0x33c   :  { %v13497_v58 = vsel %vm4514_vm5, %v4536_v62, %v4537_v16  ;;  %v13502_v18 = vsel %vm4514_vm5, %v4537_v16, %v4539_v19  ;;  %v13507_v32 = vsel %vm4514_vm5, %v4539_v19, %v16275_v35  ;;  %v16279_v45 = vrot.slane %v13164_v0, 3 }
 0x33d   :  { %v4550_v41 = vrot.slane %v13170_v47, 3  ;;  %v13512_v31 = vsel %vm4514_vm5, %v4543_v14, %v4544_v2  ;;  %v13515_v62 = vsel %vm4514_vm5, %v4544_v2, %v4546_v60  ;;  %v4551_v21 = vrot.slane %v13174_v57, 3  ;;  %v18623_v57 = vld [vmem:[#allocation128_spill] sm:$0xff] }
 0x33e   :  { %18622 = vst [vmem:[#allocation225_spill] sm:$0xff] %v13515_v62  ;;  %v4553_v16 = vrot.slane %v13178_v3, 3  ;;  %v13522_v40 = vsel %vm4514_vm5, %v4546_v60, %v16279_v45  ;;  %v16284_v19 = vrot.slane %v13184_v36, 3  ;;  %v4557_v35 = vrot.slane %v13190_v7, 3 }
 0x33f   :  { %v4558_v47 = vrot.slane %v13194_v56, 3  ;;  %v13528_v14 = vsel %vm4514_vm5, %v4550_v41, %v4551_v21  ;;  %v4560_v62 = vrot.slane %v18623_v57, 3  ;;  %v16287_v3 = vrot.slane %v13204_v1, 3  ;;  %v18624_v57 = vld [vmem:[#allocation36_spill] sm:$0xff] }
 0x340   :  { %v13531_v2 = vsel %vm4514_vm5, %v4551_v21, %v4553_v16  ;;  %v13538_v60 = vsel %vm4514_vm5, %v4553_v16, %v16284_v19  ;;  %v4564_v56 = vrot.slane %v13210_v30, 3  ;;  %v4565_v41 = vrot.slane %v13214_v51, 3 }
 0x341   :  { %v13541_v45 = vsel %vm4514_vm5, %v4557_v35, %v4558_v47  ;;  %v13546_v7 = vsel %vm4514_vm5, %v4558_v47, %v4560_v62  ;;  %v13551_v21 = vsel %vm4514_vm5, %v4560_v62, %v16287_v3  ;;  %v4567_v36 = vrot.slane %v18624_v57, 3 }
 0x342   :  { %v16291_v16 = vrot.slane %v13224_v24, 3  ;;  %v13556_v19 = vsel %vm4514_vm5, %v4564_v56, %v4565_v41  ;;  %v4571_v35 = vrot.slane %v13230_v9, 3  ;;  %v4572_v30 = vrot.slane %v13234_v34, 3 }
 0x343   :  { %v4574_v51 = vrot.slane %v13238_v39, 3  ;;  %v13562_v47 = vsel %vm4514_vm5, %v4565_v41, %v4567_v36  ;;  %v16295_v3 = vrot.slane %v13244_v42, 3  ;;  %v4578_v57 = vrot.slane %v13250_v44, 3 }
 0x344   :  { %v13567_v62 = vsel %vm4514_vm5, %v4567_v36, %v16291_v16  ;;  %v13572_v56 = vsel %vm4514_vm5, %v4571_v35, %v4572_v30  ;;  %v4579_v39 = vrot.slane %v13254_v37, 3  ;;  %v4581_v41 = vrot.slane %v13258_v11, 3 }
 0x345   :  { %v13575_v9 = vsel %vm4514_vm5, %v4572_v30, %v4574_v51  ;;  %v13582_v34 = vsel %vm4514_vm5, %v4574_v51, %v16295_v3  ;;  %v16299_v36 = vrot.slane %v13264_v38, 3  ;;  %v4585_v16 = vrot.slane %v13270_v54, 3 }
 0x346   :  { %v4586_v44 = vrot.slane %v13274_v28, 3  ;;  %v13588_v35 = vsel %vm4514_vm5, %v4578_v57, %v4579_v39  ;;  %v13591_v30 = vsel %vm4514_vm5, %v4579_v39, %v4581_v41  ;;  %v4588_v37 = vrot.slane %v13278_v29, 3 }
 0x347   :  { %v16304_v11 = vrot.slane %v13284_v50, 3  ;;  %v13598_v51 = vsel %vm4514_vm5, %v4581_v41, %v16299_v36  ;;  %v4592_v28 = vrot.slane %v13290_v55, 3  ;;  %v4593_v57 = vrot.slane %v13294_v52, 3  ;;  %v18630_v55 = vld [vmem:[#allocation37_spill] sm:$0xff]  ;;  %v18631_v52 = vld [vmem:[#allocation99_spill] sm:$0xff]  ;;  %v18635_v50 = vld [vmem:[#allocation28_spill] sm:$0xff] }
 0x348   :  { %18625 = vst [vmem:[#allocation256_spill] sm:$0xff] %v13598_v51  ;;  %v13601_v3 = vsel %vm4514_vm5, %v4585_v16, %v4586_v44  ;;  %v13606_v54 = vsel %vm4514_vm5, %v4586_v44, %v4588_v37  ;;  %v4595_v29 = vrot.slane %v13298_v8, 3  ;;  %v16310_v41 = vrot.slane %v13304_v59, 3  ;;  %v18629_v16 = vld [vmem:[#allocation165_spill] sm:$0xff] }
 0x349   :  { %18626 = vst [vmem:[#allocation42_spill] sm:$0xff] %v13601_v3  ;;  %v13611_v39 = vsel %vm4514_vm5, %v4588_v37, %v16304_v11  ;;  %v13616_v36 = vsel %vm4514_vm5, %v4592_v28, %v4593_v57  ;;  %v4599_v3 = vrot.slane %v18629_v16, 3  ;;  %v4600_v38 = vrot.slane %v18630_v55, 3  ;;  %v18634_v11 = vld [vmem:[#allocation155_spill] sm:$0xff]  ;;  %v18638_v55 = vld [vmem:[#allocation96_spill] sm:$0xff] }
 0x34a   :  { %18627 = vst [vmem:[#allocation64_spill] sm:$0xff] %v13611_v39  ;;  %18628 = vst [vmem:[#allocation182_spill] sm:$0xff] %v13616_v36  ;;  %v4602_v51 = vrot.slane %v18631_v52, 3  ;;  %v13622_v44 = vsel %vm4514_vm5, %v4593_v57, %v4595_v29  ;;  %v13627_v37 = vsel %vm4514_vm5, %v4595_v29, %v16310_v41  ;;  %v16311_v8 = vrot.slane %v18634_v11, 3  ;;  %v18639_v36 = vld [vmem:[#allocation44_spill] sm:$0xff]  ;;  %v18640_v41 = vld [vmem:[#allocation25_spill] sm:$0xff] }
 0x34b   :  { %18632 = vst [vmem:[#allocation74_spill] sm:$0xff] %v13622_v44  ;;  %18633 = vst [vmem:[#allocation139_spill] sm:$0xff] %v13627_v37  ;;  %v4606_v39 = vrot.slane %v18635_v50, 3  ;;  %v13632_v28 = vsel %vm4514_vm5, %v4599_v3, %v4600_v38  ;;  %v4607_v52 = vrot.slane %v18638_v55, 3  ;;  %v4609_v57 = vrot.slane %v18639_v36, 3  ;;  %v18641_v50 = vld [vmem:[#allocation205_spill] sm:$0xff] }
 0x34c   :  { %18636 = vst [vmem:[#allocation120_spill] sm:$0xff] %v13632_v28  ;;  %v13635_v16 = vsel %vm4514_vm5, %v4600_v38, %v4602_v51  ;;  %v13642_v59 = vsel %vm4514_vm5, %v4602_v51, %v16311_v8  ;;  %v16314_v29 = vrot.slane %v13344_v26, 3  ;;  %v4613_v37 = vrot.slane %v18640_v41, 3  ;;  %v18644_v55 = vld [vmem:[#allocation71_spill] sm:$0xff]  ;;  %v18645_v36 = vld [vmem:[#allocation149_spill] sm:$0xff] }
 0x34d   :  { %18637 = vst [vmem:[#allocation226_spill] sm:$0xff] %v13635_v16  ;;  %v4614_v44 = vrot.slane %v18641_v50, 3  ;;  %v13648_v3 = vsel %vm4514_vm5, %v4606_v39, %v4607_v52  ;;  %v13651_v38 = vsel %vm4514_vm5, %v4607_v52, %v4609_v57  ;;  %v4616_v16 = vrot.slane %v18644_v55, 3  ;;  %v18648_v41 = vld [vmem:[#allocation59_spill] sm:$0xff]  ;;  %v18649_v55 = vld [vmem:[#allocation56_spill] sm:$0xff] }
 0x34e   :  { %18642 = vst [vmem:[#allocation127_spill] sm:$0xff] %v13648_v3  ;;  %18643 = vst [vmem:[#allocation147_spill] sm:$0xff] %v13651_v38  ;;  %v16316_v28 = vrot.slane %v18645_v36, 3  ;;  %v13658_v51 = vsel %vm4514_vm5, %v4609_v57, %v16314_v29  ;;  %v4620_v50 = vrot.slane %v13370_v20, 3  ;;  %v4621_v39 = vrot.slane %v18648_v41, 3  ;;  %v18651_v20 = vld [vmem:[#allocation75_spill] sm:$0xff] }
 0x34f   :  { %18646 = vst [vmem:[#allocation111_spill] sm:$0xff] %v13658_v51  ;;  %v13661_v8 = vsel %vm4514_vm5, %v4613_v37, %v4614_v44  ;;  %v13666_v3 = vsel %vm4514_vm5, %v4614_v44, %v4616_v16  ;;  %v4623_v26 = vrot.slane %v18649_v55, 3  ;;  %v16317_v57 = vrot.slane %v13384_v27, 3  ;;  %v18650_v37 = vld [vmem:[#allocation210_spill] sm:$0xff]  ;;  %v18652_v41 = vld [vmem:[#allocation80_spill] sm:$0xff] }
 0x350   :  { %18647 = vst [vmem:[#allocation229_spill] sm:$0xff] %v13661_v8  ;;  %v13671_v52 = vsel %vm4514_vm5, %v4616_v16, %v16316_v28  ;;  %v13676_v29 = vsel %vm4514_vm5, %v4620_v50, %v4621_v39  ;;  %v4627_v8 = vrot.slane %v18650_v37, 3  ;;  %v4628_v51 = vrot.slane %v18651_v20, 3 }
 0x351   :  { %v4630_v38 = vrot.slane %v18652_v41, 3  ;;  %v13682_v44 = vsel %vm4514_vm5, %v4621_v39, %v4623_v26  ;;  %v13687_v16 = vsel %vm4514_vm5, %v4623_v26, %v16317_v57  ;;  %v16321_v28 = vrot.slane %v13404_v17, 3 }
 0x352   :  { %v4634_v55 = vrot.slane %v13410_v49, 3  ;;  %v13692_v50 = vsel %vm4514_vm5, %v4627_v8, %v4628_v51  ;;  %v4635_v41 = vrot.slane %v13414_v12, 3  ;;  %v4637_v39 = vrot.slane %v13418_v13, 3  ;;  %v18654_v12 = vld [vmem:[#allocation123_spill] sm:$0xff] }
 0x353   :  { %v13695_v37 = vsel %vm4514_vm5, %v4628_v51, %v4630_v38  ;;  %v13702_v20 = vsel %vm4514_vm5, %v4630_v38, %v16321_v28  ;;  %v16323_v26 = vrot.slane %v13424_v5, 3  ;;  %v4641_v57 = vrot.slane %v13430_v43, 3  ;;  %v18657_v43 = vld [vmem:[#allocation78_spill] sm:$0xff] }
 0x354   :  { %18653 = vst [vmem:[#allocation148_spill] sm:$0xff] %v13695_v37  ;;  %v4642_v49 = vrot.slane %v13434_v63, 3  ;;  %v13708_v8 = vsel %vm4514_vm5, %v4634_v55, %v4635_v41  ;;  %v13711_v51 = vsel %vm4514_vm5, %v4635_v41, %v4637_v39  ;;  %v4644_v37 = vrot.slane %v18654_v12, 3  ;;  %v18659_v63 = vld [vmem:[#allocation140_spill] sm:$0xff]  ;;  %v18662_v55 = vld [vmem:[#allocation255_spill] sm:$0xff] }
 0x355   :  { %v16329_v13 = vrot.slane %v13444_v15, 3  ;;  %v13718_v38 = vsel %vm4514_vm5, %v4637_v39, %v16323_v26  ;;  %v18656_v39 = vld [vmem:[#allocation248_spill] sm:$0xff]  ;;  %v13744_v46 = vmin.f32 %v18660_v23, %v18659_v63  ;;  %v18671_v63 = vld [vmem:[#allocation39_spill] sm:$0xff] }
 0x356   :  { %v13721_v28 = vsel %vm4514_vm5, %v4641_v57, %v4642_v49  ;;  %v13728_v41 = vsel %vm4514_vm5, %v4642_v49, %v4644_v37  ;;  %v18658_v57 = vrot.slane %v18657_v43, 3  ;;  %v18663_v49 = vld [vmem:[#allocation141_spill] sm:$0xff]  ;;  %v13765_v23 = vmin.f32 %v18671_v63, %v13486_v6  ;;  %v18679_v6 = vld [vmem:[#allocation162_spill] sm:$0xff] }
 0x357   :  { %18655 = vst [vmem:[#allocation250_spill] sm:$0xff] %v13721_v28  ;;  %v13733_v12 = vsel %vm4514_vm5, %v4644_v37, %v16329_v13  ;;  %18661 = vst [vmem:[#allocation29_spill] sm:$0xff] %v13744_v46  ;;  %v13748_v10 = vmin.f32 %v18663_v49, %v18662_v55  ;;  %v13752_v37 = vmin.f32 %v18665_v22, %v13476_v61  ;;  %v18667_v13 = vld [vmem:[#allocation186_spill] sm:$0xff]  ;;  %v18673_v55 = vld [vmem:[#allocation151_spill] sm:$0xff]  ;;  %v18675_v22 = vrot.slane %v13124_v33, 3 }
 0x358   :  { %v13740_v28 = vmin.f32 %v18657_v43, %v18658_v57  ;;  %v18668_v15 = vrot.slane %v18667_v13, 3  ;;  %v18669_v43 = vld [vmem:[#allocation193_spill] sm:$0xff]  ;;  %18672 = vst [vmem:[#allocation52_spill] sm:$0xff] %v13765_v23  ;;  %v13769_v49 = vmin.f32 %v18673_v55, %v13494_v25  ;;  %v13786_v63 = vmin.f32 %v18679_v6, %v13507_v32 }
 0x359   :  { %18664 = vst [vmem:[#allocation54_spill] sm:$0xff] %v13748_v10  ;;  %18666 = vst [vmem:[#allocation76_spill] sm:$0xff] %v13752_v37  ;;  %v13761_v57 = vmin.f32 %v18669_v43, %v13480_v48  ;;  %v13774_v61 = vmin.f32 %v13124_v33, %v18675_v22  ;;  %v18678_v48 = vld [vmem:[#allocation220_spill] sm:$0xff]  ;;  %v18680_v25 = vrot.slane %v13144_v4, 3  ;;  %v18681_v33 = vld [vmem:[#allocation126_spill] sm:$0xff]  ;;  %v18686_v32 = vrot.slane %v13164_v0, 3 }
 0x35a   :  { %v13757_v26 = vmin.f32 %v18667_v13, %v18668_v15  ;;  %18674 = vst [vmem:[#allocation192_spill] sm:$0xff] %v13769_v49  ;;  %v18677_v13 = vld [vmem:[#allocation187_spill] sm:$0xff]  ;;  %v13782_v43 = vmin.f32 %v18678_v48, %v13502_v18  ;;  %v13795_v22 = vmin.f32 %v18681_v33, %v13512_v31  ;;  %v18685_v18 = vld [vmem:[#allocation142_spill] sm:$0xff] }
 0x35b   :  { %18670 = vst [vmem:[#allocation168_spill] sm:$0xff] %v13761_v57  ;;  %18676 = vst [vmem:[#allocation129_spill] sm:$0xff] %v13774_v61  ;;  %v13778_v15 = vmin.f32 %v18677_v13, %v13497_v58  ;;  %v13791_v55 = vmin.f32 %v13144_v4, %v18680_v25  ;;  %v18682_v61 = vld [vmem:[#allocation225_spill] sm:$0xff]  ;;  %v13803_v48 = vmin.f32 %v18685_v18, %v13522_v40  ;;  %v18687_v4 = vld [vmem:[#allocation20_spill] sm:$0xff] }
 0x35c   :  { %v18683_v58 = vld [vmem:[#allocation61_spill] sm:$0xff]  ;;  %v13808_v6 = vmin.f32 %v13164_v0, %v18686_v32  ;;  %v13812_v25 = vmin.f32 %v18687_v4, %v13528_v14  ;;  %v18688_v31 = vld [vmem:[#allocation202_spill] sm:$0xff]  ;;  %v18693_v14 = vld [vmem:[#allocation87_spill] sm:$0xff] }
 0x35d   :  { %v13799_v13 = vmin.f32 %v18683_v58, %v18682_v61  ;;  %v13816_v33 = vmin.f32 %v18688_v31, %v13531_v2  ;;  %v18689_v61 = vld [vmem:[#allocation125_spill] sm:$0xff]  ;;  %v13833_v4 = vmin.f32 %v18693_v14, %v13546_v7  ;;  %v18694_v2 = vld [vmem:[#allocation128_spill] sm:$0xff] }
 0x35e   :  { %v13820_v58 = vmin.f32 %v18689_v61, %v13538_v60  ;;  %v18692_v0 = vld [vmem:[#allocation89_spill] sm:$0xff]  ;;  %v13837_v31 = vmin.f32 %v18694_v2, %v13551_v21  ;;  %v18695_v60 = vrot.slane %v13204_v1, 3  ;;  %v18698_v7 = vld [vmem:[#allocation36_spill] sm:$0xff]  ;;  %v18699_v21 = vrot.slane %v13224_v24, 3 }
 0x35f   :  { %18684 = vst [vmem:[#allocation131_spill] sm:$0xff] %v13799_v13  ;;  %v18690_v13 = vld [vmem:[#allocation92_spill] sm:$0xff]  ;;  %v13829_v32 = vmin.f32 %v18692_v0, %v13541_v45  ;;  %v18697_v45 = vld [vmem:[#allocation33_spill] sm:$0xff]  ;;  %v13854_v14 = vmin.f32 %v18698_v7, %v13567_v62  ;;  %v18706_v62 = vrot.slane %v13244_v42, 3 }
 0x360   :  { %v18691_v40 = vrot.slane %v18690_v13, 3  ;;  %v13842_v61 = vmin.f32 %v13204_v1, %v18695_v60  ;;  %v13850_v0 = vmin.f32 %v18697_v45, %v13562_v47  ;;  %v13859_v2 = vmin.f32 %v13224_v24, %v18699_v21  ;;  %v18700_v1 = vld [vmem:[#allocation90_spill] sm:$0xff]  ;;  %v18704_v47 = vld [vmem:[#allocation137_spill] sm:$0xff] }
 0x361   :  { %v13863_v60 = vmin.f32 %v18700_v1, %v13572_v56  ;;  %v13871_v45 = vmin.f32 %v18704_v47, %v13582_v34  ;;  %v13876_v7 = vmin.f32 %v13244_v42, %v18706_v62  ;;  %v18707_v24 = vld [vmem:[#allocation49_spill] sm:$0xff]  ;;  %v18709_v56 = vld [vmem:[#allocation98_spill] sm:$0xff] }
 0x362   :  { %v13825_v18 = vmin.f32 %v18690_v13, %v18691_v40  ;;  %v18696_v13 = vld [vmem:[#allocation113_spill] sm:$0xff]  ;;  %v13880_v21 = vmin.f32 %v18707_v24, %v13588_v35  ;;  %v13884_v1 = vmin.f32 %v18709_v56, %v13591_v30  ;;  %v18718_v42 = vld [vmem:[#allocation26_spill] sm:$0xff]  ;;  %v18720_v35 = vld [vmem:[#allocation67_spill] sm:$0xff] }
 0x363   :  { %v13846_v40 = vmin.f32 %v18696_v13, %v13556_v19  ;;  %18701 = vst [vmem:[#allocation85_spill] sm:$0xff] %v13863_v60  ;;  %v18702_v19 = vld [vmem:[#allocation106_spill] sm:$0xff]  ;;  %18705 = vst [vmem:[#allocation83_spill] sm:$0xff] %v13871_v45  ;;  %v18711_v60 = vld [vmem:[#allocation256_spill] sm:$0xff]  ;;  %v13901_v24 = vmin.f32 %v18720_v35, %v13606_v54 }
 0x364   :  { %v13867_v13 = vmin.f32 %v18702_v19, %v13575_v9  ;;  %18708 = vst [vmem:[#allocation53_spill] sm:$0xff] %v13880_v21  ;;  %18710 = vst [vmem:[#allocation247_spill] sm:$0xff] %v13884_v1  ;;  %v18712_v9 = vld [vmem:[#allocation196_spill] sm:$0xff]  ;;  %v18717_v45 = vld [vmem:[#allocation42_spill] sm:$0xff] }
 0x365   :  { %v13888_v19 = vmin.f32 %v18712_v9, %v18711_v60  ;;  %v13897_v62 = vmin.f32 %v18718_v42, %v18717_v45  ;;  %18721 = vst [vmem:[#allocation146_spill] sm:$0xff] %v13901_v24  ;;  %v18722_v21 = vld [vmem:[#allocation64_spill] sm:$0xff]  ;;  %v18723_v30 = vld [vmem:[#allocation93_spill] sm:$0xff]  ;;  %v18731_v45 = vld [vmem:[#allocation47_spill] sm:$0xff] }
 0x366   :  { %18703 = vst [vmem:[#allocation130_spill] sm:$0xff] %v13867_v13  ;;  %v18714_v13 = vld [vmem:[#allocation227_spill] sm:$0xff]  ;;  %v13905_v56 = vmin.f32 %v18723_v30, %v18722_v21  ;;  %v18725_v1 = vld [vmem:[#allocation69_spill] sm:$0xff]  ;;  %v18733_v54 = vld [vmem:[#allocation118_spill] sm:$0xff] }
 0x367   :  { %18713 = vst [vmem:[#allocation134_spill] sm:$0xff] %v13888_v19  ;;  %v18715_v34 = vrot.slane %v18714_v13, 3  ;;  %18719 = vst [vmem:[#allocation65_spill] sm:$0xff] %v13897_v62  ;;  %v18726_v60 = vrot.slane %v18725_v1, 3  ;;  %v18728_v19 = vld [vmem:[#allocation182_spill] sm:$0xff]  ;;  %v18732_v62 = vld [vmem:[#allocation139_spill] sm:$0xff] }
 0x368   :  { %18724 = vst [vmem:[#allocation132_spill] sm:$0xff] %v13905_v56  ;;  %v13922_v35 = vmin.f32 %v18733_v54, %v18732_v62  ;;  %v18735_v24 = vld [vmem:[#allocation70_spill] sm:$0xff]  ;;  %v18738_v56 = vld [vmem:[#allocation120_spill] sm:$0xff]  ;;  %v18746_v62 = vrot.slane %v18634_v11, 3 }
 0x369   :  { %v13893_v47 = vmin.f32 %v18714_v13, %v18715_v34  ;;  %v13910_v9 = vmin.f32 %v18725_v1, %v18726_v60  ;;  %v18729_v13 = vld [vmem:[#allocation24_spill] sm:$0xff]  ;;  %v18736_v21 = vrot.slane %v18735_v24, 3  ;;  %v18739_v1 = vld [vmem:[#allocation165_spill] sm:$0xff] }
 0x36a   :  { %v13914_v34 = vmin.f32 %v18729_v13, %v18728_v19  ;;  %18734 = vst [vmem:[#allocation216_spill] sm:$0xff] %v13922_v35  ;;  %v13931_v60 = vmin.f32 %v18739_v1, %v18738_v56  ;;  %v18742_v19 = vld [vmem:[#allocation37_spill] sm:$0xff]  ;;  %v13944_v54 = vmin.f32 %v18634_v11, %v18746_v62  ;;  %v18747_v35 = vld [vmem:[#allocation127_spill] sm:$0xff]  ;;  %v18750_v56 = vld [vmem:[#allocation96_spill] sm:$0xff] }
 0x36b   :  { %18716 = vst [vmem:[#allocation232_spill] sm:$0xff] %v13893_v47  ;;  %18727 = vst [vmem:[#allocation35_spill] sm:$0xff] %v13910_v9  ;;  %v18730_v47 = vld [vmem:[#allocation74_spill] sm:$0xff]  ;;  %v13927_v30 = vmin.f32 %v18735_v24, %v18736_v21  ;;  %v18748_v24 = vld [vmem:[#allocation28_spill] sm:$0xff] }
 0x36c   :  { %v13918_v42 = vmin.f32 %v18731_v45, %v18730_v47  ;;  %18740 = vst [vmem:[#allocation223_spill] sm:$0xff] %v13931_v60  ;;  %v18741_v9 = vld [vmem:[#allocation226_spill] sm:$0xff]  ;;  %v18744_v47 = vld [vmem:[#allocation99_spill] sm:$0xff]  ;;  %v13948_v21 = vmin.f32 %v18748_v24, %v18747_v35  ;;  %v18756_v11 = vld [vmem:[#allocation25_spill] sm:$0xff] }
 0x36d   :  { %18737 = vst [vmem:[#allocation107_spill] sm:$0xff] %v13927_v30  ;;  %v13935_v13 = vmin.f32 %v18742_v19, %v18741_v9  ;;  %v13939_v45 = vmin.f32 %v18744_v47, %v13642_v59  ;;  %v18749_v30 = vld [vmem:[#allocation147_spill] sm:$0xff]  ;;  %v18752_v9 = vld [vmem:[#allocation44_spill] sm:$0xff]  ;;  %v18757_v35 = vld [vmem:[#allocation205_spill] sm:$0xff] }
 0x36e   :  { %v13952_v1 = vmin.f32 %v18750_v56, %v18749_v30  ;;  %v18751_v60 = vld [vmem:[#allocation111_spill] sm:$0xff]  ;;  %v13969_v24 = vmin.f32 %v18757_v35, %v13666_v3  ;;  %v18763_v3 = vld [vmem:[#allocation56_spill] sm:$0xff] }
 0x36f   :  { %18743 = vst [vmem:[#allocation117_spill] sm:$0xff] %v13935_v13  ;;  %18745 = vst [vmem:[#allocation57_spill] sm:$0xff] %v13939_v45  ;;  %v13956_v19 = vmin.f32 %v18752_v9, %v18751_v60  ;;  %v18753_v13 = vld [vmem:[#allocation246_spill] sm:$0xff]  ;;  %v18755_v45 = vld [vmem:[#allocation229_spill] sm:$0xff]  ;;  %v18759_v60 = vrot.slane %v18645_v36, 3  ;;  %v13990_v35 = vmin.f32 %v18763_v3, %v13687_v16  ;;  %v18772_v16 = vrot.slane %v13404_v17, 3 }
 0x370   :  { %v18754_v59 = vrot.slane %v18753_v13, 3  ;;  %v13965_v62 = vmin.f32 %v18756_v11, %v18755_v45  ;;  %v18758_v30 = vld [vmem:[#allocation71_spill] sm:$0xff] }
 0x371   :  { %v13973_v56 = vmin.f32 %v18758_v30, %v13671_v52  ;;  %v13978_v9 = vmin.f32 %v18645_v36, %v18759_v60  ;;  %v18762_v45 = vld [vmem:[#allocation59_spill] sm:$0xff]  ;;  %v18764_v52 = vrot.slane %v13384_v27, 3  ;;  %v18765_v36 = vld [vmem:[#allocation210_spill] sm:$0xff]  ;;  %v14012_v3 = vmin.f32 %v13404_v17, %v18772_v16  ;;  %v18782_v17 = vld [vmem:[#allocation68_spill] sm:$0xff] }
 0x372   :  { %v13961_v47 = vmin.f32 %v18753_v13, %v18754_v59  ;;  %v18761_v13 = vld [vmem:[#allocation161_spill] sm:$0xff]  ;;  %v13986_v11 = vmin.f32 %v18762_v45, %v13682_v44  ;;  %v13999_v60 = vmin.f32 %v18765_v36, %v13692_v50  ;;  %v18770_v44 = vld [vmem:[#allocation80_spill] sm:$0xff] }
 0x373   :  { %18760 = vst [vmem:[#allocation189_spill] sm:$0xff] %v13978_v9  ;;  %v13982_v59 = vmin.f32 %v18761_v13, %v13676_v29  ;;  %v13995_v30 = vmin.f32 %v13384_v27, %v18764_v52  ;;  %v18767_v9 = vld [vmem:[#allocation148_spill] sm:$0xff]  ;;  %v18768_v29 = vld [vmem:[#allocation75_spill] sm:$0xff]  ;;  %v14007_v45 = vmin.f32 %v18770_v44, %v13702_v20  ;;  %18773 = vst [vmem:[#allocation228_spill] sm:$0xff] %v14012_v3  ;;  %v18779_v20 = vrot.slane %v13424_v5, 3 }
 0x374   :  { %18766 = vst [vmem:[#allocation60_spill] sm:$0xff] %v13999_v60  ;;  %v14003_v13 = vmin.f32 %v18768_v29, %v18767_v9  ;;  %v18774_v27 = vld [vmem:[#allocation169_spill] sm:$0xff]  ;;  %v18775_v50 = vld [vmem:[#allocation204_spill] sm:$0xff]  ;;  %v18777_v9 = vld [vmem:[#allocation31_spill] sm:$0xff] }
 0x375   :  { %18771 = vst [vmem:[#allocation119_spill] sm:$0xff] %v14007_v45  ;;  %v14016_v52 = vmin.f32 %v18774_v27, %v13708_v8  ;;  %v14020_v36 = vmin.f32 %v18775_v50, %v13711_v51  ;;  %v14024_v29 = vmin.f32 %v18777_v9, %v13718_v38  ;;  %v14029_v44 = vmin.f32 %v13424_v5, %v18779_v20  ;;  %v18781_v45 = vld [vmem:[#allocation250_spill] sm:$0xff]  ;;  %v18784_v8 = vld [vmem:[#allocation72_spill] sm:$0xff]  ;;  %v18786_v51 = vld [vmem:[#allocation123_spill] sm:$0xff] }
 0x376   :  { %18769 = vst [vmem:[#allocation102_spill] sm:$0xff] %v14003_v13  ;;  %v14033_v16 = vmin.f32 %v18782_v17, %v18781_v45  ;;  %v14037_v27 = vmin.f32 %v18784_v8, %v13728_v41  ;;  %v14041_v50 = vmin.f32 %v18786_v51, %v13733_v12  ;;  %v18791_v5 = vld [vmem:[#allocation156_spill] sm:$0xff]  ;;  %v18792_v20 = vld [vmem:[#allocation34_spill] sm:$0xff]  ;;  %v18794_v45 = vld [vmem:[#allocation19_spill] sm:$0xff]  ;;  %v18797_v12 = vmin.f32 %v18656_v39, %v13464_v53 }
 0x377   :  { %18776 = vst [vmem:[#allocation108_spill] sm:$0xff] %v14020_v36  ;;  %18778 = vst [vmem:[#allocation23_spill] sm:$0xff] %v14024_v29  ;;  %v18788_v36 = vld [vmem:[#allocation215_spill] sm:$0xff]  ;;  %v18795_v17 = vld [vmem:[#allocation73_spill] sm:$0xff]  ;;  %v14086_v39 = vmax.f32 %v13778_v15, %v13795_v22 }
 0x378   :  { %18780 = vst [vmem:[#allocation91_spill] sm:$0xff] %v14029_v44  ;;  %18783 = vst [vmem:[#allocation144_spill] sm:$0xff] %v14033_v16  ;;  %v18789_v38 = vrot.slane %v18788_v36, 3  ;;  %v18793_v44 = vmin.f32 %v18791_v5, %v18792_v20  ;;  %v18796_v41 = vmin.f32 %v18794_v45, %v18795_v17  ;;  %v14064_v51 = vmax.f32 %v18797_v12, %v13752_v37  ;;  %v18801_v20 = vld [vmem:[#allocation129_spill] sm:$0xff]  ;;  %v18803_v45 = vld [vmem:[#allocation131_spill] sm:$0xff] }
 0x379   :  { %18785 = vst [vmem:[#allocation157_spill] sm:$0xff] %v14037_v27  ;;  %18787 = vst [vmem:[#allocation251_spill] sm:$0xff] %v14041_v50  ;;  %v14078_v5 = vmax.f32 %v13769_v49, %v13786_v63  ;;  %v14082_v53 = vmax.f32 %v18801_v20, %v13791_v55  ;;  %v14090_v17 = vmax.f32 %v13782_v43, %v18803_v45  ;;  %v18815_v20 = vld [vmem:[#allocation85_spill] sm:$0xff]  ;;  %v18816_v37 = vld [vmem:[#allocation130_spill] sm:$0xff] }
 0x37a   :  { %v14046_v9 = vmin.f32 %v18788_v36, %v18789_v38  ;;  %v14052_v29 = vmax.f32 %v18793_v44, %v13744_v46  ;;  %v14058_v8 = vmax.f32 %v18796_v41, %v13748_v10  ;;  %v14070_v38 = vmax.f32 %v13761_v57, %v13778_v15  ;;  %v18817_v49 = vld [vmem:[#allocation83_spill] sm:$0xff]  ;;  %v18820_v10 = vld [vmem:[#allocation53_spill] sm:$0xff]  ;;  %v18824_v46 = vld [vmem:[#allocation134_spill] sm:$0xff] }
 0x37b   :  { %v14074_v44 = vmax.f32 %v13765_v23, %v13782_v43  ;;  %18800 = vst [vmem:[#allocation17_spill] sm:$0xff] %v14078_v5  ;;  %18802 = vst [vmem:[#allocation167_spill] sm:$0xff] %v14082_v53  ;;  %v14094_v41 = vmax.f32 %v13786_v63, %v13803_v48  ;;  %v14098_v12 = vmax.f32 %v13791_v55, %v13808_v6  ;;  %v18822_v23 = vld [vmem:[#allocation247_spill] sm:$0xff]  ;;  %v18826_v57 = vld [vmem:[#allocation232_spill] sm:$0xff] }
 0x37c   :  { %18790 = vst [vmem:[#allocation252_spill] sm:$0xff] %v14046_v9  ;;  %18798 = vst [vmem:[#allocation21_spill] sm:$0xff] %v14070_v38  ;;  %v14102_v36 = vmax.f32 %v13795_v22, %v13812_v25  ;;  %v14106_v15 = vmax.f32 %v18803_v45, %v13816_v33  ;;  %v14110_v43 = vmax.f32 %v13803_v48, %v13820_v58 }
 0x37d   :  { %18799 = vst [vmem:[#allocation171_spill] sm:$0xff] %v14074_v44  ;;  %v14114_v63 = vmax.f32 %v13808_v6, %v13825_v18  ;;  %v14118_v55 = vmax.f32 %v13812_v25, %v13829_v32  ;;  %v14122_v22 = vmax.f32 %v13816_v33, %v13833_v4  ;;  %v14126_v45 = vmax.f32 %v13820_v58, %v13837_v31 }
 0x37e   :  { %18804 = vst [vmem:[#allocation253_spill] sm:$0xff] %v14102_v36  ;;  %18805 = vst [vmem:[#allocation145_spill] sm:$0xff] %v14106_v15  ;;  %v14130_v48 = vmax.f32 %v13825_v18, %v13842_v61  ;;  %v14134_v6 = vmax.f32 %v13829_v32, %v13846_v40  ;;  %v14138_v25 = vmax.f32 %v13833_v4, %v13850_v0 }
 0x37f   :  { %18806 = vst [vmem:[#allocation254_spill] sm:$0xff] %v14110_v43  ;;  %18807 = vst [vmem:[#allocation114_spill] sm:$0xff] %v14114_v63  ;;  %v14142_v33 = vmax.f32 %v13837_v31, %v13854_v14  ;;  %v14146_v58 = vmax.f32 %v13842_v61, %v13859_v2  ;;  %v14150_v18 = vmax.f32 %v13846_v40, %v18815_v20 }
 0x380   :  { %18808 = vst [vmem:[#allocation18_spill] sm:$0xff] %v14122_v22  ;;  %18809 = vst [vmem:[#allocation173_spill] sm:$0xff] %v14126_v45  ;;  %v14154_v32 = vmax.f32 %v13850_v0, %v18816_v37  ;;  %v14158_v4 = vmax.f32 %v13854_v14, %v18817_v49  ;;  %v14162_v31 = vmax.f32 %v13859_v2, %v13876_v7 }
 0x381   :  { %18810 = vst [vmem:[#allocation77_spill] sm:$0xff] %v14130_v48  ;;  %18811 = vst [vmem:[#allocation179_spill] sm:$0xff] %v14134_v6  ;;  %v14166_v61 = vmax.f32 %v18815_v20, %v18820_v10  ;;  %v14170_v40 = vmax.f32 %v18816_v37, %v18822_v23  ;;  %v14174_v0 = vmax.f32 %v18817_v49, %v18824_v46 }
 0x382   :  { %18812 = vst [vmem:[#allocation40_spill] sm:$0xff] %v14138_v25  ;;  %18813 = vst [vmem:[#allocation138_spill] sm:$0xff] %v14142_v33  ;;  %v14178_v14 = vmax.f32 %v13876_v7, %v18826_v57 }
 0x383   :  { %18814 = vst [vmem:[#allocation159_spill] sm:$0xff] %v14146_v58  ;;  %18818 = vst [vmem:[#allocation16_spill] sm:$0xff] %v14158_v4  ;;  %v18828_v4 = vld [vmem:[#allocation65_spill] sm:$0xff] }
 0x384   :  { %18819 = vst [vmem:[#allocation249_spill] sm:$0xff] %v14162_v31  ;;  %18821 = vst [vmem:[#allocation58_spill] sm:$0xff] %v14166_v61  ;;  %v14182_v2 = vmax.f32 %v18820_v10, %v18828_v4  ;;  %v18830_v31 = vld [vmem:[#allocation146_spill] sm:$0xff]  ;;  %v18832_v61 = vld [vmem:[#allocation132_spill] sm:$0xff]  ;;  %v14198_v7 = vmax.f32 %v18828_v4, %v13914_v34 }
 0x385   :  { %18823 = vst [vmem:[#allocation154_spill] sm:$0xff] %v14170_v40  ;;  %18825 = vst [vmem:[#allocation94_spill] sm:$0xff] %v14174_v0  ;;  %v14186_v20 = vmax.f32 %v18822_v23, %v18830_v31  ;;  %v14190_v37 = vmax.f32 %v18824_v46, %v18832_v61  ;;  %v18834_v40 = vld [vmem:[#allocation35_spill] sm:$0xff]  ;;  %v14202_v10 = vmax.f32 %v18830_v31, %v13918_v42 }
 0x386   :  { %18827 = vst [vmem:[#allocation153_spill] sm:$0xff] %v14178_v14  ;;  %18829 = vst [vmem:[#allocation41_spill] sm:$0xff] %v14182_v2  ;;  %v14194_v49 = vmax.f32 %v18826_v57, %v18834_v40  ;;  %v18838_v14 = vld [vmem:[#allocation216_spill] sm:$0xff]  ;;  %v18840_v0 = vld [vmem:[#allocation107_spill] sm:$0xff] }
 0x387   :  { %18831 = vst [vmem:[#allocation183_spill] sm:$0xff] %v14186_v20  ;;  %18833 = vst [vmem:[#allocation32_spill] sm:$0xff] %v14190_v37  ;;  %v14206_v23 = vmax.f32 %v18832_v61, %v18838_v14  ;;  %v14210_v46 = vmax.f32 %v18834_v40, %v18840_v0  ;;  %v18842_v37 = vld [vmem:[#allocation223_spill] sm:$0xff]  ;;  %v14226_v61 = vmax.f32 %v18840_v0, %v13944_v54 }
 0x388   :  { %18835 = vst [vmem:[#allocation105_spill] sm:$0xff] %v14194_v49  ;;  %18836 = vst [vmem:[#allocation86_spill] sm:$0xff] %v14198_v7  ;;  %v14214_v57 = vmax.f32 %v13914_v34, %v18842_v37  ;;  %v18843_v49 = vld [vmem:[#allocation117_spill] sm:$0xff]  ;;  %v14230_v40 = vmax.f32 %v18842_v37, %v13948_v21  ;;  %v14246_v0 = vmax.f32 %v13948_v21, %v13965_v62 }
 0x389   :  { %18837 = vst [vmem:[#allocation62_spill] sm:$0xff] %v14202_v10  ;;  %18839 = vst [vmem:[#allocation121_spill] sm:$0xff] %v14206_v23  ;;  %v14218_v4 = vmax.f32 %v13918_v42, %v18843_v49  ;;  %v18844_v7 = vld [vmem:[#allocation57_spill] sm:$0xff]  ;;  %v14234_v34 = vmax.f32 %v18843_v49, %v13952_v1  ;;  %v14250_v37 = vmax.f32 %v13952_v1, %v13969_v24 }
 0x38a   :  { %18841 = vst [vmem:[#allocation81_spill] sm:$0xff] %v14210_v46  ;;  %v14222_v31 = vmax.f32 %v18838_v14, %v18844_v7  ;;  %18845 = vst [vmem:[#allocation66_spill] sm:$0xff] %v14230_v40  ;;  %v14238_v42 = vmax.f32 %v18844_v7, %v13956_v19  ;;  %v14242_v14 = vmax.f32 %v13944_v54, %v13961_v47 }
 0x38b   :  { %18846 = vst [vmem:[#allocation184_spill] sm:$0xff] %v14234_v34  ;;  %18849 = vst [vmem:[#allocation206_spill] sm:$0xff] %v14250_v37  ;;  %v14254_v49 = vmax.f32 %v13956_v19, %v13973_v56  ;;  %v18851_v34 = vld [vmem:[#allocation189_spill] sm:$0xff]  ;;  %v14262_v54 = vmax.f32 %v13965_v62, %v13982_v59  ;;  %v14266_v21 = vmax.f32 %v13969_v24, %v13986_v11 }
 0x38c   :  { %18847 = vst [vmem:[#allocation110_spill] sm:$0xff] %v14238_v42  ;;  %18848 = vst [vmem:[#allocation224_spill] sm:$0xff] %v14242_v14  ;;  %v14258_v7 = vmax.f32 %v13961_v47, %v18851_v34  ;;  %v14270_v1 = vmax.f32 %v13973_v56, %v13990_v35  ;;  %v14274_v19 = vmax.f32 %v18851_v34, %v13995_v30  ;;  %v18857_v14 = vld [vmem:[#allocation119_spill] sm:$0xff] }
 0x38d   :  { %18850 = vst [vmem:[#allocation124_spill] sm:$0xff] %v14254_v49  ;;  %18853 = vst [vmem:[#allocation115_spill] sm:$0xff] %v14262_v54  ;;  %v14278_v47 = vmax.f32 %v13982_v59, %v13999_v60  ;;  %v14282_v62 = vmax.f32 %v13986_v11, %v14003_v13  ;;  %v14286_v24 = vmax.f32 %v13990_v35, %v18857_v14  ;;  %v18861_v60 = vld [vmem:[#allocation23_spill] sm:$0xff] }
 0x38e   :  { %18852 = vst [vmem:[#allocation97_spill] sm:$0xff] %v14258_v7  ;;  %18854 = vst [vmem:[#allocation22_spill] sm:$0xff] %v14266_v21  ;;  %v14290_v56 = vmax.f32 %v13995_v30, %v14012_v3  ;;  %v14294_v34 = vmax.f32 %v14016_v52, %v14033_v16  ;;  %v14302_v11 = vmax.f32 %v18861_v60, %v14041_v50  ;;  %v18863_v13 = vld [vmem:[#allocation91_spill] sm:$0xff] }
 0x38f   :  { %18855 = vst [vmem:[#allocation257_spill] sm:$0xff] %v14270_v1  ;;  %18856 = vst [vmem:[#allocation258_spill] sm:$0xff] %v14274_v19  ;;  %v18859_v19 = vld [vmem:[#allocation108_spill] sm:$0xff]  ;;  %v14306_v35 = vmax.f32 %v18863_v13, %v14046_v9  ;;  %v5005_v30 = vmax.f32 %v14052_v29, %v14070_v38  ;;  %v5006_v3 = vmax.f32 %v14058_v8, %v14074_v44 }
 0x390   :  { %18858 = vst [vmem:[#allocation160_spill] sm:$0xff] %v14294_v34  ;;  %v14298_v59 = vmax.f32 %v18859_v19, %v14037_v27  ;;  %18862 = vst [vmem:[#allocation155_spill] sm:$0xff] %v14302_v11  ;;  %v5007_v16 = vmax.f32 %v14064_v51, %v14078_v5  ;;  %v18865_v27 = vmax.f32 %v13740_v28, %v13757_v26  ;;  %v18870_v44 = vld [vmem:[#allocation32_spill] sm:$0xff] }
 0x391   :  { %18864 = vst [vmem:[#allocation149_spill] sm:$0xff] %v14306_v35  ;;  %v5017_v50 = vmax.f32 %v14086_v39, %v14118_v55  ;;  %v5018_v9 = vmax.f32 %v14090_v17, %v14122_v22  ;;  %v5019_v29 = vmax.f32 %v14094_v41, %v14126_v45  ;;  %v5020_v8 = vmax.f32 %v14098_v12, %v14130_v48  ;;  %v18871_v38 = vld [vmem:[#allocation16_spill] sm:$0xff]  ;;  %v18877_v48 = vld [vmem:[#allocation58_spill] sm:$0xff]  ;;  %v18880_v22 = vld [vmem:[#allocation153_spill] sm:$0xff] }
 0x392   :  { %18860 = vst [vmem:[#allocation50_spill] sm:$0xff] %v14298_v59  ;;  %v5008_v14 = vmax.f32 %v18865_v27, %v14082_v53  ;;  %v14328_v51 = vmax.f32 %v14102_v36, %v14134_v6  ;;  %v14332_v28 = vmax.f32 %v14106_v15, %v14138_v25  ;;  %v14336_v27 = vmax.f32 %v14110_v43, %v14142_v33  ;;  %v18873_v15 = vld [vmem:[#allocation105_spill] sm:$0xff]  ;;  %v18876_v43 = vld [vmem:[#allocation86_spill] sm:$0xff] }
 0x393   :  { %v14340_v53 = vmax.f32 %v14114_v63, %v14146_v58  ;;  %v14344_v5 = vmax.f32 %v14150_v18, %v14182_v2  ;;  %v14348_v6 = vmax.f32 %v14154_v32, %v14186_v20  ;;  %v14352_v25 = vmax.f32 %v18871_v38, %v18870_v44  ;;  %v18874_v36 = vld [vmem:[#allocation249_spill] sm:$0xff]  ;;  %v18878_v63 = vld [vmem:[#allocation154_spill] sm:$0xff] }
 0x394   :  { %18866 = vst [vmem:[#allocation248_spill] sm:$0xff] %v14336_v27  ;;  %v14356_v33 = vmax.f32 %v18874_v36, %v18873_v15  ;;  %v14360_v58 = vmax.f32 %v18877_v48, %v18876_v43  ;;  %v14364_v2 = vmax.f32 %v18878_v63, %v14202_v10  ;;  %v18879_v45 = vld [vmem:[#allocation94_spill] sm:$0xff]  ;;  %v14372_v44 = vmax.f32 %v18880_v22, %v14210_v46  ;;  %v18887_v22 = vld [vmem:[#allocation184_spill] sm:$0xff] }
 0x395   :  { %18867 = vst [vmem:[#allocation78_spill] sm:$0xff] %v14340_v53  ;;  %18868 = vst [vmem:[#allocation140_spill] sm:$0xff] %v14344_v5  ;;  %v14368_v20 = vmax.f32 %v18879_v45, %v14206_v23  ;;  %v14376_v15 = vmax.f32 %v14214_v57, %v14246_v0  ;;  %v14380_v43 = vmax.f32 %v14218_v4, %v14250_v37  ;;  %v18891_v37 = vld [vmem:[#allocation224_spill] sm:$0xff] }
 0x396   :  { %18869 = vst [vmem:[#allocation63_spill] sm:$0xff] %v14348_v6  ;;  %18872 = vst [vmem:[#allocation255_spill] sm:$0xff] %v14352_v25  ;;  %v14384_v10 = vmax.f32 %v14222_v31, %v14254_v49  ;;  %v14388_v23 = vmax.f32 %v14226_v61, %v14258_v7  ;;  %v14392_v46 = vmax.f32 %v14230_v40, %v14262_v54  ;;  %v18890_v48 = vld [vmem:[#allocation258_spill] sm:$0xff] }
 0x397   :  { %18875 = vst [vmem:[#allocation141_spill] sm:$0xff] %v14356_v33  ;;  %18881 = vst [vmem:[#allocation116_spill] sm:$0xff] %v14372_v44  ;;  %v14396_v45 = vmax.f32 %v18887_v22, %v14266_v21  ;;  %v14400_v63 = vmax.f32 %v14238_v42, %v14270_v1  ;;  %v14404_v49 = vmax.f32 %v18891_v37, %v18890_v48 }
 0x398   :  { %18882 = vst [vmem:[#allocation186_spill] sm:$0xff] %v14376_v15  ;;  %18883 = vst [vmem:[#allocation193_spill] sm:$0xff] %v14380_v43  ;;  %v14408_v7 = vmax.f32 %v14278_v47, %v14294_v34  ;;  %v14412_v54 = vmax.f32 %v14282_v62, %v14298_v59  ;;  %v14416_v21 = vmax.f32 %v14286_v24, %v14302_v11 }
 0x399   :  { %18884 = vst [vmem:[#allocation39_spill] sm:$0xff] %v14384_v10  ;;  %18885 = vst [vmem:[#allocation151_spill] sm:$0xff] %v14388_v23  ;;  %v14420_v1 = vmax.f32 %v14290_v56, %v14306_v35  ;;  %v5097_v42 = vmax.f32 %v5005_v30, %v14328_v51  ;;  %v5098_v48 = vmax.f32 %v5006_v3, %v14332_v28 }
 0x39a   :  { %18886 = vst [vmem:[#allocation187_spill] sm:$0xff] %v14392_v46  ;;  %18888 = vst [vmem:[#allocation220_spill] sm:$0xff] %v14396_v45  ;;  %v5099_v37 = vmax.f32 %v5007_v16, %v14336_v27  ;;  %v5100_v34 = vmax.f32 %v5008_v14, %v14340_v53  ;;  %v5109_v22 = vmax.f32 %v5017_v50, %v14344_v5 }
 0x39b   :  { %18889 = vst [vmem:[#allocation162_spill] sm:$0xff] %v14400_v63  ;;  %18892 = vst [vmem:[#allocation126_spill] sm:$0xff] %v14404_v49  ;;  %v5110_v59 = vmax.f32 %v5018_v9, %v14348_v6  ;;  %v5111_v40 = vmax.f32 %v5019_v29, %v14352_v25  ;;  %v5112_v11 = vmax.f32 %v5020_v8, %v14356_v33 }
 0x39c   :  { %18893 = vst [vmem:[#allocation225_spill] sm:$0xff] %v14408_v7  ;;  %18894 = vst [vmem:[#allocation61_spill] sm:$0xff] %v14412_v54  ;;  %v14432_v35 = vmax.f32 %v14360_v58, %v14392_v46  ;;  %v14436_v30 = vmax.f32 %v14364_v2, %v14396_v45  ;;  %v14440_v3 = vmax.f32 %v14368_v20, %v14400_v63  ;;  %v18926_v46 = vld [vmem:[#allocation143_spill] sm:$0xff] }
 0x39d   :  { %18895 = vst [vmem:[#allocation142_spill] sm:$0xff] %v14416_v21  ;;  %18896 = vst [vmem:[#allocation20_spill] sm:$0xff] %v14420_v1  ;;  %v14444_v16 = vmax.f32 %v14372_v44, %v14404_v49  ;;  %v5141_v50 = vmax.f32 %v14376_v15, %v14408_v7  ;;  %v5142_v9 = vmax.f32 %v14380_v43, %v14412_v54 }
 0x39e   :  { %18897 = vst [vmem:[#allocation202_spill] sm:$0xff] %v14432_v35  ;;  %18898 = vst [vmem:[#allocation125_spill] sm:$0xff] %v14436_v30  ;;  %v5143_v14 = vmax.f32 %v14384_v10, %v14416_v21  ;;  %v5144_v29 = vmax.f32 %v14388_v23, %v14420_v1  ;;  %v5173_v8 = vmax.f32 %v5097_v42, %v14432_v35  ;;  %v18905_v21 = vld [vmem:[#allocation198_spill] sm:$0xff]  ;;  %v18906_v10 = vld [vmem:[#allocation195_spill] sm:$0xff] }
 0x39f   :  { %18899 = vst [vmem:[#allocation92_spill] sm:$0xff] %v14440_v3  ;;  %18900 = vst [vmem:[#allocation89_spill] sm:$0xff] %v14444_v16  ;;  %v5174_v33 = vmax.f32 %v5098_v48, %v14436_v30  ;;  %v5175_v25 = vmax.f32 %v5099_v37, %v14440_v3  ;;  %v5176_v6 = vmax.f32 %v5100_v34, %v14444_v16  ;;  %v18908_v1 = vld [vmem:[#allocation95_spill] sm:$0xff]  ;;  %v18911_v48 = vld [vmem:[#allocation197_spill] sm:$0xff] }
 0x3a0   :  { %v14458_v5 = vmax.f32 %v5109_v22, %v5141_v50  ;;  %v14460_v7 = vmax.f32 %v5110_v59, %v5142_v9  ;;  %v14462_v15 = vmax.f32 %v5111_v40, %v5143_v14  ;;  %v14464_v54 = vmax.f32 %v5112_v11, %v5144_v29  ;;  %v18910_v42 = vld [vmem:[#allocation199_spill] sm:$0xff]  ;;  %v18913_v37 = vld [vmem:[#allocation122_spill] sm:$0xff]  ;;  %v18915_v22 = vld [vmem:[#allocation200_spill] sm:$0xff] }
 0x3a1   :  { %v18907_v43 = vmin.f32 %v18905_v21, %v18906_v10  ;;  %v18912_v30 = vmin.f32 %v18910_v42, %v18911_v48  ;;  %v18916_v34 = vld [vmem:[#allocation231_spill] sm:$0xff]  ;;  %v18918_v50 = vld [vmem:[#allocation170_spill] sm:$0xff]  ;;  %v18920_v11 = vld [vmem:[#allocation172_spill] sm:$0xff] }
 0x3a2   :  { %18901 = vst [vmem:[#allocation87_spill] sm:$0xff] %v14458_v5  ;;  %18902 = vst [vmem:[#allocation128_spill] sm:$0xff] %v14460_v7  ;;  %v18917_v59 = vmin.f32 %v18915_v22, %v18916_v34  ;;  %v18921_v9 = vld [vmem:[#allocation48_spill] sm:$0xff]  ;;  %v5217_v10 = vmax.f32 %v5173_v8, %v14458_v5  ;;  %v5219_v21 = vmax.f32 %v5175_v25, %v14462_v15  ;;  %v18923_v42 = vld [vmem:[#allocation27_spill] sm:$0xff] }
 0x3a3   :  { %18903 = vst [vmem:[#allocation113_spill] sm:$0xff] %v14462_v15  ;;  %18904 = vst [vmem:[#allocation33_spill] sm:$0xff] %v14464_v54  ;;  %v14470_v23 = vmin.f32 %v18908_v1, %v18907_v43  ;;  %v14476_v3 = vmin.f32 %v18913_v37, %v18912_v30  ;;  %v2054_v14 = vmin.f32 %v18921_v9, %v18920_v11  ;;  %v18922_v30 = vld [vmem:[#allocation38_spill] sm:$0xff]  ;;  %v18924_v37 = vld [vmem:[#allocation43_spill] sm:$0xff] }
 0x3a4   :  { %v14482_v40 = vmin.f32 %v18918_v50, %v18917_v59  ;;  %v5218_v43 = vmax.f32 %v5174_v33, %v14460_v7  ;;  %v5220_v1 = vmax.f32 %v5176_v6, %v14464_v54  ;;  %v5281_v59 = vrot.slane %v5217_v10, 1  ;;  %v18925_v25 = vld [vmem:[#allocation174_spill] sm:$0xff] }
 0x3a5   :  { %18909 = vst [vmem:[#allocation36_spill] sm:$0xff] %v14470_v23  ;;  %18914 = vst [vmem:[#allocation90_spill] sm:$0xff] %v14476_v3  ;;  %v2051_v29 = vmin.f32 %v18922_v30, %v14470_v23  ;;  %v2052_v48 = vmin.f32 %v18923_v42, %v14476_v3  ;;  %v2464_v34 = vrot.slane %v2054_v14, 1  ;;  %v5284_v9 = vrot.slane %v5219_v21, 1 }
 0x3a6   :  { %18919 = vst [vmem:[#allocation106_spill] sm:$0xff] %v14482_v40  ;;  %v2053_v22 = vmin.f32 %v18924_v37, %v14482_v40  ;;  %v5282_v50 = vrot.slane %v5218_v43, 1  ;;  %v5286_v8 = vrot.slane %v5220_v1, 1  ;;  %v2466_v15 = vrot.slane %v18925_v25, 1 }
 0x3a7   :  { %v2459_v16 = vrot.slane %v2051_v29, 1  ;;  %v2460_v33 = vrot.slane %v2052_v48, 1 }
 0x3a8   :  { %v2462_v35 = vrot.slane %v2053_v22, 1  ;;  %v5283_v6 = vsel %vm2249_vm2, %v5281_v59, %v5282_v50  ;;  %v5285_v30 = vsel %vm2249_vm2, %v5282_v50, %v5284_v9  ;;  %v5287_v54 = vsel %vm2249_vm2, %v5284_v9, %v5286_v8 }
 0x3a9   :  { %v5372_v42 = vmax.f32 %v5220_v1, %v5286_v8  ;;  %v5369_v7 = vmax.f32 %v5217_v10, %v5283_v6  ;;  %v5370_v5 = vmax.f32 %v5218_v43, %v5285_v30  ;;  %v5371_v37 = vmax.f32 %v5219_v21, %v5287_v54 }
 0x3aa   :  { %v2461_v40 = vsel %vm2249_vm2, %v2459_v16, %v2460_v33  ;;  %v2463_v23 = vsel %vm2249_vm2, %v2460_v33, %v2462_v35  ;;  %v2465_v11 = vsel %vm2249_vm2, %v2462_v35, %v2464_v34  ;;  %v2467_v49 = vsel %vm2249_vm2, %v2464_v34, %v2466_v15 }
 0x3ab   :  { %v5438_v3 = vrot.slane %v5372_v42, 2  ;;  %v5433_v63 = vrot.slane %v5369_v7, 2  ;;  %v5434_v45 = vrot.slane %v5370_v5, 2  ;;  %v5436_v59 = vrot.slane %v5371_v37, 2 }
 0x3ac   :  { %v18927_v50 = vrot.slane %v18926_v46, 1  ;;  %v2806_v1 = vmin.f32 %v2051_v29, %v2461_v40  ;;  %v2807_v10 = vmin.f32 %v2052_v48, %v2463_v23  ;;  %v2808_v43 = vmin.f32 %v2053_v22, %v2465_v11 }
 0x3ad   :  { %v2809_v54 = vmin.f32 %v2054_v14, %v2467_v49  ;;  %v5435_v16 = vsel %vm3004_vm3, %v5433_v63, %v5434_v45  ;;  %v5437_v21 = vsel %vm3004_vm3, %v5434_v45, %v5436_v59  ;;  %v5439_v8 = vsel %vm3004_vm3, %v5436_v59, %v5438_v3  ;;  %v18928_v49 = vld [vmem:[#allocation150_spill] sm:$0xff] }
 0x3ae   :  { %v2469_v9 = vsel %vm2249_vm2, %v2466_v15, %v18927_v50  ;;  %v5513_v34 = vmax.f32 %v5369_v7, %v5435_v16  ;;  %v5514_v33 = vmax.f32 %v5370_v5, %v5437_v21  ;;  %v5515_v6 = vmax.f32 %v5371_v37, %v5439_v8 }
 0x3af   :  { %v2810_v35 = vmin.f32 %v18925_v25, %v2469_v9  ;;  %v3214_v30 = vrot.slane %v2806_v1, 2  ;;  %v3215_v42 = vrot.slane %v2807_v10, 2  ;;  %v3217_v46 = vrot.slane %v2808_v43, 2 }
 0x3b0   :  { %v3219_v53 = vrot.slane %v2809_v54, 2  ;;  %v5561_v40 = vrot.slane %v5513_v34, 4  ;;  %v5562_v23 = vrot.slane %v5514_v33, 4  ;;  %v5564_v11 = vrot.slane %v5515_v6, 4 }
 0x3b1   :  { %v3221_v15 = vrot.slane %v2810_v35, 2  ;;  %v3223_v14 = vrot.slane %v18928_v49, 2  ;;  %v3216_v63 = vsel %vm3004_vm3, %v3214_v30, %v3215_v42  ;;  %v3218_v45 = vsel %vm3004_vm3, %v3215_v42, %v3217_v46 }
 0x3b2   :  { %v3220_v3 = vsel %vm3004_vm3, %v3217_v46, %v3219_v53  ;;  %v5563_v5 = vsel %vm3759_vm4, %v5561_v40, %v5562_v23  ;;  %v5565_v29 = vsel %vm3759_vm4, %v5562_v23, %v5564_v11  ;;  %v5627_v48 = vmax.f32 %v5515_v6, %v5564_v11 }
 0x3b3   :  { %v3222_v7 = vsel %vm3004_vm3, %v3219_v53, %v3221_v15  ;;  %v3224_v22 = vsel %vm3004_vm3, %v3221_v15, %v3223_v14  ;;  %v5625_v25 = vmax.f32 %v5513_v34, %v5563_v5  ;;  %v5626_v37 = vmax.f32 %v5514_v33, %v5565_v29  ;;  %v18929_v33 = vld [vmem:[#allocation168_spill] sm:$0xff] }
 0x3b4   :  { %v3561_v59 = vmin.f32 %v2806_v1, %v3216_v63  ;;  %v3562_v50 = vmin.f32 %v2807_v10, %v3218_v45  ;;  %v3563_v9 = vmin.f32 %v2808_v43, %v3220_v3  ;;  %v3564_v16 = vmin.f32 %v2809_v54, %v3222_v7  ;;  %v18930_v1 = vld [vmem:[#allocation29_spill] sm:$0xff]  ;;  %v18931_v29 = vld [vmem:[#allocation52_spill] sm:$0xff] }
 0x3b5   :  { %v3565_v21 = vmin.f32 %v2810_v35, %v3224_v22  ;;  %v3566_v8 = vmin.f32 %v18928_v49, %v3223_v14  ;;  %v5649_v30 = vmax.f32 %v5625_v25, %v5626_v37  ;;  %v5650_v42 = vmax.f32 %v5626_v37, %v5627_v48  ;;  %v18932_v48 = vld [vmem:[#allocation54_spill] sm:$0xff] }
 0x3b6   :  { %v3969_v46 = vrot.slane %v3561_v59, 4  ;;  %v3970_v53 = vrot.slane %v3562_v50, 4  ;;  %v3972_v44 = vrot.slane %v3563_v9, 4  ;;  %v3974_v40 = vrot.slane %v3564_v16, 4 }
 0x3b7   :  { %v3976_v27 = vrot.slane %v3565_v21, 4  ;;  %v3978_v23 = vrot.slane %v3566_v8, 4  ;;  %v5681_v6 = vrot.slane %v5649_v30, 3  ;;  %v5682_v11 = vrot.slane %v5650_v42, 3  ;;  %v18933_v8 = vld [vmem:[#allocation192_spill] sm:$0xff] }
 0x3b8   :  { %v3971_v34 = vsel %vm3759_vm4, %v3969_v46, %v3970_v53  ;;  %v4909_v10 = vmax.f32 %v18930_v1, %v18929_v33  ;;  %v3973_v43 = vsel %vm3759_vm4, %v3970_v53, %v3972_v44  ;;  %v3975_v54 = vsel %vm3759_vm4, %v3972_v44, %v3974_v40  ;;  %v18934_v42 = vld [vmem:[#allocation76_spill] sm:$0xff]  ;;  %v18935_v46 = vld [vmem:[#allocation129_spill] sm:$0xff] }
 0x3b9   :  { %v3977_v35 = vsel %vm3759_vm4, %v3974_v40, %v3976_v27  ;;  %v3979_v15 = vsel %vm3759_vm4, %v3976_v27, %v3978_v23  ;;  %v5683_v49 = vsel %vm4514_vm5, %v5681_v6, %v5682_v11  ;;  %v4271_v14 = vmin.f32 %v3561_v59, %v3971_v34  ;;  %v18938_v23 = vld [vmem:[#allocation119_spill] sm:$0xff]  ;;  %v18939_v6 = vld [vmem:[#allocation228_spill] sm:$0xff] }
 0x3ba   :  { %v4272_v63 = vmin.f32 %v3562_v50, %v3973_v43  ;;  %v4273_v45 = vmin.f32 %v3563_v9, %v3975_v54  ;;  %v5713_v3 = vmax.f32 %v5649_v30, %v5683_v49  ;;  %v4274_v7 = vmin.f32 %v3564_v16, %v3977_v35  ;;  %v18936_v50 = vld [vmem:[#allocation60_spill] sm:$0xff]  ;;  %v18937_v16 = vld [vmem:[#allocation102_spill] sm:$0xff] }
 0x3bb   :  { %v4275_v5 = vmin.f32 %v3565_v21, %v3979_v15  ;;  %v4910_v22 = vmax.f32 %v18932_v48, %v18931_v29  ;;  %v4911_v44 = vmax.f32 %v18934_v42, %v18933_v8  ;;  %v4912_v53 = vmax.f32 %v13757_v26, %v18935_v46  ;;  %v18946_v29 = vld [vmem:[#allocation157_spill] sm:$0xff]  ;;  %v18947_v48 = vld [vmem:[#allocation251_spill] sm:$0xff]  ;;  %v18949_v8 = vld [vmem:[#allocation32_spill] sm:$0xff] }
 0x3bc   :  { %v4382_v25 = vmin.f32 %v4271_v14, %v4272_v63  ;;  %v4383_v37 = vmin.f32 %v4272_v63, %v4273_v45  ;;  %5721 = vst.msk [vmem:[%s15438_s1] sm:$0xff] %vm8_vm0, %v5713_v3  ;;  %v4384_v27 = vmin.f32 %v4273_v45, %v4274_v7  ;;  %v14540_v9 = vmax.f32 %v18936_v50, %v14016_v52  ;;  %v18943_v63 = vld [vmem:[#allocation252_spill] sm:$0xff]  ;;  %v18944_v3 = vld [vmem:[#allocation77_spill] sm:$0xff]  ;;  %v18951_v46 = vld [vmem:[#allocation206_spill] sm:$0xff] }
 0x3bd   :  { %v4385_v59 = vmin.f32 %v4274_v7, %v4275_v5  ;;  %v14544_v21 = vmax.f32 %v18937_v16, %v18859_v19  ;;  %v14548_v26 = vmax.f32 %v18938_v23, %v18861_v60  ;;  %v14552_v11 = vmax.f32 %v18939_v6, %v18863_v13  ;;  %v18945_v5 = vld [vmem:[#allocation41_spill] sm:$0xff]  ;;  %v18958_v23 = vld [vmem:[#allocation248_spill] sm:$0xff] }
 0x3be   :  { %v4648_v30 = vrot.slane %v4382_v25, 3  ;;  %v4649_v40 = vrot.slane %v4383_v37, 3  ;;  %v4651_v34 = vrot.slane %v4384_v27, 3  ;;  %v5009_v1 = vmax.f32 %v4909_v10, %v14086_v39  ;;  %v18950_v42 = vld [vmem:[#allocation105_spill] sm:$0xff] }
 0x3bf   :  { %v4653_v33 = vrot.slane %v4385_v59, 3  ;;  %v5010_v52 = vmax.f32 %v4910_v22, %v14090_v17  ;;  %v5011_v19 = vmax.f32 %v4911_v44, %v14094_v41  ;;  %v5012_v54 = vmax.f32 %v4912_v53, %v14098_v12  ;;  %v18940_v41 = vld [vmem:[#allocation18_spill] sm:$0xff]  ;;  %v18941_v12 = vld [vmem:[#allocation173_spill] sm:$0xff] }
 0x3c0   :  { %v4650_v43 = vsel %vm4514_vm5, %v4648_v30, %v4649_v40  ;;  %v14561_v60 = vmax.f32 %v14118_v55, %v14150_v18  ;;  %v4652_v35 = vsel %vm4514_vm5, %v4649_v40, %v4651_v34  ;;  %v14575_v10 = vmax.f32 %v18940_v41, %v14154_v32  ;;  %v18942_v18 = vld [vmem:[#allocation144_spill] sm:$0xff] }
 0x3c1   :  { %v4654_v13 = vsel %vm4514_vm5, %v4651_v34, %v4653_v33  ;;  %v14565_v15 = vmin.f32 %v4382_v25, %v4650_v43  ;;  %v14567_v49 = vmin.f32 %v4385_v59, %v4653_v33  ;;  %v14569_v39 = vmin.f32 %v4383_v37, %v4652_v35  ;;  %v18948_v25 = vld [vmem:[#allocation183_spill] sm:$0xff]  ;;  %v18953_v59 = vld [vmem:[#allocation97_spill] sm:$0xff]  ;;  %v18959_v34 = vld [vmem:[#allocation116_spill] sm:$0xff] }
 0x3c2   :  { %v14571_v17 = vmin.f32 %v4384_v27, %v4654_v13  ;;  %v14579_v55 = vmax.f32 %v18941_v12, %v18871_v38  ;;  %v14591_v7 = vmax.f32 %v18944_v3, %v18874_v36  ;;  %v14595_v32 = vmax.f32 %v18945_v5, %v14214_v57  ;;  %v18952_v27 = vld [vmem:[#allocation124_spill] sm:$0xff]  ;;  %v18960_v33 = vld [vmem:[#allocation78_spill] sm:$0xff] }
 0x3c3   :  { %v14583_v14 = vmax.f32 %v18942_v18, %v14565_v15  ;;  %v14587_v45 = vmax.f32 %v18943_v63, %v14567_v49  ;;  %v14599_v38 = vmax.f32 %v18946_v29, %v14569_v39  ;;  %v14607_v37 = vmax.f32 %v18948_v25, %v14218_v4  ;;  %v18968_v13 = vld [vmem:[#allocation126_spill] sm:$0xff] }
 0x3c4   :  { %v14603_v22 = vmax.f32 %v18947_v48, %v14571_v17  ;;  %v14611_v36 = vmax.f32 %v18949_v8, %v14222_v31  ;;  %v14615_v57 = vmax.f32 %v18950_v42, %v14226_v61  ;;  %v14619_v44 = vmax.f32 %v14246_v0, %v14278_v47  ;;  %v18973_v8 = vld [vmem:[#allocation207_spill] sm:$0xff]  ;;  %v18974_v42 = vld [vmem:[#allocation234_spill] sm:$0xff] }
 0x3c5   :  { %v14623_v53 = vmax.f32 %v18951_v46, %v14282_v62  ;;  %v14627_v4 = vmax.f32 %v18952_v27, %v14286_v24  ;;  %v14631_v31 = vmax.f32 %v18953_v59, %v14290_v56  ;;  %v14635_v61 = vmax.f32 %v14540_v9, %v14583_v14  ;;  %v18976_v27 = vld [vmem:[#allocation175_spill] sm:$0xff] }
 0x3c6   :  { %v14639_v0 = vmax.f32 %v14544_v21, %v14599_v38  ;;  %v14643_v47 = vmax.f32 %v14548_v26, %v14603_v22  ;;  %v14647_v62 = vmax.f32 %v14552_v11, %v14587_v45  ;;  %v5101_v24 = vmax.f32 %v5009_v1, %v14561_v60 }
 0x3c7   :  { %18954 = vst [vmem:[#allocation137_spill] sm:$0xff] %v14635_v61  ;;  %v5102_v56 = vmax.f32 %v5010_v52, %v14575_v10  ;;  %v5103_v50 = vmax.f32 %v5011_v19, %v14579_v55  ;;  %v5104_v16 = vmax.f32 %v5012_v54, %v14591_v7  ;;  %v5113_v30 = vmax.f32 %v14328_v51, %v14360_v58  ;;  %v18967_v54 = vld [vmem:[#allocation162_spill] sm:$0xff] }
 0x3c8   :  { %18955 = vst [vmem:[#allocation49_spill] sm:$0xff] %v14639_v0  ;;  %18956 = vst [vmem:[#allocation98_spill] sm:$0xff] %v14643_v47  ;;  %v5114_v40 = vmax.f32 %v14332_v28, %v14364_v2  ;;  %v5115_v6 = vmax.f32 %v18958_v23, %v14368_v20  ;;  %v5116_v43 = vmax.f32 %v18960_v33, %v18959_v34  ;;  %v18965_v20 = vld [vmem:[#allocation187_spill] sm:$0xff]  ;;  %v18966_v28 = vld [vmem:[#allocation220_spill] sm:$0xff] }
 0x3c9   :  { %18957 = vst [vmem:[#allocation256_spill] sm:$0xff] %v14647_v62  ;;  %v14663_v1 = vmax.f32 %v14595_v32, %v14619_v44  ;;  %v14667_v52 = vmax.f32 %v14607_v37, %v14623_v53  ;;  %v14671_v58 = vmax.f32 %v14611_v36, %v14627_v4  ;;  %v14675_v2 = vmax.f32 %v14615_v57, %v14631_v31  ;;  %v18984_v33 = vld [vmem:[#allocation177_spill] sm:$0xff] }
 0x3ca   :  { %v5145_v51 = vmax.f32 %v18965_v20, %v14635_v61  ;;  %v5146_v19 = vmax.f32 %v18966_v28, %v14639_v0  ;;  %v5147_v35 = vmax.f32 %v18967_v54, %v14643_v47  ;;  %v5148_v41 = vmax.f32 %v18968_v13, %v14647_v62  ;;  %v18985_v28 = vld [vmem:[#allocation178_spill] sm:$0xff]  ;;  %v18987_v13 = vld [vmem:[#allocation100_spill] sm:$0xff] }
 0x3cb   :  { %18961 = vst [vmem:[#allocation196_spill] sm:$0xff] %v14663_v1  ;;  %18962 = vst [vmem:[#allocation227_spill] sm:$0xff] %v14667_v52  ;;  %v5177_v12 = vmax.f32 %v5101_v24, %v14663_v1  ;;  %v5178_v18 = vmax.f32 %v5102_v56, %v14667_v52  ;;  %v5179_v63 = vmax.f32 %v5103_v50, %v14671_v58  ;;  %v18977_v24 = vld [vmem:[#allocation208_spill] sm:$0xff]  ;;  %v18978_v56 = vld [vmem:[#allocation235_spill] sm:$0xff] }
 0x3cc   :  { %18963 = vst [vmem:[#allocation42_spill] sm:$0xff] %v14671_v58  ;;  %18964 = vst [vmem:[#allocation26_spill] sm:$0xff] %v14675_v2  ;;  %v5180_v3 = vmax.f32 %v5104_v16, %v14675_v2  ;;  %v14689_v5 = vmax.f32 %v5113_v30, %v5145_v51  ;;  %v14691_v29 = vmax.f32 %v5114_v40, %v5146_v19  ;;  %v18980_v50 = vld [vmem:[#allocation176_spill] sm:$0xff]  ;;  %v18981_v16 = vld [vmem:[#allocation209_spill] sm:$0xff] }
 0x3cd   :  { %v14693_v48 = vmax.f32 %v5115_v6, %v5147_v35  ;;  %v14695_v25 = vmax.f32 %v5116_v43, %v5148_v41  ;;  %v18975_v46 = vmin.f32 %v18973_v8, %v18974_v42  ;;  %v18979_v23 = vmin.f32 %v18977_v24, %v18978_v56  ;;  %v18982_v30 = vld [vmem:[#allocation236_spill] sm:$0xff]  ;;  %v18986_v19 = vld [vmem:[#allocation109_spill] sm:$0xff]  ;;  %v18991_v52 = vld [vmem:[#allocation242_spill] sm:$0xff] }
 0x3ce   :  { %18969 = vst [vmem:[#allocation67_spill] sm:$0xff] %v14689_v5  ;;  %18970 = vst [vmem:[#allocation64_spill] sm:$0xff] %v14691_v29  ;;  %v18983_v40 = vmin.f32 %v18981_v16, %v18982_v30  ;;  %v5221_v43 = vmax.f32 %v5177_v12, %v14689_v5  ;;  %v5222_v20 = vmax.f32 %v5178_v18, %v14691_v29  ;;  %v18988_v8 = vld [vmem:[#allocation45_spill] sm:$0xff]  ;;  %v18990_v58 = vld [vmem:[#allocation152_spill] sm:$0xff]  ;;  %v3234_v2 = vrot.slane %v18991_v52, 2 }
 0x3cf   :  { %18971 = vst [vmem:[#allocation93_spill] sm:$0xff] %v14693_v48  ;;  %18972 = vst [vmem:[#allocation69_spill] sm:$0xff] %v14695_v25  ;;  %v14701_v59 = vmin.f32 %v18976_v27, %v18975_v46  ;;  %v14707_v34 = vmin.f32 %v18980_v50, %v18979_v23  ;;  %v5223_v51 = vmax.f32 %v5179_v63, %v14693_v48  ;;  %v18989_v27 = vld [vmem:[#allocation101_spill] sm:$0xff] }
 0x3d0   :  { %v14713_v6 = vmin.f32 %v18984_v33, %v18983_v40  ;;  %v2060_v54 = vmin.f32 %v18986_v19, %v18985_v28  ;;  %v5224_v35 = vmax.f32 %v5180_v3, %v14695_v25  ;;  %v5288_v23 = vrot.slane %v5221_v43, 1  ;;  %v18992_v25 = vld [vmem:[#allocation240_spill] sm:$0xff] }
 0x3d1   :  { %v2057_v41 = vmin.f32 %v18987_v13, %v14701_v59  ;;  %v2058_v46 = vmin.f32 %v18988_v8, %v14707_v34  ;;  %v5289_v12 = vrot.slane %v5222_v20, 1  ;;  %v5291_v50 = vrot.slane %v5223_v51, 1 }
 0x3d2   :  { %v2059_v24 = vmin.f32 %v18989_v27, %v14713_v6  ;;  %v2475_v18 = vrot.slane %v2060_v54, 1  ;;  %v5293_v16 = vrot.slane %v5224_v35, 1  ;;  %v2477_v13 = vrot.slane %v18990_v58, 1 }
 0x3d3   :  { %v2470_v63 = vrot.slane %v2057_v41, 1  ;;  %v2471_v40 = vrot.slane %v2058_v46, 1  ;;  %v5290_v19 = vsel %vm2249_vm2, %v5288_v23, %v5289_v12  ;;  %v5292_v3 = vsel %vm2249_vm2, %v5289_v12, %v5291_v50 }
 0x3d4   :  { %v2473_v33 = vrot.slane %v2059_v24, 1  ;;  %v5294_v8 = vsel %vm2249_vm2, %v5291_v50, %v5293_v16  ;;  %v5373_v1 = vmax.f32 %v5221_v43, %v5290_v19  ;;  %v5374_v27 = vmax.f32 %v5222_v20, %v5292_v3 }
 0x3d5   :  { %v5376_v62 = vmax.f32 %v5224_v35, %v5293_v16  ;;  %v5375_v47 = vmax.f32 %v5223_v51, %v5294_v8  ;;  %v2472_v0 = vsel %vm2249_vm2, %v2470_v63, %v2471_v40  ;;  %v2478_v12 = vsel %vm2249_vm2, %v2475_v18, %v2477_v13 }
 0x3d6   :  { %v2474_v61 = vsel %vm2249_vm2, %v2471_v40, %v2473_v33  ;;  %v2476_v30 = vsel %vm2249_vm2, %v2473_v33, %v2475_v18  ;;  %v5440_v56 = vrot.slane %v5373_v1, 2  ;;  %v5441_v23 = vrot.slane %v5374_v27, 2 }
 0x3d7   :  { %v5445_v42 = vrot.slane %v5376_v62, 2  ;;  %v5443_v48 = vrot.slane %v5375_v47, 2  ;;  %v18993_v29 = vrot.slane %v18992_v25, 1  ;;  %v2812_v43 = vmin.f32 %v2057_v41, %v2472_v0 }
 0x3d8   :  { %v2813_v20 = vmin.f32 %v2058_v46, %v2474_v61  ;;  %v5442_v51 = vsel %vm3004_vm3, %v5440_v56, %v5441_v23  ;;  %v2814_v35 = vmin.f32 %v2059_v24, %v2476_v30  ;;  %v2815_v16 = vmin.f32 %v2060_v54, %v2478_v12 }
 0x3d9   :  { %v2480_v50 = vsel %vm2249_vm2, %v2477_v13, %v18993_v29  ;;  %v5444_v40 = vsel %vm3004_vm3, %v5441_v23, %v5443_v48  ;;  %v5446_v33 = vsel %vm3004_vm3, %v5443_v48, %v5445_v42  ;;  %v5516_v62 = vmax.f32 %v5373_v1, %v5442_v51 }
 0x3da   :  { %v2816_v63 = vmin.f32 %v18990_v58, %v2480_v50  ;;  %v3225_v19 = vrot.slane %v2812_v43, 2  ;;  %v5517_v18 = vmax.f32 %v5374_v27, %v5444_v40  ;;  %v5518_v3 = vmax.f32 %v5375_v47, %v5446_v33 }
 0x3db   :  { %v3226_v8 = vrot.slane %v2813_v20, 2  ;;  %v3228_v25 = vrot.slane %v2814_v35, 2  ;;  %v5566_v5 = vrot.slane %v5516_v62, 4  ;;  %v3230_v29 = vrot.slane %v2815_v16, 2 }
 0x3dc   :  { %v3232_v0 = vrot.slane %v2816_v63, 2  ;;  %v3572_v61 = vmin.f32 %v18991_v52, %v3234_v2  ;;  %v5567_v56 = vrot.slane %v5517_v18, 4  ;;  %v5569_v30 = vrot.slane %v5518_v3, 4 }
 0x3dd   :  { %v3227_v54 = vsel %vm3004_vm3, %v3225_v19, %v3226_v8  ;;  %v3229_v58 = vsel %vm3004_vm3, %v3226_v8, %v3228_v25  ;;  %v3231_v41 = vsel %vm3004_vm3, %v3228_v25, %v3230_v29 }
 0x3de   :  { %v3233_v1 = vsel %vm3004_vm3, %v3230_v29, %v3232_v0  ;;  %v3235_v48 = vsel %vm3004_vm3, %v3232_v0, %v3234_v2  ;;  %v3567_v47 = vmin.f32 %v2812_v43, %v3227_v54  ;;  %v5568_v42 = vsel %vm3759_vm4, %v5566_v5, %v5567_v56  ;;  %v18994_v5 = vld [vmem:[#allocation253_spill] sm:$0xff] }
 0x3df   :  { %v5570_v46 = vsel %vm3759_vm4, %v5567_v56, %v5569_v30  ;;  %v5630_v24 = vmax.f32 %v5518_v3, %v5569_v30  ;;  %v3568_v13 = vmin.f32 %v2813_v20, %v3229_v58  ;;  %v5628_v52 = vmax.f32 %v5516_v62, %v5568_v42  ;;  %v18995_v0 = vld [vmem:[#allocation21_spill] sm:$0xff]  ;;  %v18997_v20 = vld [vmem:[#allocation171_spill] sm:$0xff] }
 0x3e0   :  { %v5629_v27 = vmax.f32 %v5517_v18, %v5570_v46  ;;  %v3569_v23 = vmin.f32 %v2814_v35, %v3231_v41  ;;  %v3570_v12 = vmin.f32 %v2815_v16, %v3233_v1  ;;  %v3571_v50 = vmin.f32 %v2816_v63, %v3235_v48  ;;  %v18996_v3 = vld [vmem:[#allocation145_spill] sm:$0xff] }
 0x3e1   :  { %v3980_v51 = vrot.slane %v3567_v47, 4  ;;  %v3981_v40 = vrot.slane %v3568_v13, 4  ;;  %v3989_v33 = vrot.slane %v3572_v61, 4  ;;  %v5013_v56 = vmax.f32 %v18995_v0, %v18994_v5 }
 0x3e2   :  { %v5651_v19 = vmax.f32 %v5628_v52, %v5629_v27  ;;  %v5652_v8 = vmax.f32 %v5629_v27, %v5630_v24  ;;  %v3983_v25 = vrot.slane %v3569_v23, 4  ;;  %v3985_v29 = vrot.slane %v3570_v12, 4  ;;  %v18998_v52 = vld [vmem:[#allocation254_spill] sm:$0xff]  ;;  %v18999_v27 = vld [vmem:[#allocation17_spill] sm:$0xff] }
 0x3e3   :  { %v3982_v2 = vsel %vm3759_vm4, %v3980_v51, %v3981_v40  ;;  %v3987_v43 = vrot.slane %v3571_v50, 4  ;;  %v5014_v62 = vmax.f32 %v18997_v20, %v18996_v3  ;;  %v5015_v51 = vmax.f32 %v18999_v27, %v18998_v52  ;;  %v19002_v3 = vld [vmem:[#allocation58_spill] sm:$0xff]  ;;  %v19008_v20 = vld [vmem:[#allocation153_spill] sm:$0xff]  ;;  %v19016_v27 = vld [vmem:[#allocation224_spill] sm:$0xff] }
 0x3e4   :  { %v5684_v18 = vrot.slane %v5651_v19, 3  ;;  %v5685_v35 = vrot.slane %v5652_v8, 3  ;;  %v3984_v16 = vsel %vm3759_vm4, %v3981_v40, %v3983_v25  ;;  %v3986_v63 = vsel %vm3759_vm4, %v3983_v25, %v3985_v29  ;;  %v19000_v8 = vld [vmem:[#allocation114_spill] sm:$0xff]  ;;  %v19001_v40 = vld [vmem:[#allocation167_spill] sm:$0xff] }
 0x3e5   :  { %v3988_v61 = vsel %vm3759_vm4, %v3985_v29, %v3987_v43  ;;  %v3990_v30 = vsel %vm3759_vm4, %v3987_v43, %v3989_v33  ;;  %v4276_v54 = vmin.f32 %v3567_v47, %v3982_v2  ;;  %v4277_v58 = vmin.f32 %v3568_v13, %v3984_v16  ;;  %v19003_v33 = vld [vmem:[#allocation179_spill] sm:$0xff]  ;;  %v19007_v2 = vld [vmem:[#allocation138_spill] sm:$0xff] }
 0x3e6   :  { %v5686_v41 = vsel %vm4514_vm5, %v5684_v18, %v5685_v35  ;;  %v4278_v1 = vmin.f32 %v3569_v23, %v3986_v63  ;;  %v4279_v48 = vmin.f32 %v3570_v12, %v3988_v61  ;;  %v4280_v42 = vmin.f32 %v3571_v50, %v3990_v30  ;;  %v19004_v23 = vld [vmem:[#allocation154_spill] sm:$0xff]  ;;  %v19005_v12 = vld [vmem:[#allocation40_spill] sm:$0xff]  ;;  %v19009_v18 = vld [vmem:[#allocation159_spill] sm:$0xff] }
 0x3e7   :  { %v5714_v46 = vmax.f32 %v5651_v19, %v5686_v41  ;;  %v4386_v24 = vmin.f32 %v4276_v54, %v4277_v58  ;;  %v5016_v5 = vmax.f32 %v19001_v40, %v19000_v8  ;;  %v14767_v47 = vmax.f32 %v19003_v33, %v19002_v3  ;;  %v19006_v19 = vld [vmem:[#allocation94_spill] sm:$0xff]  ;;  %v19012_v41 = vld [vmem:[#allocation184_spill] sm:$0xff]  ;;  %v19017_v8 = vld [vmem:[#allocation81_spill] sm:$0xff] }
 0x3e8   :  { %v4387_v25 = vmin.f32 %v4277_v58, %v4278_v1  ;;  %v4388_v0 = vmin.f32 %v4278_v1, %v4279_v48  ;;  %v4389_v29 = vmin.f32 %v4279_v48, %v4280_v42  ;;  %v14775_v50 = vmax.f32 %v19005_v12, %v19004_v23  ;;  %v19010_v30 = vld [vmem:[#allocation66_spill] sm:$0xff]  ;;  %v19018_v3 = vld [vmem:[#allocation115_spill] sm:$0xff] }
 0x3e9   :  { %5722 = vst.msk [vmem:[%s15438_s1 + $0x8] sm:$0xff] %vm8_vm0, %v5714_v46  ;;  %v4655_v13 = vrot.slane %v4386_v24, 3  ;;  %v14779_v43 = vmax.f32 %v19007_v2, %v19006_v19  ;;  %v14783_v35 = vmax.f32 %v19009_v18, %v19008_v20  ;;  %v19011_v54 = vld [vmem:[#allocation86_spill] sm:$0xff]  ;;  %v19015_v46 = vld [vmem:[#allocation121_spill] sm:$0xff]  ;;  %v14799_v40 = vmax.f32 %v19017_v8, %v19016_v27 }
 0x3ea   :  { %v4656_v16 = vrot.slane %v4387_v25, 3  ;;  %v4658_v63 = vrot.slane %v4388_v0, 3  ;;  %v4660_v61 = vrot.slane %v4389_v29, 3  ;;  %v14787_v58 = vmax.f32 %v19011_v54, %v19010_v30  ;;  %v19013_v1 = vld [vmem:[#allocation62_spill] sm:$0xff] }
 0x3eb   :  { %v14791_v48 = vmax.f32 %v19013_v1, %v19012_v41  ;;  %v19014_v42 = vld [vmem:[#allocation110_spill] sm:$0xff]  ;;  %v14803_v33 = vmax.f32 %v19018_v3, %v14540_v9 }
 0x3ec   :  { %v14795_v52 = vmax.f32 %v19015_v46, %v19014_v42  ;;  %v4657_v23 = vsel %vm4514_vm5, %v4655_v13, %v4656_v16  ;;  %v4659_v12 = vsel %vm4514_vm5, %v4656_v16, %v4658_v63  ;;  %v4661_v19 = vsel %vm4514_vm5, %v4658_v63, %v4660_v61  ;;  %v19019_v54 = vld [vmem:[#allocation22_spill] sm:$0xff]  ;;  %v19020_v13 = vld [vmem:[#allocation257_spill] sm:$0xff] }
 0x3ed   :  { %v14808_v2 = vmin.f32 %v4389_v29, %v4660_v61  ;;  %v14810_v20 = vmin.f32 %v4386_v24, %v4657_v23  ;;  %v14812_v18 = vmin.f32 %v4387_v25, %v4659_v12  ;;  %v14814_v30 = vmin.f32 %v4388_v0, %v4661_v19  ;;  %v19021_v29 = vld [vmem:[#allocation258_spill] sm:$0xff]  ;;  %v19022_v63 = vld [vmem:[#allocation149_spill] sm:$0xff] }
 0x3ee   :  { %v14818_v41 = vmax.f32 %v19019_v54, %v14544_v21  ;;  %v14826_v16 = vmax.f32 %v19020_v13, %v14548_v26  ;;  %v14830_v24 = vmax.f32 %v19021_v29, %v14552_v11  ;;  %v5105_v25 = vmax.f32 %v5013_v56, %v14767_v47  ;;  %v19039_v13 = vld [vmem:[#allocation237_spill] sm:$0xff] }
 0x3ef   :  { %v14822_v9 = vmax.f32 %v14567_v49, %v14808_v2  ;;  %v14835_v0 = vmax.f32 %v14565_v15, %v14810_v20  ;;  %v14839_v21 = vmax.f32 %v14569_v39, %v14812_v18  ;;  %v14843_v49 = vmax.f32 %v14571_v17, %v14814_v30  ;;  %v19024_v39 = vld [vmem:[#allocation160_spill] sm:$0xff]  ;;  %v19026_v17 = vld [vmem:[#allocation50_spill] sm:$0xff] }
 0x3f0   :  { %v5106_v26 = vmax.f32 %v5014_v62, %v14775_v50  ;;  %v5107_v56 = vmax.f32 %v5015_v51, %v14779_v43  ;;  %v5108_v61 = vmax.f32 %v5016_v5, %v14783_v35  ;;  %v5117_v15 = vmax.f32 %v14561_v60, %v14595_v32  ;;  %v19028_v62 = vld [vmem:[#allocation155_spill] sm:$0xff] }
 0x3f1   :  { %v14848_v11 = vmax.f32 %v19022_v63, %v14822_v9  ;;  %v14856_v1 = vmax.f32 %v19024_v39, %v14835_v0  ;;  %v14860_v42 = vmax.f32 %v19026_v17, %v14839_v21  ;;  %v14864_v46 = vmax.f32 %v19028_v62, %v14843_v49  ;;  %v19048_v62 = vld [vmem:[#allocation219_spill] sm:$0xff] }
 0x3f2   :  { %v5118_v51 = vmax.f32 %v14575_v10, %v14607_v37  ;;  %v5119_v5 = vmax.f32 %v14579_v55, %v14611_v36  ;;  %v5120_v60 = vmax.f32 %v14591_v7, %v14615_v57  ;;  %v14874_v32 = vmax.f32 %v14787_v58, %v14803_v33 }
 0x3f3   :  { %19023 = vst [vmem:[#allocation182_spill] sm:$0xff] %v14848_v11  ;;  %19025 = vst [vmem:[#allocation24_spill] sm:$0xff] %v14856_v1  ;;  %v14878_v27 = vmax.f32 %v14791_v48, %v14818_v41  ;;  %v14882_v8 = vmax.f32 %v14795_v52, %v14826_v16  ;;  %v14886_v10 = vmax.f32 %v14799_v40, %v14830_v24 }
 0x3f4   :  { %19027 = vst [vmem:[#allocation74_spill] sm:$0xff] %v14860_v42  ;;  %19029 = vst [vmem:[#allocation47_spill] sm:$0xff] %v14864_v46  ;;  %v5149_v55 = vmax.f32 %v14619_v44, %v14856_v1  ;;  %v5150_v7 = vmax.f32 %v14623_v53, %v14860_v42  ;;  %v5151_v37 = vmax.f32 %v14627_v4, %v14864_v46  ;;  %v19038_v4 = vld [vmem:[#allocation217_spill] sm:$0xff]  ;;  %v19059_v42 = vld [vmem:[#allocation230_spill] sm:$0xff] }
 0x3f5   :  { %19030 = vst [vmem:[#allocation139_spill] sm:$0xff] %v14874_v32  ;;  %19031 = vst [vmem:[#allocation118_spill] sm:$0xff] %v14878_v27  ;;  %v5152_v36 = vmax.f32 %v14631_v31, %v14848_v11  ;;  %v5181_v57 = vmax.f32 %v5105_v25, %v14874_v32  ;;  %v5182_v3 = vmax.f32 %v5106_v26, %v14878_v27  ;;  %v19041_v31 = vld [vmem:[#allocation79_spill] sm:$0xff]  ;;  %v19043_v25 = vld [vmem:[#allocation218_spill] sm:$0xff] }
 0x3f6   :  { %19032 = vst [vmem:[#allocation70_spill] sm:$0xff] %v14882_v8  ;;  %19033 = vst [vmem:[#allocation120_spill] sm:$0xff] %v14886_v10  ;;  %v5183_v23 = vmax.f32 %v5107_v56, %v14882_v8  ;;  %v5184_v12 = vmax.f32 %v5108_v61, %v14886_v10  ;;  %v14900_v19 = vmax.f32 %v5117_v15, %v5149_v55  ;;  %v19044_v26 = vld [vmem:[#allocation238_spill] sm:$0xff]  ;;  %v19046_v56 = vld [vmem:[#allocation180_spill] sm:$0xff] }
 0x3f7   :  { %v14902_v44 = vmax.f32 %v5118_v51, %v5150_v7  ;;  %v14904_v54 = vmax.f32 %v5119_v5, %v5151_v37  ;;  %v14906_v53 = vmax.f32 %v5120_v60, %v5152_v36  ;;  %v19040_v29 = vmin.f32 %v19038_v4, %v19039_v13  ;;  %v19049_v51 = vld [vmem:[#allocation239_spill] sm:$0xff]  ;;  %v19051_v60 = vld [vmem:[#allocation181_spill] sm:$0xff]  ;;  %v19053_v7 = vld [vmem:[#allocation104_spill] sm:$0xff] }
 0x3f8   :  { %19034 = vst [vmem:[#allocation165_spill] sm:$0xff] %v14900_v19  ;;  %v19045_v39 = vmin.f32 %v19043_v25, %v19044_v26  ;;  %v5225_v61 = vmax.f32 %v5181_v57, %v14900_v19  ;;  %v19050_v5 = vmin.f32 %v19048_v62, %v19049_v51  ;;  %v19054_v37 = vld [vmem:[#allocation163_spill] sm:$0xff] }
 0x3f9   :  { %19035 = vst [vmem:[#allocation226_spill] sm:$0xff] %v14902_v44  ;;  %19036 = vst [vmem:[#allocation37_spill] sm:$0xff] %v14904_v54  ;;  %v14912_v63 = vmin.f32 %v19041_v31, %v19040_v29  ;;  %v5226_v15 = vmax.f32 %v5182_v3, %v14902_v44  ;;  %v2066_v36 = vmin.f32 %v19054_v37, %v19053_v7  ;;  %v19055_v31 = vld [vmem:[#allocation46_spill] sm:$0xff]  ;;  %v19056_v57 = vld [vmem:[#allocation51_spill] sm:$0xff] }
 0x3fa   :  { %19037 = vst [vmem:[#allocation99_spill] sm:$0xff] %v14906_v53  ;;  %v14918_v17 = vmin.f32 %v19046_v56, %v19045_v39  ;;  %v14926_v55 = vmin.f32 %v19051_v60, %v19050_v5  ;;  %v5227_v4 = vmax.f32 %v5183_v23, %v14904_v54  ;;  %v5228_v29 = vmax.f32 %v5184_v12, %v14906_v53  ;;  %v19057_v62 = vld [vmem:[#allocation55_spill] sm:$0xff] }
 0x3fb   :  { %19042 = vst [vmem:[#allocation127_spill] sm:$0xff] %v14912_v63  ;;  %v2063_v25 = vmin.f32 %v19055_v31, %v14912_v63  ;;  %v5295_v3 = vrot.slane %v5225_v61, 1  ;;  %v5296_v56 = vrot.slane %v5226_v15, 1  ;;  %v2486_v5 = vrot.slane %v2066_v36, 1  ;;  %v19058_v12 = vld [vmem:[#allocation243_spill] sm:$0xff] }
 0x3fc   :  { %19047 = vst [vmem:[#allocation28_spill] sm:$0xff] %v14918_v17  ;;  %19052 = vst [vmem:[#allocation147_spill] sm:$0xff] %v14926_v55  ;;  %v2064_v39 = vmin.f32 %v19056_v57, %v14918_v17  ;;  %v2065_v8 = vmin.f32 %v19057_v62, %v14926_v55  ;;  %v5298_v60 = vrot.slane %v5227_v4, 1  ;;  %v5300_v27 = vrot.slane %v5228_v29, 1  ;;  %v19060_v17 = vld [vmem:[#allocation158_spill] sm:$0xff] }
 0x3fd   :  { %v2481_v10 = vrot.slane %v2063_v25, 1  ;;  %v5297_v23 = vsel %vm2249_vm2, %v5295_v3, %v5296_v56  ;;  %v2488_v46 = vrot.slane %v19058_v12, 1  ;;  %v3245_v31 = vrot.slane %v19059_v42, 2 }
 0x3fe   :  { %v2482_v37 = vrot.slane %v2064_v39, 1  ;;  %v2484_v32 = vrot.slane %v2065_v8, 1  ;;  %v5299_v11 = vsel %vm2249_vm2, %v5296_v56, %v5298_v60  ;;  %v5301_v57 = vsel %vm2249_vm2, %v5298_v60, %v5300_v27 }
 0x3ff   :  { %v5377_v1 = vmax.f32 %v5225_v61, %v5297_v23  ;;  %v5380_v51 = vmax.f32 %v5228_v29, %v5300_v27  ;;  %v5378_v26 = vmax.f32 %v5226_v15, %v5299_v11  ;;  %v5379_v62 = vmax.f32 %v5227_v4, %v5301_v57 }
 0x400   :  { %v2483_v13 = vsel %vm2249_vm2, %v2481_v10, %v2482_v37  ;;  %v2485_v53 = vsel %vm2249_vm2, %v2482_v37, %v2484_v32  ;;  %v2487_v3 = vsel %vm2249_vm2, %v2484_v32, %v2486_v5  ;;  %v2489_v19 = vsel %vm2249_vm2, %v2486_v5, %v2488_v46 }
 0x401   :  { %v5447_v54 = vrot.slane %v5377_v1, 2  ;;  %v5452_v44 = vrot.slane %v5380_v51, 2  ;;  %v5448_v7 = vrot.slane %v5378_v26, 2  ;;  %v5450_v55 = vrot.slane %v5379_v62, 2 }
 0x402   :  { %v19061_v56 = vrot.slane %v19060_v17, 1  ;;  %v2818_v61 = vmin.f32 %v2063_v25, %v2483_v13  ;;  %v2819_v27 = vmin.f32 %v2064_v39, %v2485_v53  ;;  %v2820_v11 = vmin.f32 %v2065_v8, %v2487_v3 }
 0x403   :  { %v2821_v15 = vmin.f32 %v2066_v36, %v2489_v19  ;;  %v5449_v4 = vsel %vm3004_vm3, %v5447_v54, %v5448_v7  ;;  %v5451_v51 = vsel %vm3004_vm3, %v5448_v7, %v5450_v55  ;;  %v5453_v32 = vsel %vm3004_vm3, %v5450_v55, %v5452_v44 }
 0x404   :  { %v2491_v60 = vsel %vm2249_vm2, %v2488_v46, %v19061_v56  ;;  %v3236_v29 = vrot.slane %v2818_v61, 2  ;;  %v5519_v5 = vmax.f32 %v5377_v1, %v5449_v4  ;;  %v5520_v37 = vmax.f32 %v5378_v26, %v5451_v51 }
 0x405   :  { %v2822_v10 = vmin.f32 %v19058_v12, %v2491_v60  ;;  %v5521_v23 = vmax.f32 %v5379_v62, %v5453_v32  ;;  %v3237_v57 = vrot.slane %v2819_v27, 2  ;;  %v3239_v17 = vrot.slane %v2820_v11, 2 }
 0x406   :  { %v3241_v63 = vrot.slane %v2821_v15, 2  ;;  %v3578_v53 = vmin.f32 %v19059_v42, %v3245_v31  ;;  %v5571_v8 = vrot.slane %v5519_v5, 4  ;;  %v5572_v19 = vrot.slane %v5520_v37, 4 }
 0x407   :  { %v3243_v46 = vrot.slane %v2822_v10, 2  ;;  %v5574_v13 = vrot.slane %v5521_v23, 4  ;;  %v3238_v36 = vsel %vm3004_vm3, %v3236_v29, %v3237_v57  ;;  %v3240_v54 = vsel %vm3004_vm3, %v3237_v57, %v3239_v17 }
 0x408   :  { %v3242_v7 = vsel %vm3004_vm3, %v3239_v17, %v3241_v63  ;;  %v5573_v26 = vsel %vm3759_vm4, %v5571_v8, %v5572_v19  ;;  %v3573_v39 = vmin.f32 %v2818_v61, %v3238_v36  ;;  %v3574_v62 = vmin.f32 %v2819_v27, %v3240_v54 }
 0x409   :  { %v3244_v44 = vsel %vm3004_vm3, %v3241_v63, %v3243_v46  ;;  %v3246_v1 = vsel %vm3004_vm3, %v3243_v46, %v3245_v31  ;;  %v5575_v55 = vsel %vm3759_vm4, %v5572_v19, %v5574_v13  ;;  %v5633_v25 = vmax.f32 %v5521_v23, %v5574_v13 }
 0x40a   :  { %v5631_v42 = vmax.f32 %v5519_v5, %v5573_v26  ;;  %v5632_v12 = vmax.f32 %v5520_v37, %v5575_v55  ;;  %v3575_v3 = vmin.f32 %v2820_v11, %v3242_v7  ;;  %v3576_v56 = vmin.f32 %v2821_v15, %v3244_v44 }
 0x40b   :  { %v3577_v60 = vmin.f32 %v2822_v10, %v3246_v1  ;;  %v3991_v4 = vrot.slane %v3573_v39, 4  ;;  %v4000_v51 = vrot.slane %v3578_v53, 4  ;;  %v3992_v57 = vrot.slane %v3574_v62, 4 }
 0x40c   :  { %v5653_v32 = vmax.f32 %v5631_v42, %v5632_v12  ;;  %v5654_v29 = vmax.f32 %v5632_v12, %v5633_v25  ;;  %v3994_v63 = vrot.slane %v3575_v3, 4  ;;  %v3996_v17 = vrot.slane %v3576_v56, 4  ;;  %v19062_v42 = vld [vmem:[#allocation185_spill] sm:$0xff]  ;;  %v19063_v12 = vld [vmem:[#allocation112_spill] sm:$0xff] }
 0x40d   :  { %v3998_v31 = vrot.slane %v3577_v60, 4  ;;  %v5121_v46 = vmax.f32 %v14767_v47, %v14787_v58  ;;  %v5122_v61 = vmax.f32 %v14775_v50, %v14791_v48  ;;  %v3993_v27 = vsel %vm3759_vm4, %v3991_v4, %v3992_v57  ;;  %v19077_v58 = vld [vmem:[#allocation128_spill] sm:$0xff]  ;;  %v19078_v50 = vld [vmem:[#allocation33_spill] sm:$0xff] }
 0x40e   :  { %v5687_v5 = vrot.slane %v5653_v32, 3  ;;  %v5688_v37 = vrot.slane %v5654_v29, 3  ;;  %v3995_v11 = vsel %vm3759_vm4, %v3992_v57, %v3994_v63  ;;  %v3997_v15 = vsel %vm3759_vm4, %v3994_v63, %v3996_v17  ;;  %v19070_v63 = vld [vmem:[#allocation36_spill] sm:$0xff] }
 0x40f   :  { %v3999_v10 = vsel %vm3759_vm4, %v3996_v17, %v3998_v31  ;;  %v4001_v23 = vsel %vm3759_vm4, %v3998_v31, %v4000_v51  ;;  %v4281_v53 = vmin.f32 %v3573_v39, %v3993_v27  ;;  %v4282_v19 = vmin.f32 %v3574_v62, %v3995_v11  ;;  %v19064_v62 = vld [vmem:[#allocation241_spill] sm:$0xff]  ;;  %v19072_v27 = vld [vmem:[#allocation106_spill] sm:$0xff] }
 0x410   :  { %v5689_v8 = vsel %vm4514_vm5, %v5687_v5, %v5688_v37  ;;  %v4283_v13 = vmin.f32 %v3575_v3, %v3997_v15  ;;  %v4284_v36 = vmin.f32 %v3576_v56, %v3999_v10  ;;  %v4285_v7 = vmin.f32 %v3577_v60, %v4001_v23  ;;  %v19065_v3 = vld [vmem:[#allocation190_spill] sm:$0xff]  ;;  %v19069_v60 = vld [vmem:[#allocation172_spill] sm:$0xff] }
 0x411   :  { %v5715_v54 = vmax.f32 %v5653_v32, %v5689_v8  ;;  %v5123_v44 = vmax.f32 %v14779_v43, %v14795_v52  ;;  %v5124_v1 = vmax.f32 %v14783_v35, %v14799_v40  ;;  %v4390_v26 = vmin.f32 %v4281_v53, %v4282_v19  ;;  %v19066_v43 = vld [vmem:[#allocation188_spill] sm:$0xff]  ;;  %v19068_v40 = vld [vmem:[#allocation194_spill] sm:$0xff] }
 0x412   :  { %v4391_v55 = vmin.f32 %v4282_v19, %v4283_v13  ;;  %v4392_v25 = vmin.f32 %v4283_v13, %v4284_v36  ;;  %v14978_v4 = vmin.f32 %v19063_v12, %v19062_v42  ;;  %v4393_v39 = vmin.f32 %v4284_v36, %v4285_v7  ;;  %v19067_v52 = vld [vmem:[#allocation88_spill] sm:$0xff]  ;;  %v19071_v5 = vld [vmem:[#allocation90_spill] sm:$0xff] }
 0x413   :  { %5723 = vst.msk [vmem:[%s15438_s1 + $0x10] sm:$0xff] %vm8_vm0, %v5715_v54  ;;  %v14986_v56 = vmin.f32 %v19065_v3, %v19064_v62  ;;  %v14990_v35 = vmin.f32 %v19067_v52, %v19066_v43  ;;  %v2072_v51 = vmin.f32 %v19069_v60, %v19068_v40  ;;  %v4662_v32 = vrot.slane %v4390_v26, 3  ;;  %v19073_v8 = vld [vmem:[#allocation166_spill] sm:$0xff] }
 0x414   :  { %v4663_v29 = vrot.slane %v4391_v55, 3  ;;  %v4665_v57 = vrot.slane %v4392_v25, 3  ;;  %v2069_v17 = vmin.f32 %v19070_v63, %v14978_v4  ;;  %v4667_v31 = vrot.slane %v4393_v39, 3 }
 0x415   :  { %v2070_v37 = vmin.f32 %v19071_v5, %v14986_v56  ;;  %v2071_v11 = vmin.f32 %v19072_v27, %v14990_v35  ;;  %v2497_v15 = vrot.slane %v2072_v51, 1  ;;  %v2499_v19 = vrot.slane %v19073_v8, 1 }
 0x416   :  { %v4664_v10 = vsel %vm4514_vm5, %v4662_v32, %v4663_v29  ;;  %v4666_v23 = vsel %vm4514_vm5, %v4663_v29, %v4665_v57  ;;  %v2492_v53 = vrot.slane %v2069_v17, 1  ;;  %v4668_v13 = vsel %vm4514_vm5, %v4665_v57, %v4667_v31 }
 0x417   :  { %v15004_v36 = vmin.f32 %v4390_v26, %v4664_v10  ;;  %v15006_v54 = vmin.f32 %v4391_v55, %v4666_v23  ;;  %v15008_v7 = vmin.f32 %v4393_v39, %v4667_v31  ;;  %v15010_v42 = vmin.f32 %v4392_v25, %v4668_v13  ;;  %v19074_v55 = vld [vmem:[#allocation244_spill] sm:$0xff]  ;;  %v19080_v13 = vld [vmem:[#allocation10_spill] sm:$0xff] }
 0x418   :  { %v2493_v12 = vrot.slane %v2070_v37, 1  ;;  %v2495_v62 = vrot.slane %v2071_v11, 1  ;;  %v2500_v3 = vsel %vm2249_vm2, %v2497_v15, %v2499_v19  ;;  %v19075_v39 = vrot.slane %v19074_v55, 1 }
 0x419   :  { %v15015_v43 = vmax.f32 %v14810_v20, %v15004_v36  ;;  %v15019_v52 = vmax.f32 %v14812_v18, %v15006_v54  ;;  %v15023_v26 = vmax.f32 %v14808_v2, %v15008_v7  ;;  %v15030_v60 = vmax.f32 %v14814_v30, %v15010_v42 }
 0x41a   :  { %v2502_v25 = vsel %vm2249_vm2, %v2499_v19, %v19075_v39  ;;  %v2494_v32 = vsel %vm2249_vm2, %v2492_v53, %v2493_v12  ;;  %v2496_v20 = vsel %vm2249_vm2, %v2493_v12, %v2495_v62  ;;  %v2498_v29 = vsel %vm2249_vm2, %v2495_v62, %v2497_v15 }
 0x41b   :  { %v15037_v18 = vmax.f32 %v14583_v14, %v15015_v43  ;;  %v15041_v2 = vmax.f32 %v14599_v38, %v15019_v52  ;;  %v15045_v57 = vmax.f32 %v14587_v45, %v15023_v26  ;;  %v2824_v30 = vmin.f32 %v2069_v17, %v2494_v32 }
 0x41c   :  { %v15049_v63 = vmax.f32 %v14603_v22, %v15030_v60  ;;  %v2825_v31 = vmin.f32 %v2070_v37, %v2496_v20  ;;  %v2826_v5 = vmin.f32 %v2071_v11, %v2498_v29  ;;  %v2827_v27 = vmin.f32 %v2072_v51, %v2500_v3 }
 0x41d   :  { %v5153_v14 = vmax.f32 %v14803_v33, %v15037_v18  ;;  %v5154_v15 = vmax.f32 %v14818_v41, %v15041_v2  ;;  %v5156_v38 = vmax.f32 %v14830_v24, %v15045_v57  ;;  %v2828_v45 = vmin.f32 %v19073_v8, %v2502_v25  ;;  %v19076_v8 = vld [vmem:[#allocation87_spill] sm:$0xff] }
 0x41e   :  { %v5155_v17 = vmax.f32 %v14826_v16, %v15049_v63  ;;  %v3247_v10 = vrot.slane %v2824_v30, 2  ;;  %v3248_v22 = vrot.slane %v2825_v31, 2  ;;  %v3250_v23 = vrot.slane %v2826_v5, 2 }
 0x41f   :  { %v15063_v51 = vmax.f32 %v5121_v46, %v5153_v14  ;;  %v15068_v33 = vmax.f32 %v5122_v61, %v5154_v15  ;;  %v15070_v41 = vmax.f32 %v5124_v1, %v5156_v38  ;;  %v3252_v24 = vrot.slane %v2827_v27, 2  ;;  %v19079_v1 = vld [vmem:[#allocation113_spill] sm:$0xff] }
 0x420   :  { %v15072_v37 = vmax.f32 %v5123_v44, %v5155_v17  ;;  %v3249_v16 = vsel %vm3004_vm3, %v3247_v10, %v3248_v22  ;;  %v3251_v11 = vsel %vm3004_vm3, %v3248_v22, %v3250_v23  ;;  %v3254_v53 = vrot.slane %v2828_v45, 2 }
 0x421   :  { %v5229_v47 = vmax.f32 %v19076_v8, %v15063_v51  ;;  %v5230_v46 = vmax.f32 %v19077_v58, %v15068_v33  ;;  %v5232_v48 = vmax.f32 %v19078_v50, %v15070_v41  ;;  %v3253_v61 = vsel %vm3004_vm3, %v3250_v23, %v3252_v24 }
 0x422   :  { %v5231_v44 = vmax.f32 %v19079_v1, %v15072_v37  ;;  %v3255_v19 = vsel %vm3004_vm3, %v3252_v24, %v3254_v53  ;;  %v3256_v12 = vrot.slane %v19080_v13, 2  ;;  %v3579_v62 = vmin.f32 %v2824_v30, %v3249_v16 }
 0x423   :  { %v5302_v3 = vrot.slane %v5229_v47, 1  ;;  %v5303_v55 = vrot.slane %v5230_v46, 1  ;;  %v5307_v39 = vrot.slane %v5232_v48, 1  ;;  %v3580_v25 = vmin.f32 %v2825_v31, %v3251_v11 }
 0x424   :  { %v5305_v32 = vrot.slane %v5231_v44, 1  ;;  %v3257_v20 = vsel %vm3004_vm3, %v3254_v53, %v3256_v12  ;;  %v3581_v29 = vmin.f32 %v2826_v5, %v3253_v61  ;;  %v3582_v14 = vmin.f32 %v2827_v27, %v3255_v19 }
 0x425   :  { %v5304_v15 = vsel %vm2249_vm2, %v5302_v3, %v5303_v55  ;;  %v5384_v38 = vmax.f32 %v5232_v48, %v5307_v39  ;;  %v3583_v17 = vmin.f32 %v2828_v45, %v3257_v20  ;;  %v3584_v10 = vmin.f32 %v19080_v13, %v3256_v12 }
 0x426   :  { %v5306_v22 = vsel %vm2249_vm2, %v5303_v55, %v5305_v32  ;;  %v5308_v23 = vsel %vm2249_vm2, %v5305_v32, %v5307_v39  ;;  %v5381_v30 = vmax.f32 %v5229_v47, %v5304_v15  ;;  %v4002_v24 = vrot.slane %v3579_v62, 4 }
 0x427   :  { %v5382_v16 = vmax.f32 %v5230_v46, %v5306_v22  ;;  %v5383_v8 = vmax.f32 %v5231_v44, %v5308_v23  ;;  %v5459_v31 = vrot.slane %v5384_v38, 2  ;;  %v4003_v11 = vrot.slane %v3580_v25, 4  ;;  %v19081_v22 = vld [vmem:[#allocation186_spill] sm:$0xff]  ;;  %v19082_v23 = vld [vmem:[#allocation140_spill] sm:$0xff] }
 0x428   :  { %v5454_v58 = vrot.slane %v5381_v30, 2  ;;  %v4005_v53 = vrot.slane %v3581_v29, 4  ;;  %v4007_v5 = vrot.slane %v3582_v14, 4  ;;  %v4009_v27 = vrot.slane %v3583_v17, 4 }
 0x429   :  { %v5455_v50 = vrot.slane %v5382_v16, 2  ;;  %v5457_v61 = vrot.slane %v5383_v8, 2  ;;  %v4004_v45 = vsel %vm3759_vm4, %v4002_v24, %v4003_v11  ;;  %v4011_v48 = vrot.slane %v3584_v10, 4 }
 0x42a   :  { %v4006_v1 = vsel %vm3759_vm4, %v4003_v11, %v4005_v53  ;;  %v4008_v19 = vsel %vm3759_vm4, %v4005_v53, %v4007_v5  ;;  %v4010_v47 = vsel %vm3759_vm4, %v4007_v5, %v4009_v27  ;;  %v4286_v13 = vmin.f32 %v3579_v62, %v4004_v45 }
 0x42b   :  { %v5456_v46 = vsel %vm3004_vm3, %v5454_v58, %v5455_v50  ;;  %v5458_v44 = vsel %vm3004_vm3, %v5455_v50, %v5457_v61  ;;  %v5460_v12 = vsel %vm3004_vm3, %v5457_v61, %v5459_v31  ;;  %v4012_v3 = vsel %vm3759_vm4, %v4009_v27, %v4011_v48  ;;  %v19083_v31 = vld [vmem:[#allocation193_spill] sm:$0xff]  ;;  %v19084_v61 = vld [vmem:[#allocation63_spill] sm:$0xff] }
 0x42c   :  { %v5522_v55 = vmax.f32 %v5381_v30, %v5456_v46  ;;  %v5523_v39 = vmax.f32 %v5382_v16, %v5458_v44  ;;  %v5524_v32 = vmax.f32 %v5383_v8, %v5460_v12  ;;  %v4287_v20 = vmin.f32 %v3580_v25, %v4006_v1  ;;  %v19087_v46 = vld [vmem:[#allocation151_spill] sm:$0xff]  ;;  %v19088_v44 = vld [vmem:[#allocation141_spill] sm:$0xff] }
 0x42d   :  { %v4288_v15 = vmin.f32 %v3581_v29, %v4008_v19  ;;  %v4289_v38 = vmin.f32 %v3582_v14, %v4010_v47  ;;  %v4290_v10 = vmin.f32 %v3583_v17, %v4012_v3  ;;  %v5125_v24 = vmax.f32 %v19082_v23, %v19081_v22  ;;  %v19085_v19 = vld [vmem:[#allocation39_spill] sm:$0xff]  ;;  %v19089_v3 = vld [vmem:[#allocation5_spill] sm:$0xff] }
 0x42e   :  { %v5576_v11 = vrot.slane %v5522_v55, 4  ;;  %v5577_v62 = vrot.slane %v5523_v39, 4  ;;  %v5579_v53 = vrot.slane %v5524_v32, 4  ;;  %v4394_v58 = vmin.f32 %v4286_v13, %v4287_v20  ;;  %v19086_v47 = vld [vmem:[#allocation255_spill] sm:$0xff] }
 0x42f   :  { %v4395_v5 = vmin.f32 %v4287_v20, %v4288_v15  ;;  %v4396_v50 = vmin.f32 %v4288_v15, %v4289_v38  ;;  %v4397_v45 = vmin.f32 %v4289_v38, %v4290_v10  ;;  %v5126_v27 = vmax.f32 %v19084_v61, %v19083_v31  ;;  %v19090_v20 = vld [vmem:[#allocation135_spill] sm:$0xff]  ;;  %v19091_v61 = vld [vmem:[#allocation6_spill] sm:$0xff] }
 0x430   :  { %v5578_v30 = vsel %vm3759_vm4, %v5576_v11, %v5577_v62  ;;  %v5580_v25 = vsel %vm3759_vm4, %v5577_v62, %v5579_v53  ;;  %v5636_v29 = vmax.f32 %v5524_v32, %v5579_v53  ;;  %v4669_v14 = vrot.slane %v4394_v58, 3 }
 0x431   :  { %v5634_v17 = vmax.f32 %v5522_v55, %v5578_v30  ;;  %v5635_v16 = vmax.f32 %v5523_v39, %v5580_v25  ;;  %v4670_v8 = vrot.slane %v4395_v5, 3  ;;  %v4672_v48 = vrot.slane %v4396_v50, 3  ;;  %v19092_v30 = vld [vmem:[#allocation136_spill] sm:$0xff] }
 0x432   :  { %v4674_v1 = vrot.slane %v4397_v45, 3  ;;  %v5127_v13 = vmax.f32 %v19086_v47, %v19085_v19  ;;  %v5128_v12 = vmax.f32 %v19088_v44, %v19087_v46  ;;  %v1919_v15 = vmin.f32 %v19090_v20, %v19089_v3  ;;  %v19095_v47 = vld [vmem:[#allocation203_spill] sm:$0xff]  ;;  %v19096_v46 = vld [vmem:[#allocation245_spill] sm:$0xff]  ;;  %v19100_v20 = vld [vmem:[#allocation20_spill] sm:$0xff] }
 0x433   :  { %v5655_v38 = vmax.f32 %v5634_v17, %v5635_v16  ;;  %v5656_v10 = vmax.f32 %v5635_v16, %v5636_v29  ;;  %v4671_v22 = vsel %vm4514_vm5, %v4669_v14, %v4670_v8  ;;  %v4673_v32 = vsel %vm4514_vm5, %v4670_v8, %v4672_v48  ;;  %v19099_v3 = vld [vmem:[#allocation61_spill] sm:$0xff] }
 0x434   :  { %v4675_v55 = vsel %vm4514_vm5, %v4672_v48, %v4674_v1  ;;  %v15115_v39 = vmin.f32 %v4394_v58, %v4671_v22  ;;  %v15117_v23 = vmin.f32 %v4395_v5, %v4673_v32  ;;  %v15119_v11 = vmin.f32 %v4397_v45, %v4674_v1  ;;  %v19093_v5 = vld [vmem:[#allocation8_spill] sm:$0xff]  ;;  %v19094_v45 = vld [vmem:[#allocation201_spill] sm:$0xff] }
 0x435   :  { %v5690_v62 = vrot.slane %v5655_v38, 3  ;;  %v5691_v53 = vrot.slane %v5656_v10, 3  ;;  %v15121_v31 = vmin.f32 %v4396_v50, %v4675_v55  ;;  %v1920_v25 = vmin.f32 %v19092_v30, %v19091_v61  ;;  %v19102_v32 = vld [vmem:[#allocation12_spill] sm:$0xff] }
 0x436   :  { %v15127_v29 = vmax.f32 %v15004_v36, %v15115_v39  ;;  %v15131_v14 = vmax.f32 %v15006_v54, %v15117_v23  ;;  %v15135_v58 = vmax.f32 %v15008_v7, %v15119_v11  ;;  %v1921_v17 = vmin.f32 %v19094_v45, %v19093_v5 }
 0x437   :  { %v5692_v50 = vsel %vm4514_vm5, %v5690_v62, %v5691_v53  ;;  %v15142_v16 = vmax.f32 %v15010_v42, %v15121_v31  ;;  %v2075_v36 = vmin.f32 %v14701_v59, %v1919_v15  ;;  %v2076_v8 = vmin.f32 %v14707_v34, %v1920_v25 }
 0x438   :  { %v5716_v48 = vmax.f32 %v5655_v38, %v5692_v50  ;;  %v5081_v54 = vmax.f32 %v14835_v0, %v15127_v29  ;;  %v5082_v7 = vmax.f32 %v14839_v21, %v15131_v14  ;;  %v5084_v1 = vmax.f32 %v14822_v9, %v15135_v58  ;;  %v19098_v0 = vld [vmem:[#allocation225_spill] sm:$0xff]  ;;  %v19101_v38 = vld [vmem:[#allocation142_spill] sm:$0xff] }
 0x439   :  { %v5083_v19 = vmax.f32 %v14843_v49, %v15142_v16  ;;  %v2077_v42 = vmin.f32 %v14713_v6, %v1921_v17  ;;  %v19097_v59 = vmin.f32 %v19095_v47, %v19096_v46  ;;  %v2503_v44 = vrot.slane %v2075_v36, 1  ;;  %v19103_v17 = vld [vmem:[#allocation67_spill] sm:$0xff] }
 0x43a   :  { %5724 = vst.msk [vmem:[%s15438_s1 + $0x18] sm:$0xff] %vm8_vm0, %v5716_v48  ;;  %v5157_v21 = vmax.f32 %v19098_v0, %v5081_v54  ;;  %v5158_v9 = vmax.f32 %v19099_v3, %v5082_v7  ;;  %v5160_v15 = vmax.f32 %v19100_v20, %v5084_v1  ;;  %v2504_v49 = vrot.slane %v2076_v8, 1  ;;  %v19106_v54 = vld [vmem:[#allocation13_spill] sm:$0xff] }
 0x43b   :  { %v2078_v34 = vmin.f32 %v18985_v28, %v19097_v59  ;;  %v5159_v6 = vmax.f32 %v19101_v38, %v5083_v19  ;;  %v2506_v10 = vrot.slane %v2077_v42, 1  ;;  %v2510_v55 = vrot.slane %v19102_v32, 1  ;;  %v19108_v1 = vld [vmem:[#allocation93_spill] sm:$0xff] }
 0x43c   :  { %v15168_v28 = vmax.f32 %v5125_v24, %v5157_v21  ;;  %v15170_v62 = vmax.f32 %v5126_v27, %v5158_v9  ;;  %v15172_v53 = vmax.f32 %v5128_v12, %v5160_v15  ;;  %v2505_v61 = vsel %vm2249_vm2, %v2503_v44, %v2504_v49  ;;  %v19104_v24 = vld [vmem:[#allocation64_spill] sm:$0xff]  ;;  %v19105_v27 = vld [vmem:[#allocation69_spill] sm:$0xff] }
 0x43d   :  { %v2508_v22 = vrot.slane %v2078_v34, 1  ;;  %v15175_v30 = vmax.f32 %v5127_v13, %v5159_v6  ;;  %v2507_v25 = vsel %vm2249_vm2, %v2504_v49, %v2506_v10  ;;  %v19107_v7 = vrot.slane %v19106_v54, 1 }
 0x43e   :  { %v5233_v50 = vmax.f32 %v19103_v17, %v15168_v28  ;;  %v5234_v48 = vmax.f32 %v19104_v24, %v15170_v62  ;;  %v5236_v12 = vmax.f32 %v19105_v27, %v15172_v53  ;;  %v2830_v47 = vmin.f32 %v2075_v36, %v2505_v61  ;;  %v19109_v24 = vld [vmem:[#allocation30_spill] sm:$0xff] }
 0x43f   :  { %v2509_v5 = vsel %vm2249_vm2, %v2506_v10, %v2508_v22  ;;  %v2511_v45 = vsel %vm2249_vm2, %v2508_v22, %v2510_v55  ;;  %v2513_v13 = vsel %vm2249_vm2, %v2510_v55, %v19107_v7  ;;  %v5235_v19 = vmax.f32 %v19108_v1, %v15175_v30 }
 0x440   :  { %v2831_v46 = vmin.f32 %v2076_v8, %v2507_v25  ;;  %v2832_v59 = vmin.f32 %v2077_v42, %v2509_v5  ;;  %v5309_v44 = vrot.slane %v5233_v50, 1  ;;  %v5310_v0 = vrot.slane %v5234_v48, 1 }
 0x441   :  { %v5314_v21 = vrot.slane %v5236_v12, 1  ;;  %v2833_v3 = vmin.f32 %v2078_v34, %v2511_v45  ;;  %v5312_v9 = vrot.slane %v5235_v19, 1  ;;  %v2834_v20 = vmin.f32 %v19102_v32, %v2513_v13 }
 0x442   :  { %v3258_v15 = vrot.slane %v2830_v47, 2  ;;  %v3259_v49 = vrot.slane %v2831_v46, 2  ;;  %v5311_v38 = vsel %vm2249_vm2, %v5309_v44, %v5310_v0  ;;  %v3261_v10 = vrot.slane %v2832_v59, 2 }
 0x443   :  { %v5388_v6 = vmax.f32 %v5236_v12, %v5314_v21  ;;  %v3263_v22 = vrot.slane %v2833_v3, 2  ;;  %v5313_v55 = vsel %vm2249_vm2, %v5310_v0, %v5312_v9  ;;  %v5315_v36 = vsel %vm2249_vm2, %v5312_v9, %v5314_v21 }
 0x444   :  { %v5385_v8 = vmax.f32 %v5233_v50, %v5311_v38  ;;  %v3260_v42 = vsel %vm3004_vm3, %v3258_v15, %v3259_v49  ;;  %v5386_v61 = vmax.f32 %v5234_v48, %v5313_v55  ;;  %v5387_v25 = vmax.f32 %v5235_v19, %v5315_v36 }
 0x445   :  { %v5466_v34 = vrot.slane %v5388_v6, 2  ;;  %v3262_v5 = vsel %vm3004_vm3, %v3259_v49, %v3261_v10  ;;  %v3264_v45 = vsel %vm3004_vm3, %v3261_v10, %v3263_v22  ;;  %v3265_v17 = vrot.slane %v2834_v20, 2 }
 0x446   :  { %v5461_v32 = vrot.slane %v5385_v8, 2  ;;  %v3267_v27 = vrot.slane %v19109_v24, 2  ;;  %v5462_v12 = vrot.slane %v5386_v61, 2  ;;  %v5464_v54 = vrot.slane %v5387_v25, 2 }
 0x447   :  { %v3585_v7 = vmin.f32 %v2830_v47, %v3260_v42  ;;  %v3586_v13 = vmin.f32 %v2831_v46, %v3262_v5  ;;  %v3266_v1 = vsel %vm3004_vm3, %v3263_v22, %v3265_v17  ;;  %v3587_v44 = vmin.f32 %v2832_v59, %v3264_v45 }
 0x448   :  { %v3268_v50 = vsel %vm3004_vm3, %v3265_v17, %v3267_v27  ;;  %v3590_v48 = vmin.f32 %v19109_v24, %v3267_v27  ;;  %v5463_v19 = vsel %vm3004_vm3, %v5461_v32, %v5462_v12  ;;  %v5465_v0 = vsel %vm3004_vm3, %v5462_v12, %v5464_v54 }
 0x449   :  { %v5467_v21 = vsel %vm3004_vm3, %v5464_v54, %v5466_v34  ;;  %v3588_v9 = vmin.f32 %v2833_v3, %v3266_v1  ;;  %v5525_v15 = vmax.f32 %v5385_v8, %v5463_v19  ;;  %v5526_v49 = vmax.f32 %v5386_v61, %v5465_v0 }
 0x44a   :  { %v5527_v38 = vmax.f32 %v5387_v25, %v5467_v21  ;;  %v3589_v6 = vmin.f32 %v2834_v20, %v3268_v50  ;;  %v4013_v47 = vrot.slane %v3585_v7, 4  ;;  %v4014_v46 = vrot.slane %v3586_v13, 4  ;;  %v19110_v21 = vld [vmem:[#allocation234_spill] sm:$0xff] }
 0x44b   :  { %v4016_v10 = vrot.slane %v3587_v44, 4  ;;  %v4018_v22 = vrot.slane %v3588_v9, 4  ;;  %v5581_v55 = vrot.slane %v5525_v15, 4  ;;  %v5582_v36 = vrot.slane %v5526_v49, 4 }
 0x44c   :  { %v5584_v59 = vrot.slane %v5527_v38, 4  ;;  %v4020_v42 = vrot.slane %v3589_v6, 4  ;;  %v4015_v5 = vsel %vm3759_vm4, %v4013_v47, %v4014_v46  ;;  %v4022_v34 = vrot.slane %v3590_v48, 4  ;;  %v19111_v48 = vld [vmem:[#allocation3_spill] sm:$0xff] }
 0x44d   :  { %v4017_v32 = vsel %vm3759_vm4, %v4014_v46, %v4016_v10  ;;  %v4019_v45 = vsel %vm3759_vm4, %v4016_v10, %v4018_v22  ;;  %v5583_v3 = vsel %vm3759_vm4, %v5581_v55, %v5582_v36  ;;  %v4291_v27 = vmin.f32 %v3585_v7, %v4015_v5  ;;  %v19113_v46 = vld [vmem:[#allocation211_spill] sm:$0xff] }
 0x44e   :  { %v5585_v8 = vsel %vm3759_vm4, %v5582_v36, %v5584_v59  ;;  %v5639_v20 = vmax.f32 %v5527_v38, %v5584_v59  ;;  %v4021_v61 = vsel %vm3759_vm4, %v4018_v22, %v4020_v42  ;;  %v5637_v25 = vmax.f32 %v5525_v15, %v5583_v3  ;;  %v19114_v55 = vld [vmem:[#allocation235_spill] sm:$0xff]  ;;  %v19115_v38 = vld [vmem:[#allocation164_spill] sm:$0xff] }
 0x44f   :  { %v5638_v17 = vmax.f32 %v5526_v49, %v5585_v8  ;;  %v4023_v24 = vsel %vm3759_vm4, %v4020_v42, %v4022_v34  ;;  %v4292_v12 = vmin.f32 %v3586_v13, %v4017_v32  ;;  %v4293_v54 = vmin.f32 %v3587_v44, %v4019_v45  ;;  %v19117_v22 = vld [vmem:[#allocation212_spill] sm:$0xff]  ;;  %v19121_v32 = vld [vmem:[#allocation213_spill] sm:$0xff]  ;;  %v19122_v34 = vld [vmem:[#allocation127_spill] sm:$0xff] }
 0x450   :  { %v4294_v1 = vmin.f32 %v3588_v9, %v4021_v61  ;;  %v4295_v50 = vmin.f32 %v3589_v6, %v4023_v24  ;;  %v19112_v47 = vmin.f32 %v19110_v21, %v19111_v48  ;;  %v19116_v36 = vmin.f32 %v19114_v55, %v19115_v38  ;;  %v19118_v9 = vld [vmem:[#allocation236_spill] sm:$0xff]  ;;  %v19119_v6 = vld [vmem:[#allocation9_spill] sm:$0xff] }
 0x451   :  { %v5657_v19 = vmax.f32 %v5637_v25, %v5638_v17  ;;  %v5658_v0 = vmax.f32 %v5638_v17, %v5639_v20  ;;  %v4398_v49 = vmin.f32 %v4291_v27, %v4292_v12  ;;  %v4399_v59 = vmin.f32 %v4292_v12, %v4293_v54  ;;  %v19123_v24 = vld [vmem:[#allocation28_spill] sm:$0xff]  ;;  %v19124_v12 = vld [vmem:[#allocation147_spill] sm:$0xff] }
 0x452   :  { %v1925_v10 = vmin.f32 %v19113_v46, %v19112_v47  ;;  %v1926_v15 = vmin.f32 %v19117_v22, %v19116_v36  ;;  %v4400_v42 = vmin.f32 %v4293_v54, %v4294_v1  ;;  %v4401_v7 = vmin.f32 %v4294_v1, %v4295_v50  ;;  %v19125_v1 = vld [vmem:[#allocation11_spill] sm:$0xff]  ;;  %v19126_v50 = vld [vmem:[#allocation104_spill] sm:$0xff] }
 0x453   :  { %v5693_v13 = vrot.slane %v5657_v19, 3  ;;  %v5694_v44 = vrot.slane %v5658_v0, 3  ;;  %v19120_v5 = vmin.f32 %v19118_v9, %v19119_v6  ;;  %v4676_v8 = vrot.slane %v4398_v49, 3 }
 0x454   :  { %v2081_v3 = vmin.f32 %v19122_v34, %v1925_v10  ;;  %v4677_v20 = vrot.slane %v4399_v59, 3  ;;  %v4679_v61 = vrot.slane %v4400_v42, 3  ;;  %v4681_v25 = vrot.slane %v4401_v7, 3  ;;  %v19128_v34 = vld [vmem:[#allocation82_spill] sm:$0xff] }
 0x455   :  { %v1927_v45 = vmin.f32 %v19121_v32, %v19120_v5  ;;  %v5695_v17 = vsel %vm4514_vm5, %v5693_v13, %v5694_v44  ;;  %v2082_v27 = vmin.f32 %v19123_v24, %v1926_v15  ;;  %v2084_v0 = vmin.f32 %v19126_v50, %v19125_v1  ;;  %v19132_v1 = vld [vmem:[#allocation98_spill] sm:$0xff]  ;;  %v19133_v50 = vld [vmem:[#allocation256_spill] sm:$0xff] }
 0x456   :  { %v5717_v21 = vmax.f32 %v5657_v19, %v5695_v17  ;;  %v4678_v48 = vsel %vm4514_vm5, %v4676_v8, %v4677_v20  ;;  %v4680_v47 = vsel %vm4514_vm5, %v4677_v20, %v4679_v61  ;;  %v4682_v46 = vsel %vm4514_vm5, %v4679_v61, %v4681_v25  ;;  %v19130_v17 = vld [vmem:[#allocation137_spill] sm:$0xff] }
 0x457   :  { %v2083_v54 = vmin.f32 %v19124_v12, %v1927_v45  ;;  %v15233_v10 = vmin.f32 %v4398_v49, %v4678_v48  ;;  %v15235_v55 = vmin.f32 %v4399_v59, %v4680_v47  ;;  %v15237_v38 = vmin.f32 %v4400_v42, %v4682_v46  ;;  %v19134_v46 = vld [vmem:[#allocation202_spill] sm:$0xff] }
 0x458   :  { %v15239_v36 = vmin.f32 %v4401_v7, %v4681_v25  ;;  %5725 = vst.msk [vmem:[%s15438_s1 + $0x20] sm:$0xff] %vm8_vm0, %v5717_v21  ;;  %v2514_v19 = vrot.slane %v2081_v3, 1  ;;  %v2515_v22 = vrot.slane %v2082_v27, 1  ;;  %v2519_v13 = vrot.slane %v2084_v0, 1 }
 0x459   :  { %v2517_v15 = vrot.slane %v2083_v54, 1  ;;  %v15247_v44 = vmax.f32 %v15115_v39, %v15233_v10  ;;  %v15251_v49 = vmax.f32 %v15117_v23, %v15235_v55  ;;  %v15255_v59 = vmax.f32 %v15121_v31, %v15237_v38  ;;  %v19127_v39 = vld [vmem:[#allocation14_spill] sm:$0xff] }
 0x45a   :  { %v15259_v42 = vmax.f32 %v15119_v11, %v15239_v36  ;;  %v2516_v7 = vsel %vm2249_vm2, %v2514_v19, %v2515_v22  ;;  %v2521_v5 = vrot.slane %v19127_v39, 1  ;;  %v19129_v8 = vrot.slane %v19128_v34, 1 }
 0x45b   :  { %v2518_v9 = vsel %vm2249_vm2, %v2515_v22, %v2517_v15  ;;  %v2520_v6 = vsel %vm2249_vm2, %v2517_v15, %v2519_v13  ;;  %v5085_v23 = vmax.f32 %v15015_v43, %v15247_v44  ;;  %v5086_v32 = vmax.f32 %v15019_v52, %v15251_v49  ;;  %v19131_v43 = vld [vmem:[#allocation49_spill] sm:$0xff] }
 0x45c   :  { %v5087_v31 = vmax.f32 %v15030_v60, %v15255_v59  ;;  %v5088_v11 = vmax.f32 %v15023_v26, %v15259_v42  ;;  %v2522_v45 = vsel %vm2249_vm2, %v2519_v13, %v2521_v5  ;;  %v2524_v20 = vsel %vm2249_vm2, %v2521_v5, %v19129_v8  ;;  %v19135_v22 = vld [vmem:[#allocation125_spill] sm:$0xff]  ;;  %v19136_v13 = vld [vmem:[#allocation92_spill] sm:$0xff] }
 0x45d   :  { %v2836_v61 = vmin.f32 %v2081_v3, %v2516_v7  ;;  %v2837_v25 = vmin.f32 %v2082_v27, %v2518_v9  ;;  %v5161_v24 = vmax.f32 %v19130_v17, %v5085_v23  ;;  %v5162_v12 = vmax.f32 %v19131_v43, %v5086_v32  ;;  %v19137_v27 = vld [vmem:[#allocation89_spill] sm:$0xff] }
 0x45e   :  { %v5163_v52 = vmax.f32 %v19132_v1, %v5087_v31  ;;  %v5164_v21 = vmax.f32 %v19133_v50, %v5088_v11  ;;  %v2838_v60 = vmin.f32 %v2083_v54, %v2520_v6  ;;  %v2839_v48 = vmin.f32 %v2084_v0, %v2522_v45  ;;  %v19138_v31 = vld [vmem:[#allocation165_spill] sm:$0xff]  ;;  %v19139_v11 = vld [vmem:[#allocation226_spill] sm:$0xff] }
 0x45f   :  { %v2840_v26 = vmin.f32 %v19127_v39, %v2524_v20  ;;  %v3269_v47 = vrot.slane %v2836_v61, 2  ;;  %v5205_v19 = vmax.f32 %v19134_v46, %v5161_v24  ;;  %v5206_v15 = vmax.f32 %v19135_v22, %v5162_v12  ;;  %v19140_v0 = vld [vmem:[#allocation37_spill] sm:$0xff]  ;;  %v19141_v39 = vld [vmem:[#allocation99_spill] sm:$0xff] }
 0x460   :  { %v5207_v3 = vmax.f32 %v19136_v13, %v5163_v52  ;;  %v5208_v7 = vmax.f32 %v19137_v27, %v5164_v21  ;;  %v3270_v9 = vrot.slane %v2837_v25, 2  ;;  %v3272_v5 = vrot.slane %v2838_v60, 2  ;;  %v19142_v50 = vld [vmem:[#allocation233_spill] sm:$0xff] }
 0x461   :  { %v3274_v23 = vrot.slane %v2839_v48, 2  ;;  %v3276_v32 = vrot.slane %v2840_v26, 2  ;;  %v5237_v34 = vmax.f32 %v19138_v31, %v5205_v19  ;;  %v5238_v54 = vmax.f32 %v19139_v11, %v5206_v15 }
 0x462   :  { %v5239_v6 = vmax.f32 %v19140_v0, %v5207_v3  ;;  %v5240_v45 = vmax.f32 %v19141_v39, %v5208_v7  ;;  %v3271_v8 = vsel %vm3004_vm3, %v3269_v47, %v3270_v9  ;;  %v3273_v20 = vsel %vm3004_vm3, %v3270_v9, %v3272_v5 }
 0x463   :  { %v3275_v17 = vsel %vm3004_vm3, %v3272_v5, %v3274_v23  ;;  %v3277_v24 = vsel %vm3004_vm3, %v3274_v23, %v3276_v32  ;;  %v5316_v43 = vrot.slane %v5237_v34, 1  ;;  %v5317_v12 = vrot.slane %v5238_v54, 1 }
 0x464   :  { %v5319_v1 = vrot.slane %v5239_v6, 1  ;;  %v5321_v52 = vrot.slane %v5240_v45, 1  ;;  %v3278_v21 = vrot.slane %v19142_v50, 2  ;;  %v3591_v46 = vmin.f32 %v2836_v61, %v3271_v8 }
 0x465   :  { %v3592_v19 = vmin.f32 %v2837_v25, %v3273_v20  ;;  %v3593_v22 = vmin.f32 %v2838_v60, %v3275_v17  ;;  %v5318_v15 = vsel %vm2249_vm2, %v5316_v43, %v5317_v12  ;;  %v3594_v31 = vmin.f32 %v2839_v48, %v3277_v24 }
 0x466   :  { %v5320_v13 = vsel %vm2249_vm2, %v5317_v12, %v5319_v1  ;;  %v5322_v47 = vsel %vm2249_vm2, %v5319_v1, %v5321_v52  ;;  %v5392_v3 = vmax.f32 %v5240_v45, %v5321_v52  ;;  %v5389_v27 = vmax.f32 %v5237_v34, %v5318_v15 }
 0x467   :  { %v5390_v7 = vmax.f32 %v5238_v54, %v5320_v13  ;;  %v5391_v9 = vmax.f32 %v5239_v6, %v5322_v47  ;;  %v3279_v5 = vsel %vm3004_vm3, %v3276_v32, %v3278_v21  ;;  %v3596_v0 = vmin.f32 %v19142_v50, %v3278_v21 }
 0x468   :  { %v5473_v23 = vrot.slane %v5392_v3, 2  ;;  %v3595_v11 = vmin.f32 %v2840_v26, %v3279_v5  ;;  %v5468_v61 = vrot.slane %v5389_v27, 2  ;;  %v4024_v39 = vrot.slane %v3591_v46, 4 }
 0x469   :  { %v5469_v25 = vrot.slane %v5390_v7, 2  ;;  %v5471_v60 = vrot.slane %v5391_v9, 2  ;;  %v4025_v8 = vrot.slane %v3592_v19, 4  ;;  %v4027_v20 = vrot.slane %v3593_v22, 4 }
 0x46a   :  { %v4029_v17 = vrot.slane %v3594_v31, 4  ;;  %v4031_v43 = vrot.slane %v3595_v11, 4  ;;  %v4033_v32 = vrot.slane %v3596_v0, 4 }
 0x46b   :  { %v5470_v45 = vsel %vm3004_vm3, %v5468_v61, %v5469_v25  ;;  %v5472_v34 = vsel %vm3004_vm3, %v5469_v25, %v5471_v60  ;;  %v5474_v54 = vsel %vm3004_vm3, %v5471_v60, %v5473_v23  ;;  %v4026_v24 = vsel %vm3759_vm4, %v4024_v39, %v4025_v8  ;;  %v19143_v61 = vld [vmem:[#allocation237_spill] sm:$0xff]  ;;  %v19144_v25 = vld [vmem:[#allocation191_spill] sm:$0xff] }
 0x46c   :  { %v5528_v6 = vmax.f32 %v5389_v27, %v5470_v45  ;;  %v5529_v48 = vmax.f32 %v5390_v7, %v5472_v34  ;;  %v5530_v26 = vmax.f32 %v5391_v9, %v5474_v54  ;;  %v4028_v12 = vsel %vm3759_vm4, %v4025_v8, %v4027_v20  ;;  %v19146_v39 = vld [vmem:[#allocation103_spill] sm:$0xff] }
 0x46d   :  { %v4030_v1 = vsel %vm3759_vm4, %v4027_v20, %v4029_v17  ;;  %v4032_v52 = vsel %vm3759_vm4, %v4029_v17, %v4031_v43  ;;  %v4034_v50 = vsel %vm3759_vm4, %v4031_v43, %v4033_v32  ;;  %v4296_v47 = vmin.f32 %v3591_v46, %v4026_v24  ;;  %v19151_v32 = vld [vmem:[#allocation239_spill] sm:$0xff] }
 0x46e   :  { %v5586_v21 = vrot.slane %v5528_v6, 4  ;;  %v5587_v15 = vrot.slane %v5529_v48, 4  ;;  %v5589_v13 = vrot.slane %v5530_v26, 4  ;;  %v4297_v3 = vmin.f32 %v3592_v19, %v4028_v12  ;;  %v19147_v19 = vld [vmem:[#allocation238_spill] sm:$0xff]  ;;  %v19152_v24 = vld [vmem:[#allocation7_spill] sm:$0xff] }
 0x46f   :  { %v4298_v5 = vmin.f32 %v3593_v22, %v4030_v1  ;;  %v4299_v23 = vmin.f32 %v3594_v31, %v4032_v52  ;;  %v4300_v27 = vmin.f32 %v3595_v11, %v4034_v50  ;;  %v19145_v60 = vmin.f32 %v19143_v61, %v19144_v25  ;;  %v19148_v22 = vld [vmem:[#allocation4_spill] sm:$0xff]  ;;  %v19150_v11 = vld [vmem:[#allocation221_spill] sm:$0xff] }
 0x470   :  { %v5588_v7 = vsel %vm3759_vm4, %v5586_v21, %v5587_v15  ;;  %v5590_v9 = vsel %vm3759_vm4, %v5587_v15, %v5589_v13  ;;  %v5642_v0 = vmax.f32 %v5530_v26, %v5589_v13  ;;  %v4402_v43 = vmin.f32 %v4296_v47, %v4297_v3  ;;  %v19154_v26 = vld [vmem:[#allocation222_spill] sm:$0xff] }
 0x471   :  { %v1931_v8 = vmin.f32 %v19146_v39, %v19145_v60  ;;  %v5640_v20 = vmax.f32 %v5528_v6, %v5588_v7  ;;  %v5641_v17 = vmax.f32 %v5529_v48, %v5590_v9  ;;  %v4403_v45 = vmin.f32 %v4297_v3, %v4298_v5 }
 0x472   :  { %v4404_v34 = vmin.f32 %v4298_v5, %v4299_v23  ;;  %v4405_v46 = vmin.f32 %v4299_v23, %v4300_v27  ;;  %v19149_v31 = vmin.f32 %v19147_v19, %v19148_v22  ;;  %v19153_v12 = vmin.f32 %v19151_v32, %v19152_v24  ;;  %v19158_v24 = vld [vmem:[#allocation182_spill] sm:$0xff] }
 0x473   :  { %v5659_v52 = vmax.f32 %v5640_v20, %v5641_v17  ;;  %v5660_v50 = vmax.f32 %v5641_v17, %v5642_v0  ;;  %v4683_v21 = vrot.slane %v4402_v43, 3  ;;  %v4684_v15 = vrot.slane %v4403_v45, 3 }
 0x474   :  { %v1932_v54 = vmin.f32 %v19150_v11, %v19149_v31  ;;  %v1933_v1 = vmin.f32 %v19154_v26, %v19153_v12  ;;  %v4686_v6 = vrot.slane %v4404_v34, 3  ;;  %v4688_v48 = vrot.slane %v4405_v46, 3 }
 0x475   :  { %v2087_v13 = vmin.f32 %v14978_v4, %v1931_v8  ;;  %v5696_v3 = vrot.slane %v5659_v52, 3  ;;  %v5697_v5 = vrot.slane %v5660_v50, 3  ;;  %v4685_v23 = vsel %vm4514_vm5, %v4683_v21, %v4684_v15  ;;  %v19161_v21 = vld [vmem:[#allocation15_spill] sm:$0xff] }
 0x476   :  { %v2088_v47 = vmin.f32 %v14986_v56, %v1932_v54  ;;  %v2089_v27 = vmin.f32 %v14990_v35, %v1933_v1  ;;  %v4687_v7 = vsel %vm4514_vm5, %v4684_v15, %v4686_v6  ;;  %v4689_v9 = vsel %vm4514_vm5, %v4686_v6, %v4688_v48  ;;  %v19155_v56 = vld [vmem:[#allocation133_spill] sm:$0xff]  ;;  %v19157_v54 = vld [vmem:[#allocation24_spill] sm:$0xff] }
 0x477   :  { %v15328_v61 = vmin.f32 %v4402_v43, %v4685_v23  ;;  %v15330_v0 = vmin.f32 %v4405_v46, %v4688_v48  ;;  %v5698_v25 = vsel %vm4514_vm5, %v5696_v3, %v5697_v5  ;;  %v15333_v60 = vmin.f32 %v4403_v45, %v4687_v7  ;;  %v19163_v6 = vld [vmem:[#allocation196_spill] sm:$0xff]  ;;  %v19164_v3 = vld [vmem:[#allocation26_spill] sm:$0xff] }
 0x478   :  { %v15335_v4 = vmin.f32 %v4404_v34, %v4689_v9  ;;  %v2090_v39 = vmin.f32 %v19068_v40, %v19155_v56  ;;  %v5718_v8 = vmax.f32 %v5659_v52, %v5698_v25  ;;  %v2525_v17 = vrot.slane %v2087_v13, 1  ;;  %v19160_v52 = vld [vmem:[#allocation47_spill] sm:$0xff]  ;;  %v19166_v56 = vld [vmem:[#allocation42_spill] sm:$0xff] }
 0x479   :  { %v4997_v35 = vmax.f32 %v15233_v10, %v15328_v61  ;;  %v5000_v20 = vmax.f32 %v15239_v36, %v15330_v0  ;;  %v4998_v43 = vmax.f32 %v15235_v55, %v15333_v60  ;;  %v2526_v46 = vrot.slane %v2088_v47, 1  ;;  %v19156_v36 = vld [vmem:[#allocation214_spill] sm:$0xff]  ;;  %v19165_v9 = vld [vmem:[#allocation227_spill] sm:$0xff] }
 0x47a   :  { %v4999_v45 = vmax.f32 %v15237_v38, %v15335_v4  ;;  %v2528_v34 = vrot.slane %v2089_v27, 1  ;;  %5726 = vst.msk [vmem:[%s15438_s1 + $0x28] sm:$0xff] %vm8_vm0, %v5718_v8  ;;  %v2530_v19 = vrot.slane %v2090_v39, 1  ;;  %v2532_v22 = vrot.slane %v19156_v36, 1 }
 0x47b   :  { %v5089_v40 = vmax.f32 %v15127_v29, %v4997_v35  ;;  %v5092_v10 = vmax.f32 %v15135_v58, %v5000_v20  ;;  %v5090_v31 = vmax.f32 %v15131_v14, %v4998_v43  ;;  %v2527_v38 = vsel %vm2249_vm2, %v2525_v17, %v2526_v46  ;;  %v19159_v58 = vld [vmem:[#allocation74_spill] sm:$0xff] }
 0x47c   :  { %v5091_v55 = vmax.f32 %v15142_v16, %v4999_v45  ;;  %v2529_v11 = vsel %vm2249_vm2, %v2526_v46, %v2528_v34  ;;  %v2531_v26 = vsel %vm2249_vm2, %v2528_v34, %v2530_v19  ;;  %v2533_v29 = vsel %vm2249_vm2, %v2530_v19, %v2532_v22 }
 0x47d   :  { %v5165_v32 = vmax.f32 %v19157_v54, %v5089_v40  ;;  %v5168_v12 = vmax.f32 %v19158_v24, %v5092_v10  ;;  %v5166_v1 = vmax.f32 %v19159_v58, %v5090_v31  ;;  %v19162_v14 = vrot.slane %v19161_v21, 1 }
 0x47e   :  { %v5167_v50 = vmax.f32 %v19160_v52, %v5091_v55  ;;  %v2842_v15 = vmin.f32 %v2087_v13, %v2527_v38  ;;  %v2843_v23 = vmin.f32 %v2088_v47, %v2529_v11  ;;  %v2844_v7 = vmin.f32 %v2089_v27, %v2531_v26  ;;  %v19167_v38 = vld [vmem:[#allocation84_spill] sm:$0xff] }
 0x47f   :  { %v2535_v16 = vsel %vm2249_vm2, %v2532_v22, %v19162_v14  ;;  %v5209_v48 = vmax.f32 %v19163_v6, %v5165_v32  ;;  %v5212_v5 = vmax.f32 %v19164_v3, %v5168_v12  ;;  %v5210_v25 = vmax.f32 %v19165_v9, %v5166_v1 }
 0x480   :  { %v5211_v8 = vmax.f32 %v19166_v56, %v5167_v50  ;;  %v2845_v35 = vmin.f32 %v2090_v39, %v2533_v29  ;;  %v2846_v20 = vmin.f32 %v19156_v36, %v2535_v16  ;;  %v3280_v45 = vrot.slane %v2842_v15, 2 }
 0x481   :  { %v5241_v17 = vmax.f32 %v15063_v51, %v5209_v48  ;;  %v5244_v43 = vmax.f32 %v15070_v41, %v5212_v5  ;;  %v3281_v46 = vrot.slane %v2843_v23, 2  ;;  %v5242_v13 = vmax.f32 %v15068_v33, %v5210_v25 }
 0x482   :  { %v5243_v34 = vmax.f32 %v15072_v37, %v5211_v8  ;;  %v3283_v40 = vrot.slane %v2844_v7, 2  ;;  %v3285_v47 = vrot.slane %v2845_v35, 2  ;;  %v3287_v22 = vrot.slane %v2846_v20, 2 }
 0x483   :  { %v5323_v27 = vrot.slane %v5241_v17, 1  ;;  %v5328_v10 = vrot.slane %v5244_v43, 1  ;;  %v3282_v19 = vsel %vm3004_vm3, %v3280_v45, %v3281_v46  ;;  %v5324_v39 = vrot.slane %v5242_v13, 1 }
 0x484   :  { %v5326_v31 = vrot.slane %v5243_v34, 1  ;;  %v3284_v36 = vsel %vm3004_vm3, %v3281_v46, %v3283_v40  ;;  %v3286_v51 = vsel %vm3004_vm3, %v3283_v40, %v3285_v47  ;;  %v3288_v55 = vsel %vm3004_vm3, %v3285_v47, %v3287_v22 }
 0x485   :  { %v5396_v41 = vmax.f32 %v5244_v43, %v5328_v10  ;;  %v3289_v33 = vrot.slane %v19167_v38, 2  ;;  %v3597_v11 = vmin.f32 %v2842_v15, %v3282_v19  ;;  %v5325_v37 = vsel %vm2249_vm2, %v5323_v27, %v5324_v39 }
 0x486   :  { %v5327_v54 = vsel %vm2249_vm2, %v5324_v39, %v5326_v31  ;;  %v5329_v32 = vsel %vm2249_vm2, %v5326_v31, %v5328_v10  ;;  %v3598_v24 = vmin.f32 %v2843_v23, %v3284_v36  ;;  %v5393_v12 = vmax.f32 %v5241_v17, %v5325_v37 }
 0x487   :  { %v5394_v26 = vmax.f32 %v5242_v13, %v5327_v54  ;;  %v5395_v29 = vmax.f32 %v5243_v34, %v5329_v32  ;;  %v5480_v58 = vrot.slane %v5396_v41, 2  ;;  %v3290_v1 = vsel %vm3004_vm3, %v3287_v22, %v3289_v33 }
 0x488   :  { %v3599_v52 = vmin.f32 %v2844_v7, %v3286_v51  ;;  %v3600_v50 = vmin.f32 %v2845_v35, %v3288_v55  ;;  %v3602_v21 = vmin.f32 %v19167_v38, %v3289_v33  ;;  %v5475_v14 = vrot.slane %v5393_v12, 2 }
 0x489   :  { %v5476_v16 = vrot.slane %v5394_v26, 2  ;;  %v5478_v15 = vrot.slane %v5395_v29, 2  ;;  %v3601_v6 = vmin.f32 %v2846_v20, %v3290_v1  ;;  %v4035_v48 = vrot.slane %v3597_v11, 4 }
 0x48a   :  { %v4036_v3 = vrot.slane %v3598_v24, 4  ;;  %v4038_v5 = vrot.slane %v3599_v52, 4  ;;  %v4040_v9 = vrot.slane %v3600_v50, 4  ;;  %v4044_v13 = vrot.slane %v3602_v21, 4 }
 0x48b   :  { %v5477_v23 = vsel %vm3004_vm3, %v5475_v14, %v5476_v16  ;;  %v5479_v25 = vsel %vm3004_vm3, %v5476_v16, %v5478_v15  ;;  %v5481_v56 = vsel %vm3004_vm3, %v5478_v15, %v5480_v58  ;;  %v4042_v8 = vrot.slane %v3601_v6, 4 }
 0x48c   :  { %v5531_v17 = vmax.f32 %v5393_v12, %v5477_v23  ;;  %v5532_v7 = vmax.f32 %v5394_v26, %v5479_v25  ;;  %v5533_v35 = vmax.f32 %v5395_v29, %v5481_v56  ;;  %v4037_v43 = vsel %vm3759_vm4, %v4035_v48, %v4036_v3 }
 0x48d   :  { %v4039_v45 = vsel %vm3759_vm4, %v4036_v3, %v4038_v5  ;;  %v4041_v20 = vsel %vm3759_vm4, %v4038_v5, %v4040_v9  ;;  %v4043_v46 = vsel %vm3759_vm4, %v4040_v9, %v4042_v8  ;;  %v4301_v27 = vmin.f32 %v3597_v11, %v4037_v43  ;;  %v19168_v43 = vld [vmem:[#allocation139_spill] sm:$0xff] }
 0x48e   :  { %v5591_v34 = vrot.slane %v5531_v17, 4  ;;  %v5592_v40 = vrot.slane %v5532_v7, 4  ;;  %v5594_v47 = vrot.slane %v5533_v35, 4  ;;  %v4045_v10 = vsel %vm3759_vm4, %v4042_v8, %v4044_v13  ;;  %v19170_v13 = vld [vmem:[#allocation118_spill] sm:$0xff] }
 0x48f   :  { %v4302_v19 = vmin.f32 %v3598_v24, %v4039_v45  ;;  %v4303_v22 = vmin.f32 %v3599_v52, %v4041_v20  ;;  %v4304_v39 = vmin.f32 %v3600_v50, %v4043_v46  ;;  %v4305_v41 = vmin.f32 %v3601_v6, %v4045_v10  ;;  %v19169_v20 = vld [vmem:[#allocation120_spill] sm:$0xff] }
 0x490   :  { %v5593_v31 = vsel %vm3759_vm4, %v5591_v34, %v5592_v40  ;;  %v5595_v36 = vsel %vm3759_vm4, %v5592_v40, %v5594_v47  ;;  %v5645_v51 = vmax.f32 %v5533_v35, %v5594_v47  ;;  %v19171_v34 = vld [vmem:[#allocation70_spill] sm:$0xff] }
 0x491   :  { %v5643_v55 = vmax.f32 %v5531_v17, %v5593_v31  ;;  %v5644_v38 = vmax.f32 %v5532_v7, %v5595_v36  ;;  %v4406_v33 = vmin.f32 %v4301_v27, %v4302_v19  ;;  %v4407_v37 = vmin.f32 %v4302_v19, %v4303_v22 }
 0x492   :  { %v4408_v54 = vmin.f32 %v4303_v22, %v4304_v39  ;;  %v4409_v32 = vmin.f32 %v4304_v39, %v4305_v41 }
 0x493   :  { %v5661_v12 = vmax.f32 %v5643_v55, %v5644_v38  ;;  %v5662_v26 = vmax.f32 %v5644_v38, %v5645_v51  ;;  %v4690_v11 = vrot.slane %v4406_v33, 3  ;;  %v4691_v29 = vrot.slane %v4407_v37, 3 }
 0x494   :  { %v4693_v58 = vrot.slane %v4408_v54, 3  ;;  %v4695_v24 = vrot.slane %v4409_v32, 3 }
 0x495   :  { %v5699_v1 = vrot.slane %v5661_v12, 3  ;;  %v5700_v52 = vrot.slane %v5662_v26, 3  ;;  %v4692_v50 = vsel %vm4514_vm5, %v4690_v11, %v4691_v29 }
 0x496   :  { %v4694_v21 = vsel %vm4514_vm5, %v4691_v29, %v4693_v58  ;;  %v4696_v14 = vsel %vm4514_vm5, %v4693_v58, %v4695_v24  ;;  %v4901_v16 = vmin.f32 %v4406_v33, %v4692_v50  ;;  %v4904_v15 = vmin.f32 %v4409_v32, %v4695_v24 }
 0x497   :  { %v5701_v6 = vsel %vm4514_vm5, %v5699_v1, %v5700_v52  ;;  %v4902_v48 = vmin.f32 %v4407_v37, %v4694_v21  ;;  %v4903_v3 = vmin.f32 %v4408_v54, %v4696_v14 }
 0x498   :  { %v5719_v5 = vmax.f32 %v5661_v12, %v5701_v6  ;;  %v5001_v9 = vmax.f32 %v15328_v61, %v4901_v16  ;;  %v5004_v23 = vmax.f32 %v15330_v0, %v4904_v15 }
 0x499   :  { %v5002_v25 = vmax.f32 %v15333_v60, %v4902_v48  ;;  %v5003_v56 = vmax.f32 %v15335_v4, %v4903_v3 }
 0x49a   :  { %5727 = vst.msk [vmem:[%s15438_s1 + $0x30] sm:$0xff] %vm8_vm0, %v5719_v5  ;;  %v5093_v8 = vmax.f32 %v15247_v44, %v5001_v9  ;;  %v5096_v17 = vmax.f32 %v15259_v42, %v5004_v23 }
 0x49b   :  { %v5094_v7 = vmax.f32 %v15251_v49, %v5002_v25  ;;  %v5095_v35 = vmax.f32 %v15255_v59, %v5003_v56 }
 0x49c   :  { %v5169_v61 = vmax.f32 %v15037_v18, %v5093_v8  ;;  %v5172_v0 = vmax.f32 %v15045_v57, %v5096_v17 }
 0x49d   :  { %v5170_v60 = vmax.f32 %v15041_v2, %v5094_v7  ;;  %v5171_v4 = vmax.f32 %v15049_v63, %v5095_v35 }
 0x49e   :  { %v5213_v45 = vmax.f32 %v19168_v43, %v5169_v61  ;;  %v5216_v46 = vmax.f32 %v19169_v20, %v5172_v0 }
 0x49f   :  { %v5214_v44 = vmax.f32 %v19170_v13, %v5170_v60  ;;  %v5215_v42 = vmax.f32 %v19171_v34, %v5171_v4 }
 0x4a0   :  { %v5245_v49 = vmax.f32 %v15168_v28, %v5213_v45  ;;  %v5248_v59 = vmax.f32 %v15172_v53, %v5216_v46 }
 0x4a1   :  { %v5246_v18 = vmax.f32 %v15170_v62, %v5214_v44  ;;  %v5247_v57 = vmax.f32 %v15175_v30, %v5215_v42 }
 0x4a2   :  { %v5330_v40 = vrot.slane %v5245_v49, 1  ;;  %v5335_v2 = vrot.slane %v5248_v59, 1 }
 0x4a3   :  { %v5331_v47 = vrot.slane %v5246_v18, 1  ;;  %v5333_v63 = vrot.slane %v5247_v57, 1 }
 0x4a4   :  { %v5400_v27 = vmax.f32 %v5248_v59, %v5335_v2 }
 0x4a5   :  { %v5332_v10 = vsel %vm2249_vm2, %v5330_v40, %v5331_v47  ;;  %v5334_v19 = vsel %vm2249_vm2, %v5331_v47, %v5333_v63  ;;  %v5336_v22 = vsel %vm2249_vm2, %v5333_v63, %v5335_v2 }
 0x4a6   :  { %v5397_v39 = vmax.f32 %v5245_v49, %v5332_v10  ;;  %v5398_v31 = vmax.f32 %v5246_v18, %v5334_v19  ;;  %v5399_v28 = vmax.f32 %v5247_v57, %v5336_v22  ;;  %v5487_v62 = vrot.slane %v5400_v27, 2 }
 0x4a8   :  { %v5482_v36 = vrot.slane %v5397_v39, 2  ;;  %v5483_v53 = vrot.slane %v5398_v31, 2  ;;  %v5485_v51 = vrot.slane %v5399_v28, 2 }
 0x4aa   :  { %v5484_v30 = vsel %vm3004_vm3, %v5482_v36, %v5483_v53  ;;  %v5486_v41 = vsel %vm3004_vm3, %v5483_v53, %v5485_v51  ;;  %v5488_v55 = vsel %vm3004_vm3, %v5485_v51, %v5487_v62 }
 0x4ab   :  { %v5534_v38 = vmax.f32 %v5397_v39, %v5484_v30  ;;  %v5535_v33 = vmax.f32 %v5398_v31, %v5486_v41  ;;  %v5536_v37 = vmax.f32 %v5399_v28, %v5488_v55 }
 0x4ad   :  { %v5596_v54 = vrot.slane %v5534_v38, 4  ;;  %v5597_v32 = vrot.slane %v5535_v33, 4  ;;  %v5599_v12 = vrot.slane %v5536_v37, 4 }
 0x4af   :  { %v5598_v26 = vsel %vm3759_vm4, %v5596_v54, %v5597_v32  ;;  %v5600_v11 = vsel %vm3759_vm4, %v5597_v32, %v5599_v12  ;;  %v5648_v29 = vmax.f32 %v5536_v37, %v5599_v12 }
 0x4b0   :  { %v5646_v58 = vmax.f32 %v5534_v38, %v5598_v26  ;;  %v5647_v24 = vmax.f32 %v5535_v33, %v5600_v11 }
 0x4b2   :  { %v5663_v1 = vmax.f32 %v5646_v58, %v5647_v24  ;;  %v5664_v52 = vmax.f32 %v5647_v24, %v5648_v29 }
 0x4b4   :  { %v5702_v50 = vrot.slane %v5663_v1, 3  ;;  %v5703_v21 = vrot.slane %v5664_v52, 3 }
 0x4b6   :  { %v5704_v14 = vsel %vm4514_vm5, %v5702_v50, %v5703_v21 }
 0x4b7   :  { %v5720_v16 = vmax.f32 %v5663_v1, %v5704_v14 }
 0x4b9   :  { %5728 = vst.msk [vmem:[%s15438_s1 + $0x38] sm:$0xff] %vm8_vm0, %v5720_v16 }

</bundles_post_ra>
